<compile_context>
chip_gen: v7x
topology: tpu7x:2x2x1
jax: 0.10.0
libtpu: 0.0.40
codegen_flags: <defaults>
</compile_context>

<pallas_src>
import functools

import jax
import jax.numpy as jnp
from jax import lax
from jax.experimental import pallas as pl
from jax.experimental.pallas import tpu as pltpu

# ---------------------------------------------------------------------------
# FCN architecture constants (from the PyTorch module)
# ---------------------------------------------------------------------------
FCN_CHAN = [64, 128, 256, 128]
FCN_SPECS = [  # (kernel, stride, padding)
    (12, 6, 6),
    (8, 4, 4),
    (5, 2, 2),
    (3, 1, 1),
]

COMPUTE_DTYPE = jnp.bfloat16   # MXU operand dtype; accumulation stays f32
LANE = 128
SUBLANE = 8
NCLS_PAD = 128                 # classifier output padded to a full lane group
DEFAULT_BATCH_TILE = 16        # samples per grid step (rounded to sublanes)


def _round_up(x, m):
    return (x + m - 1) // m * m


def _cdiv(a, b):
    return (a + b - 1) // b


def _num_windows(t, patch_size, slide_window):
    hw = patch_size[0] * patch_size[1]
    need = hw - (t % hw)   # pads a FULL extra block when t % hw == 0 (as torch)
    return (t + need - int(slide_window[0])) // int(slide_window[1]) + 1


def compute_geometry(nc, hw, nw):
    """Static shape bookkeeping for the fused conv stack."""
    k0, s0, p0 = FCN_SPECS[0]
    wo0 = (nw + 2 * p0 - k0) // s0 + 1
    assert wo0 == 1 and p0 + nw <= k0, (
        "fused kernel requires the spatial width to collapse to 1 after conv0")
    h_out = [(hw + 2 * p0 - k0) // s0 + 1]           # conv0 output rows
    for (k, s, p) in FCN_SPECS[1:]:
        assert (1 + 2 * p - k) // s + 1 == 1         # width stays 1
        h_out.append((h_out[-1] + 2 * p - k) // s + 1)
    c_pad = [max(c, LANE) for c in FCN_CHAN]         # lane-padded channels
    h_pad = [_round_up(v, SUBLANE) for v in h_out]   # sublane-padded row counts
    buf_rows = []                                    # zero-padded input rows
    for l in range(1, 4):
        k, s, p = FCN_SPECS[l]
        rows = max((h_out[l] - 1) * s + k, p + h_out[l - 1])
        buf_rows.append(_round_up(rows, SUBLANE))
    k0_eff = nc * k0 * nw
    return {
        "h_out": h_out, "h_pad": h_pad, "c_pad": c_pad, "buf_rows": buf_rows,
        "k0_eff": k0_eff, "k0_pad": _round_up(k0_eff, LANE),
        "m0_pad": h_pad[0],
    }


# ---------------------------------------------------------------------------
# JAX-side glue: raw 1-D streams -> FCN input view -> conv0 im2col patches
# ---------------------------------------------------------------------------
def _slide_window_view(streams, *, nc, patch_size, slide_window):
    """(B, NH, nc*t) -> (B, NH, nc, h*w, nw).

    Replicates: rearrange '(c t)->1 c t', _pad_to_grid, unfold (slide window),
    torch .reshape(nw, c, h, w), rearrange 't c h w -> 1 c (h w) t'.
    """
    h, w = patch_size
    hw = h * w
    window, stride = int(slide_window[0]), int(slide_window[1])
    b, nh, ct = streams.shape
    t = ct // nc
    seq = streams.reshape(b, nh, nc, t)
    need = hw - (t % hw)
    seq = jnp.pad(seq, ((0, 0), (0, 0), (0, 0), (0, need)))
    nw = _num_windows(t, patch_size, slide_window)
    widx = jnp.arange(nw)[:, None] * stride + jnp.arange(window)[None, :]
    xw = seq[:, :, :, widx]                       # (B, NH, nc, nw, window)
    xw = xw.reshape(b, nh, nw, nc, h, w)          # torch row-major .reshape
    return jnp.transpose(xw, (0, 1, 3, 4, 5, 2)).reshape(b, nh, nc, hw, nw)


def _build_conv0_patches(streams, *, nc, patch_size, slide_window, geom,
                         b_tile, num_tiles):
    """Build lane-dense conv0 im2col patches, batch-tiled:
       -> (num_tiles, NH, b_tile*m0_pad, k0_pad) bf16."""
    xin = _slide_window_view(streams, nc=nc, patch_size=patch_size,
                             slide_window=slide_window)   # (B, NH, C, H, W)
    b, nh, cin, _, nw = xin.shape
    k0, s0, p0 = FCN_SPECS[0]
    ho = geom["h_out"][0]
    xpad = jnp.pad(xin, ((0, 0), (0, 0), (0, 0), (p0, p0), (0, 0)))
    ridx = (jnp.arange(ho)[:, None] * s0 + jnp.arange(k0)[None, :]).reshape(-1)
    g = jnp.take(xpad, ridx, axis=3).reshape(b, nh, cin, ho, k0, nw)
    patches = jnp.transpose(g, (0, 1, 3, 2, 4, 5)).reshape(b, nh, ho,
                                                           cin * k0 * nw)
    b_padded = num_tiles * b_tile
    patches = jnp.pad(patches, ((0, b_padded - b), (0, 0),
                                (0, geom["m0_pad"] - ho),
                                (0, geom["k0_pad"] - cin * k0 * nw)))
    patches = patches.reshape(num_tiles, b_tile, nh, geom["m0_pad"],
                              geom["k0_pad"])
    patches = jnp.transpose(patches, (0, 2, 1, 3, 4)).reshape(
        num_tiles, nh, b_tile * geom["m0_pad"], geom["k0_pad"])
    return patches.astype(COMPUTE_DTYPE)


# ---------------------------------------------------------------------------
# Parameter preparation (model-build time): dead-kw slicing, im2col weight
# layout (k*Cin_pad, Cout_pad), lane padding, head stacking, bf16 cast
# ---------------------------------------------------------------------------
def prepare_fused_params(raw, *, nc, nw, n_heads, geom):
    k0, _, p0 = FCN_SPECS[0]
    cp = geom["c_pad"]
    k0_pad = geom["k0_pad"]
    bmax = max(cp)

    w0s, wls, bps = [], [[], [], []], []
    for hidx in range(n_heads):
        hp = raw[f"head{hidx}"]
        # conv0: keep only the kw columns that ever see real data (exact:
        # the dropped taps multiply zero width-padding)
        w0 = hp["conv0_w"][:, :, :, p0:p0 + nw]               # (C0, nc, k0, nw)
        w0 = jnp.transpose(w0, (1, 2, 3, 0)).reshape(nc * k0 * nw, FCN_CHAN[0])
        w0 = jnp.pad(w0, ((0, k0_pad - nc * k0 * nw), (0, cp[0] - FCN_CHAN[0])))
        w0s.append(w0)
        cin, cin_pad = FCN_CHAN[0], cp[0]
        for l in range(1, 4):
            k, _, p = FCN_SPECS[l]
            # centre kw tap only (spatial width is 1 with symmetric pad p);
            # im2col layout: row = kh*Cin_pad + c, col = Cout
            wt = jnp.transpose(hp[f"conv{l}_w"][:, :, :, p], (2, 1, 0))
            wt = jnp.pad(wt, ((0, 0), (0, cin_pad - cin),
                              (0, cp[l] - FCN_CHAN[l])))
            wls[l - 1].append(wt.reshape(k * cin_pad, cp[l]))
            cin, cin_pad = FCN_CHAN[l], cp[l]
        bp = jnp.zeros((len(FCN_CHAN), bmax), jnp.float32)
        for l in range(4):
            bp = bp.at[l, :FCN_CHAN[l]].set(hp[f"conv{l}_b"])
        bps.append(bp)

    return {
        "w0": jnp.stack(w0s).astype(COMPUTE_DTYPE),
        "w1": jnp.stack(wls[0]).astype(COMPUTE_DTYPE),
        "w2": jnp.stack(wls[1]).astype(COMPUTE_DTYPE),
        "w3": jnp.stack(wls[2]).astype(COMPUTE_DTYPE),
        "b": jnp.stack(bps).astype(jnp.float32),       # (NH, 4, 256)
        "cls_w": raw["cls_w"].astype(COMPUTE_DTYPE),   # (model_dim, nclass)
        "cls_b": raw["cls_b"].astype(jnp.float32),     # (nclass,)
    }


# ---------------------------------------------------------------------------
# The fused Pallas kernel: one grid step == one tile of b_tile samples
# (both heads, all four convs, global pool, fusion, classifier)
# ---------------------------------------------------------------------------
def _fused_model_kernel(patches_ref, w0_ref, w1_ref, w2_ref, w3_ref, b_ref,
                        cls_w_ref, cls_b_ref, out_ref,
                        pad1, col1, pad2, col2, pad3, col3,
                        *, geom, n_heads, fusion, globalpool, b_tile):
    h = geom["h_out"]          # [43, 11, 6, 6]
    hp = geom["h_pad"]         # [48, 16, 8, 8]
    cp = geom["c_pad"]         # [128, 128, 256, 128]
    pads = [pad1, pad2, pad3]
    cols = [col1, col2, col3]
    w_refs = [w1_ref, w2_ref, w3_ref]

    # Zero ONLY the pad-row slices of the per-sample conv input buffers; the
    # data rows are fully overwritten below.  (Not gated on program_id==0:
    # with the batch axis "parallel", core 1 on v7x never runs step 0.)
    for l in range(1, 4):
        _, _, p = FCN_SPECS[l]
        pb = pads[l - 1]
        rows, chan = pb.shape[1], pb.shape[2]
        bot = p + h[l - 1]
        if p > 0:
            pb[:, 0:p, :] = jnp.zeros((b_tile, p, chan), jnp.float32)
        if bot < rows:
            pb[:, bot:rows, :] = jnp.zeros((b_tile, rows - bot, chan),
                                           jnp.float32)

    feats = []
    for head in range(n_heads):
        # ---- conv0: one batch-stacked MXU matmul on pre-built im2col patches
        acc = jnp.dot(patches_ref[0, head], w0_ref[head],
                      preferred_element_type=jnp.float32)
        act = jnp.maximum(acc + b_ref[head, 0:1, 0:cp[0]], 0.0)
        m_prev = geom["m0_pad"]

        # ---- conv1..conv3: vectorised im2col fill + ONE matmul per layer
        for l in range(1, 4):
            k, s, p = FCN_SPECS[l]
            cin, cout = cp[l - 1], cp[l]
            h_prev, h_out = h[l - 1], h[l]
            pb, cb = pads[l - 1], cols[l - 1]
            # scatter the valid rows of the previous activation into the
            # zero-padded per-sample buffer (single store for the whole tile;
            # pad-M garbage rows of `act` are dropped here)
            pb[:, p:p + h_prev, :] = (
                act.reshape(b_tile, m_prev, cin)[:, :h_prev, :])
            # im2col: one strided read + one store per kernel tap, all samples
            for j in range(k):
                src = (pb[:, j:j + h_out, :] if s == 1
                       else pb[:, pl.ds(j, h_out, stride=s), :])
                cb[:, 0:h_out, j * cin:(j + 1) * cin] = src
            lhs = cb[...].reshape(b_tile * hp[l], k * cin).astype(COMPUTE_DTYPE)
            acc = jnp.dot(lhs, w_refs[l - 1][head],
                          preferred_element_type=jnp.float32)
            act = jnp.maximum(acc + b_ref[head, l:l + 1, 0:cout], 0.0)
            m_prev = hp[l]

        # atten_layer is None in this config (identity);
        # AdaptiveMax/AvgPool2d(1) + Flatten(1): reduce the valid rows.
        pooled = act.reshape(b_tile, m_prev, cp[3])[:, :h[3], :]
        if globalpool == "maxpool":
            feats.append(jnp.max(pooled, axis=1))
        else:
            feats.append(jnp.mean(pooled, axis=1))

    # MIMS fusion followed by the classifier (Dropout == identity at inference)
    if n_heads == 2:
        feat = (feats[0] + feats[1]) if fusion == "sum" else jnp.concatenate(
            feats, axis=1)
    else:
        feat = feats[0]
    logits = jnp.dot(feat.astype(COMPUTE_DTYPE), cls_w_ref[...],
                     preferred_element_type=jnp.float32) + cls_b_ref[...]
    out_ref[...] = logits           # lane/sublane-dense (b_tile, 128) block


def _full_spec(arr):
    nd = arr.ndim
    return pl.BlockSpec(arr.shape, lambda g: (0,) * nd)


# ---------------------------------------------------------------------------
# Forward pass
# ---------------------------------------------------------------------------
@functools.partial(
    jax.jit, static_argnames=("nc", "patch_size", "slide_window", "globalpool",
                              "scale", "fusion", "batch_tile"))
def _forward_jit(streams, fused_params, *, nc, patch_size, slide_window,
                 globalpool, scale, fusion, batch_tile):
    n_heads = 2 if scale == "MIMS" else 1
    batch = streams.shape[0]
    hw = patch_size[0] * patch_size[1]
    t = streams.shape[-1] // nc
    nw = _num_windows(t, patch_size, slide_window)
    geom = compute_geometry(nc, hw, nw)
    assert fused_params["w0"].shape[0] == n_heads
    assert fused_params["w0"].shape[-2] == geom["k0_pad"]

    # batch tile: multiple of 8 rows so every matmul M and the output block
    # are sublane-dense; grid splits into >=2 steps on larger batches (v7x)
    b_tile = _round_up(min(batch_tile, _round_up(batch, SUBLANE)), SUBLANE)
    num_tiles = _cdiv(batch, b_tile)

    patches = _build_conv0_patches(streams, nc=nc, patch_size=patch_size,
                                   slide_window=slide_window, geom=geom,
                                   b_tile=b_tile, num_tiles=num_tiles)

    nclass = fused_params["cls_b"].shape[0]
    assert nclass <= NCLS_PAD
    cls_w = jnp.pad(fused_params["cls_w"],
                    ((0, 0), (0, NCLS_PAD - nclass))).astype(COMPUTE_DTYPE)
    cls_b = jnp.pad(fused_params["cls_b"],
                    (0, NCLS_PAD - nclass)).reshape(1, NCLS_PAD)

    kernel = functools.partial(_fused_model_kernel, geom=geom, n_heads=n_heads,
                               fusion=fusion, globalpool=globalpool,
                               b_tile=b_tile)
    cp = geom["c_pad"]
    out = pl.pallas_call(
        kernel,
        out_shape=jax.ShapeDtypeStruct((num_tiles * b_tile, NCLS_PAD),
                                       jnp.float32),
        grid=(num_tiles,),
        in_specs=[
            pl.BlockSpec((1, n_heads, b_tile * geom["m0_pad"], geom["k0_pad"]),
                         lambda g: (g, 0, 0, 0)),
            _full_spec(fused_params["w0"]), _full_spec(fused_params["w1"]),
            _full_spec(fused_params["w2"]), _full_spec(fused_params["w3"]),
            _full_spec(fused_params["b"]),
            _full_spec(cls_w), _full_spec(cls_b),
        ],
        out_specs=pl.BlockSpec((b_tile, NCLS_PAD), lambda g: (g, 0)),
        scratch_shapes=[
            pltpu.VMEM((b_tile, geom["buf_rows"][0], cp[0]), jnp.float32),
            pltpu.VMEM((b_tile, geom["h_pad"][1],
                        FCN_SPECS[1][0] * cp[0]), jnp.float32),
            pltpu.VMEM((b_tile, geom["buf_rows"][1], cp[1]), jnp.float32),
            pltpu.VMEM((b_tile, geom["h_pad"][2],
                        FCN_SPECS[2][0] * cp[1]), jnp.float32),
            pltpu.VMEM((b_tile, geom["buf_rows"][2], cp[2]), jnp.float32),
            pltpu.VMEM((b_tile, geom["h_pad"][3],
                        FCN_SPECS[3][0] * cp[2]), jnp.float32),
        ],
        compiler_params=pltpu.CompilerParams(
            dimension_semantics=("parallel",)),   # tiles shard across TCs
    )(patches,
      fused_params["w0"], fused_params["w1"], fused_params["w2"],
      fused_params["w3"], fused_params["b"], cls_w, cls_b)
    return out[:batch, :nclass]


def ablation_model_forward(x, fused_params, *, nc, patch_size, slide_window,
                           globalpool, scale, fusion,
                           batch_tile=DEFAULT_BATCH_TILE):
    """x: list of samples, each a tuple of 1-D sequences (one per scale)."""
    n_heads = 2 if scale == "MIMS" else 1
    streams = jnp.stack(
        [jnp.stack([jnp.asarray(sample[i], jnp.float32)
                    for i in range(n_heads)]) for sample in x])
    return _forward_jit(streams, fused_params, nc=nc,
                        patch_size=tuple(int(v) for v in patch_size),
                        slide_window=tuple(int(v) for v in slide_window),
                        globalpool=globalpool, scale=scale, fusion=fusion,
                        batch_tile=int(batch_tile))


# ---------------------------------------------------------------------------
# Plain-JAX reference (silent self-check; mirrors the kernel's bf16 rounding)
# ---------------------------------------------------------------------------
def _reference_forward(x, raw, *, nc, patch_size, slide_window, globalpool,
                       scale, fusion):
    n_heads = 2 if scale == "MIMS" else 1
    streams = jnp.stack(
        [jnp.stack([jnp.asarray(sample[i], jnp.float32)
                    for i in range(n_heads)]) for sample in x])
    xin = _slide_window_view(streams, nc=nc, patch_size=patch_size,
                             slide_window=slide_window)

    def rnd(a):
        return a.astype(COMPUTE_DTYPE).astype(jnp.float32)

    feats = []
    for hidx in range(n_heads):
        a = rnd(xin[:, hidx])
        hp = raw[f"head{hidx}"]
        for l, (k, s, p) in enumerate(FCN_SPECS):
            a = lax.conv_general_dilated(
                a, rnd(hp[f"conv{l}_w"]), window_strides=(s, s),
                padding=[(p, p), (p, p)],
                dimension_numbers=("NCHW", "OIHW", "NCHW"))
            a = jnp.maximum(a + hp[f"conv{l}_b"][None, :, None, None], 0.0)
            if l < len(FCN_SPECS) - 1:
                a = rnd(a)
        feats.append(jnp.max(a, axis=(2, 3)) if globalpool == "maxpool"
                     else jnp.mean(a, axis=(2, 3)))
    if n_heads == 2:
        feat = feats[0] + feats[1] if fusion == "sum" else jnp.concatenate(
            feats, axis=1)
    else:
        feat = feats[0]
    return rnd(feat) @ rnd(raw["cls_w"]) + raw["cls_b"]


# ---------------------------------------------------------------------------
# Deterministic parameter init (torch-layout raw parameters)
# ---------------------------------------------------------------------------
def init_head_params(key, nc):
    params = {}
    cin = nc
    for li, ((k, _, _), cout) in enumerate(zip(FCN_SPECS, FCN_CHAN)):
        key, kw_, kb_ = jax.random.split(key, 3)
        fan_in = cin * k * k
        params[f"conv{li}_w"] = (
            jax.random.normal(kw_, (cout, cin, k, k), jnp.float32)
            / jnp.sqrt(float(fan_in)))
        params[f"conv{li}_b"] = (
            jax.random.normal(kb_, (cout,), jnp.float32) * 0.01)
        cin = cout
    return params


if __name__ == "__main__":
    # Small configuration consistent with the module (MIMS scale, concat fusion)
    nc = 2
    nclass = 4
    patch_size = (16, 16)                       # h*w = 256
    slide_window = (patch_size[0] * patch_size[1],
                    patch_size[0] * patch_size[1] // 2)   # window=256, stride=128
    scale = "MIMS"
    fusion = "concat"
    globalpool = "maxpool"
    batch = 2
    t = 512                                     # per-channel sequence length

    key = jax.random.PRNGKey(0)
    k_h0, k_h1, k_cls, k_x = jax.random.split(key, 4)
    raw = {"head0": init_head_params(k_h0, nc),
           "head1": init_head_params(k_h1, nc)}
    model_dim = FCN_CHAN[-1] * (2 if (scale == "MIMS" and fusion == "concat")
                                else 1)
    kw_, kb_ = jax.random.split(k_cls)
    raw["cls_w"] = (jax.random.normal(kw_, (model_dim, nclass), jnp.float32)
                    / jnp.sqrt(float(model_dim)))
    raw["cls_b"] = jax.random.normal(kb_, (nclass,), jnp.float32) * 0.01

    # Fused / padded / bf16 parameter bundle (model-build time, done once)
    n_heads = 2 if scale == "MIMS" else 1
    nw = _num_windows(t, patch_size, slide_window)
    geom = compute_geometry(nc, patch_size[0] * patch_size[1], nw)
    fused_params = prepare_fused_params(raw, nc=nc, nw=nw, n_heads=n_heads,
                                        geom=geom)

    # Build the batch: each sample has two 1-D streams of length nc*t
    xs = []
    for _ in range(batch):
        k_x, k0, k1 = jax.random.split(k_x, 3)
        xs.append((jax.random.normal(k0, (nc * t,), jnp.float32),
                   jax.random.normal(k1, (nc * t,), jnp.float32)))

    logits = ablation_model_forward(
        xs, fused_params, nc=nc, patch_size=patch_size,
        slide_window=slide_window, globalpool=globalpool, scale=scale,
        fusion=fusion)
    logits = jax.block_until_ready(logits)
    assert logits.shape == (batch, nclass), logits.shape

    # Silent correctness check against a plain-JAX replica of the torch graph
    ref = _reference_forward(xs, raw, nc=nc, patch_size=patch_size,
                             slide_window=slide_window, globalpool=globalpool,
                             scale=scale, fusion=fusion)
    max_err = float(jnp.max(jnp.abs(logits - ref)))
    assert bool(jnp.allclose(logits, ref, rtol=1e-2, atol=1e-2)), (
        f"kernel/reference mismatch, max abs diff {max_err}")

    print("KERNEL_OK")
</pallas_src>

<mosaic_0001>
module attributes {stable_mosaic.version = 11 : i64} {
  func.func @_fused_model_kernel(%arg0: i32, %arg1: memref<1x2x384x128xbf16, #tpu.memory_space<vmem>>, %arg2: memref<2x128x128xbf16, #tpu.memory_space<vmem>>, %arg3: memref<2x1024x128xbf16, #tpu.memory_space<vmem>>, %arg4: memref<2x640x256xbf16, #tpu.memory_space<vmem>>, %arg5: memref<2x768x128xbf16, #tpu.memory_space<vmem>>, %arg6: memref<2x4x256xf32, #tpu.memory_space<vmem>>, %arg7: memref<256x128xbf16, #tpu.memory_space<vmem>>, %arg8: memref<1x128xf32, #tpu.memory_space<vmem>>, %arg9: memref<8x128xf32, #tpu.memory_space<vmem>>, %arg10: memref<8x48x128xf32, #tpu.memory_space<vmem>>, %arg11: memref<8x16x1024xf32, #tpu.memory_space<vmem>>, %arg12: memref<8x16x128xf32, #tpu.memory_space<vmem>>, %arg13: memref<8x8x640xf32, #tpu.memory_space<vmem>>, %arg14: memref<8x8x256xf32, #tpu.memory_space<vmem>>, %arg15: memref<8x8x768xf32, #tpu.memory_space<vmem>>) attributes {dimension_semantics = [#tpu.dimension_semantics<parallel>], iteration_bounds = array<i64: 1>, scalar_prefetch = 0 : i64, scratch_operands = 6 : i64, tpu.core_type = #tpu.core_type<tc>, window_params = [{transform_indices = @transform_0, window_bounds = array<i64: 1, 2, 384, 128>}, {pipeline_mode = #tpu.pipeline_mode<synchronous>, transform_indices = @transform_1, window_bounds = array<i64: 2, 128, 128>}, {pipeline_mode = #tpu.pipeline_mode<synchronous>, transform_indices = @transform_2, window_bounds = array<i64: 2, 1024, 128>}, {pipeline_mode = #tpu.pipeline_mode<synchronous>, transform_indices = @transform_3, window_bounds = array<i64: 2, 640, 256>}, {pipeline_mode = #tpu.pipeline_mode<synchronous>, transform_indices = @transform_4, window_bounds = array<i64: 2, 768, 128>}, {pipeline_mode = #tpu.pipeline_mode<synchronous>, transform_indices = @transform_5, window_bounds = array<i64: 2, 4, 256>}, {pipeline_mode = #tpu.pipeline_mode<synchronous>, transform_indices = @transform_6, window_bounds = array<i64: 256, 128>}, {pipeline_mode = #tpu.pipeline_mode<synchronous>, transform_indices = @transform_7, window_bounds = array<i64: 1, 128>}, {transform_indices = @transform_8, window_bounds = array<i64: 8, 128>}]} {
    %cst = arith.constant 0.000000e+00 : f32
    %0 = vector.broadcast %cst : f32 to vector<8x4x128xf32>
    %c0 = arith.constant 0 : index
    %c0_0 = arith.constant 0 : index
    %c0_1 = arith.constant 0 : index
    %1 = vector.load %arg10[%c0, %c0_0, %c0_1] : memref<8x48x128xf32, #tpu.memory_space<vmem>>, vector<8x4x128xf32>
    tpu.vector_store %arg10[%c0, %c0_0, %c0_1], %0 {strides = array<i32>} : memref<8x48x128xf32, #tpu.memory_space<vmem>>, vector<8x4x128xf32>,
    %cst_2 = arith.constant 0.000000e+00 : f32
    %2 = vector.broadcast %cst_2 : f32 to vector<8x1x128xf32>
    %c0_3 = arith.constant 0 : index
    %c47 = arith.constant 47 : index
    %c0_4 = arith.constant 0 : index
    %3 = vector.load %arg10[%c0_3, %c47, %c0_4] : memref<8x48x128xf32, #tpu.memory_space<vmem>>, vector<8x1x128xf32>
    tpu.vector_store %arg10[%c0_3, %c47, %c0_4], %2 {strides = array<i32>} : memref<8x48x128xf32, #tpu.memory_space<vmem>>, vector<8x1x128xf32>,
    %cst_5 = arith.constant 0.000000e+00 : f32
    %4 = vector.broadcast %cst_5 : f32 to vector<8x2x128xf32>
    %c0_6 = arith.constant 0 : index
    %c0_7 = arith.constant 0 : index
    %c0_8 = arith.constant 0 : index
    %5 = vector.load %arg12[%c0_6, %c0_7, %c0_8] : memref<8x16x128xf32, #tpu.memory_space<vmem>>, vector<8x2x128xf32>
    tpu.vector_store %arg12[%c0_6, %c0_7, %c0_8], %4 {strides = array<i32>} : memref<8x16x128xf32, #tpu.memory_space<vmem>>, vector<8x2x128xf32>,
    %cst_9 = arith.constant 0.000000e+00 : f32
    %6 = vector.broadcast %cst_9 : f32 to vector<8x3x128xf32>
    %c0_10 = arith.constant 0 : index
    %c13 = arith.constant 13 : index
    %c0_11 = arith.constant 0 : index
    %7 = vector.load %arg12[%c0_10, %c13, %c0_11] : memref<8x16x128xf32, #tpu.memory_space<vmem>>, vector<8x3x128xf32>
    tpu.vector_store %arg12[%c0_10, %c13, %c0_11], %6 {strides = array<i32>} : memref<8x16x128xf32, #tpu.memory_space<vmem>>, vector<8x3x128xf32>,
    %cst_12 = arith.constant 0.000000e+00 : f32
    %8 = vector.broadcast %cst_12 : f32 to vector<8x1x256xf32>
    %c0_13 = arith.constant 0 : index
    %c0_14 = arith.constant 0 : index
    %c0_15 = arith.constant 0 : index
    %9 = vector.load %arg14[%c0_13, %c0_14, %c0_15] : memref<8x8x256xf32, #tpu.memory_space<vmem>>, vector<8x1x256xf32>
    tpu.vector_store %arg14[%c0_13, %c0_14, %c0_15], %8 {strides = array<i32>} : memref<8x8x256xf32, #tpu.memory_space<vmem>>, vector<8x1x256xf32>,
    %cst_16 = arith.constant 0.000000e+00 : f32
    %10 = vector.broadcast %cst_16 : f32 to vector<8x1x256xf32>
    %c0_17 = arith.constant 0 : index
    %c7 = arith.constant 7 : index
    %c0_18 = arith.constant 0 : index
    %11 = vector.load %arg14[%c0_17, %c7, %c0_18] : memref<8x8x256xf32, #tpu.memory_space<vmem>>, vector<8x1x256xf32>
    tpu.vector_store %arg14[%c0_17, %c7, %c0_18], %10 {strides = array<i32>} : memref<8x8x256xf32, #tpu.memory_space<vmem>>, vector<8x1x256xf32>,
    %c0_19 = arith.constant 0 : index
    %c0_20 = arith.constant 0 : index
    %c0_21 = arith.constant 0 : index
    %c0_22 = arith.constant 0 : index
    %12 = vector.load %arg1[%c0_19, %c0_20, %c0_21, %c0_22] : memref<1x2x384x128xbf16, #tpu.memory_space<vmem>>, vector<1x1x384x128xbf16>
    %13 = vector.shape_cast %12 : vector<1x1x384x128xbf16> to vector<384x128xbf16>
    %c0_23 = arith.constant 0 : index
    %c0_24 = arith.constant 0 : index
    %c0_25 = arith.constant 0 : index
    %14 = vector.load %arg2[%c0_23, %c0_24, %c0_25] : memref<2x128x128xbf16, #tpu.memory_space<vmem>>, vector<1x128x128xbf16>
    %15 = vector.shape_cast %14 : vector<1x128x128xbf16> to vector<128x128xbf16>
    %cst_26 = arith.constant dense<0.000000e+00> : vector<384x128xf32>
    %16 = tpu.matmul %13, %15, %cst_26 {dimension_numbers = #tpu.dot_dimension_numbers<[1], [0], [0], [1], [0, 0, 1, 1], [], []>} : vector<384x128xbf16>, vector<128x128xbf16>, vector<384x128xf32> -> vector<384x128xf32>
    %c0_27 = arith.constant 0 : index
    %c0_28 = arith.constant 0 : index
    %c0_29 = arith.constant 0 : index
    %17 = vector.load %arg6[%c0_27, %c0_28, %c0_29] : memref<2x4x256xf32, #tpu.memory_space<vmem>>, vector<1x1x128xf32>
    %18 = vector.shape_cast %17 : vector<1x1x128xf32> to vector<1x128xf32>
    %19 = vector.broadcast %18 : vector<1x128xf32> to vector<384x128xf32>
    %20 = arith.addf %16, %19 : vector<384x128xf32>
    %cst_30 = arith.constant 0.000000e+00 : f32
    %21 = vector.broadcast %cst_30 : f32 to vector<384x128xf32>
    %22 = arith.maximumf %20, %21 : vector<384x128xf32>
    %23 = vector.shape_cast %22 : vector<384x128xf32> to vector<8x48x128xf32>
    %24 = vector.extract_strided_slice %23 {offsets = [0, 0, 0], sizes = [8, 43, 128], strides = [1, 1, 1]} : vector<8x48x128xf32> to vector<8x43x128xf32>
    %c0_31 = arith.constant 0 : index
    %c4 = arith.constant 4 : index
    %c0_32 = arith.constant 0 : index
    %25 = vector.load %arg10[%c0_31, %c4, %c0_32] : memref<8x48x128xf32, #tpu.memory_space<vmem>>, vector<8x43x128xf32>
    tpu.vector_store %arg10[%c0_31, %c4, %c0_32], %24 {strides = array<i32>} : memref<8x48x128xf32, #tpu.memory_space<vmem>>, vector<8x43x128xf32>,
    %c0_33 = arith.constant 0 : index
    %c0_34 = arith.constant 0 : index
    %c0_35 = arith.constant 0 : index
    %26 = tpu.strided_load %arg10[%c0_33, %c0_34, %c0_35] {strides = array<i32: 1, 4, 1>} : memref<8x48x128xf32, #tpu.memory_space<vmem>>, vector<8x11x128xf32>
    %c0_36 = arith.constant 0 : index
    %c0_37 = arith.constant 0 : index
    %c0_38 = arith.constant 0 : index
    %27 = vector.load %arg11[%c0_36, %c0_37, %c0_38] : memref<8x16x1024xf32, #tpu.memory_space<vmem>>, vector<8x11x128xf32>
    tpu.vector_store %arg11[%c0_36, %c0_37, %c0_38], %26 {strides = array<i32>} : memref<8x16x1024xf32, #tpu.memory_space<vmem>>, vector<8x11x128xf32>,
    %c0_39 = arith.constant 0 : index
    %c1 = arith.constant 1 : index
    %c0_40 = arith.constant 0 : index
    %28 = tpu.strided_load %arg10[%c0_39, %c1, %c0_40] {strides = array<i32: 1, 4, 1>} : memref<8x48x128xf32, #tpu.memory_space<vmem>>, vector<8x11x128xf32>
    %c0_41 = arith.constant 0 : index
    %c0_42 = arith.constant 0 : index
    %c128 = arith.constant 128 : index
    %29 = vector.load %arg11[%c0_41, %c0_42, %c128] : memref<8x16x1024xf32, #tpu.memory_space<vmem>>, vector<8x11x128xf32>
    tpu.vector_store %arg11[%c0_41, %c0_42, %c128], %28 {strides = array<i32>} : memref<8x16x1024xf32, #tpu.memory_space<vmem>>, vector<8x11x128xf32>,
    %c0_43 = arith.constant 0 : index
    %c2 = arith.constant 2 : index
    %c0_44 = arith.constant 0 : index
    %30 = tpu.strided_load %arg10[%c0_43, %c2, %c0_44] {strides = array<i32: 1, 4, 1>} : memref<8x48x128xf32, #tpu.memory_space<vmem>>, vector<8x11x128xf32>
    %c0_45 = arith.constant 0 : index
    %c0_46 = arith.constant 0 : index
    %c256 = arith.constant 256 : index
    %31 = vector.load %arg11[%c0_45, %c0_46, %c256] : memref<8x16x1024xf32, #tpu.memory_space<vmem>>, vector<8x11x128xf32>
    tpu.vector_store %arg11[%c0_45, %c0_46, %c256], %30 {strides = array<i32>} : memref<8x16x1024xf32, #tpu.memory_space<vmem>>, vector<8x11x128xf32>,
    %c0_47 = arith.constant 0 : index
    %c3 = arith.constant 3 : index
    %c0_48 = arith.constant 0 : index
    %32 = tpu.strided_load %arg10[%c0_47, %c3, %c0_48] {strides = array<i32: 1, 4, 1>} : memref<8x48x128xf32, #tpu.memory_space<vmem>>, vector<8x11x128xf32>
    %c0_49 = arith.constant 0 : index
    %c0_50 = arith.constant 0 : index
    %c384 = arith.constant 384 : index
    %33 = vector.load %arg11[%c0_49, %c0_50, %c384] : memref<8x16x1024xf32, #tpu.memory_space<vmem>>, vector<8x11x128xf32>
    tpu.vector_store %arg11[%c0_49, %c0_50, %c384], %32 {strides = array<i32>} : memref<8x16x1024xf32, #tpu.memory_space<vmem>>, vector<8x11x128xf32>,
    %c0_51 = arith.constant 0 : index
    %c4_52 = arith.constant 4 : index
    %c0_53 = arith.constant 0 : index
    %34 = tpu.strided_load %arg10[%c0_51, %c4_52, %c0_53] {strides = array<i32: 1, 4, 1>} : memref<8x48x128xf32, #tpu.memory_space<vmem>>, vector<8x11x128xf32>
    %c0_54 = arith.constant 0 : index
    %c0_55 = arith.constant 0 : index
    %c512 = arith.constant 512 : index
    %35 = vector.load %arg11[%c0_54, %c0_55, %c512] : memref<8x16x1024xf32, #tpu.memory_space<vmem>>, vector<8x11x128xf32>
    tpu.vector_store %arg11[%c0_54, %c0_55, %c512], %34 {strides = array<i32>} : memref<8x16x1024xf32, #tpu.memory_space<vmem>>, vector<8x11x128xf32>,
    %c0_56 = arith.constant 0 : index
    %c5 = arith.constant 5 : index
    %c0_57 = arith.constant 0 : index
    %36 = tpu.strided_load %arg10[%c0_56, %c5, %c0_57] {strides = array<i32: 1, 4, 1>} : memref<8x48x128xf32, #tpu.memory_space<vmem>>, vector<8x11x128xf32>
    %c0_58 = arith.constant 0 : index
    %c0_59 = arith.constant 0 : index
    %c640 = arith.constant 640 : index
    %37 = vector.load %arg11[%c0_58, %c0_59, %c640] : memref<8x16x1024xf32, #tpu.memory_space<vmem>>, vector<8x11x128xf32>
    tpu.vector_store %arg11[%c0_58, %c0_59, %c640], %36 {strides = array<i32>} : memref<8x16x1024xf32, #tpu.memory_space<vmem>>, vector<8x11x128xf32>,
    %c0_60 = arith.constant 0 : index
    %c6 = arith.constant 6 : index
    %c0_61 = arith.constant 0 : index
    %38 = tpu.strided_load %arg10[%c0_60, %c6, %c0_61] {strides = array<i32: 1, 4, 1>} : memref<8x48x128xf32, #tpu.memory_space<vmem>>, vector<8x11x128xf32>
    %c0_62 = arith.constant 0 : index
    %c0_63 = arith.constant 0 : index
    %c768 = arith.constant 768 : index
    %39 = vector.load %arg11[%c0_62, %c0_63, %c768] : memref<8x16x1024xf32, #tpu.memory_space<vmem>>, vector<8x11x128xf32>
    tpu.vector_store %arg11[%c0_62, %c0_63, %c768], %38 {strides = array<i32>} : memref<8x16x1024xf32, #tpu.memory_space<vmem>>, vector<8x11x128xf32>,
    %c0_64 = arith.constant 0 : index
    %c7_65 = arith.constant 7 : index
    %c0_66 = arith.constant 0 : index
    %40 = tpu.strided_load %arg10[%c0_64, %c7_65, %c0_66] {strides = array<i32: 1, 4, 1>} : memref<8x48x128xf32, #tpu.memory_space<vmem>>, vector<8x11x128xf32>
    %c0_67 = arith.constant 0 : index
    %c0_68 = arith.constant 0 : index
    %c896 = arith.constant 896 : index
    %41 = vector.load %arg11[%c0_67, %c0_68, %c896] : memref<8x16x1024xf32, #tpu.memory_space<vmem>>, vector<8x11x128xf32>
    tpu.vector_store %arg11[%c0_67, %c0_68, %c896], %40 {strides = array<i32>} : memref<8x16x1024xf32, #tpu.memory_space<vmem>>, vector<8x11x128xf32>,
    %c0_69 = arith.constant 0 : index
    %c0_70 = arith.constant 0 : index
    %c0_71 = arith.constant 0 : index
    %42 = vector.load %arg11[%c0_69, %c0_70, %c0_71] : memref<8x16x1024xf32, #tpu.memory_space<vmem>>, vector<8x16x1024xf32>
    %43 = vector.shape_cast %42 : vector<8x16x1024xf32> to vector<128x1024xf32>
    %44 = arith.truncf %43 : vector<128x1024xf32> to vector<128x1024xbf16>
    %c0_72 = arith.constant 0 : index
    %c0_73 = arith.constant 0 : index
    %c0_74 = arith.constant 0 : index
    %45 = vector.load %arg3[%c0_72, %c0_73, %c0_74] : memref<2x1024x128xbf16, #tpu.memory_space<vmem>>, vector<1x1024x128xbf16>
    %46 = vector.shape_cast %45 : vector<1x1024x128xbf16> to vector<1024x128xbf16>
    %cst_75 = arith.constant dense<0.000000e+00> : vector<128x128xf32>
    %47 = tpu.matmul %44, %46, %cst_75 {dimension_numbers = #tpu.dot_dimension_numbers<[1], [0], [0], [1], [0, 0, 1, 1], [], []>} : vector<128x1024xbf16>, vector<1024x128xbf16>, vector<128x128xf32> -> vector<128x128xf32>
    %c0_76 = arith.constant 0 : index
    %c1_77 = arith.constant 1 : index
    %c0_78 = arith.constant 0 : index
    %48 = vector.load %arg6[%c0_76, %c1_77, %c0_78] : memref<2x4x256xf32, #tpu.memory_space<vmem>>, vector<1x1x128xf32>
    %49 = vector.shape_cast %48 : vector<1x1x128xf32> to vector<1x128xf32>
    %50 = vector.broadcast %49 : vector<1x128xf32> to vector<128x128xf32>
    %51 = arith.addf %47, %50 : vector<128x128xf32>
    %cst_79 = arith.constant 0.000000e+00 : f32
    %52 = vector.broadcast %cst_79 : f32 to vector<128x128xf32>
    %53 = arith.maximumf %51, %52 : vector<128x128xf32>
    %54 = vector.shape_cast %53 : vector<128x128xf32> to vector<8x16x128xf32>
    %55 = vector.extract_strided_slice %54 {offsets = [0, 0, 0], sizes = [8, 11, 128], strides = [1, 1, 1]} : vector<8x16x128xf32> to vector<8x11x128xf32>
    %c0_80 = arith.constant 0 : index
    %c2_81 = arith.constant 2 : index
    %c0_82 = arith.constant 0 : index
    %56 = vector.load %arg12[%c0_80, %c2_81, %c0_82] : memref<8x16x128xf32, #tpu.memory_space<vmem>>, vector<8x11x128xf32>
    tpu.vector_store %arg12[%c0_80, %c2_81, %c0_82], %55 {strides = array<i32>} : memref<8x16x128xf32, #tpu.memory_space<vmem>>, vector<8x11x128xf32>,
    %c0_83 = arith.constant 0 : index
    %c0_84 = arith.constant 0 : index
    %c0_85 = arith.constant 0 : index
    %57 = tpu.strided_load %arg12[%c0_83, %c0_84, %c0_85] {strides = array<i32: 1, 2, 1>} : memref<8x16x128xf32, #tpu.memory_space<vmem>>, vector<8x6x128xf32>
    %c0_86 = arith.constant 0 : index
    %c0_87 = arith.constant 0 : index
    %c0_88 = arith.constant 0 : index
    %58 = vector.load %arg13[%c0_86, %c0_87, %c0_88] : memref<8x8x640xf32, #tpu.memory_space<vmem>>, vector<8x6x128xf32>
    tpu.vector_store %arg13[%c0_86, %c0_87, %c0_88], %57 {strides = array<i32>} : memref<8x8x640xf32, #tpu.memory_space<vmem>>, vector<8x6x128xf32>,
    %c0_89 = arith.constant 0 : index
    %c1_90 = arith.constant 1 : index
    %c0_91 = arith.constant 0 : index
    %59 = tpu.strided_load %arg12[%c0_89, %c1_90, %c0_91] {strides = array<i32: 1, 2, 1>} : memref<8x16x128xf32, #tpu.memory_space<vmem>>, vector<8x6x128xf32>
    %c0_92 = arith.constant 0 : index
    %c0_93 = arith.constant 0 : index
    %c128_94 = arith.constant 128 : index
    %60 = vector.load %arg13[%c0_92, %c0_93, %c128_94] : memref<8x8x640xf32, #tpu.memory_space<vmem>>, vector<8x6x128xf32>
    tpu.vector_store %arg13[%c0_92, %c0_93, %c128_94], %59 {strides = array<i32>} : memref<8x8x640xf32, #tpu.memory_space<vmem>>, vector<8x6x128xf32>,
    %c0_95 = arith.constant 0 : index
    %c2_96 = arith.constant 2 : index
    %c0_97 = arith.constant 0 : index
    %61 = tpu.strided_load %arg12[%c0_95, %c2_96, %c0_97] {strides = array<i32: 1, 2, 1>} : memref<8x16x128xf32, #tpu.memory_space<vmem>>, vector<8x6x128xf32>
    %c0_98 = arith.constant 0 : index
    %c0_99 = arith.constant 0 : index
    %c256_100 = arith.constant 256 : index
    %62 = vector.load %arg13[%c0_98, %c0_99, %c256_100] : memref<8x8x640xf32, #tpu.memory_space<vmem>>, vector<8x6x128xf32>
    tpu.vector_store %arg13[%c0_98, %c0_99, %c256_100], %61 {strides = array<i32>} : memref<8x8x640xf32, #tpu.memory_space<vmem>>, vector<8x6x128xf32>,
    %c0_101 = arith.constant 0 : index
    %c3_102 = arith.constant 3 : index
    %c0_103 = arith.constant 0 : index
    %63 = tpu.strided_load %arg12[%c0_101, %c3_102, %c0_103] {strides = array<i32: 1, 2, 1>} : memref<8x16x128xf32, #tpu.memory_space<vmem>>, vector<8x6x128xf32>
    %c0_104 = arith.constant 0 : index
    %c0_105 = arith.constant 0 : index
    %c384_106 = arith.constant 384 : index
    %64 = vector.load %arg13[%c0_104, %c0_105, %c384_106] : memref<8x8x640xf32, #tpu.memory_space<vmem>>, vector<8x6x128xf32>
    tpu.vector_store %arg13[%c0_104, %c0_105, %c384_106], %63 {strides = array<i32>} : memref<8x8x640xf32, #tpu.memory_space<vmem>>, vector<8x6x128xf32>,
    %c0_107 = arith.constant 0 : index
    %c4_108 = arith.constant 4 : index
    %c0_109 = arith.constant 0 : index
    %65 = tpu.strided_load %arg12[%c0_107, %c4_108, %c0_109] {strides = array<i32: 1, 2, 1>} : memref<8x16x128xf32, #tpu.memory_space<vmem>>, vector<8x6x128xf32>
    %c0_110 = arith.constant 0 : index
    %c0_111 = arith.constant 0 : index
    %c512_112 = arith.constant 512 : index
    %66 = vector.load %arg13[%c0_110, %c0_111, %c512_112] : memref<8x8x640xf32, #tpu.memory_space<vmem>>, vector<8x6x128xf32>
    tpu.vector_store %arg13[%c0_110, %c0_111, %c512_112], %65 {strides = array<i32>} : memref<8x8x640xf32, #tpu.memory_space<vmem>>, vector<8x6x128xf32>,
    %c0_113 = arith.constant 0 : index
    %c0_114 = arith.constant 0 : index
    %c0_115 = arith.constant 0 : index
    %67 = vector.load %arg13[%c0_113, %c0_114, %c0_115] : memref<8x8x640xf32, #tpu.memory_space<vmem>>, vector<8x8x640xf32>
    %68 = vector.shape_cast %67 : vector<8x8x640xf32> to vector<64x640xf32>
    %69 = arith.truncf %68 : vector<64x640xf32> to vector<64x640xbf16>
    %c0_116 = arith.constant 0 : index
    %c0_117 = arith.constant 0 : index
    %c0_118 = arith.constant 0 : index
    %70 = vector.load %arg4[%c0_116, %c0_117, %c0_118] : memref<2x640x256xbf16, #tpu.memory_space<vmem>>, vector<1x640x256xbf16>
    %71 = vector.shape_cast %70 : vector<1x640x256xbf16> to vector<640x256xbf16>
    %cst_119 = arith.constant dense<0.000000e+00> : vector<64x256xf32>
    %72 = tpu.matmul %69, %71, %cst_119 {dimension_numbers = #tpu.dot_dimension_numbers<[1], [0], [0], [1], [0, 0, 1, 1], [], []>} : vector<64x640xbf16>, vector<640x256xbf16>, vector<64x256xf32> -> vector<64x256xf32>
    %c0_120 = arith.constant 0 : index
    %c2_121 = arith.constant 2 : index
    %c0_122 = arith.constant 0 : index
    %73 = vector.load %arg6[%c0_120, %c2_121, %c0_122] : memref<2x4x256xf32, #tpu.memory_space<vmem>>, vector<1x1x256xf32>
    %74 = vector.shape_cast %73 : vector<1x1x256xf32> to vector<1x256xf32>
    %75 = vector.broadcast %74 : vector<1x256xf32> to vector<64x256xf32>
    %76 = arith.addf %72, %75 : vector<64x256xf32>
    %cst_123 = arith.constant 0.000000e+00 : f32
    %77 = vector.broadcast %cst_123 : f32 to vector<64x256xf32>
    %78 = arith.maximumf %76, %77 : vector<64x256xf32>
    %79 = vector.shape_cast %78 : vector<64x256xf32> to vector<8x8x256xf32>
    %80 = vector.extract_strided_slice %79 {offsets = [0, 0, 0], sizes = [8, 6, 256], strides = [1, 1, 1]} : vector<8x8x256xf32> to vector<8x6x256xf32>
    %c0_124 = arith.constant 0 : index
    %c1_125 = arith.constant 1 : index
    %c0_126 = arith.constant 0 : index
    %81 = vector.load %arg14[%c0_124, %c1_125, %c0_126] : memref<8x8x256xf32, #tpu.memory_space<vmem>>, vector<8x6x256xf32>
    tpu.vector_store %arg14[%c0_124, %c1_125, %c0_126], %80 {strides = array<i32>} : memref<8x8x256xf32, #tpu.memory_space<vmem>>, vector<8x6x256xf32>,
    %c0_127 = arith.constant 0 : index
    %c0_128 = arith.constant 0 : index
    %c0_129 = arith.constant 0 : index
    %82 = vector.load %arg14[%c0_127, %c0_128, %c0_129] : memref<8x8x256xf32, #tpu.memory_space<vmem>>, vector<8x6x256xf32>
    %c0_130 = arith.constant 0 : index
    %c0_131 = arith.constant 0 : index
    %c0_132 = arith.constant 0 : index
    %83 = vector.load %arg15[%c0_130, %c0_131, %c0_132] : memref<8x8x768xf32, #tpu.memory_space<vmem>>, vector<8x6x256xf32>
    tpu.vector_store %arg15[%c0_130, %c0_131, %c0_132], %82 {strides = array<i32>} : memref<8x8x768xf32, #tpu.memory_space<vmem>>, vector<8x6x256xf32>,
    %c0_133 = arith.constant 0 : index
    %c1_134 = arith.constant 1 : index
    %c0_135 = arith.constant 0 : index
    %84 = vector.load %arg14[%c0_133, %c1_134, %c0_135] : memref<8x8x256xf32, #tpu.memory_space<vmem>>, vector<8x6x256xf32>
    %c0_136 = arith.constant 0 : index
    %c0_137 = arith.constant 0 : index
    %c256_138 = arith.constant 256 : index
    %85 = vector.load %arg15[%c0_136, %c0_137, %c256_138] : memref<8x8x768xf32, #tpu.memory_space<vmem>>, vector<8x6x256xf32>
    tpu.vector_store %arg15[%c0_136, %c0_137, %c256_138], %84 {strides = array<i32>} : memref<8x8x768xf32, #tpu.memory_space<vmem>>, vector<8x6x256xf32>,
    %c0_139 = arith.constant 0 : index
    %c2_140 = arith.constant 2 : index
    %c0_141 = arith.constant 0 : index
    %86 = vector.load %arg14[%c0_139, %c2_140, %c0_141] : memref<8x8x256xf32, #tpu.memory_space<vmem>>, vector<8x6x256xf32>
    %c0_142 = arith.constant 0 : index
    %c0_143 = arith.constant 0 : index
    %c512_144 = arith.constant 512 : index
    %87 = vector.load %arg15[%c0_142, %c0_143, %c512_144] : memref<8x8x768xf32, #tpu.memory_space<vmem>>, vector<8x6x256xf32>
    tpu.vector_store %arg15[%c0_142, %c0_143, %c512_144], %86 {strides = array<i32>} : memref<8x8x768xf32, #tpu.memory_space<vmem>>, vector<8x6x256xf32>,
    %c0_145 = arith.constant 0 : index
    %c0_146 = arith.constant 0 : index
    %c0_147 = arith.constant 0 : index
    %88 = vector.load %arg15[%c0_145, %c0_146, %c0_147] : memref<8x8x768xf32, #tpu.memory_space<vmem>>, vector<8x8x768xf32>
    %89 = vector.shape_cast %88 : vector<8x8x768xf32> to vector<64x768xf32>
    %90 = arith.truncf %89 : vector<64x768xf32> to vector<64x768xbf16>
    %c0_148 = arith.constant 0 : index
    %c0_149 = arith.constant 0 : index
    %c0_150 = arith.constant 0 : index
    %91 = vector.load %arg5[%c0_148, %c0_149, %c0_150] : memref<2x768x128xbf16, #tpu.memory_space<vmem>>, vector<1x768x128xbf16>
    %92 = vector.shape_cast %91 : vector<1x768x128xbf16> to vector<768x128xbf16>
    %cst_151 = arith.constant dense<0.000000e+00> : vector<64x128xf32>
    %93 = tpu.matmul %90, %92, %cst_151 {dimension_numbers = #tpu.dot_dimension_numbers<[1], [0], [0], [1], [0, 0, 1, 1], [], []>} : vector<64x768xbf16>, vector<768x128xbf16>, vector<64x128xf32> -> vector<64x128xf32>
    %c0_152 = arith.constant 0 : index
    %c3_153 = arith.constant 3 : index
    %c0_154 = arith.constant 0 : index
    %94 = vector.load %arg6[%c0_152, %c3_153, %c0_154] : memref<2x4x256xf32, #tpu.memory_space<vmem>>, vector<1x1x128xf32>
    %95 = vector.shape_cast %94 : vector<1x1x128xf32> to vector<1x128xf32>
    %96 = vector.broadcast %95 : vector<1x128xf32> to vector<64x128xf32>
    %97 = arith.addf %93, %96 : vector<64x128xf32>
    %cst_155 = arith.constant 0.000000e+00 : f32
    %98 = vector.broadcast %cst_155 : f32 to vector<64x128xf32>
    %99 = arith.maximumf %97, %98 : vector<64x128xf32>
    %100 = vector.shape_cast %99 : vector<64x128xf32> to vector<8x8x128xf32>
    %101 = vector.extract_strided_slice %100 {offsets = [0, 0, 0], sizes = [8, 6, 128], strides = [1, 1, 1]} : vector<8x8x128xf32> to vector<8x6x128xf32>
    %cst_156 = arith.constant dense<0xFF800000> : vector<8x128xf32>
    %102 = vector.multi_reduction <maximumf>, %101, %cst_156 [1] : vector<8x6x128xf32> to vector<8x128xf32>
    %c0_157 = arith.constant 0 : index
    %c1_158 = arith.constant 1 : index
    %c0_159 = arith.constant 0 : index
    %c0_160 = arith.constant 0 : index
    %103 = vector.load %arg1[%c0_157, %c1_158, %c0_159, %c0_160] : memref<1x2x384x128xbf16, #tpu.memory_space<vmem>>, vector<1x1x384x128xbf16>
    %104 = vector.shape_cast %103 : vector<1x1x384x128xbf16> to vector<384x128xbf16>
    %c1_161 = arith.constant 1 : index
    %c0_162 = arith.constant 0 : index
    %c0_163 = arith.constant 0 : index
    %105 = vector.load %arg2[%c1_161, %c0_162, %c0_163] : memref<2x128x128xbf16, #tpu.memory_space<vmem>>, vector<1x128x128xbf16>
    %106 = vector.shape_cast %105 : vector<1x128x128xbf16> to vector<128x128xbf16>
    %cst_164 = arith.constant dense<0.000000e+00> : vector<384x128xf32>
    %107 = tpu.matmul %104, %106, %cst_164 {dimension_numbers = #tpu.dot_dimension_numbers<[1], [0], [0], [1], [0, 0, 1, 1], [], []>} : vector<384x128xbf16>, vector<128x128xbf16>, vector<384x128xf32> -> vector<384x128xf32>
    %c1_165 = arith.constant 1 : index
    %c0_166 = arith.constant 0 : index
    %c0_167 = arith.constant 0 : index
    %108 = vector.load %arg6[%c1_165, %c0_166, %c0_167] : memref<2x4x256xf32, #tpu.memory_space<vmem>>, vector<1x1x128xf32>
    %109 = vector.shape_cast %108 : vector<1x1x128xf32> to vector<1x128xf32>
    %110 = vector.broadcast %109 : vector<1x128xf32> to vector<384x128xf32>
    %111 = arith.addf %107, %110 : vector<384x128xf32>
    %cst_168 = arith.constant 0.000000e+00 : f32
    %112 = vector.broadcast %cst_168 : f32 to vector<384x128xf32>
    %113 = arith.maximumf %111, %112 : vector<384x128xf32>
    %114 = vector.shape_cast %113 : vector<384x128xf32> to vector<8x48x128xf32>
    %115 = vector.extract_strided_slice %114 {offsets = [0, 0, 0], sizes = [8, 43, 128], strides = [1, 1, 1]} : vector<8x48x128xf32> to vector<8x43x128xf32>
    %c0_169 = arith.constant 0 : index
    %c4_170 = arith.constant 4 : index
    %c0_171 = arith.constant 0 : index
    %116 = vector.load %arg10[%c0_169, %c4_170, %c0_171] : memref<8x48x128xf32, #tpu.memory_space<vmem>>, vector<8x43x128xf32>
    tpu.vector_store %arg10[%c0_169, %c4_170, %c0_171], %115 {strides = array<i32>} : memref<8x48x128xf32, #tpu.memory_space<vmem>>, vector<8x43x128xf32>,
    %c0_172 = arith.constant 0 : index
    %c0_173 = arith.constant 0 : index
    %c0_174 = arith.constant 0 : index
    %117 = tpu.strided_load %arg10[%c0_172, %c0_173, %c0_174] {strides = array<i32: 1, 4, 1>} : memref<8x48x128xf32, #tpu.memory_space<vmem>>, vector<8x11x128xf32>
    %c0_175 = arith.constant 0 : index
    %c0_176 = arith.constant 0 : index
    %c0_177 = arith.constant 0 : index
    %118 = vector.load %arg11[%c0_175, %c0_176, %c0_177] : memref<8x16x1024xf32, #tpu.memory_space<vmem>>, vector<8x11x128xf32>
    tpu.vector_store %arg11[%c0_175, %c0_176, %c0_177], %117 {strides = array<i32>} : memref<8x16x1024xf32, #tpu.memory_space<vmem>>, vector<8x11x128xf32>,
    %c0_178 = arith.constant 0 : index
    %c1_179 = arith.constant 1 : index
    %c0_180 = arith.constant 0 : index
    %119 = tpu.strided_load %arg10[%c0_178, %c1_179, %c0_180] {strides = array<i32: 1, 4, 1>} : memref<8x48x128xf32, #tpu.memory_space<vmem>>, vector<8x11x128xf32>
    %c0_181 = arith.constant 0 : index
    %c0_182 = arith.constant 0 : index
    %c128_183 = arith.constant 128 : index
    %120 = vector.load %arg11[%c0_181, %c0_182, %c128_183] : memref<8x16x1024xf32, #tpu.memory_space<vmem>>, vector<8x11x128xf32>
    tpu.vector_store %arg11[%c0_181, %c0_182, %c128_183], %119 {strides = array<i32>} : memref<8x16x1024xf32, #tpu.memory_space<vmem>>, vector<8x11x128xf32>,
    %c0_184 = arith.constant 0 : index
    %c2_185 = arith.constant 2 : index
    %c0_186 = arith.constant 0 : index
    %121 = tpu.strided_load %arg10[%c0_184, %c2_185, %c0_186] {strides = array<i32: 1, 4, 1>} : memref<8x48x128xf32, #tpu.memory_space<vmem>>, vector<8x11x128xf32>
    %c0_187 = arith.constant 0 : index
    %c0_188 = arith.constant 0 : index
    %c256_189 = arith.constant 256 : index
    %122 = vector.load %arg11[%c0_187, %c0_188, %c256_189] : memref<8x16x1024xf32, #tpu.memory_space<vmem>>, vector<8x11x128xf32>
    tpu.vector_store %arg11[%c0_187, %c0_188, %c256_189], %121 {strides = array<i32>} : memref<8x16x1024xf32, #tpu.memory_space<vmem>>, vector<8x11x128xf32>,
    %c0_190 = arith.constant 0 : index
    %c3_191 = arith.constant 3 : index
    %c0_192 = arith.constant 0 : index
    %123 = tpu.strided_load %arg10[%c0_190, %c3_191, %c0_192] {strides = array<i32: 1, 4, 1>} : memref<8x48x128xf32, #tpu.memory_space<vmem>>, vector<8x11x128xf32>
    %c0_193 = arith.constant 0 : index
    %c0_194 = arith.constant 0 : index
    %c384_195 = arith.constant 384 : index
    %124 = vector.load %arg11[%c0_193, %c0_194, %c384_195] : memref<8x16x1024xf32, #tpu.memory_space<vmem>>, vector<8x11x128xf32>
    tpu.vector_store %arg11[%c0_193, %c0_194, %c384_195], %123 {strides = array<i32>} : memref<8x16x1024xf32, #tpu.memory_space<vmem>>, vector<8x11x128xf32>,
    %c0_196 = arith.constant 0 : index
    %c4_197 = arith.constant 4 : index
    %c0_198 = arith.constant 0 : index
    %125 = tpu.strided_load %arg10[%c0_196, %c4_197, %c0_198] {strides = array<i32: 1, 4, 1>} : memref<8x48x128xf32, #tpu.memory_space<vmem>>, vector<8x11x128xf32>
    %c0_199 = arith.constant 0 : index
    %c0_200 = arith.constant 0 : index
    %c512_201 = arith.constant 512 : index
    %126 = vector.load %arg11[%c0_199, %c0_200, %c512_201] : memref<8x16x1024xf32, #tpu.memory_space<vmem>>, vector<8x11x128xf32>
    tpu.vector_store %arg11[%c0_199, %c0_200, %c512_201], %125 {strides = array<i32>} : memref<8x16x1024xf32, #tpu.memory_space<vmem>>, vector<8x11x128xf32>,
    %c0_202 = arith.constant 0 : index
    %c5_203 = arith.constant 5 : index
    %c0_204 = arith.constant 0 : index
    %127 = tpu.strided_load %arg10[%c0_202, %c5_203, %c0_204] {strides = array<i32: 1, 4, 1>} : memref<8x48x128xf32, #tpu.memory_space<vmem>>, vector<8x11x128xf32>
    %c0_205 = arith.constant 0 : index
    %c0_206 = arith.constant 0 : index
    %c640_207 = arith.constant 640 : index
    %128 = vector.load %arg11[%c0_205, %c0_206, %c640_207] : memref<8x16x1024xf32, #tpu.memory_space<vmem>>, vector<8x11x128xf32>
    tpu.vector_store %arg11[%c0_205, %c0_206, %c640_207], %127 {strides = array<i32>} : memref<8x16x1024xf32, #tpu.memory_space<vmem>>, vector<8x11x128xf32>,
    %c0_208 = arith.constant 0 : index
    %c6_209 = arith.constant 6 : index
    %c0_210 = arith.constant 0 : index
    %129 = tpu.strided_load %arg10[%c0_208, %c6_209, %c0_210] {strides = array<i32: 1, 4, 1>} : memref<8x48x128xf32, #tpu.memory_space<vmem>>, vector<8x11x128xf32>
    %c0_211 = arith.constant 0 : index
    %c0_212 = arith.constant 0 : index
    %c768_213 = arith.constant 768 : index
    %130 = vector.load %arg11[%c0_211, %c0_212, %c768_213] : memref<8x16x1024xf32, #tpu.memory_space<vmem>>, vector<8x11x128xf32>
    tpu.vector_store %arg11[%c0_211, %c0_212, %c768_213], %129 {strides = array<i32>} : memref<8x16x1024xf32, #tpu.memory_space<vmem>>, vector<8x11x128xf32>,
    %c0_214 = arith.constant 0 : index
    %c7_215 = arith.constant 7 : index
    %c0_216 = arith.constant 0 : index
    %131 = tpu.strided_load %arg10[%c0_214, %c7_215, %c0_216] {strides = array<i32: 1, 4, 1>} : memref<8x48x128xf32, #tpu.memory_space<vmem>>, vector<8x11x128xf32>
    %c0_217 = arith.constant 0 : index
    %c0_218 = arith.constant 0 : index
    %c896_219 = arith.constant 896 : index
    %132 = vector.load %arg11[%c0_217, %c0_218, %c896_219] : memref<8x16x1024xf32, #tpu.memory_space<vmem>>, vector<8x11x128xf32>
    tpu.vector_store %arg11[%c0_217, %c0_218, %c896_219], %131 {strides = array<i32>} : memref<8x16x1024xf32, #tpu.memory_space<vmem>>, vector<8x11x128xf32>,
    %c0_220 = arith.constant 0 : index
    %c0_221 = arith.constant 0 : index
    %c0_222 = arith.constant 0 : index
    %133 = vector.load %arg11[%c0_220, %c0_221, %c0_222] : memref<8x16x1024xf32, #tpu.memory_space<vmem>>, vector<8x16x1024xf32>
    %134 = vector.shape_cast %133 : vector<8x16x1024xf32> to vector<128x1024xf32>
    %135 = arith.truncf %134 : vector<128x1024xf32> to vector<128x1024xbf16>
    %c1_223 = arith.constant 1 : index
    %c0_224 = arith.constant 0 : index
    %c0_225 = arith.constant 0 : index
    %136 = vector.load %arg3[%c1_223, %c0_224, %c0_225] : memref<2x1024x128xbf16, #tpu.memory_space<vmem>>, vector<1x1024x128xbf16>
    %137 = vector.shape_cast %136 : vector<1x1024x128xbf16> to vector<1024x128xbf16>
    %cst_226 = arith.constant dense<0.000000e+00> : vector<128x128xf32>
    %138 = tpu.matmul %135, %137, %cst_226 {dimension_numbers = #tpu.dot_dimension_numbers<[1], [0], [0], [1], [0, 0, 1, 1], [], []>} : vector<128x1024xbf16>, vector<1024x128xbf16>, vector<128x128xf32> -> vector<128x128xf32>
    %c1_227 = arith.constant 1 : index
    %c1_228 = arith.constant 1 : index
    %c0_229 = arith.constant 0 : index
    %139 = vector.load %arg6[%c1_227, %c1_228, %c0_229] : memref<2x4x256xf32, #tpu.memory_space<vmem>>, vector<1x1x128xf32>
    %140 = vector.shape_cast %139 : vector<1x1x128xf32> to vector<1x128xf32>
    %141 = vector.broadcast %140 : vector<1x128xf32> to vector<128x128xf32>
    %142 = arith.addf %138, %141 : vector<128x128xf32>
    %cst_230 = arith.constant 0.000000e+00 : f32
    %143 = vector.broadcast %cst_230 : f32 to vector<128x128xf32>
    %144 = arith.maximumf %142, %143 : vector<128x128xf32>
    %145 = vector.shape_cast %144 : vector<128x128xf32> to vector<8x16x128xf32>
    %146 = vector.extract_strided_slice %145 {offsets = [0, 0, 0], sizes = [8, 11, 128], strides = [1, 1, 1]} : vector<8x16x128xf32> to vector<8x11x128xf32>
    %c0_231 = arith.constant 0 : index
    %c2_232 = arith.constant 2 : index
    %c0_233 = arith.constant 0 : index
    %147 = vector.load %arg12[%c0_231, %c2_232, %c0_233] : memref<8x16x128xf32, #tpu.memory_space<vmem>>, vector<8x11x128xf32>
    tpu.vector_store %arg12[%c0_231, %c2_232, %c0_233], %146 {strides = array<i32>} : memref<8x16x128xf32, #tpu.memory_space<vmem>>, vector<8x11x128xf32>,
    %c0_234 = arith.constant 0 : index
    %c0_235 = arith.constant 0 : index
    %c0_236 = arith.constant 0 : index
    %148 = tpu.strided_load %arg12[%c0_234, %c0_235, %c0_236] {strides = array<i32: 1, 2, 1>} : memref<8x16x128xf32, #tpu.memory_space<vmem>>, vector<8x6x128xf32>
    %c0_237 = arith.constant 0 : index
    %c0_238 = arith.constant 0 : index
    %c0_239 = arith.constant 0 : index
    %149 = vector.load %arg13[%c0_237, %c0_238, %c0_239] : memref<8x8x640xf32, #tpu.memory_space<vmem>>, vector<8x6x128xf32>
    tpu.vector_store %arg13[%c0_237, %c0_238, %c0_239], %148 {strides = array<i32>} : memref<8x8x640xf32, #tpu.memory_space<vmem>>, vector<8x6x128xf32>,
    %c0_240 = arith.constant 0 : index
    %c1_241 = arith.constant 1 : index
    %c0_242 = arith.constant 0 : index
    %150 = tpu.strided_load %arg12[%c0_240, %c1_241, %c0_242] {strides = array<i32: 1, 2, 1>} : memref<8x16x128xf32, #tpu.memory_space<vmem>>, vector<8x6x128xf32>
    %c0_243 = arith.constant 0 : index
    %c0_244 = arith.constant 0 : index
    %c128_245 = arith.constant 128 : index
    %151 = vector.load %arg13[%c0_243, %c0_244, %c128_245] : memref<8x8x640xf32, #tpu.memory_space<vmem>>, vector<8x6x128xf32>
    tpu.vector_store %arg13[%c0_243, %c0_244, %c128_245], %150 {strides = array<i32>} : memref<8x8x640xf32, #tpu.memory_space<vmem>>, vector<8x6x128xf32>,
    %c0_246 = arith.constant 0 : index
    %c2_247 = arith.constant 2 : index
    %c0_248 = arith.constant 0 : index
    %152 = tpu.strided_load %arg12[%c0_246, %c2_247, %c0_248] {strides = array<i32: 1, 2, 1>} : memref<8x16x128xf32, #tpu.memory_space<vmem>>, vector<8x6x128xf32>
    %c0_249 = arith.constant 0 : index
    %c0_250 = arith.constant 0 : index
    %c256_251 = arith.constant 256 : index
    %153 = vector.load %arg13[%c0_249, %c0_250, %c256_251] : memref<8x8x640xf32, #tpu.memory_space<vmem>>, vector<8x6x128xf32>
    tpu.vector_store %arg13[%c0_249, %c0_250, %c256_251], %152 {strides = array<i32>} : memref<8x8x640xf32, #tpu.memory_space<vmem>>, vector<8x6x128xf32>,
    %c0_252 = arith.constant 0 : index
    %c3_253 = arith.constant 3 : index
    %c0_254 = arith.constant 0 : index
    %154 = tpu.strided_load %arg12[%c0_252, %c3_253, %c0_254] {strides = array<i32: 1, 2, 1>} : memref<8x16x128xf32, #tpu.memory_space<vmem>>, vector<8x6x128xf32>
    %c0_255 = arith.constant 0 : index
    %c0_256 = arith.constant 0 : index
    %c384_257 = arith.constant 384 : index
    %155 = vector.load %arg13[%c0_255, %c0_256, %c384_257] : memref<8x8x640xf32, #tpu.memory_space<vmem>>, vector<8x6x128xf32>
    tpu.vector_store %arg13[%c0_255, %c0_256, %c384_257], %154 {strides = array<i32>} : memref<8x8x640xf32, #tpu.memory_space<vmem>>, vector<8x6x128xf32>,
    %c0_258 = arith.constant 0 : index
    %c4_259 = arith.constant 4 : index
    %c0_260 = arith.constant 0 : index
    %156 = tpu.strided_load %arg12[%c0_258, %c4_259, %c0_260] {strides = array<i32: 1, 2, 1>} : memref<8x16x128xf32, #tpu.memory_space<vmem>>, vector<8x6x128xf32>
    %c0_261 = arith.constant 0 : index
    %c0_262 = arith.constant 0 : index
    %c512_263 = arith.constant 512 : index
    %157 = vector.load %arg13[%c0_261, %c0_262, %c512_263] : memref<8x8x640xf32, #tpu.memory_space<vmem>>, vector<8x6x128xf32>
    tpu.vector_store %arg13[%c0_261, %c0_262, %c512_263], %156 {strides = array<i32>} : memref<8x8x640xf32, #tpu.memory_space<vmem>>, vector<8x6x128xf32>,
    %c0_264 = arith.constant 0 : index
    %c0_265 = arith.constant 0 : index
    %c0_266 = arith.constant 0 : index
    %158 = vector.load %arg13[%c0_264, %c0_265, %c0_266] : memref<8x8x640xf32, #tpu.memory_space<vmem>>, vector<8x8x640xf32>
    %159 = vector.shape_cast %158 : vector<8x8x640xf32> to vector<64x640xf32>
    %160 = arith.truncf %159 : vector<64x640xf32> to vector<64x640xbf16>
    %c1_267 = arith.constant 1 : index
    %c0_268 = arith.constant 0 : index
    %c0_269 = arith.constant 0 : index
    %161 = vector.load %arg4[%c1_267, %c0_268, %c0_269] : memref<2x640x256xbf16, #tpu.memory_space<vmem>>, vector<1x640x256xbf16>
    %162 = vector.shape_cast %161 : vector<1x640x256xbf16> to vector<640x256xbf16>
    %cst_270 = arith.constant dense<0.000000e+00> : vector<64x256xf32>
    %163 = tpu.matmul %160, %162, %cst_270 {dimension_numbers = #tpu.dot_dimension_numbers<[1], [0], [0], [1], [0, 0, 1, 1], [], []>} : vector<64x640xbf16>, vector<640x256xbf16>, vector<64x256xf32> -> vector<64x256xf32>
    %c1_271 = arith.constant 1 : index
    %c2_272 = arith.constant 2 : index
    %c0_273 = arith.constant 0 : index
    %164 = vector.load %arg6[%c1_271, %c2_272, %c0_273] : memref<2x4x256xf32, #tpu.memory_space<vmem>>, vector<1x1x256xf32>
    %165 = vector.shape_cast %164 : vector<1x1x256xf32> to vector<1x256xf32>
    %166 = vector.broadcast %165 : vector<1x256xf32> to vector<64x256xf32>
    %167 = arith.addf %163, %166 : vector<64x256xf32>
    %cst_274 = arith.constant 0.000000e+00 : f32
    %168 = vector.broadcast %cst_274 : f32 to vector<64x256xf32>
    %169 = arith.maximumf %167, %168 : vector<64x256xf32>
    %170 = vector.shape_cast %169 : vector<64x256xf32> to vector<8x8x256xf32>
    %171 = vector.extract_strided_slice %170 {offsets = [0, 0, 0], sizes = [8, 6, 256], strides = [1, 1, 1]} : vector<8x8x256xf32> to vector<8x6x256xf32>
    %c0_275 = arith.constant 0 : index
    %c1_276 = arith.constant 1 : index
    %c0_277 = arith.constant 0 : index
    %172 = vector.load %arg14[%c0_275, %c1_276, %c0_277] : memref<8x8x256xf32, #tpu.memory_space<vmem>>, vector<8x6x256xf32>
    tpu.vector_store %arg14[%c0_275, %c1_276, %c0_277], %171 {strides = array<i32>} : memref<8x8x256xf32, #tpu.memory_space<vmem>>, vector<8x6x256xf32>,
    %c0_278 = arith.constant 0 : index
    %c0_279 = arith.constant 0 : index
    %c0_280 = arith.constant 0 : index
    %173 = vector.load %arg14[%c0_278, %c0_279, %c0_280] : memref<8x8x256xf32, #tpu.memory_space<vmem>>, vector<8x6x256xf32>
    %c0_281 = arith.constant 0 : index
    %c0_282 = arith.constant 0 : index
    %c0_283 = arith.constant 0 : index
    %174 = vector.load %arg15[%c0_281, %c0_282, %c0_283] : memref<8x8x768xf32, #tpu.memory_space<vmem>>, vector<8x6x256xf32>
    tpu.vector_store %arg15[%c0_281, %c0_282, %c0_283], %173 {strides = array<i32>} : memref<8x8x768xf32, #tpu.memory_space<vmem>>, vector<8x6x256xf32>,
    %c0_284 = arith.constant 0 : index
    %c1_285 = arith.constant 1 : index
    %c0_286 = arith.constant 0 : index
    %175 = vector.load %arg14[%c0_284, %c1_285, %c0_286] : memref<8x8x256xf32, #tpu.memory_space<vmem>>, vector<8x6x256xf32>
    %c0_287 = arith.constant 0 : index
    %c0_288 = arith.constant 0 : index
    %c256_289 = arith.constant 256 : index
    %176 = vector.load %arg15[%c0_287, %c0_288, %c256_289] : memref<8x8x768xf32, #tpu.memory_space<vmem>>, vector<8x6x256xf32>
    tpu.vector_store %arg15[%c0_287, %c0_288, %c256_289], %175 {strides = array<i32>} : memref<8x8x768xf32, #tpu.memory_space<vmem>>, vector<8x6x256xf32>,
    %c0_290 = arith.constant 0 : index
    %c2_291 = arith.constant 2 : index
    %c0_292 = arith.constant 0 : index
    %177 = vector.load %arg14[%c0_290, %c2_291, %c0_292] : memref<8x8x256xf32, #tpu.memory_space<vmem>>, vector<8x6x256xf32>
    %c0_293 = arith.constant 0 : index
    %c0_294 = arith.constant 0 : index
    %c512_295 = arith.constant 512 : index
    %178 = vector.load %arg15[%c0_293, %c0_294, %c512_295] : memref<8x8x768xf32, #tpu.memory_space<vmem>>, vector<8x6x256xf32>
    tpu.vector_store %arg15[%c0_293, %c0_294, %c512_295], %177 {strides = array<i32>} : memref<8x8x768xf32, #tpu.memory_space<vmem>>, vector<8x6x256xf32>,
    %c0_296 = arith.constant 0 : index
    %c0_297 = arith.constant 0 : index
    %c0_298 = arith.constant 0 : index
    %179 = vector.load %arg15[%c0_296, %c0_297, %c0_298] : memref<8x8x768xf32, #tpu.memory_space<vmem>>, vector<8x8x768xf32>
    %180 = vector.shape_cast %179 : vector<8x8x768xf32> to vector<64x768xf32>
    %181 = arith.truncf %180 : vector<64x768xf32> to vector<64x768xbf16>
    %c1_299 = arith.constant 1 : index
    %c0_300 = arith.constant 0 : index
    %c0_301 = arith.constant 0 : index
    %182 = vector.load %arg5[%c1_299, %c0_300, %c0_301] : memref<2x768x128xbf16, #tpu.memory_space<vmem>>, vector<1x768x128xbf16>
    %183 = vector.shape_cast %182 : vector<1x768x128xbf16> to vector<768x128xbf16>
    %cst_302 = arith.constant dense<0.000000e+00> : vector<64x128xf32>
    %184 = tpu.matmul %181, %183, %cst_302 {dimension_numbers = #tpu.dot_dimension_numbers<[1], [0], [0], [1], [0, 0, 1, 1], [], []>} : vector<64x768xbf16>, vector<768x128xbf16>, vector<64x128xf32> -> vector<64x128xf32>
    %c1_303 = arith.constant 1 : index
    %c3_304 = arith.constant 3 : index
    %c0_305 = arith.constant 0 : index
    %185 = vector.load %arg6[%c1_303, %c3_304, %c0_305] : memref<2x4x256xf32, #tpu.memory_space<vmem>>, vector<1x1x128xf32>
    %186 = vector.shape_cast %185 : vector<1x1x128xf32> to vector<1x128xf32>
    %187 = vector.broadcast %186 : vector<1x128xf32> to vector<64x128xf32>
    %188 = arith.addf %184, %187 : vector<64x128xf32>
    %cst_306 = arith.constant 0.000000e+00 : f32
    %189 = vector.broadcast %cst_306 : f32 to vector<64x128xf32>
    %190 = arith.maximumf %188, %189 : vector<64x128xf32>
    %191 = vector.shape_cast %190 : vector<64x128xf32> to vector<8x8x128xf32>
    %192 = vector.extract_strided_slice %191 {offsets = [0, 0, 0], sizes = [8, 6, 128], strides = [1, 1, 1]} : vector<8x8x128xf32> to vector<8x6x128xf32>
    %cst_307 = arith.constant dense<0xFF800000> : vector<8x128xf32>
    %193 = vector.multi_reduction <maximumf>, %192, %cst_307 [1] : vector<8x6x128xf32> to vector<8x128xf32>
    %194 = tpu.concatenate %102, %193 in 1 : vector<8x128xf32>, vector<8x128xf32> -> vector<8x256xf32>
    %195 = arith.truncf %194 : vector<8x256xf32> to vector<8x256xbf16>
    %c0_308 = arith.constant 0 : index
    %c0_309 = arith.constant 0 : index
    %196 = vector.load %arg7[%c0_308, %c0_309] : memref<256x128xbf16, #tpu.memory_space<vmem>>, vector<256x128xbf16>
    %cst_310 = arith.constant dense<0.000000e+00> : vector<8x128xf32>
    %197 = tpu.matmul %195, %196, %cst_310 {dimension_numbers = #tpu.dot_dimension_numbers<[1], [0], [0], [1], [0, 0, 1, 1], [], []>} : vector<8x256xbf16>, vector<256x128xbf16>, vector<8x128xf32> -> vector<8x128xf32>
    %c0_311 = arith.constant 0 : index
    %c0_312 = arith.constant 0 : index
    %198 = vector.load %arg8[%c0_311, %c0_312] : memref<1x128xf32, #tpu.memory_space<vmem>>, vector<1x128xf32>
    %199 = vector.broadcast %198 : vector<1x128xf32> to vector<8x128xf32>
    %200 = arith.addf %197, %199 : vector<8x128xf32>
    %c0_313 = arith.constant 0 : index
    %c0_314 = arith.constant 0 : index
    %201 = vector.load %arg9[%c0_313, %c0_314] : memref<8x128xf32, #tpu.memory_space<vmem>>, vector<8x128xf32>
    tpu.vector_store %arg9[%c0_313, %c0_314], %200 {strides = array<i32>} : memref<8x128xf32, #tpu.memory_space<vmem>>, vector<8x128xf32>,
    return
  }
  func.func @transform_0(%arg0: i32) -> (i32, i32, i32, i32) {
    %c0_i32 = arith.constant 0 : i32
    %c0_i32_0 = arith.constant 0 : i32
    %c0_i32_1 = arith.constant 0 : i32
    %c0_i32_2 = arith.constant 0 : i32
    return %arg0, %c0_i32, %c0_i32_0, %c0_i32_1 : i32, i32, i32, i32
  }
  func.func @transform_1(%arg0: i32) -> (i32, i32, i32) {
    %c0_i32 = arith.constant 0 : i32
    %c0_i32_0 = arith.constant 0 : i32
    %c0_i32_1 = arith.constant 0 : i32
    %c0_i32_2 = arith.constant 0 : i32
    return %c0_i32, %c0_i32_0, %c0_i32_1 : i32, i32, i32
  }
  func.func @transform_2(%arg0: i32) -> (i32, i32, i32) {
    %c0_i32 = arith.constant 0 : i32
    %c0_i32_0 = arith.constant 0 : i32
    %c0_i32_1 = arith.constant 0 : i32
    %c0_i32_2 = arith.constant 0 : i32
    return %c0_i32, %c0_i32_0, %c0_i32_1 : i32, i32, i32
  }
  func.func @transform_3(%arg0: i32) -> (i32, i32, i32) {
    %c0_i32 = arith.constant 0 : i32
    %c0_i32_0 = arith.constant 0 : i32
    %c0_i32_1 = arith.constant 0 : i32
    %c0_i32_2 = arith.constant 0 : i32
    return %c0_i32, %c0_i32_0, %c0_i32_1 : i32, i32, i32
  }
  func.func @transform_4(%arg0: i32) -> (i32, i32, i32) {
    %c0_i32 = arith.constant 0 : i32
    %c0_i32_0 = arith.constant 0 : i32
    %c0_i32_1 = arith.constant 0 : i32
    %c0_i32_2 = arith.constant 0 : i32
    return %c0_i32, %c0_i32_0, %c0_i32_1 : i32, i32, i32
  }
  func.func @transform_5(%arg0: i32) -> (i32, i32, i32) {
    %c0_i32 = arith.constant 0 : i32
    %c0_i32_0 = arith.constant 0 : i32
    %c0_i32_1 = arith.constant 0 : i32
    %c0_i32_2 = arith.constant 0 : i32
    return %c0_i32, %c0_i32_0, %c0_i32_1 : i32, i32, i32
  }
  func.func @transform_6(%arg0: i32) -> (i32, i32) {
    %c0_i32 = arith.constant 0 : i32
    %c0_i32_0 = arith.constant 0 : i32
    %c0_i32_1 = arith.constant 0 : i32
    return %c0_i32, %c0_i32_0 : i32, i32
  }
  func.func @transform_7(%arg0: i32) -> (i32, i32) {
    %c0_i32 = arith.constant 0 : i32
    %c0_i32_0 = arith.constant 0 : i32
    %c0_i32_1 = arith.constant 0 : i32
    return %c0_i32, %c0_i32_0 : i32, i32
  }
  func.func @transform_8(%arg0: i32) -> (i32, i32) {
    %c0_i32 = arith.constant 0 : i32
    %c0_i32_0 = arith.constant 0 : i32
    return %arg0, %c0_i32 : i32, i32
  }
}

</mosaic_0001>

<bundles_post_ra>
// kernel: _forward_jit.1
= control target key start
LH: loop header
LB: loop body
LE: loop exit
PB: predicated region body
PF: predicated region fallthrough
CT: control target
= control target key end

     0   :  { %v10595_v39 = vmov 0.0   ;;  %vm4034_vm1 = vcmask 1045504   ;;  %vm7916_vm2 = vcmask 1041409   ;;  %vm7918_vm3 = vcmask 1042434   ;;  %s12883_s1 = inlined_call_operand.vmem [shape: bf16[2,128,128], index: 1, kind: input, shape index: {}]   ;;  %s12884_s0 = inlined_call_operand.vmem [shape: bf16[1,2,384,128], index: 0, kind: input, shape index: {}]   ;;  %s12885_s2 = inlined_call_operand.vmem [shape: bf16[2,1024,128], index: 2, kind: input, shape index: {}]   ;;  %s12886_s5 = inlined_call_operand.vmem [shape: f32[2,4,256], index: 5, kind: input, shape index: {}]   ;;  %s12887_s3 = inlined_call_operand.vmem [shape: bf16[2,640,256], index: 3, kind: input, shape index: {}]   ;;  %s12888_s4 = inlined_call_operand.vmem [shape: bf16[2,768,128], index: 4, kind: input, shape index: {}]   ;;  %s12889_s6 = inlined_call_operand.vmem [shape: bf16[256,128], index: 6, kind: input, shape index: {}]   ;;  %s12890_s7 = inlined_call_operand.vmem [shape: f32[1,128], index: 7, kind: input, shape index: {}]   ;;  %s12891_s8 = inlined_call_operand.vmem [shape: f32[8,128], index: 8, kind: output, shape index: {}]  }
   0x1   :  { %v10038_v0 = vld [vmem:[%s12883_s1] sm:$0xff]   ;;  %v10039_v1 = vld [vmem:[%s12883_s1 + $0x8] sm:$0xff]   ;;  %v10040_v2 = vld [vmem:[%s12883_s1 + $0x10] sm:$0xff]   ;;  %30 = vst [vmem:[#allocation2] sm:$0xf] %v10595_v39  ;;  %vm7920_vm4 = vcmask 1043459  }
   0x2   :  { %9812 = vmatprep.subr.bf16.mxu0 %v10038_v0  ;;  %v10041_v3 = vld [vmem:[%s12883_s1 + $0x18] sm:$0xff]   ;;  %v10046_v4 = vld [vmem:[%s12884_s0] sm:$0xff]   ;;  %v10043_v6 = vld [vmem:[%s12883_s1 + $0x28] sm:$0xff]   ;;  %31 = vst [vmem:[#allocation2 + $0x30] sm:$0xf] %v10595_v39  ;;  %vm7922_vm5 = vcmask 1044484  }
   0x3   :  { %9813 = vmatpush3.bf16.msra.mxu0 %v10038_v0  ;;  %9828 = vmatprep.mubr.bf16.mxu0 %v10046_v4  ;;  %v10042_v5 = vld [vmem:[%s12883_s1 + $0x20] sm:$0xff]   ;;  %v10044_v7 = vld [vmem:[%s12883_s1 + $0x30] sm:$0xff]   ;;  %v10045_v8 = vld [vmem:[%s12883_s1 + $0x38] sm:$0xff]   ;;  %32 = vst [vmem:[#allocation2 + $0x60] sm:$0xf] %v10595_v39  ;;  %vm7924_vm6 = vcmask 1045509  }
   0x4   :  { %9814 = vmatprep.subr.bf16.mxu0 %v10039_v1  ;;  %v10047_v9 = vld [vmem:[%s12884_s0 + $0x8] sm:$0xff]   ;;  %v10048_v10 = vld [vmem:[%s12884_s0 + $0x10] sm:$0xff]   ;;  %v10049_v11 = vld [vmem:[%s12884_s0 + $0x18] sm:$0xff]   ;;  %33 = vst [vmem:[#allocation2 + $0x90] sm:$0xf] %v10595_v39  ;;  %vm7926_vm7 = vcmask 1046534  }
   0x5   :  { %v10050_v12 = vld [vmem:[%s12884_s0 + $0x20] sm:$0xff]   ;;  %v10051_v13 = vld [vmem:[%s12884_s0 + $0x28] sm:$0xff]   ;;  %v10052_v14 = vld [vmem:[%s12884_s0 + $0x30] sm:$0xff]   ;;  %34 = vst [vmem:[#allocation2 + $0xc0] sm:$0xf] %v10595_v39  ;;  %vm7928_vm8 = vcmask 1047559  }
   0x6   :  { %v10053_v15 = vld [vmem:[%s12884_s0 + $0x38] sm:$0xff]   ;;  %v10054_v16 = vld [vmem:[%s12884_s0 + $0x40] sm:$0xff]   ;;  %v10055_v17 = vld [vmem:[%s12884_s0 + $0x48] sm:$0xff]   ;;  %35 = vst [vmem:[#allocation2 + $0xf0] sm:$0xf] %v10595_v39 }
   0x7   :  { %9815 = vmatpush3.bf16.msra.mxu0 %v10039_v1  ;;  %v10056_v18 = vld [vmem:[%s12884_s0 + $0x50] sm:$0xff]   ;;  %v10057_v19 = vld [vmem:[%s12884_s0 + $0x58] sm:$0xff]   ;;  %v10058_v20 = vld [vmem:[%s12884_s0 + $0x60] sm:$0xff]   ;;  %36 = vst [vmem:[#allocation2 + $0x120] sm:$0xf] %v10595_v39 }
   0x8   :  { %9816 = vmatprep.subr.bf16.mxu0 %v10040_v2  ;;  %v10059_v21 = vld [vmem:[%s12884_s0 + $0x68] sm:$0xff]   ;;  %v10060_v22 = vld [vmem:[%s12884_s0 + $0x70] sm:$0xff]   ;;  %v10061_v23 = vld [vmem:[%s12884_s0 + $0x78] sm:$0xff]   ;;  %37 = vst [vmem:[#allocation2 + $0x150] sm:$0xf] %v10595_v39 }
   0x9   :  { %v10062_v24 = vld [vmem:[%s12884_s0 + $0x80] sm:$0xff]   ;;  %v10063_v25 = vld [vmem:[%s12884_s0 + $0x88] sm:$0xff]   ;;  %v10064_v26 = vld [vmem:[%s12884_s0 + $0x90] sm:$0xff]   ;;  %38 = vst [vmem:[#allocation2 + $0x2f] sm:$0x1] %v10595_v39 }
   0xa   :  { %v10065_v27 = vld [vmem:[%s12884_s0 + $0x98] sm:$0xff]   ;;  %v10066_v28 = vld [vmem:[%s12884_s0 + $0xa0] sm:$0xff]   ;;  %v10067_v29 = vld [vmem:[%s12884_s0 + $0xa8] sm:$0xff]   ;;  %39 = vst [vmem:[#allocation2 + $0x5f] sm:$0x1] %v10595_v39 }
   0xb   :  { %9817 = vmatpush3.bf16.msra.mxu0 %v10040_v2  ;;  %v10068_v30 = vld [vmem:[%s12884_s0 + $0xb0] sm:$0xff]   ;;  %v10070_v31 = vld [vmem:[%s12885_s2 + $0x40] sm:$0xff]   ;;  %v10069_v32 = vld [vmem:[%s12884_s0 + $0xb8] sm:$0xff]   ;;  %40 = vst [vmem:[#allocation2 + $0x8f] sm:$0x1] %v10595_v39 }
   0xc   :  { %9818 = vmatprep.subr.bf16.mxu0 %v10041_v3  ;;  %9006 = vmatprep.subr.bf16.mxu1 %v10070_v31  ;;  %v10071_v33 = vld [vmem:[%s12885_s2] sm:$0xff]   ;;  %v10074_v36 = vld [vmem:[%s12885_s2 + $0x48] sm:$0xff]   ;;  %41 = vst [vmem:[#allocation2 + $0xbf] sm:$0x1] %v10595_v39  ;;  %42 = vst [vmem:[#allocation2 + $0xef] sm:$0x1] %v10595_v39 }
   0xd   :  { %9007 = vmatpush3.bf16.msra.mxu1 %v10071_v33  ;;  %v10072_v34 = vld [vmem:[%s12885_s2 + $0x140] sm:$0xff]   ;;  %v10075_v37 = vld [vmem:[%s12885_s2 + $0x8] sm:$0xff]   ;;  %43 = vst [vmem:[#allocation2 + $0x11f] sm:$0x1] %v10595_v39  ;;  %44 = vst [vmem:[#allocation2 + $0x14f] sm:$0x1] %v10595_v39 }
   0xe   :  { %v10073_v35 = vld [vmem:[%s12885_s2 + $0x100] sm:$0xff]   ;;  %9008 = vmatprep.subr.bf16.mxu1 %v10074_v36  ;;  %v10076_v38 = vld [vmem:[%s12885_s2 + $0x148] sm:$0xff]   ;;  %45 = vst [vmem:[#allocation2 + $0x17f] sm:$0x1] %v10595_v39  ;;  %46 = vst [vmem:[#allocation4] sm:$0x3] %v10595_v39 }
   0xf   :  { %9819 = vmatpush3.bf16.msra.mxu0 %v10041_v3  ;;  %47 = vst [vmem:[#allocation4 + $0x10] sm:$0x3] %v10595_v39  ;;  %48 = vst [vmem:[#allocation4 + $0x20] sm:$0x3] %v10595_v39  ;;  %v10077_v40 = vld [vmem:[%s12885_s2 + $0x108] sm:$0xff]   ;;  %v10078_v41 = vld [vmem:[%s12885_s2 + $0x50] sm:$0xff]  }
  0x10   :  { %9820 = vmatprep.subr.bf16.mxu0 %v10042_v5  ;;  %49 = vst [vmem:[#allocation4 + $0x30] sm:$0x3] %v10595_v39  ;;  %50 = vst [vmem:[#allocation4 + $0x40] sm:$0x3] %v10595_v39  ;;  %v10079_v42 = vld [vmem:[%s12885_s2 + $0x10] sm:$0xff]   ;;  %v10082_v45 = vld [vmem:[%s12885_s2 + $0x58] sm:$0xff]  }
  0x11   :  { %51 = vst [vmem:[#allocation4 + $0x50] sm:$0x3] %v10595_v39  ;;  %52 = vst [vmem:[#allocation4 + $0x60] sm:$0x3] %v10595_v39  ;;  %9009 = vmatpush3.bf16.msra.mxu1 %v10075_v37  ;;  %v10080_v43 = vld [vmem:[%s12885_s2 + $0x150] sm:$0xff]   ;;  %v10083_v46 = vld [vmem:[%s12885_s2 + $0x18] sm:$0xff]  }
  0x12   :  { %53 = vst [vmem:[#allocation4 + $0x70] sm:$0x3] %v10595_v39  ;;  %54 = vst [vmem:[#allocation4 + $0xd] sm:$0x7] %v10595_v39  ;;  %9010 = vmatprep.subr.bf16.mxu1 %v10078_v41  ;;  %v10081_v44 = vld [vmem:[%s12885_s2 + $0x110] sm:$0xff]   ;;  %v10084_v47 = vld [vmem:[%s12885_s2 + $0x158] sm:$0xff]  }
  0x13   :  { %9821 = vmatpush3.bf16.msra.mxu0 %v10042_v5  ;;  %55 = vst [vmem:[#allocation4 + $0x1d] sm:$0x7] %v10595_v39  ;;  %56 = vst [vmem:[#allocation4 + $0x2d] sm:$0x7] %v10595_v39  ;;  %v10085_v48 = vld [vmem:[%s12885_s2 + $0x118] sm:$0xff]   ;;  %v10086_v49 = vld [vmem:[%s12885_s2 + $0x60] sm:$0xff]  }
  0x14   :  { %9822 = vmatprep.subr.bf16.mxu0 %v10043_v6  ;;  %57 = vst [vmem:[#allocation4 + $0x3d] sm:$0x7] %v10595_v39  ;;  %58 = vst [vmem:[#allocation4 + $0x4d] sm:$0x7] %v10595_v39  ;;  %v10087_v50 = vld [vmem:[%s12885_s2 + $0x20] sm:$0xff]   ;;  %v10090_v53 = vld [vmem:[%s12885_s2 + $0x68] sm:$0xff]  }
  0x15   :  { %59 = vst [vmem:[#allocation4 + $0x5d] sm:$0x7] %v10595_v39  ;;  %60 = vst [vmem:[#allocation4 + $0x6d] sm:$0x7] %v10595_v39  ;;  %9011 = vmatpush3.bf16.msra.mxu1 %v10079_v42  ;;  %v10088_v51 = vld [vmem:[%s12885_s2 + $0x160] sm:$0xff]   ;;  %v10091_v54 = vld [vmem:[%s12885_s2 + $0x28] sm:$0xff]  }
  0x16   :  { %61 = vst [vmem:[#allocation4 + $0x7d] sm:$0x7] %v10595_v39  ;;  %9012 = vmatprep.subr.bf16.mxu1 %v10082_v45  ;;  %v10089_v52 = vld [vmem:[%s12885_s2 + $0x120] sm:$0xff]   ;;  %v10092_v55 = vld [vmem:[%s12885_s2 + $0x168] sm:$0xff]   ;;  %v10094_v57 = vld [vmem:[%s12885_s2 + $0x70] sm:$0xff]  }
  0x17   :  { %9823 = vmatpush3.bf16.msra.mxu0 %v10043_v6  ;;  %v10093_v56 = vld [vmem:[%s12885_s2 + $0x128] sm:$0xff]   ;;  %v10095_v58 = vld [vmem:[%s12885_s2 + $0x30] sm:$0xff]   ;;  %v10098_v61 = vld [vmem:[%s12885_s2 + $0x78] sm:$0xff]  }
  0x18   :  { %9824 = vmatprep.subr.bf16.mxu0 %v10044_v7  ;;  %v10096_v59 = vld [vmem:[%s12885_s2 + $0x170] sm:$0xff]   ;;  %v10099_v62 = vld [vmem:[%s12885_s2 + $0x38] sm:$0xff]   ;;  %v10102_v1 = vld [vmem:[%s12885_s2 + $0xc0] sm:$0xff]  }
  0x19   :  { %9013 = vmatpush3.bf16.msra.mxu1 %v10083_v46  ;;  %v10097_v60 = vld [vmem:[%s12885_s2 + $0x130] sm:$0xff]   ;;  %v10100_v63 = vld [vmem:[%s12885_s2 + $0x178] sm:$0xff]   ;;  %v10872_v2 = vld [vmem:[%s12886_s5] ss:$0 sm:$0xff] }
  0x1a   :  { %9014 = vmatprep.subr.bf16.mxu1 %v10086_v49  ;;  %v10101_v0 = vld [vmem:[%s12885_s2 + $0x138] sm:$0xff]  }
  0x1b   :  { %9825 = vmatpush3.bf16.msra.mxu0 %v10044_v7 }
  0x1c   :  { %9826 = vmatprep.subr.bf16.mxu0 %v10045_v8 }
  0x1d   :  { %9015 = vmatpush3.bf16.msra.mxu1 %v10087_v50 }
  0x1e   :  { %9016 = vmatprep.subr.bf16.mxu1 %v10090_v53 }
  0x1f   :  { %9827 = vmatpush3.bf16.msra.mxu0 %v10045_v8 }
  0x20   :  { %9134 = vmatprep.subr.bf16.mxu0 %v10072_v34 }
  0x21   :  { %9017 = vmatpush3.bf16.msra.mxu1 %v10091_v54 }
  0x22   :  { %9829 = vmatmul.mubr.bf16.vlgmr.msra.gmra.mrb[0].mxu0 %v10047_v9  ;;  %9018 = vmatprep.subr.bf16.mxu1 %v10094_v57 }
  0x23   :  { %9832 = vmatprep.mubr.bf16.mxu0 %v10048_v10  ;;  %9135 = vmatpush3.bf16.msra.mxu0 %v10073_v35 }
  0x24   :  { %9136 = vmatprep.subr.bf16.mxu0 %v10076_v38 }
  0x25   :  { %9019 = vmatpush3.bf16.msra.mxu1 %v10095_v58 }
  0x26   :  { %9020 = vmatprep.subr.bf16.mxu1 %v10098_v61 }
  0x27   :  { %9137 = vmatpush3.bf16.msra.mxu0 %v10077_v40 }
  0x28   :  { %9138 = vmatprep.subr.bf16.mxu0 %v10080_v43 }
  0x29   :  { %9021 = vmatpush3.bf16.msra.mxu1 %v10099_v62 }
  0x2a   :  { %9833 = vmatmul.mubr.bf16.gmra.mrb[4].mxu0 %v10049_v11  ;;  %9070 = vmatprep.subr.bf16.mxu1 %v10102_v1 }
  0x2b   :  { %9836 = vmatprep.mubr.bf16.mxu0 %v10050_v12  ;;  %9139 = vmatpush3.bf16.msra.mxu0 %v10081_v44 }
  0x2c   :  { %9140 = vmatprep.subr.bf16.mxu0 %v10084_v47 }
  0x2f   :  { %9141 = vmatpush3.bf16.msra.mxu0 %v10085_v48 }
  0x30   :  { %9142 = vmatprep.subr.bf16.mxu0 %v10088_v51 }
  0x32   :  { %9837 = vmatmul.mubr.bf16.gmra.mrb[8].mxu0 %v10051_v13 }
  0x33   :  { %9840 = vmatprep.mubr.bf16.mxu0 %v10052_v14  ;;  %9143 = vmatpush3.bf16.msra.mxu0 %v10089_v52 }
  0x34   :  { %9144 = vmatprep.subr.bf16.mxu0 %v10092_v55 }
  0x37   :  { %9145 = vmatpush3.bf16.msra.mxu0 %v10093_v56 }
  0x38   :  { %9146 = vmatprep.subr.bf16.mxu0 %v10096_v59 }
  0x3a   :  { %9841 = vmatmul.mubr.bf16.gmra.mrb[12].mxu0 %v10053_v15 }
  0x3b   :  { %9844 = vmatprep.mubr.bf16.mxu0 %v10054_v16  ;;  %9147 = vmatpush3.bf16.msra.mxu0 %v10097_v60 }
  0x3c   :  { %9148 = vmatprep.subr.bf16.mxu0 %v10100_v63 }
  0x3f   :  { %9149 = vmatpush3.bf16.msra.mxu0 %v10101_v0 }
  0x42   :  { %9845 = vmatmul.mubr.bf16.gmra.mrb[16].mxu0 %v10055_v17 }
  0x43   :  { %9848 = vmatprep.mubr.bf16.mxu0 %v10056_v18 }
  0x4a   :  { %9849 = vmatmul.mubr.bf16.gmra.mrb[20].mxu0 %v10057_v19 }
  0x4b   :  { %9852 = vmatprep.mubr.bf16.mxu0 %v10058_v20 }
  0x52   :  { %9853 = vmatmul.mubr.bf16.gmra.mrb[24].mxu0 %v10059_v21 }
  0x53   :  { %9856 = vmatprep.mubr.bf16.mxu0 %v10060_v22 }
  0x5a   :  { %9857 = vmatmul.mubr.bf16.gmra.mrb[28].mxu0 %v10061_v23 }
  0x5b   :  { %9860 = vmatprep.mubr.bf16.mxu0 %v10062_v24 }
  0x62   :  { %9861 = vmatmul.mubr.bf16.gmra.mrb[32].mxu0 %v10063_v25 }
  0x63   :  { %9864 = vmatprep.mubr.bf16.mxu0 %v10064_v26 }
  0x6a   :  { %9865 = vmatmul.mubr.bf16.gmra.mrb[36].mxu0 %v10065_v27 }
  0x6b   :  { %9868 = vmatprep.mubr.bf16.mxu0 %v10066_v28 }
  0x72   :  { %9869 = vmatmul.mubr.bf16.gmra.mrb[40].mxu0 %v10067_v29 }
  0x73   :  { %9872 = vmatprep.mubr.bf16.mxu0 %v10068_v30 }
  0x7a   :  { %9873 = vmatmul.mubr.bf16.gmra.mrb[44].mxu0 %v10069_v32 }
  0xf5   :  { %v9830_v3 = vpop.f32.mrb[0].mxu0 }
  0xf6   :  { %v417_v4 = vadd.f32 %v9830_v3, %v10872_v2  ;;  %v408_v5 = vpop.f32.mrb[1].mxu0 }
  0xf7   :  { %v409_v6 = vadd.f32 %v10872_v2, %v408_v5  ;;  %v9831_v7 = vpop.f32.mrb[2].mxu0 }
  0xf8   :  { %v601_v8 = vmax.f32 %v417_v4, 0.0  ;;  %v420_v9 = vadd.f32 %v9831_v7, %v10872_v2  ;;  %v411_v10 = vpop.f32.mrb[3].mxu0  ;;  %v10103_v7 = vld [vmem:[%s12885_s2 + $0x80] sm:$0xff]  }
  0xf9   :  { %v599_v11 = vmax.f32 %v409_v6, 0.0  ;;  %v412_v12 = vadd.f32 %v10872_v2, %v411_v10 }
  0xfa   :  { %649 = vst [vmem:[#allocation2 + $0x14] sm:$0xff] %v601_v8  ;;  %v602_v13 = vmax.f32 %v420_v9, 0.0 }
  0xfb   :  { %647 = vst [vmem:[#allocation2 + $0x4] sm:$0xff] %v599_v11  ;;  %v600_v14 = vmax.f32 %v412_v12, 0.0  ;;  %v10104_v11 = vld [vmem:[%s12885_s2 + $0xc8] sm:$0xff]  }
  0xfc   :  { %650 = vst [vmem:[#allocation2 + $0x1c] sm:$0xff] %v602_v13 }
  0xfd   :  { %648 = vst [vmem:[#allocation2 + $0xc] sm:$0xff] %v600_v14  ;;  %v9834_v15 = vpop.f32.mrb[4].mxu0 }
  0xfe   :  { %v433_v16 = vadd.f32 %v9834_v15, %v10872_v2  ;;  %v424_v17 = vpop.f32.mrb[5].mxu0 }
  0xff   :  { %v425_v18 = vadd.f32 %v10872_v2, %v424_v17  ;;  %v9835_v19 = vpop.f32.mrb[6].mxu0 }
 0x100   :  { %v605_v20 = vmax.f32 %v433_v16, 0.0  ;;  %v436_v21 = vadd.f32 %v9835_v19, %v10872_v2  ;;  %v427_v22 = vpop.f32.mrb[7].mxu0  ;;  %v10105_v19 = vld [vmem:[%s12885_s2 + $0x88] sm:$0xff]  }
 0x101   :  { %v603_v23 = vmax.f32 %v425_v18, 0.0  ;;  %v428_v24 = vadd.f32 %v10872_v2, %v427_v22 }
 0x102   :  { %653 = vst [vmem:[#allocation2 + $0x34] sm:$0xff] %v605_v20  ;;  %v606_v25 = vmax.f32 %v436_v21, 0.0 }
 0x103   :  { %651 = vst [vmem:[#allocation2 + $0x24] sm:$0xff] %v603_v23  ;;  %v604_v26 = vmax.f32 %v428_v24, 0.0 }
 0x104   :  { %v791_v27 = vld [vmem:[#allocation2 + $0x2] ss:$4 sm:$0xff]  ;;  %654 = vst [vmem:[#allocation2 + $0x3c] sm:$0xff] %v606_v25  ;;  %v839_v28 = vld [vmem:[#allocation2 + $0x3] ss:$4 sm:$0xff] }
 0x105   :  { %822 = vst [vmem:[#allocation3 + $0x10] sm:$0xff] %v791_v27  ;;  %652 = vst [vmem:[#allocation2 + $0x2c] sm:$0x7] %v604_v26  ;;  %v983_v29 = vld [vmem:[#allocation2 + $0x6] ss:$4 sm:$0xff]  ;;  %v9838_v31 = vpop.f32.mrb[8].mxu0 }
 0x106   :  { %v1031_v30 = vld [vmem:[#allocation2 + $0x7] ss:$4 sm:$0xff]  ;;  %870 = vst [vmem:[#allocation3 + $0x18] sm:$0xff] %v839_v28  ;;  %1014 = vst [vmem:[#allocation3 + $0x30] sm:$0xff] %v983_v29  ;;  %v449_v32 = vadd.f32 %v9838_v31, %v10872_v2  ;;  %v440_v33 = vpop.f32.mrb[9].mxu0 }
 0x107   :  { %1062 = vst [vmem:[#allocation3 + $0x38] sm:$0xff] %v1031_v30  ;;  %v9839_v34 = vpop.f32.mrb[10].mxu0  ;;  %v441_v40 = vadd.f32 %v10872_v2, %v440_v33  ;;  %v695_v57 = vld [vmem:[#allocation2] ss:$4 sm:$0xff]  ;;  %v743_v58 = vld [vmem:[#allocation2 + $0x1] ss:$4 sm:$0xff] }
 0x108   :  { %v609_v35 = vmax.f32 %v449_v32, 0.0  ;;  %v443_v36 = vpop.f32.mrb[11].mxu0  ;;  %v452_v41 = vadd.f32 %v9839_v34, %v10872_v2  ;;  %v887_v8 = vld [vmem:[#allocation2 + $0x4] ss:$4 sm:$0xff]  ;;  %v935_v12 = vld [vmem:[#allocation2 + $0x5] ss:$4 sm:$0xff] }
 0x109   :  { %v444_v42 = vadd.f32 %v10872_v2, %v443_v36  ;;  %v607_v49 = vmax.f32 %v441_v40, 0.0  ;;  %v10106_v25 = vld [vmem:[%s12885_s2 + $0xd0] sm:$0xff]  }
 0x10a   :  { %v697_v37 = vld [vmem:[#allocation2 + $0x20] ss:$4 sm:$0x7]  ;;  %v745_v38 = vld [vmem:[#allocation2 + $0x21] ss:$4 sm:$0x7] }
 0x10b   :  { %727 = vst [vmem:[#allocation3 + $0x40] sm:$0x7] %v697_v37  ;;  %v793_v43 = vld [vmem:[#allocation2 + $0x22] ss:$4 sm:$0x7]  ;;  %657 = vst [vmem:[#allocation2 + $0x54] sm:$0xff] %v609_v35 }
 0x10c   :  { %v841_v44 = vld [vmem:[#allocation2 + $0x23] ss:$4 sm:$0x7]  ;;  %775 = vst [vmem:[#allocation3 + $0x48] sm:$0x7] %v745_v38  ;;  %v610_v50 = vmax.f32 %v452_v41, 0.0 }
 0x10d   :  { %823 = vst [vmem:[#allocation3 + $0x50] sm:$0x7] %v793_v43  ;;  %871 = vst [vmem:[#allocation3 + $0x58] sm:$0x7] %v841_v44  ;;  %v608_v51 = vmax.f32 %v444_v42, 0.0  ;;  %v9842_v52 = vpop.f32.mrb[12].mxu0 }
 0x10e   :  { %v1033_v45 = vld [vmem:[#allocation2 + $0x27] ss:$4 sm:$0x7]  ;;  %v889_v46 = vld [vmem:[#allocation2 + $0x24] ss:$4 sm:$0x7]  ;;  %v465_v53 = vadd.f32 %v9842_v52, %v10872_v2 }
 0x10f   :  { %1063 = vst [vmem:[#allocation3 + $0x78] sm:$0x7] %v1033_v45  ;;  %919 = vst [vmem:[#allocation3 + $0x60] sm:$0x7] %v889_v46  ;;  %v456_v54 = vpop.f32.mrb[13].mxu0  ;;  %v10107_v28 = vld [vmem:[%s12885_s2 + $0x90] sm:$0xff]  }
 0x110   :  { %v937_v47 = vld [vmem:[#allocation2 + $0x25] ss:$4 sm:$0x7]  ;;  %v985_v48 = vld [vmem:[#allocation2 + $0x26] ss:$4 sm:$0x7]  ;;  %v457_v55 = vadd.f32 %v10872_v2, %v456_v54 }
 0x111   :  { %967 = vst [vmem:[#allocation3 + $0x68] sm:$0x7] %v937_v47  ;;  %1015 = vst [vmem:[#allocation3 + $0x70] sm:$0x7] %v985_v48  ;;  %v9843_v56 = vpop.f32.mrb[14].mxu0  ;;  %v613_v59 = vmax.f32 %v465_v53, 0.0 }
 0x112   :  { %655 = vst [vmem:[#allocation2 + $0x44] sm:$0xff] %v607_v49  ;;  %658 = vst [vmem:[#allocation2 + $0x5c] sm:$0x7] %v610_v50  ;;  %v468_v60 = vadd.f32 %v9843_v56, %v10872_v2  ;;  %v459_v61 = vpop.f32.mrb[15].mxu0  ;;  %v611_v63 = vmax.f32 %v457_v55, 0.0  ;;  %v1086_v3 = vld [vmem:[#allocation3 + $0x40] sm:$0xff] }
 0x113   :  { %656 = vst [vmem:[#allocation2 + $0x4c] sm:$0xff] %v608_v51  ;;  %v1037_v62 = vld [vmem:[#allocation2 + $0x57] ss:$4 sm:$0x7]  ;;  %v460_v0 = vadd.f32 %v10872_v2, %v459_v61  ;;  %v1087_v1 = vld [vmem:[#allocation3 + $0x48] sm:$0xff]  ;;  %661 = vst [vmem:[#allocation2 + $0x74] sm:$0xff] %v613_v59  ;;  %v1206_v6 = vpack.c.bf16 %v1086_v3, %v695_v57 }
 0x114   :  { %1065 = vst [vmem:[#allocation3 + $0xf8] sm:$0x7] %v1037_v62  ;;  %v614_v4 = vmax.f32 %v468_v60, 0.0  ;;  %v1207_v5 = vpack.c.bf16 %v1087_v1, %v743_v58  ;;  %659 = vst [vmem:[#allocation2 + $0x64] sm:$0xff] %v611_v63  ;;  %v10108_v38 = vld [vmem:[%s12885_s2 + $0xd8] sm:$0xff]   ;;  %v10110_v46 = vld [vmem:[%s12885_s2 + $0xe0] sm:$0xff]  }
 0x115   :  { %v612_v9 = vmax.f32 %v460_v0, 0.0  ;;  %v9846_v13 = vpop.f32.mrb[16].mxu0  ;;  %v10109_v43 = vld [vmem:[%s12885_s2 + $0x98] sm:$0xff]   ;;  %v10111_v57 = vld [vmem:[%s12885_s2 + $0xa0] sm:$0xff]   ;;  %v10112_v63 = vld [vmem:[%s12885_s2 + $0xe8] sm:$0xff]  }
 0x116   :  { %v1090_v10 = vld [vmem:[#allocation3 + $0x60] sm:$0xff]  ;;  %662 = vst [vmem:[#allocation2 + $0x7c] sm:$0xff] %v614_v4  ;;  %1819 = vmatprep.mubr.bf16.mxu1 %v1207_v5  ;;  %v481_v16 = vadd.f32 %v9846_v13, %v10872_v2  ;;  %v472_v17 = vpop.f32.mrb[17].mxu0 }
 0x117   :  { %v1210_v15 = vpack.c.bf16 %v1090_v10, %v887_v8  ;;  %660 = vst [vmem:[#allocation2 + $0x6c] sm:$0xff] %v612_v9  ;;  %1820 = vmatmul.mubr.bf16.vlgmr.msra.gmra.mrb[0].mxu1 %v1206_v6  ;;  %v473_v22 = vadd.f32 %v10872_v2, %v472_v17  ;;  %v9847_v31 = vpop.f32.mrb[18].mxu0  ;;  %v10113_v17 = vld [vmem:[%s12885_s2 + $0xa8] sm:$0xff]  }
 0x118   :  { %v1091_v14 = vld [vmem:[#allocation3 + $0x68] sm:$0xff]  ;;  %9071 = vmatpush3.bf16.msra.mxu1 %v10103_v7  ;;  %v617_v24 = vmax.f32 %v481_v16, 0.0  ;;  %v475_v34 = vpop.f32.mrb[19].mxu0  ;;  %v484_v36 = vadd.f32 %v9847_v31, %v10872_v2 }
 0x119   :  { %v1211_v18 = vpack.c.bf16 %v1091_v14, %v935_v12  ;;  %v893_v20 = vld [vmem:[#allocation2 + $0x54] ss:$4 sm:$0x7]  ;;  %v941_v21 = vld [vmem:[#allocation2 + $0x55] ss:$4 sm:$0x7]  ;;  %9072 = vmatprep.subr.bf16.mxu1 %v10104_v11  ;;  %v476_v37 = vadd.f32 %v10872_v2, %v475_v34 }
 0x11a   :  { %921 = vst [vmem:[#allocation3 + $0xe0] sm:$0x7] %v893_v20  ;;  %969 = vst [vmem:[#allocation3 + $0xe8] sm:$0x7] %v941_v21  ;;  %v615_v27 = vmax.f32 %v473_v22, 0.0  ;;  %v618_v50 = vmax.f32 %v484_v36, 0.0 }
 0x11b   :  { %v989_v23 = vld [vmem:[#allocation2 + $0x56] ss:$4 sm:$0x7]  ;;  %2013 = vmatprep.mubr.bf16.mxu0 %v1211_v18  ;;  %v701_v26 = vld [vmem:[#allocation2 + $0x50] ss:$4 sm:$0x7] }
 0x11c   :  { %1017 = vst [vmem:[#allocation3 + $0xf0] sm:$0x7] %v989_v23  ;;  %2014 = vmatmul.mubr.bf16.vlgmr.msra.gmra.mrb[48].mxu0 %v1210_v15  ;;  %729 = vst [vmem:[#allocation3 + $0xc0] sm:$0x7] %v701_v26  ;;  %v795_v30 = vld [vmem:[#allocation2 + $0x32] ss:$4 sm:$0xff]  ;;  %9073 = vmatpush3.bf16.msra.mxu1 %v10105_v19 }
 0x11d   :  { %v749_v29 = vld [vmem:[#allocation2 + $0x51] ss:$4 sm:$0x7]  ;;  %665 = vst [vmem:[#allocation2 + $0x94] sm:$0xff] %v617_v24  ;;  %v843_v33 = vld [vmem:[#allocation2 + $0x33] ss:$4 sm:$0xff]  ;;  %9074 = vmatprep.subr.bf16.mxu1 %v10106_v25 }
 0x11e   :  { %777 = vst [vmem:[#allocation3 + $0xc8] sm:$0x7] %v749_v29  ;;  %v797_v32 = vld [vmem:[#allocation2 + $0x52] ss:$4 sm:$0x7]  ;;  %824 = vst [vmem:[#allocation3 + $0x90] sm:$0xff] %v795_v30 }
 0x11f   :  { %663 = vst [vmem:[#allocation2 + $0x84] sm:$0xff] %v615_v27  ;;  %825 = vst [vmem:[#allocation3 + $0xd0] sm:$0x7] %v797_v32  ;;  %v845_v35 = vld [vmem:[#allocation2 + $0x53] ss:$4 sm:$0x7] }
 0x120   :  { %872 = vst [vmem:[#allocation3 + $0x98] sm:$0xff] %v843_v33  ;;  %873 = vst [vmem:[#allocation3 + $0xd8] sm:$0x7] %v845_v35  ;;  %v987_v40 = vld [vmem:[#allocation2 + $0x36] ss:$4 sm:$0xff]  ;;  %9075 = vmatpush3.bf16.msra.mxu1 %v10107_v28  ;;  %v616_v51 = vmax.f32 %v476_v37, 0.0 }
 0x121   :  { %v1035_v41 = vld [vmem:[#allocation2 + $0x37] ss:$4 sm:$0xff]  ;;  %1016 = vst [vmem:[#allocation3 + $0xb0] sm:$0xff] %v987_v40  ;;  %v799_v42 = vld [vmem:[#allocation2 + $0x62] ss:$4 sm:$0xff]  ;;  %9076 = vmatprep.subr.bf16.mxu1 %v10108_v38  ;;  %v9850_v53 = vpop.f32.mrb[20].mxu0 }
 0x122   :  { %1064 = vst [vmem:[#allocation3 + $0xb8] sm:$0xff] %v1035_v41  ;;  %v939_v44 = vld [vmem:[#allocation2 + $0x35] ss:$4 sm:$0xff]  ;;  %v847_v45 = vld [vmem:[#allocation2 + $0x63] ss:$4 sm:$0xff]  ;;  %826 = vst [vmem:[#allocation3 + $0x110] sm:$0xff] %v799_v42  ;;  %v497_v61 = vadd.f32 %v9850_v53, %v10872_v2 }
 0x123   :  { %v891_v47 = vld [vmem:[#allocation2 + $0x34] ss:$4 sm:$0xff]  ;;  %v991_v48 = vld [vmem:[#allocation2 + $0x66] ss:$4 sm:$0xff]  ;;  %v1039_v49 = vld [vmem:[#allocation2 + $0x67] ss:$4 sm:$0xff] }
 0x124   :  { %874 = vst [vmem:[#allocation3 + $0x118] sm:$0xff] %v847_v45  ;;  %v699_v52 = vld [vmem:[#allocation2 + $0x30] ss:$4 sm:$0xff]  ;;  %1018 = vst [vmem:[#allocation3 + $0x130] sm:$0xff] %v991_v48  ;;  %v747_v58 = vld [vmem:[#allocation2 + $0x31] ss:$4 sm:$0xff]  ;;  %9077 = vmatpush3.bf16.msra.mxu1 %v10109_v43 }
 0x125   :  { %1066 = vst [vmem:[#allocation3 + $0x138] sm:$0xff] %v1039_v49  ;;  %v1107_v54 = vld [vmem:[#allocation3 + $0xe8] sm:$0xff]  ;;  %v1102_v55 = vld [vmem:[#allocation3 + $0xc0] sm:$0xff]  ;;  %666 = vst [vmem:[#allocation2 + $0x9c] sm:$0xff] %v618_v50  ;;  %v621_v5 = vmax.f32 %v497_v61, 0.0  ;;  %v488_v6 = vpop.f32.mrb[21].mxu0  ;;  %9078 = vmatprep.subr.bf16.mxu1 %v10110_v46 }
 0x126   :  { %v1106_v56 = vld [vmem:[#allocation3 + $0xe0] sm:$0xff]  ;;  %664 = vst [vmem:[#allocation2 + $0x8c] sm:$0x7] %v616_v51  ;;  %v1219_v62 = vpack.c.bf16 %v1107_v54, %v939_v44  ;;  %v1103_v7 = vld [vmem:[#allocation3 + $0xc8] sm:$0xff]  ;;  %v1214_v8 = vpack.c.bf16 %v1102_v55, %v699_v52  ;;  %v489_v9 = vadd.f32 %v10872_v2, %v488_v6  ;;  %v9851_v10 = vpop.f32.mrb[22].mxu0  ;;  %v10114_v21 = vld [vmem:[%s12885_s2 + $0xf0] sm:$0xff]  }
 0x127   :  { %v705_v59 = vld [vmem:[#allocation2 + $0x80] ss:$4 sm:$0x7]  ;;  %v753_v60 = vld [vmem:[#allocation2 + $0x81] ss:$4 sm:$0x7]  ;;  %v1218_v3 = vpack.c.bf16 %v1106_v56, %v891_v47  ;;  %v1215_v11 = vpack.c.bf16 %v1103_v7, %v747_v58  ;;  %v500_v12 = vadd.f32 %v9851_v10, %v10872_v2 }
 0x128   :  { %731 = vst [vmem:[#allocation3 + $0x140] sm:$0x7] %v705_v59  ;;  %779 = vst [vmem:[#allocation3 + $0x148] sm:$0x7] %v753_v60  ;;  %2021 = vmatprep.mubr.bf16.mxu0 %v1219_v62  ;;  %v491_v13 = vpop.f32.mrb[23].mxu0  ;;  %v619_v14 = vmax.f32 %v489_v9, 0.0  ;;  %9079 = vmatpush3.bf16.msra.mxu1 %v10111_v57 }
 0x129   :  { %v801_v0 = vld [vmem:[#allocation2 + $0x82] ss:$4 sm:$0x7]  ;;  %v849_v1 = vld [vmem:[#allocation2 + $0x83] ss:$4 sm:$0x7]  ;;  %2022 = vmatmul.mubr.bf16.gmra.mrb[52].mxu0 %v1218_v3  ;;  %1827 = vmatprep.mubr.bf16.mxu1 %v1215_v11  ;;  %v492_v15 = vadd.f32 %v10872_v2, %v491_v13 }
 0x12a   :  { %827 = vst [vmem:[#allocation3 + $0x150] sm:$0x7] %v801_v0  ;;  %875 = vst [vmem:[#allocation3 + $0x158] sm:$0x7] %v849_v1  ;;  %v9854_v16 = vpop.f32.mrb[24].mxu0  ;;  %v622_v18 = vmax.f32 %v500_v12, 0.0  ;;  %1828 = vmatmul.mubr.bf16.gmra.mrb[4].mxu1 %v1214_v8  ;;  %9080 = vmatprep.subr.bf16.mxu1 %v10112_v63 }
 0x12b   :  { %v1041_v4 = vld [vmem:[#allocation2 + $0x87] ss:$4 sm:$0x7]  ;;  %669 = vst [vmem:[#allocation2 + $0xb4] sm:$0xff] %v621_v5  ;;  %v513_v19 = vadd.f32 %v9854_v16, %v10872_v2  ;;  %v504_v20 = vpop.f32.mrb[25].mxu0  ;;  %667 = vst [vmem:[#allocation2 + $0xa4] sm:$0xff] %v619_v14 }
 0x12c   :  { %1067 = vst [vmem:[#allocation3 + $0x178] sm:$0x7] %v1041_v4  ;;  %v703_v22 = vld [vmem:[#allocation2 + $0x60] ss:$4 sm:$0xff]  ;;  %v505_v25 = vadd.f32 %v10872_v2, %v504_v20  ;;  %670 = vst [vmem:[#allocation2 + $0xbc] sm:$0x7] %v622_v18  ;;  %9081 = vmatpush3.bf16.msra.mxu1 %v10113_v17 }
 0x12d   :  { %v897_v23 = vld [vmem:[#allocation2 + $0x84] ss:$4 sm:$0x7]  ;;  %v945_v24 = vld [vmem:[#allocation2 + $0x85] ss:$4 sm:$0x7]  ;;  %9082 = vmatprep.subr.bf16.mxu1 %v10114_v21 }
 0x12e   :  { %v10115_v26 = vld [vmem:[%s12885_s2 + $0xb0] sm:$0xff]   ;;  %923 = vst [vmem:[#allocation3 + $0x160] sm:$0x7] %v897_v23  ;;  %971 = vst [vmem:[#allocation3 + $0x168] sm:$0x7] %v945_v24  ;;  %v620_v28 = vmax.f32 %v492_v15, 0.0 }
 0x12f   :  { %v993_v27 = vld [vmem:[#allocation2 + $0x86] ss:$4 sm:$0x7]  ;;  %v625_v29 = vmax.f32 %v513_v19, 0.0  ;;  %v9855_v30 = vpop.f32.mrb[26].mxu0  ;;  %v623_v32 = vmax.f32 %v505_v25, 0.0 }
 0x130   :  { %v751_v31 = vld [vmem:[#allocation2 + $0x61] ss:$4 sm:$0xff]  ;;  %1019 = vst [vmem:[#allocation3 + $0x170] sm:$0x7] %v993_v27  ;;  %v516_v33 = vadd.f32 %v9855_v30, %v10872_v2  ;;  %v507_v34 = vpop.f32.mrb[27].mxu0  ;;  %668 = vst [vmem:[#allocation2 + $0xac] sm:$0xff] %v620_v28  ;;  %9083 = vmatpush3.bf16.msra.mxu1 %v10115_v26 }
 0x131   :  { %v1119_v35 = vld [vmem:[#allocation3 + $0x148] sm:$0xff]  ;;  %v1118_v36 = vld [vmem:[#allocation3 + $0x140] sm:$0xff]  ;;  %673 = vst [vmem:[#allocation2 + $0xd4] sm:$0xff] %v625_v29  ;;  %v508_v37 = vadd.f32 %v10872_v2, %v507_v34  ;;  %v10116_v41 = vld [vmem:[%s12885_s2 + $0xf8] sm:$0xff]   ;;  %v9858_v44 = vpop.f32.mrb[28].mxu0 }
 0x132   :  { %v1223_v38 = vpack.c.bf16 %v1119_v35, %v751_v31  ;;  %v1222_v40 = vpack.c.bf16 %v1118_v36, %v703_v22  ;;  %v1045_v42 = vld [vmem:[#allocation2 + $0xb7] ss:$4 sm:$0x7]  ;;  %671 = vst [vmem:[#allocation2 + $0xc4] sm:$0xff] %v623_v32  ;;  %v626_v43 = vmax.f32 %v516_v33, 0.0  ;;  %v529_v46 = vadd.f32 %v9858_v44, %v10872_v2  ;;  %v520_v47 = vpop.f32.mrb[29].mxu0  ;;  %9084 = vmatprep.subr.bf16.mxu1 %v10116_v41 }
 0x133   :  { %1069 = vst [vmem:[#allocation3 + $0x1f8] sm:$0x7] %v1045_v42  ;;  %v624_v45 = vmax.f32 %v508_v37, 0.0  ;;  %v521_v48 = vadd.f32 %v10872_v2, %v520_v47  ;;  %v9859_v49 = vpop.f32.mrb[30].mxu0  ;;  %v10117_v50 = vld [vmem:[%s12885_s2 + $0xb8] sm:$0xff]   ;;  %v10118_v55 = vld [vmem:[%s12885_s2 + $0x1c0] sm:$0xff]  }
 0x134   :  { %1835 = vmatprep.mubr.bf16.mxu1 %v1223_v38  ;;  %674 = vst [vmem:[#allocation2 + $0xdc] sm:$0xff] %v626_v43  ;;  %v943_v51 = vld [vmem:[#allocation2 + $0x65] ss:$4 sm:$0xff]  ;;  %v629_v52 = vmax.f32 %v529_v46, 0.0  ;;  %v532_v53 = vadd.f32 %v9859_v49, %v10872_v2  ;;  %v523_v54 = vpop.f32.mrb[31].mxu0  ;;  %9085 = vmatpush3.bf16.msra.mxu1 %v10117_v50 }
 0x135   :  { %672 = vst [vmem:[#allocation2 + $0xcc] sm:$0xff] %v624_v45  ;;  %1836 = vmatmul.mubr.bf16.gmra.mrb[8].mxu1 %v1222_v40  ;;  %v901_v56 = vld [vmem:[#allocation2 + $0xb4] ss:$4 sm:$0x7]  ;;  %v524_v58 = vadd.f32 %v10872_v2, %v523_v54  ;;  %v627_v60 = vmax.f32 %v521_v48, 0.0  ;;  %v1123_v62 = vld [vmem:[#allocation3 + $0x168] sm:$0xff]  ;;  %9198 = vmatprep.subr.bf16.mxu1 %v10118_v55 }
 0x136   :  { %v949_v57 = vld [vmem:[#allocation2 + $0xb5] ss:$4 sm:$0x7]  ;;  %925 = vst [vmem:[#allocation3 + $0x1e0] sm:$0x7] %v901_v56  ;;  %677 = vst [vmem:[#allocation2 + $0xf4] sm:$0xff] %v629_v52  ;;  %v1227_v0 = vpack.c.bf16 %v1123_v62, %v943_v51 }
 0x137   :  { %973 = vst [vmem:[#allocation3 + $0x1e8] sm:$0x7] %v949_v57  ;;  %v997_v59 = vld [vmem:[#allocation2 + $0xb6] ss:$4 sm:$0x7]  ;;  %v630_v61 = vmax.f32 %v532_v53, 0.0 }
 0x138   :  { %1021 = vst [vmem:[#allocation3 + $0x1f0] sm:$0x7] %v997_v59  ;;  %v709_v63 = vld [vmem:[#allocation2 + $0xb0] ss:$4 sm:$0x7]  ;;  %v628_v1 = vmax.f32 %v524_v58, 0.0  ;;  %2029 = vmatprep.mubr.bf16.mxu0 %v1227_v0 }
 0x139   :  { %v895_v3 = vld [vmem:[#allocation2 + $0x64] ss:$4 sm:$0xff]  ;;  %733 = vst [vmem:[#allocation3 + $0x1c0] sm:$0x7] %v709_v63  ;;  %675 = vst [vmem:[#allocation2 + $0xe4] sm:$0xff] %v627_v60  ;;  %v9862_v8 = vpop.f32.mrb[32].mxu0 }
 0x13a   :  { %v757_v4 = vld [vmem:[#allocation2 + $0xb1] ss:$4 sm:$0x7]  ;;  %678 = vst [vmem:[#allocation2 + $0xfc] sm:$0xff] %v630_v61  ;;  %v1122_v5 = vld [vmem:[#allocation3 + $0x160] sm:$0xff]  ;;  %v536_v10 = vpop.f32.mrb[33].mxu0  ;;  %v545_v17 = vadd.f32 %v9862_v8, %v10872_v2 }
 0x13b   :  { %781 = vst [vmem:[#allocation3 + $0x1c8] sm:$0x7] %v757_v4  ;;  %v805_v6 = vld [vmem:[#allocation2 + $0xb2] ss:$4 sm:$0x7]  ;;  %v1226_v7 = vpack.c.bf16 %v1122_v5, %v895_v3  ;;  %v537_v18 = vadd.f32 %v10872_v2, %v536_v10  ;;  %v9863_v30 = vpop.f32.mrb[34].mxu0 }
 0x13c   :  { %676 = vst [vmem:[#allocation2 + $0xec] sm:$0x7] %v628_v1  ;;  %829 = vst [vmem:[#allocation3 + $0x1d0] sm:$0x7] %v805_v6  ;;  %v995_v11 = vld [vmem:[#allocation2 + $0x96] ss:$4 sm:$0xff]  ;;  %v548_v35 = vadd.f32 %v9863_v30, %v10872_v2 }
 0x13d   :  { %v853_v9 = vld [vmem:[#allocation2 + $0xb3] ss:$4 sm:$0x7]  ;;  %2030 = vmatmul.mubr.bf16.gmra.mrb[56].mxu0 %v1226_v7  ;;  %1020 = vst [vmem:[#allocation3 + $0x1b0] sm:$0xff] %v995_v11  ;;  %v999_v13 = vld [vmem:[#allocation2 + $0xc6] ss:$4 sm:$0xff] }
 0x13e   :  { %877 = vst [vmem:[#allocation3 + $0x1d8] sm:$0x7] %v853_v9  ;;  %v1043_v12 = vld [vmem:[#allocation2 + $0x97] ss:$4 sm:$0xff]  ;;  %1022 = vst [vmem:[#allocation3 + $0x230] sm:$0xff] %v999_v13  ;;  %v633_v28 = vmax.f32 %v545_v17, 0.0 }
 0x13f   :  { %1068 = vst [vmem:[#allocation3 + $0x1b8] sm:$0xff] %v1043_v12  ;;  %v1047_v14 = vld [vmem:[#allocation2 + $0xc7] ss:$4 sm:$0xff]  ;;  %v707_v21 = vld [vmem:[#allocation2 + $0x90] ss:$4 sm:$0xff]  ;;  %v631_v29 = vmax.f32 %v537_v18, 0.0 }
 0x140   :  { %1070 = vst [vmem:[#allocation3 + $0x238] sm:$0xff] %v1047_v14  ;;  %v713_v15 = vld [vmem:[#allocation2 + $0xe0] ss:$4 sm:$0x7]  ;;  %v755_v22 = vld [vmem:[#allocation2 + $0x91] ss:$4 sm:$0xff] }
 0x141   :  { %v761_v16 = vld [vmem:[#allocation2 + $0xe1] ss:$4 sm:$0x7]  ;;  %735 = vst [vmem:[#allocation3 + $0x240] sm:$0x7] %v713_v15  ;;  %v539_v38 = vpop.f32.mrb[35].mxu0 }
 0x142   :  { %783 = vst [vmem:[#allocation3 + $0x248] sm:$0x7] %v761_v16  ;;  %v809_v19 = vld [vmem:[#allocation2 + $0xe2] ss:$4 sm:$0x7]  ;;  %681 = vst [vmem:[#allocation2 + $0x114] sm:$0xff] %v633_v28  ;;  %v540_v42 = vadd.f32 %v10872_v2, %v539_v38 }
 0x143   :  { %v857_v20 = vld [vmem:[#allocation2 + $0xe3] ss:$4 sm:$0x7]  ;;  %v947_v23 = vld [vmem:[#allocation2 + $0x95] ss:$4 sm:$0xff]  ;;  %679 = vst [vmem:[#allocation2 + $0x104] sm:$0xff] %v631_v29 }
 0x144   :  { %831 = vst [vmem:[#allocation3 + $0x250] sm:$0x7] %v809_v19  ;;  %879 = vst [vmem:[#allocation3 + $0x258] sm:$0x7] %v857_v20  ;;  %v1135_v31 = vld [vmem:[#allocation3 + $0x1c8] sm:$0xff]  ;;  %v1134_v33 = vld [vmem:[#allocation3 + $0x1c0] sm:$0xff] }
 0x145   :  { %v1049_v24 = vld [vmem:[#allocation2 + $0xe7] ss:$4 sm:$0x7]  ;;  %v905_v25 = vld [vmem:[#allocation2 + $0xe4] ss:$4 sm:$0x7]  ;;  %v1231_v36 = vpack.c.bf16 %v1135_v31, %v755_v22  ;;  %v1230_v40 = vpack.c.bf16 %v1134_v33, %v707_v21 }
 0x146   :  { %1071 = vst [vmem:[#allocation3 + $0x278] sm:$0x7] %v1049_v24  ;;  %927 = vst [vmem:[#allocation3 + $0x260] sm:$0x7] %v905_v25  ;;  %v1139_v32 = vld [vmem:[#allocation3 + $0x1e8] sm:$0xff]  ;;  %v1138_v41 = vld [vmem:[#allocation3 + $0x1e0] sm:$0xff] }
 0x147   :  { %v953_v26 = vld [vmem:[#allocation2 + $0xe5] ss:$4 sm:$0x7]  ;;  %v1001_v27 = vld [vmem:[#allocation2 + $0xe6] ss:$4 sm:$0x7]  ;;  %v1235_v37 = vpack.c.bf16 %v1139_v32, %v947_v23  ;;  %1843 = vmatprep.mubr.bf16.mxu1 %v1231_v36 }
 0x148   :  { %975 = vst [vmem:[#allocation3 + $0x268] sm:$0x7] %v953_v26  ;;  %1023 = vst [vmem:[#allocation3 + $0x270] sm:$0x7] %v1001_v27  ;;  %v899_v34 = vld [vmem:[#allocation2 + $0x94] ss:$4 sm:$0xff]  ;;  %1844 = vmatmul.mubr.bf16.gmra.mrb[12].mxu1 %v1230_v40 }
 0x149   :  { %v1234_v43 = vpack.c.bf16 %v1138_v41, %v899_v34  ;;  %v9866_v44 = vpop.f32.mrb[36].mxu0  ;;  %v634_v45 = vmax.f32 %v548_v35, 0.0  ;;  %2037 = vmatprep.mubr.bf16.mxu0 %v1235_v37  ;;  %v759_v48 = vld [vmem:[#allocation2 + $0xc1] ss:$4 sm:$0xff]  ;;  %v632_v49 = vmax.f32 %v540_v42, 0.0 }
 0x14a   :  { %v561_v46 = vadd.f32 %v9866_v44, %v10872_v2  ;;  %v552_v47 = vpop.f32.mrb[37].mxu0  ;;  %v1151_v52 = vld [vmem:[#allocation3 + $0x248] sm:$0xff]  ;;  %v1150_v53 = vld [vmem:[#allocation3 + $0x240] sm:$0xff]  ;;  %v1053_v12 = vld [vmem:[#allocation2 + $0x117] ss:$4 sm:$0x7] }
 0x14b   :  { %2038 = vmatmul.mubr.bf16.gmra.mrb[60].mxu0 %v1234_v43  ;;  %v553_v50 = vadd.f32 %v10872_v2, %v552_v47  ;;  %v9867_v51 = vpop.f32.mrb[38].mxu0  ;;  %v711_v54 = vld [vmem:[#allocation2 + $0xc0] ss:$4 sm:$0xff]  ;;  %682 = vst [vmem:[#allocation2 + $0x11c] sm:$0x7] %v634_v45  ;;  %v1239_v58 = vpack.c.bf16 %v1151_v52, %v759_v48  ;;  %680 = vst [vmem:[#allocation2 + $0x10c] sm:$0xff] %v632_v49 }
 0x14c   :  { %v637_v55 = vmax.f32 %v561_v46, 0.0  ;;  %v564_v56 = vadd.f32 %v9867_v51, %v10872_v2  ;;  %v555_v57 = vpop.f32.mrb[39].mxu0  ;;  %v903_v59 = vld [vmem:[#allocation2 + $0xc4] ss:$4 sm:$0xff]  ;;  %v951_v0 = vld [vmem:[#allocation2 + $0xc5] ss:$4 sm:$0xff]  ;;  %v1238_v5 = vpack.c.bf16 %v1150_v53, %v711_v54 }
 0x14d   :  { %v635_v60 = vmax.f32 %v553_v50, 0.0  ;;  %v556_v61 = vadd.f32 %v10872_v2, %v555_v57  ;;  %v9870_v62 = vpop.f32.mrb[40].mxu0  ;;  %v1154_v63 = vld [vmem:[#allocation3 + $0x260] sm:$0xff]  ;;  %1851 = vmatprep.mubr.bf16.mxu1 %v1239_v58  ;;  %1073 = vst [vmem:[#allocation3 + $0x2f8] sm:$0x7] %v1053_v12 }
 0x14e   :  { %685 = vst [vmem:[#allocation2 + $0x134] sm:$0xff] %v637_v55  ;;  %v638_v1 = vmax.f32 %v564_v56, 0.0  ;;  %v577_v3 = vadd.f32 %v9870_v62, %v10872_v2  ;;  %v568_v4 = vpop.f32.mrb[41].mxu0  ;;  %v1242_v11 = vpack.c.bf16 %v1154_v63, %v903_v59 }
 0x14f   :  { %v1155_v6 = vld [vmem:[#allocation3 + $0x268] sm:$0xff]  ;;  %683 = vst [vmem:[#allocation2 + $0x124] sm:$0xff] %v635_v60  ;;  %v636_v7 = vmax.f32 %v556_v61, 0.0  ;;  %v569_v8 = vadd.f32 %v10872_v2, %v568_v4  ;;  %v9871_v9 = vpop.f32.mrb[42].mxu0 }
 0x150   :  { %v1243_v10 = vpack.c.bf16 %v1155_v6, %v951_v0  ;;  %686 = vst [vmem:[#allocation2 + $0x13c] sm:$0xff] %v638_v1  ;;  %v641_v13 = vmax.f32 %v577_v3, 0.0  ;;  %v580_v14 = vadd.f32 %v9871_v9, %v10872_v2  ;;  %v571_v15 = vpop.f32.mrb[43].mxu0  ;;  %1852 = vmatmul.mubr.bf16.gmra.mrb[16].mxu1 %v1238_v5 }
 0x151   :  { %684 = vst [vmem:[#allocation2 + $0x12c] sm:$0xff] %v636_v7  ;;  %v639_v16 = vmax.f32 %v569_v8, 0.0  ;;  %v572_v17 = vadd.f32 %v10872_v2, %v571_v15  ;;  %v9874_v24 = vpop.f32.mrb[44].mxu0 }
 0x152   :  { %2045 = vmatprep.mubr.bf16.mxu0 %v1243_v10  ;;  %689 = vst [vmem:[#allocation2 + $0x154] sm:$0xff] %v641_v13  ;;  %v642_v18 = vmax.f32 %v580_v14, 0.0  ;;  %v909_v19 = vld [vmem:[#allocation2 + $0x114] ss:$4 sm:$0x7]  ;;  %v593_v26 = vadd.f32 %v9874_v24, %v10872_v2  ;;  %v584_v27 = vpop.f32.mrb[45].mxu0 }
 0x153   :  { %v957_v20 = vld [vmem:[#allocation2 + $0x115] ss:$4 sm:$0x7]  ;;  %687 = vst [vmem:[#allocation2 + $0x144] sm:$0xff] %v639_v16  ;;  %2046 = vmatmul.mubr.bf16.gmra.mrb[64].mxu0 %v1242_v11  ;;  %929 = vst [vmem:[#allocation3 + $0x2e0] sm:$0x7] %v909_v19  ;;  %v585_v32 = vadd.f32 %v10872_v2, %v584_v27 }
 0x154   :  { %977 = vst [vmem:[#allocation3 + $0x2e8] sm:$0x7] %v957_v20  ;;  %v1005_v21 = vld [vmem:[#allocation2 + $0x116] ss:$4 sm:$0x7]  ;;  %690 = vst [vmem:[#allocation2 + $0x15c] sm:$0xff] %v642_v18 }
 0x155   :  { %v640_v22 = vmax.f32 %v572_v17, 0.0  ;;  %1025 = vst [vmem:[#allocation3 + $0x2f0] sm:$0x7] %v1005_v21  ;;  %v717_v23 = vld [vmem:[#allocation2 + $0x110] ss:$4 sm:$0x7] }
 0x156   :  { %737 = vst [vmem:[#allocation3 + $0x2c0] sm:$0x7] %v717_v23  ;;  %v765_v25 = vld [vmem:[#allocation2 + $0x111] ss:$4 sm:$0x7]  ;;  %v9875_v29 = vpop.f32.mrb[46].mxu0 }
 0x157   :  { %688 = vst [vmem:[#allocation2 + $0x14c] sm:$0x7] %v640_v22  ;;  %785 = vst [vmem:[#allocation3 + $0x2c8] sm:$0x7] %v765_v25  ;;  %v645_v31 = vmax.f32 %v593_v26, 0.0  ;;  %v596_v33 = vadd.f32 %v9875_v29, %v10872_v2  ;;  %v643_v34 = vmax.f32 %v585_v32, 0.0 }
 0x158   :  { %v813_v28 = vld [vmem:[#allocation2 + $0x112] ss:$4 sm:$0x7]  ;;  %v861_v30 = vld [vmem:[#allocation2 + $0x113] ss:$4 sm:$0x7] }
 0x159   :  { %833 = vst [vmem:[#allocation3 + $0x2d0] sm:$0x7] %v813_v28  ;;  %881 = vst [vmem:[#allocation3 + $0x2d8] sm:$0x7] %v861_v30  ;;  %v646_v35 = vmax.f32 %v596_v33, 0.0  ;;  %v587_v51 = vpop.f32.mrb[47].mxu0 }
 0x15a   :  { %693 = vst [vmem:[#allocation2 + $0x174] sm:$0xff] %v645_v31  ;;  %v721_v36 = vld [vmem:[#allocation2 + $0x140] ss:$4 sm:$0x7]  ;;  %691 = vst [vmem:[#allocation2 + $0x164] sm:$0xff] %v643_v34  ;;  %v588_v55 = vadd.f32 %v10872_v2, %v587_v51  ;;  %v1089_v27 = vld [vmem:[#allocation3 + $0x58] sm:$0xff] }
 0x15b   :  { %v769_v37 = vld [vmem:[#allocation2 + $0x141] ss:$4 sm:$0x7]  ;;  %739 = vst [vmem:[#allocation3 + $0x340] sm:$0x7] %v721_v36  ;;  %v1081_v29 = vld [vmem:[#allocation3 + $0x18] sm:$0xff] }
 0x15c   :  { %787 = vst [vmem:[#allocation3 + $0x348] sm:$0x7] %v769_v37  ;;  %v817_v38 = vld [vmem:[#allocation2 + $0x142] ss:$4 sm:$0x7]  ;;  %v644_v61 = vmax.f32 %v588_v55, 0.0  ;;  %v1209_v30 = vpack.c.bf16 %v1089_v27, %v1081_v29 }
 0x15d   :  { %v865_v40 = vld [vmem:[#allocation2 + $0x143] ss:$4 sm:$0x7]  ;;  %694 = vst [vmem:[#allocation2 + $0x17c] sm:$0x7] %v646_v35  ;;  %v1088_v31 = vld [vmem:[#allocation3 + $0x50] sm:$0xff] }
 0x15e   :  { %v763_v41 = vld [vmem:[#allocation2 + $0xf1] ss:$4 sm:$0xff]  ;;  %835 = vst [vmem:[#allocation3 + $0x350] sm:$0x7] %v817_v38  ;;  %883 = vst [vmem:[#allocation3 + $0x358] sm:$0x7] %v865_v40 }
 0x15f   :  { %v955_v42 = vld [vmem:[#allocation2 + $0xf5] ss:$4 sm:$0xff]  ;;  %v1057_v43 = vld [vmem:[#allocation2 + $0x147] ss:$4 sm:$0x7]  ;;  %692 = vst [vmem:[#allocation2 + $0x16c] sm:$0xff] %v644_v61 }
 0x160   :  { %v913_v44 = vld [vmem:[#allocation2 + $0x144] ss:$4 sm:$0x7]  ;;  %1075 = vst [vmem:[#allocation3 + $0x378] sm:$0x7] %v1057_v43  ;;  %v1097_v32 = vld [vmem:[#allocation3 + $0x98] sm:$0xff] }
 0x161   :  { %v715_v45 = vld [vmem:[#allocation2 + $0xf0] ss:$4 sm:$0xff]  ;;  %931 = vst [vmem:[#allocation3 + $0x360] sm:$0x7] %v913_v44  ;;  %v767_v60 = vld [vmem:[#allocation2 + $0x121] ss:$4 sm:$0xff] }
 0x162   :  { %v961_v46 = vld [vmem:[#allocation2 + $0x145] ss:$4 sm:$0x7]  ;;  %v1009_v47 = vld [vmem:[#allocation2 + $0x146] ss:$4 sm:$0x7] }
 0x163   :  { %979 = vst [vmem:[#allocation3 + $0x368] sm:$0x7] %v961_v46  ;;  %1027 = vst [vmem:[#allocation3 + $0x370] sm:$0x7] %v1009_v47  ;;  %v1167_v49 = vld [vmem:[#allocation3 + $0x2c8] sm:$0xff]  ;;  %v1166_v56 = vld [vmem:[#allocation3 + $0x2c0] sm:$0xff] }
 0x164   :  { %v1061_v48 = vld [vmem:[#allocation2 + $0x177] ss:$4 sm:$0x7]  ;;  %v1171_v50 = vld [vmem:[#allocation3 + $0x2e8] sm:$0xff]  ;;  %v1247_v53 = vpack.c.bf16 %v1167_v49, %v763_v41  ;;  %v1170_v57 = vld [vmem:[#allocation3 + $0x2e0] sm:$0xff]  ;;  %v1246_v58 = vpack.c.bf16 %v1166_v56, %v715_v45 }
 0x165   :  { %v907_v52 = vld [vmem:[#allocation2 + $0xf4] ss:$4 sm:$0xff]  ;;  %1077 = vst [vmem:[#allocation3 + $0x3f8] sm:$0x7] %v1061_v48  ;;  %v1251_v54 = vpack.c.bf16 %v1171_v50, %v955_v42  ;;  %v959_v7 = vld [vmem:[#allocation2 + $0x125] ss:$4 sm:$0xff] }
 0x166   :  { %v1250_v59 = vpack.c.bf16 %v1170_v57, %v907_v52  ;;  %1859 = vmatprep.mubr.bf16.mxu1 %v1247_v53  ;;  %v917_v62 = vld [vmem:[#allocation2 + $0x174] ss:$4 sm:$0x7]  ;;  %v965_v63 = vld [vmem:[#allocation2 + $0x175] ss:$4 sm:$0x7] }
 0x167   :  { %2053 = vmatprep.mubr.bf16.mxu0 %v1251_v54  ;;  %1860 = vmatmul.mubr.bf16.gmra.mrb[20].mxu1 %v1246_v58  ;;  %933 = vst [vmem:[#allocation3 + $0x3e0] sm:$0x7] %v917_v62  ;;  %981 = vst [vmem:[#allocation3 + $0x3e8] sm:$0x7] %v965_v63  ;;  %v1183_v1 = vld [vmem:[#allocation3 + $0x348] sm:$0xff]  ;;  %v1182_v3 = vld [vmem:[#allocation3 + $0x340] sm:$0xff] }
 0x168   :  { %2054 = vmatmul.mubr.bf16.gmra.mrb[68].mxu0 %v1250_v59  ;;  %v1013_v0 = vld [vmem:[#allocation2 + $0x176] ss:$4 sm:$0x7]  ;;  %v719_v4 = vld [vmem:[#allocation2 + $0x120] ss:$4 sm:$0xff]  ;;  %v1255_v2 = vpack.c.bf16 %v1183_v1, %v767_v60 }
 0x169   :  { %1029 = vst [vmem:[#allocation3 + $0x3f0] sm:$0x7] %v1013_v0  ;;  %v1186_v5 = vld [vmem:[#allocation3 + $0x360] sm:$0xff]  ;;  %v1254_v9 = vpack.c.bf16 %v1182_v3, %v719_v4  ;;  %v725_v12 = vld [vmem:[#allocation2 + $0x170] ss:$4 sm:$0x7] }
 0x16a   :  { %v911_v6 = vld [vmem:[#allocation2 + $0x124] ss:$4 sm:$0xff]  ;;  %1867 = vmatprep.mubr.bf16.mxu1 %v1255_v2  ;;  %741 = vst [vmem:[#allocation3 + $0x3c0] sm:$0x7] %v725_v12  ;;  %v963_v18 = vld [vmem:[#allocation2 + $0x155] ss:$4 sm:$0xff] }
 0x16b   :  { %v1187_v8 = vld [vmem:[#allocation3 + $0x368] sm:$0xff]  ;;  %v1258_v11 = vpack.c.bf16 %v1186_v5, %v911_v6  ;;  %v773_v13 = vld [vmem:[#allocation2 + $0x171] ss:$4 sm:$0x7]  ;;  %v10119_v35 = vld [vmem:[%s12885_s2 + $0x180] sm:$0xff]  }
 0x16c   :  { %v1259_v10 = vpack.c.bf16 %v1187_v8, %v959_v7  ;;  %789 = vst [vmem:[#allocation3 + $0x3c8] sm:$0x7] %v773_v13  ;;  %v821_v14 = vld [vmem:[#allocation2 + $0x172] ss:$4 sm:$0x7]  ;;  %v10120_v37 = vld [vmem:[%s12885_s2 + $0x1c8] sm:$0xff]  }
 0x16d   :  { %837 = vst [vmem:[#allocation3 + $0x3d0] sm:$0x7] %v821_v14  ;;  %v869_v16 = vld [vmem:[#allocation2 + $0x173] ss:$4 sm:$0x7]  ;;  %v10121_v40 = vld [vmem:[%s12885_s2 + $0x188] sm:$0xff]  }
 0x16e   :  { %2061 = vmatprep.mubr.bf16.mxu0 %v1259_v10  ;;  %v1203_v15 = vld [vmem:[#allocation3 + $0x3e8] sm:$0xff]  ;;  %v1202_v17 = vld [vmem:[#allocation3 + $0x3e0] sm:$0xff]  ;;  %885 = vst [vmem:[#allocation3 + $0x3d8] sm:$0x7] %v869_v16  ;;  %v1105_v33 = vld [vmem:[#allocation3 + $0xd8] sm:$0xff] }
 0x16f   :  { %1868 = vmatmul.mubr.bf16.gmra.mrb[24].mxu1 %v1254_v9  ;;  %v915_v19 = vld [vmem:[#allocation2 + $0x154] ss:$4 sm:$0xff]  ;;  %v1267_v20 = vpack.c.bf16 %v1203_v15, %v963_v18  ;;  %v771_v24 = vld [vmem:[#allocation2 + $0x151] ss:$4 sm:$0xff]  ;;  %v1217_v38 = vpack.c.bf16 %v1105_v33, %v1097_v32  ;;  %v851_v56 = vld [vmem:[#allocation2 + $0x93] ss:$4 sm:$0xff] }
 0x170   :  { %2062 = vmatmul.mubr.bf16.gmra.mrb[72].mxu0 %v1258_v11  ;;  %v1266_v21 = vpack.c.bf16 %v1202_v17, %v915_v19  ;;  %v723_v22 = vld [vmem:[#allocation2 + $0x150] ss:$4 sm:$0xff]  ;;  %v803_v0 = vld [vmem:[#allocation2 + $0x92] ss:$4 sm:$0xff]  ;;  %v855_v3 = vld [vmem:[#allocation2 + $0xc3] ss:$4 sm:$0xff] }
 0x171   :  { %2069 = vmatprep.mubr.bf16.mxu0 %v1267_v20  ;;  %v1198_v23 = vld [vmem:[#allocation3 + $0x3c0] sm:$0xff]  ;;  %v1080_v34 = vld [vmem:[#allocation3 + $0x10] sm:$0xff]  ;;  %v1121_v44 = vld [vmem:[#allocation3 + $0x158] sm:$0xff] }
 0x172   :  { %v1262_v26 = vpack.c.bf16 %v1198_v23, %v723_v22  ;;  %v1208_v36 = vpack.c.bf16 %v1088_v31, %v1080_v34  ;;  %v10122_v41 = vld [vmem:[%s12885_s2 + $0x1d0] sm:$0xff]   ;;  %v1113_v47 = vld [vmem:[#allocation3 + $0x118] sm:$0xff]  ;;  %v10126_v51 = vld [vmem:[%s12885_s2 + $0x1e0] sm:$0xff]  }
 0x173   :  { %v1199_v25 = vld [vmem:[#allocation3 + $0x3c8] sm:$0xff]  ;;  %v1096_v42 = vld [vmem:[#allocation3 + $0x90] sm:$0xff]  ;;  %v10124_v48 = vld [vmem:[%s12885_s2 + $0x1d8] sm:$0xff]   ;;  %v1225_v49 = vpack.c.bf16 %v1121_v44, %v1113_v47 }
 0x174   :  { %v1263_v28 = vpack.c.bf16 %v1199_v25, %v771_v24  ;;  %v1104_v43 = vld [vmem:[#allocation3 + $0xd0] sm:$0xff]  ;;  %v10125_v50 = vld [vmem:[%s12885_s2 + $0x198] sm:$0xff]   ;;  %v10127_v55 = vld [vmem:[%s12885_s2 + $0x1a0] sm:$0xff]  }
 0x175   :  { %v10123_v45 = vld [vmem:[%s12885_s2 + $0x190] sm:$0xff]   ;;  %v1216_v46 = vpack.c.bf16 %v1104_v43, %v1096_v42  ;;  %v1137_v53 = vld [vmem:[#allocation3 + $0x1d8] sm:$0xff]  ;;  %v10128_v58 = vld [vmem:[%s12885_s2 + $0x1e8] sm:$0xff]  }
 0x176   :  { %1875 = vmatprep.mubr.bf16.mxu1 %v1263_v28  ;;  %v1120_v52 = vld [vmem:[#allocation3 + $0x150] sm:$0xff]  ;;  %v1233_v59 = vpack.c.bf16 %v1137_v53, %v851_v56  ;;  %v10129_v60 = vld [vmem:[%s12885_s2 + $0x1a8] sm:$0xff]   ;;  %v1153_v63 = vld [vmem:[#allocation3 + $0x258] sm:$0xff] }
 0x177   :  { %1876 = vmatmul.mubr.bf16.gmra.mrb[28].mxu1 %v1262_v26  ;;  %v1112_v54 = vld [vmem:[#allocation3 + $0x110] sm:$0xff]  ;;  %v10132_v2 = vld [vmem:[%s12885_s2 + $0x1f8] sm:$0xff]   ;;  %v1241_v5 = vpack.c.bf16 %v1153_v63, %v855_v3 }
 0x178   :  { %2070 = vmatmul.mubr.bf16.gmra.mrb[76].mxu0 %v1266_v21  ;;  %1916 = vmatprep.mubr.bf16.mxu1 %v1209_v30  ;;  %v1224_v57 = vpack.c.bf16 %v1120_v52, %v1112_v54  ;;  %v10130_v61 = vld [vmem:[%s12885_s2 + $0x1f0] sm:$0xff]   ;;  %v10133_v6 = vld [vmem:[%s12885_s2 + $0x1b8] sm:$0xff]  }
 0x179   :  { %v1136_v62 = vld [vmem:[#allocation3 + $0x1d0] sm:$0xff]  ;;  %v1169_v8 = vld [vmem:[#allocation3 + $0x2d8] sm:$0xff] }
 0x17a   :  { %v10131_v1 = vld [vmem:[%s12885_s2 + $0x1b0] sm:$0xff]   ;;  %v1232_v4 = vpack.c.bf16 %v1136_v62, %v803_v0  ;;  %v1185_v14 = vld [vmem:[#allocation3 + $0x358] sm:$0xff] }
 0x17b   :  { %v1152_v7 = vld [vmem:[#allocation3 + $0x250] sm:$0xff]  ;;  %v1201_v20 = vld [vmem:[#allocation3 + $0x3d8] sm:$0xff] }
 0x17c   :  { %v807_v9 = vld [vmem:[#allocation2 + $0xc2] ss:$4 sm:$0xff]  ;;  %v859_v10 = vld [vmem:[#allocation2 + $0xf3] ss:$4 sm:$0xff] }
 0x17d   :  { %v1240_v11 = vpack.c.bf16 %v1152_v7, %v807_v9  ;;  %v1249_v12 = vpack.c.bf16 %v1169_v8, %v859_v10  ;;  %v1168_v13 = vld [vmem:[#allocation3 + $0x2d0] sm:$0xff]  ;;  %v1093_v26 = vld [vmem:[#allocation3 + $0x78] sm:$0xff] }
 0x17e   :  { %v811_v15 = vld [vmem:[#allocation2 + $0xf2] ss:$4 sm:$0xff]  ;;  %v863_v16 = vld [vmem:[#allocation2 + $0x123] ss:$4 sm:$0xff] }
 0x17f   :  { %1917 = vmatmul.mubr.bf16.vlgmr.msra.gmra.mrb[32].mxu1 %v1208_v36  ;;  %v1248_v17 = vpack.c.bf16 %v1168_v13, %v811_v15  ;;  %v1257_v18 = vpack.c.bf16 %v1185_v14, %v863_v16  ;;  %v1184_v19 = vld [vmem:[#allocation3 + $0x350] sm:$0xff]  ;;  %v1085_v29 = vld [vmem:[#allocation3 + $0x38] sm:$0xff] }
 0x180   :  { %1924 = vmatprep.mubr.bf16.mxu1 %v1217_v38  ;;  %9199 = vmatpush3.bf16.msra.mxu1 %v10119_v35  ;;  %v815_v21 = vld [vmem:[#allocation2 + $0x122] ss:$4 sm:$0xff]  ;;  %v867_v22 = vld [vmem:[#allocation2 + $0x153] ss:$4 sm:$0xff]  ;;  %v1213_v30 = vpack.c.bf16 %v1093_v26, %v1085_v29 }
 0x181   :  { %9200 = vmatprep.subr.bf16.mxu1 %v10120_v37  ;;  %v1256_v23 = vpack.c.bf16 %v1184_v19, %v815_v21  ;;  %v1265_v24 = vpack.c.bf16 %v1201_v20, %v867_v22  ;;  %v1200_v25 = vld [vmem:[#allocation3 + $0x3d0] sm:$0xff]  ;;  %v1101_v32 = vld [vmem:[#allocation3 + $0xb8] sm:$0xff]  ;;  %v10136_v26 = vld [vmem:[%s12887_s3 + $0x4] ss:$8 sps:$4 sm:$0xff]  }
 0x182   :  { %v819_v27 = vld [vmem:[#allocation2 + $0x152] ss:$4 sm:$0xff]  ;;  %v1059_v7 = vld [vmem:[#allocation2 + $0x157] ss:$4 sm:$0xff]  ;;  %2879 = vmatprep.subr.bf16.mxu0 %v10136_v26 }
 0x183   :  { %v1264_v28 = vpack.c.bf16 %v1200_v25, %v819_v27  ;;  %v1092_v31 = vld [vmem:[#allocation3 + $0x70] sm:$0xff]  ;;  %v1109_v35 = vld [vmem:[#allocation3 + $0xf8] sm:$0xff]  ;;  %v10134_v25 = vld [vmem:[%s12887_s3] ss:$8 sps:$4 sm:$0xff]  }
 0x184   :  { %9201 = vmatpush3.bf16.msra.mxu1 %v10121_v40  ;;  %v1084_v33 = vld [vmem:[#allocation3 + $0x30] sm:$0xff]  ;;  %v1221_v36 = vpack.c.bf16 %v1109_v35, %v1101_v32  ;;  %v1125_v40 = vld [vmem:[#allocation3 + $0x178] sm:$0xff]  ;;  %2880 = vmatpush1.bf16.msra.mxu0 %v10134_v25  ;;  %v10140_v35 = vld [vmem:[%s12887_s3 + $0x20] ss:$8 sps:$4 sm:$0xff]  }
 0x185   :  { %9202 = vmatprep.subr.bf16.mxu1 %v10122_v41  ;;  %v1212_v34 = vpack.c.bf16 %v1092_v31, %v1084_v33  ;;  %v1100_v37 = vld [vmem:[#allocation3 + $0xb0] sm:$0xff]  ;;  %v1117_v42 = vld [vmem:[#allocation3 + $0x138] sm:$0xff] }
 0x186   :  { %v1108_v38 = vld [vmem:[#allocation3 + $0xf0] sm:$0xff]  ;;  %v1229_v43 = vpack.c.bf16 %v1125_v40, %v1117_v42  ;;  %v1157_v52 = vld [vmem:[#allocation3 + $0x278] sm:$0xff] }
 0x187   :  { %1925 = vmatmul.mubr.bf16.gmra.mrb[36].mxu1 %v1216_v46  ;;  %v1220_v41 = vpack.c.bf16 %v1108_v38, %v1100_v37  ;;  %v1124_v44 = vld [vmem:[#allocation3 + $0x170] sm:$0xff]  ;;  %v1149_v54 = vld [vmem:[#allocation3 + $0x238] sm:$0xff] }
 0x188   :  { %1932 = vmatprep.mubr.bf16.mxu1 %v1225_v49  ;;  %9203 = vmatpush3.bf16.msra.mxu1 %v10123_v45  ;;  %v1133_v45 = vld [vmem:[#allocation3 + $0x1b8] sm:$0xff]  ;;  %v1116_v46 = vld [vmem:[#allocation3 + $0x130] sm:$0xff] }
 0x189   :  { %9204 = vmatprep.subr.bf16.mxu1 %v10124_v48  ;;  %v1228_v47 = vpack.c.bf16 %v1124_v44, %v1116_v46  ;;  %v1141_v48 = vld [vmem:[#allocation3 + $0x1f8] sm:$0xff]  ;;  %v1156_v56 = vld [vmem:[#allocation3 + $0x270] sm:$0xff] }
 0x18a   :  { %v1237_v49 = vpack.c.bf16 %v1141_v48, %v1133_v45  ;;  %v1172_v62 = vld [vmem:[#allocation3 + $0x2f0] sm:$0xff]  ;;  %v1189_v63 = vld [vmem:[#allocation3 + $0x378] sm:$0xff]  ;;  %v10148_v48 = vld [vmem:[%s12887_s3 + $0x44] ss:$8 sps:$4 sm:$0xff]  }
 0x18b   :  { %v1003_v0 = vld [vmem:[#allocation2 + $0xf6] ss:$4 sm:$0xff] }
 0x18c   :  { %9205 = vmatpush3.bf16.msra.mxu1 %v10125_v50  ;;  %v1132_v50 = vld [vmem:[#allocation3 + $0x1b0] sm:$0xff]  ;;  %v1252_v3 = vpack.c.bf16 %v1172_v62, %v1003_v0 }
 0x18d   :  { %9206 = vmatprep.subr.bf16.mxu1 %v10126_v51  ;;  %v1140_v51 = vld [vmem:[#allocation3 + $0x1f0] sm:$0xff] }
 0x18e   :  { %v1236_v53 = vpack.c.bf16 %v1140_v51, %v1132_v50  ;;  %v1204_v16 = vld [vmem:[#allocation3 + $0x3f0] sm:$0xff] }
 0x18f   :  { %1933 = vmatmul.mubr.bf16.gmra.mrb[40].mxu1 %v1224_v57  ;;  %v1173_v57 = vld [vmem:[#allocation3 + $0x2f8] sm:$0xff] }
 0x190   :  { %1940 = vmatprep.mubr.bf16.mxu1 %v1233_v59  ;;  %9207 = vmatpush3.bf16.msra.mxu1 %v10127_v55  ;;  %v1245_v55 = vpack.c.bf16 %v1157_v52, %v1149_v54  ;;  %v1051_v59 = vld [vmem:[#allocation2 + $0xf7] ss:$4 sm:$0xff]  ;;  %v1011_v21 = vld [vmem:[#allocation2 + $0x156] ss:$4 sm:$0xff] }
 0x191   :  { %9208 = vmatprep.subr.bf16.mxu1 %v10128_v58  ;;  %v1148_v58 = vld [vmem:[#allocation3 + $0x230] sm:$0xff] }
 0x192   :  { %v10137_v27 = vld [vmem:[%s12887_s3 + $0x10] ss:$8 sps:$4 sm:$0xff]   ;;  %v10145_v42 = vld [vmem:[%s12887_s3 + $0x34] ss:$8 sps:$4 sm:$0xff]  }
 0x193   :  { %v10143_v44 = vld [vmem:[%s12887_s3 + $0x30] ss:$8 sps:$4 sm:$0xff]   ;;  %v10151_v52 = vld [vmem:[%s12887_s3 + $0x54] ss:$8 sps:$4 sm:$0xff]  }
 0x194   :  { %9209 = vmatpush3.bf16.msra.mxu1 %v10129_v60  ;;  %v1244_v60 = vpack.c.bf16 %v1156_v56, %v1148_v58  ;;  %v10149_v54 = vld [vmem:[%s12887_s3 + $0x50] ss:$8 sps:$4 sm:$0xff]   ;;  %v10152_v58 = vld [vmem:[%s12887_s3 + $0x60] ss:$8 sps:$4 sm:$0xff]  }
 0x195   :  { %9210 = vmatprep.subr.bf16.mxu1 %v10130_v61  ;;  %v1253_v61 = vpack.c.bf16 %v1173_v57, %v1051_v59  ;;  %v10154_v59 = vld [vmem:[%s12887_s3 + $0x64] ss:$8 sps:$4 sm:$0xff]   ;;  %v10161_v25 = vld [vmem:[%s12887_s3 + $0x90] ss:$8 sps:$4 sm:$0xff]  }
 0x197   :  { %1941 = vmatmul.mubr.bf16.gmra.mrb[44].mxu1 %v1232_v4 }
 0x198   :  { %1948 = vmatprep.mubr.bf16.mxu1 %v1241_v5  ;;  %9211 = vmatpush3.bf16.msra.mxu1 %v10131_v1  ;;  %v1055_v1 = vld [vmem:[#allocation2 + $0x127] ss:$4 sm:$0xff] }
 0x199   :  { %9212 = vmatprep.subr.bf16.mxu1 %v10132_v2  ;;  %v1261_v4 = vpack.c.bf16 %v1189_v63, %v1055_v1  ;;  %v1188_v2 = vld [vmem:[#allocation3 + $0x370] sm:$0xff]  ;;  %v1205_v5 = vld [vmem:[#allocation3 + $0x3f8] sm:$0xff] }
 0x19a   :  { %v1269_v9 = vpack.c.bf16 %v1205_v5, %v1059_v7  ;;  %v10157_v63 = vld [vmem:[%s12887_s3 + $0x74] ss:$8 sps:$4 sm:$0xff]   ;;  %v10155_v1 = vld [vmem:[%s12887_s3 + $0x70] ss:$8 sps:$4 sm:$0xff]  }
 0x19c   :  { %9213 = vmatpush3.bf16.msra.mxu1 %v10133_v6  ;;  %v1007_v6 = vld [vmem:[#allocation2 + $0x126] ss:$4 sm:$0xff] }
 0x19d   :  { %v1260_v8 = vpack.c.bf16 %v1188_v2, %v1007_v6 }
 0x19f   :  { %1949 = vmatmul.mubr.bf16.gmra.mrb[48].mxu1 %v1240_v11 }
 0x1a0   :  { %1956 = vmatprep.mubr.bf16.mxu1 %v1249_v12 }
 0x1a7   :  { %1957 = vmatmul.mubr.bf16.gmra.mrb[52].mxu1 %v1248_v17 }
 0x1a8   :  { %1964 = vmatprep.mubr.bf16.mxu1 %v1257_v18 }
 0x1af   :  { %1965 = vmatmul.mubr.bf16.gmra.mrb[56].mxu1 %v1256_v23  ;;  %v1268_v23 = vpack.c.bf16 %v1204_v16, %v1011_v21  ;;  %v10158_v16 = vld [vmem:[%s12887_s3 + $0x80] ss:$8 sps:$4 sm:$0xff]   ;;  %v10163_v21 = vld [vmem:[%s12887_s3 + $0x94] ss:$8 sps:$4 sm:$0xff]  }
 0x1b0   :  { %1972 = vmatprep.mubr.bf16.mxu1 %v1265_v24 }
 0x1b7   :  { %1973 = vmatmul.mubr.bf16.gmra.mrb[60].mxu1 %v1264_v28  ;;  %v10139_v28 = vld [vmem:[%s12887_s3 + $0x14] ss:$8 sps:$4 sm:$0xff]  }
 0x1b8   :  { %2110 = vmatprep.mubr.bf16.mxu1 %v1213_v30  ;;  %2881 = vmatprep.subr.bf16.mxu0 %v10139_v28 }
 0x1b9   :  { %2882 = vmatpush1.bf16.msra.mxu0 %v10137_v27 }
 0x1bf   :  { %2111 = vmatmul.mubr.bf16.vlgmr.msra.gmra.mrb[64].mxu1 %v1212_v34 }
 0x1c0   :  { %2118 = vmatprep.mubr.bf16.mxu1 %v1221_v36  ;;  %v10142_v36 = vld [vmem:[%s12887_s3 + $0x24] ss:$8 sps:$4 sm:$0xff]  }
 0x1c1   :  { %2883 = vmatprep.subr.bf16.mxu0 %v10142_v36  ;;  %v10164_v36 = vld [vmem:[%s12887_s3 + $0xa0] ss:$8 sps:$4 sm:$0xff]  }
 0x1c2   :  { %2884 = vmatpush1.bf16.msra.mxu0 %v10140_v35  ;;  %v10166_v35 = vld [vmem:[%s12887_s3 + $0xa4] ss:$8 sps:$4 sm:$0xff]  }
 0x1c3   :  { %2885 = vmatprep.subr.bf16.mxu0 %v10145_v42  ;;  %v10172_v42 = vld [vmem:[%s12887_s3 + $0xc4] ss:$8 sps:$4 sm:$0xff]  }
 0x1c6   :  { %2886 = vmatpush1.bf16.msra.mxu0 %v10143_v44  ;;  %v10175_v44 = vld [vmem:[%s12887_s3 + $0xd4] ss:$8 sps:$4 sm:$0xff]  }
 0x1c7   :  { %2119 = vmatmul.mubr.bf16.gmra.mrb[68].mxu1 %v1220_v41  ;;  %2887 = vmatprep.subr.bf16.mxu0 %v10148_v48 }
 0x1c8   :  { %2126 = vmatprep.mubr.bf16.mxu1 %v1229_v43 }
 0x1cf   :  { %2127 = vmatmul.mubr.bf16.gmra.mrb[72].mxu1 %v1228_v47  ;;  %v10146_v47 = vld [vmem:[%s12887_s3 + $0x40] ss:$8 sps:$4 sm:$0xff]  }
 0x1d0   :  { %2134 = vmatprep.mubr.bf16.mxu1 %v1237_v49  ;;  %2888 = vmatpush1.bf16.msra.mxu0 %v10146_v47 }
 0x1d1   :  { %2889 = vmatprep.subr.bf16.mxu0 %v10151_v52 }
 0x1d4   :  { %2890 = vmatpush1.bf16.msra.mxu0 %v10149_v54 }
 0x1d5   :  { %2891 = vmatprep.subr.bf16.mxu0 %v10154_v59 }
 0x1d7   :  { %2135 = vmatmul.mubr.bf16.gmra.mrb[76].mxu1 %v1236_v53 }
 0x1d8   :  { %2142 = vmatprep.mubr.bf16.mxu1 %v1245_v55  ;;  %2892 = vmatpush1.bf16.msra.mxu0 %v10152_v58 }
 0x1d9   :  { %2893 = vmatprep.subr.bf16.mxu0 %v10157_v63 }
 0x1dc   :  { %2894 = vmatpush1.bf16.msra.mxu0 %v10155_v1  ;;  %v10181_v1 = vld [vmem:[%s12887_s3 + $0xf4] ss:$8 sps:$4 sm:$0xff]  }
 0x1df   :  { %2143 = vmatmul.mubr.bf16.gmra.mrb[80].mxu1 %v1244_v60 }
 0x1e0   :  { %2150 = vmatprep.mubr.bf16.mxu1 %v1253_v61 }
 0x1e7   :  { %2151 = vmatmul.mubr.bf16.gmra.mrb[84].mxu1 %v1252_v3 }
 0x1e8   :  { %2158 = vmatprep.mubr.bf16.mxu1 %v1261_v4 }
 0x1ea   :  { %v9022_v10 = vpop.f32.mrb[0].mxu1 }
 0x1eb   :  { %v9023_v11 = vpop.f32.mrb[1].mxu1 }
 0x1ec   :  { %v11015_v12 = vadd.f32 %v9023_v11, %v9022_v10  ;;  %v9025_v13 = vpop.f32.mrb[2].mxu1 }
 0x1ed   :  { %v9026_v15 = vpop.f32.mrb[3].mxu1 }
 0x1ee   :  { %v11017_v17 = vadd.f32 %v9026_v15, %v9025_v13  ;;  %v10160_v15 = vld [vmem:[%s12887_s3 + $0x84] ss:$8 sps:$4 sm:$0xff]  }
 0x1ef   :  { %2159 = vmatmul.mubr.bf16.gmra.mrb[88].mxu1 %v1260_v8  ;;  %v9150_v14 = vpop.f32.mrb[48].mxu0  ;;  %2895 = vmatprep.subr.bf16.mxu0 %v10160_v15 }
 0x1f0   :  { %2166 = vmatprep.mubr.bf16.mxu1 %v1269_v9  ;;  %v9151_v18 = vpop.f32.mrb[49].mxu0  ;;  %2896 = vmatpush1.bf16.msra.mxu0 %v10158_v16  ;;  %v10184_v16 = vld [vmem:[%s12887_s3 + $0x104] ss:$8 sps:$4 sm:$0xff]  }
 0x1f1   :  { %v11019_v19 = vadd.f32 %v9151_v18, %v9150_v14  ;;  %v9153_v20 = vpop.f32.mrb[50].mxu0  ;;  %2897 = vmatprep.subr.bf16.mxu0 %v10163_v21 }
 0x1f2   :  { %v9154_v22 = vpop.f32.mrb[51].mxu0 }
 0x1f3   :  { %v11021_v24 = vadd.f32 %v9154_v22, %v9153_v20 }
 0x1f4   :  { %2898 = vmatpush1.bf16.msra.mxu0 %v10161_v25 }
 0x1f5   :  { %2899 = vmatprep.subr.bf16.mxu0 %v10166_v35 }
 0x1f7   :  { %2167 = vmatmul.mubr.bf16.gmra.mrb[92].mxu1 %v1268_v23 }
 0x1f8   :  { %2900 = vmatpush1.bf16.msra.mxu0 %v10164_v36 }
 0x1fc   :  { %v9156_v29 = vpop.f32.mrb[52].mxu0 }
 0x1fd   :  { %v9157_v30 = vpop.f32.mrb[53].mxu0  ;;  %v9028_v33 = vpop.f32.mrb[4].mxu1 }
 0x1fe   :  { %v11035_v31 = vadd.f32 %v9157_v30, %v9156_v29  ;;  %v9159_v32 = vpop.f32.mrb[54].mxu0  ;;  %v9029_v37 = vpop.f32.mrb[5].mxu1 }
 0x1ff   :  { %v9160_v34 = vpop.f32.mrb[55].mxu0  ;;  %v11045_v40 = vadd.f32 %v9029_v37, %v9028_v33  ;;  %v9031_v41 = vpop.f32.mrb[6].mxu1  ;;  %v10169_v37 = vld [vmem:[%s12887_s3 + $0xb4] ss:$8 sps:$4 sm:$0xff]  }
 0x200   :  { %v11043_v38 = vadd.f32 %v9160_v34, %v9159_v32  ;;  %v9032_v43 = vpop.f32.mrb[7].mxu1  ;;  %2901 = vmatprep.subr.bf16.mxu0 %v10169_v37 }
 0x201   :  { %v11053_v45 = vadd.f32 %v9032_v43, %v9031_v41  ;;  %v10167_v41 = vld [vmem:[%s12887_s3 + $0xb0] ss:$8 sps:$4 sm:$0xff]   ;;  %v10170_v43 = vld [vmem:[%s12887_s3 + $0xc0] ss:$8 sps:$4 sm:$0xff]  }
 0x202   :  { %2902 = vmatpush1.bf16.msra.mxu0 %v10167_v41 }
 0x203   :  { %2903 = vmatprep.subr.bf16.mxu0 %v10172_v42 }
 0x206   :  { %2904 = vmatpush1.bf16.msra.mxu0 %v10170_v43 }
 0x207   :  { %2905 = vmatprep.subr.bf16.mxu0 %v10175_v44  ;;  %v11181_v44 = vld [vmem:[%s12886_s5 + $0x1] ss:$0 sm:$0xff] }
 0x208   :  { %v9034_v46 = vpop.f32.mrb[8].mxu1 }
 0x209   :  { %v9035_v49 = vpop.f32.mrb[9].mxu1 }
 0x20a   :  { %v11061_v50 = vadd.f32 %v9035_v49, %v9034_v46  ;;  %v9037_v51 = vpop.f32.mrb[10].mxu1  ;;  %v10173_v46 = vld [vmem:[%s12887_s3 + $0xd0] ss:$8 sps:$4 sm:$0xff]  }
 0x20b   :  { %v9038_v53 = vpop.f32.mrb[11].mxu1  ;;  %2906 = vmatpush1.bf16.msra.mxu0 %v10173_v46 }
 0x20c   :  { %v11069_v55 = vadd.f32 %v9038_v53, %v9037_v51 }
 0x210   :  { %v9162_v56 = vpop.f32.mrb[56].mxu0 }
 0x211   :  { %v9163_v57 = vpop.f32.mrb[57].mxu0 }
 0x212   :  { %v11077_v60 = vadd.f32 %v9163_v57, %v9162_v56  ;;  %v9165_v61 = vpop.f32.mrb[58].mxu0  ;;  %v10178_v57 = vld [vmem:[%s12887_s3 + $0xe4] ss:$8 sps:$4 sm:$0xff]  }
 0x213   :  { %v9166_v62 = vpop.f32.mrb[59].mxu0  ;;  %2907 = vmatprep.subr.bf16.mxu0 %v10178_v57  ;;  %v1825_v57 = vadd.f32 %v11017_v17, %v11181_v44  ;;  %v1833_v17 = vadd.f32 %v11053_v45, %v11181_v44  ;;  %v1841_v45 = vadd.f32 %v11069_v55, %v11181_v44 }
 0x214   :  { %v11082_v0 = vadd.f32 %v9166_v62, %v9165_v61  ;;  %v10176_v61 = vld [vmem:[%s12887_s3 + $0xe0] ss:$8 sps:$4 sm:$0xff]  }
 0x215   :  { %2908 = vmatpush1.bf16.msra.mxu0 %v10176_v61 }
 0x216   :  { %2909 = vmatprep.subr.bf16.mxu0 %v10181_v1 }
 0x21b   :  { %v9040_v3 = vpop.f32.mrb[12].mxu1 }
 0x21c   :  { %v9041_v2 = vpop.f32.mrb[13].mxu1 }
 0x21d   :  { %v11087_v6 = vadd.f32 %v9041_v2, %v9040_v3  ;;  %v9043_v8 = vpop.f32.mrb[14].mxu1  ;;  %v10179_v3 = vld [vmem:[%s12887_s3 + $0xf0] ss:$8 sps:$4 sm:$0xff]  }
 0x21e   :  { %v9168_v4 = vpop.f32.mrb[60].mxu0  ;;  %v9044_v10 = vpop.f32.mrb[15].mxu1  ;;  %2910 = vmatpush1.bf16.msra.mxu0 %v10179_v3 }
 0x21f   :  { %v9169_v5 = vpop.f32.mrb[61].mxu0  ;;  %v11091_v13 = vadd.f32 %v9044_v10, %v9043_v8  ;;  %2952 = vmatprep.subr.bf16.mxu0 %v10184_v16 }
 0x220   :  { %v11089_v7 = vadd.f32 %v9169_v5, %v9168_v4  ;;  %v9171_v9 = vpop.f32.mrb[62].mxu0 }
 0x221   :  { %v9172_v11 = vpop.f32.mrb[63].mxu0  ;;  %v1849_v55 = vadd.f32 %v11091_v13, %v11181_v44 }
 0x222   :  { %v11093_v14 = vadd.f32 %v9172_v11, %v9171_v9 }
 0x223   :  { %v9046_v18 = vpop.f32.mrb[16].mxu1 }
 0x224   :  { %v9047_v22 = vpop.f32.mrb[17].mxu1 }
 0x225   :  { %v11107_v26 = vadd.f32 %v9047_v22, %v9046_v18  ;;  %v9049_v27 = vpop.f32.mrb[18].mxu1 }
 0x226   :  { %v9174_v20 = vpop.f32.mrb[64].mxu0  ;;  %v9050_v30 = vpop.f32.mrb[19].mxu1 }
 0x227   :  { %v9175_v23 = vpop.f32.mrb[65].mxu0  ;;  %v11111_v33 = vadd.f32 %v9050_v30, %v9049_v27 }
 0x228   :  { %v11109_v28 = vadd.f32 %v9175_v23, %v9174_v20  ;;  %v9177_v29 = vpop.f32.mrb[66].mxu0 }
 0x229   :  { %v9178_v32 = vpop.f32.mrb[67].mxu0  ;;  %v1857_v13 = vadd.f32 %v11111_v33, %v11181_v44 }
 0x22a   :  { %v11113_v34 = vadd.f32 %v9178_v32, %v9177_v29 }
 0x23a   :  { %v9052_v47 = vpop.f32.mrb[20].mxu1 }
 0x23b   :  { %v9180_v48 = vpop.f32.mrb[68].mxu0  ;;  %v9053_v49 = vpop.f32.mrb[21].mxu1 }
 0x23c   :  { %v9181_v51 = vpop.f32.mrb[69].mxu0  ;;  %v11139_v52 = vadd.f32 %v9053_v49, %v9052_v47  ;;  %v9055_v54 = vpop.f32.mrb[22].mxu1 }
 0x23d   :  { %v11141_v53 = vadd.f32 %v9181_v51, %v9180_v48  ;;  %v9183_v56 = vpop.f32.mrb[70].mxu0  ;;  %v9056_v58 = vpop.f32.mrb[23].mxu1  ;;  %v1822_v48 = vadd.f32 %v11015_v12, %v11181_v44  ;;  %v1830_v12 = vadd.f32 %v11045_v40, %v11181_v44  ;;  %v1838_v40 = vadd.f32 %v11061_v50, %v11181_v44 }
 0x23e   :  { %v9184_v59 = vpop.f32.mrb[71].mxu0  ;;  %v11149_v62 = vadd.f32 %v9056_v58, %v9055_v54  ;;  %v1846_v50 = vadd.f32 %v11087_v6, %v11181_v44  ;;  %v1854_v6 = vadd.f32 %v11107_v26, %v11181_v44  ;;  %v1862_v26 = vadd.f32 %v11139_v52, %v11181_v44 }
 0x23f   :  { %v11151_v63 = vadd.f32 %v9184_v59, %v9183_v56 }
 0x240   :  { %v1865_v33 = vadd.f32 %v11149_v62, %v11181_v44 }
 0x242   :  { %v9058_v4 = vpop.f32.mrb[24].mxu1 }
 0x243   :  { %v9186_v2 = vpop.f32.mrb[72].mxu0  ;;  %v9059_v5 = vpop.f32.mrb[25].mxu1 }
 0x244   :  { %v9187_v8 = vpop.f32.mrb[73].mxu0  ;;  %v11159_v9 = vadd.f32 %v9059_v5, %v9058_v4  ;;  %v9061_v10 = vpop.f32.mrb[26].mxu1 }
 0x245   :  { %v11161_v11 = vadd.f32 %v9187_v8, %v9186_v2  ;;  %v9189_v15 = vpop.f32.mrb[74].mxu0  ;;  %v9062_v18 = vpop.f32.mrb[27].mxu1 }
 0x246   :  { %v9190_v20 = vpop.f32.mrb[75].mxu0  ;;  %v11166_v21 = vadd.f32 %v9062_v18, %v9061_v10  ;;  %v1870_v52 = vadd.f32 %v11159_v9, %v11181_v44 }
 0x247   :  { %v11168_v22 = vadd.f32 %v9190_v20, %v9189_v15 }
 0x248   :  { %v1873_v62 = vadd.f32 %v11166_v21, %v11181_v44 }
 0x24a   :  { %v9064_v35 = vpop.f32.mrb[28].mxu1 }
 0x24b   :  { %v9192_v23 = vpop.f32.mrb[76].mxu0  ;;  %v9065_v36 = vpop.f32.mrb[29].mxu1 }
 0x24c   :  { %v9193_v25 = vpop.f32.mrb[77].mxu0  ;;  %v11174_v37 = vadd.f32 %v9065_v36, %v9064_v35  ;;  %v9067_v41 = vpop.f32.mrb[30].mxu1 }
 0x24d   :  { %v11170_v27 = vadd.f32 %v9193_v25, %v9192_v23  ;;  %v9195_v29 = vpop.f32.mrb[78].mxu0  ;;  %v9068_v42 = vpop.f32.mrb[31].mxu1 }
 0x24e   :  { %v9196_v30 = vpop.f32.mrb[79].mxu0  ;;  %v11176_v43 = vadd.f32 %v9068_v42, %v9067_v41  ;;  %v1878_v9 = vadd.f32 %v11174_v37, %v11181_v44 }
 0x24f   :  { %v11172_v32 = vadd.f32 %v9196_v30, %v9195_v29 }
 0x250   :  { %v1881_v21 = vadd.f32 %v11176_v43, %v11181_v44 }
 0x252   :  { %v9086_v46 = vpop.f32.mrb[32].mxu1 }
 0x253   :  { %v9087_v47 = vpop.f32.mrb[33].mxu1 }
 0x254   :  { %v9088_v49 = vadd.f32 %v9087_v47, %v9086_v46  ;;  %v9089_v51 = vpop.f32.mrb[34].mxu1 }
 0x255   :  { %v9090_v54 = vpop.f32.mrb[35].mxu1 }
 0x256   :  { %v1919_v56 = vadd.f32 %v9088_v49, %v1822_v48  ;;  %v9091_v58 = vadd.f32 %v9090_v54, %v9089_v51 }
 0x258   :  { %v1922_v59 = vadd.f32 %v9091_v58, %v1825_v57  ;;  %v11188_v61 = vadd.f32 %v11019_v19, %v1919_v56 }
 0x25a   :  { %v9092_v1 = vpop.f32.mrb[36].mxu1  ;;  %v11191_v3 = vadd.f32 %v11021_v24, %v1922_v59 }
 0x25b   :  { %v9093_v4 = vpop.f32.mrb[37].mxu1 }
 0x25c   :  { %v9094_v2 = vadd.f32 %v9093_v4, %v9092_v1  ;;  %v9095_v5 = vpop.f32.mrb[38].mxu1 }
 0x25d   :  { %v9096_v8 = vpop.f32.mrb[39].mxu1 }
 0x25e   :  { %v1927_v10 = vadd.f32 %v9094_v2, %v1830_v12  ;;  %v9097_v15 = vadd.f32 %v9096_v8, %v9095_v5 }
 0x260   :  { %v1930_v16 = vadd.f32 %v9097_v15, %v1833_v17  ;;  %v11198_v19 = vadd.f32 %v11035_v31, %v1927_v10 }
 0x262   :  { %v9098_v18 = vpop.f32.mrb[40].mxu1  ;;  %v11201_v24 = vadd.f32 %v11043_v38, %v1930_v16 }
 0x263   :  { %v9099_v20 = vpop.f32.mrb[41].mxu1 }
 0x264   :  { %v9100_v23 = vadd.f32 %v9099_v20, %v9098_v18  ;;  %v9101_v25 = vpop.f32.mrb[42].mxu1 }
 0x265   :  { %v9102_v29 = vpop.f32.mrb[43].mxu1 }
 0x266   :  { %v1935_v30 = vadd.f32 %v9100_v23, %v1838_v40  ;;  %v9103_v35 = vadd.f32 %v9102_v29, %v9101_v25 }
 0x268   :  { %v1938_v36 = vadd.f32 %v9103_v35, %v1841_v45  ;;  %v11208_v31 = vadd.f32 %v11077_v60, %v1935_v30 }
 0x26a   :  { %v9104_v41 = vpop.f32.mrb[44].mxu1  ;;  %v11211_v38 = vadd.f32 %v11082_v0, %v1938_v36 }
 0x26b   :  { %v9105_v42 = vpop.f32.mrb[45].mxu1 }
 0x26c   :  { %v9106_v46 = vadd.f32 %v9105_v42, %v9104_v41  ;;  %v9107_v47 = vpop.f32.mrb[46].mxu1 }
 0x26d   :  { %v9108_v48 = vpop.f32.mrb[47].mxu1 }
 0x26e   :  { %v1943_v49 = vadd.f32 %v9106_v46, %v1846_v50  ;;  %v9109_v51 = vadd.f32 %v9108_v48, %v9107_v47 }
 0x270   :  { %v1946_v54 = vadd.f32 %v9109_v51, %v1849_v55  ;;  %v11218_v60 = vadd.f32 %v11089_v7, %v1943_v49 }
 0x272   :  { %v9110_v56 = vpop.f32.mrb[48].mxu1  ;;  %v11221_v0 = vadd.f32 %v11093_v14, %v1946_v54 }
 0x273   :  { %v9111_v57 = vpop.f32.mrb[49].mxu1 }
 0x274   :  { %v9112_v58 = vadd.f32 %v9111_v57, %v9110_v56  ;;  %v9113_v59 = vpop.f32.mrb[50].mxu1 }
 0x275   :  { %v9114_v1 = vpop.f32.mrb[51].mxu1 }
 0x276   :  { %v1951_v4 = vadd.f32 %v9112_v58, %v1854_v6  ;;  %v9115_v12 = vadd.f32 %v9114_v1, %v9113_v59 }
 0x278   :  { %v1954_v2 = vadd.f32 %v9115_v12, %v1857_v13  ;;  %v11228_v7 = vadd.f32 %v11109_v28, %v1951_v4 }
 0x27a   :  { %v9116_v5 = vpop.f32.mrb[52].mxu1  ;;  %v11231_v14 = vadd.f32 %v11113_v34, %v1954_v2 }
 0x27b   :  { %v9117_v8 = vpop.f32.mrb[53].mxu1 }
 0x27c   :  { %v9118_v10 = vadd.f32 %v9117_v8, %v9116_v5  ;;  %v9119_v17 = vpop.f32.mrb[54].mxu1 }
 0x27d   :  { %v9120_v15 = vpop.f32.mrb[55].mxu1 }
 0x27e   :  { %v1959_v16 = vadd.f32 %v9118_v10, %v1862_v26  ;;  %v9121_v18 = vadd.f32 %v9120_v15, %v9119_v17 }
 0x280   :  { %v1962_v20 = vadd.f32 %v9121_v18, %v1865_v33  ;;  %v11238_v28 = vadd.f32 %v11141_v53, %v1959_v16 }
 0x282   :  { %v9122_v40 = vpop.f32.mrb[56].mxu1  ;;  %v11241_v34 = vadd.f32 %v11151_v63, %v1962_v20 }
 0x283   :  { %v9123_v23 = vpop.f32.mrb[57].mxu1 }
 0x284   :  { %v9124_v25 = vadd.f32 %v9123_v23, %v9122_v40  ;;  %v9125_v29 = vpop.f32.mrb[58].mxu1 }
 0x285   :  { %v9126_v30 = vpop.f32.mrb[59].mxu1 }
 0x286   :  { %v1967_v45 = vadd.f32 %v9124_v25, %v1870_v52  ;;  %v9127_v35 = vadd.f32 %v9126_v30, %v9125_v29 }
 0x288   :  { %v1970_v36 = vadd.f32 %v9127_v35, %v1873_v62  ;;  %v11248_v53 = vadd.f32 %v11161_v11, %v1967_v45 }
 0x28a   :  { %v9128_v41 = vpop.f32.mrb[60].mxu1  ;;  %v11251_v63 = vadd.f32 %v11168_v22, %v1970_v36 }
 0x28b   :  { %v9129_v42 = vpop.f32.mrb[61].mxu1 }
 0x28c   :  { %v9130_v50 = vadd.f32 %v9129_v42, %v9128_v41  ;;  %v9131_v46 = vpop.f32.mrb[62].mxu1 }
 0x28d   :  { %v9132_v47 = vpop.f32.mrb[63].mxu1 }
 0x28e   :  { %v1975_v48 = vadd.f32 %v9130_v50, %v1878_v9  ;;  %v9133_v49 = vadd.f32 %v9132_v47, %v9131_v46 }
 0x290   :  { %v1978_v55 = vadd.f32 %v9133_v49, %v1881_v21  ;;  %v11258_v11 = vadd.f32 %v11170_v27, %v1975_v48 }
 0x292   :  { %v9214_v51 = vpop.f32.mrb[64].mxu1  ;;  %v11261_v22 = vadd.f32 %v11172_v32, %v1978_v55 }
 0x293   :  { %v9215_v54 = vpop.f32.mrb[65].mxu1 }
 0x294   :  { %v9216_v56 = vadd.f32 %v9215_v54, %v9214_v51  ;;  %v9217_v57 = vpop.f32.mrb[66].mxu1 }
 0x295   :  { %v9218_v37 = vpop.f32.mrb[67].mxu1 }
 0x296   :  { %v2113_v6 = vadd.f32 %v9216_v56, %v11188_v61  ;;  %v9219_v58 = vadd.f32 %v9218_v37, %v9217_v57 }
 0x298   :  { %v2175_v59 = vmax.f32 %v2113_v6, 0.0  ;;  %v2116_v1 = vadd.f32 %v9219_v58, %v11191_v3  ;;  %v10182_v58 = vld [vmem:[%s12887_s3 + $0x100] ss:$8 sps:$4 sm:$0xff]  }
 0x29a   :  { %2191 = vst [vmem:[#allocation4 + $0x2] sm:$0xff] %v2175_v59  ;;  %v2176_v43 = vmax.f32 %v2116_v1, 0.0  ;;  %v9220_v44 = vpop.f32.mrb[68].mxu1 }
 0x29b   :  { %v9221_v4 = vpop.f32.mrb[69].mxu1 }
 0x29c   :  { %2192 = vst [vmem:[#allocation4 + $0xa] sm:$0x7] %v2176_v43  ;;  %v9222_v27 = vadd.f32 %v9221_v4, %v9220_v44  ;;  %v9223_v13 = vpop.f32.mrb[70].mxu1 }
 0x29d   :  { %v9224_v12 = vpop.f32.mrb[71].mxu1 }
 0x29e   :  { %v2121_v32 = vadd.f32 %v9222_v27, %v11198_v19  ;;  %v9225_v2 = vadd.f32 %v9224_v12, %v9223_v13 }
 0x2a0   :  { %v2177_v5 = vmax.f32 %v2121_v32, 0.0  ;;  %v2124_v8 = vadd.f32 %v9225_v2, %v11201_v24 }
 0x2a2   :  { %2193 = vst [vmem:[#allocation4 + $0x12] sm:$0xff] %v2177_v5  ;;  %v2178_v61 = vmax.f32 %v2124_v8, 0.0  ;;  %v9226_v26 = vpop.f32.mrb[72].mxu1  ;;  %v10185_v5 = vld [vmem:[%s12887_s3 + $0x110] ss:$8 sps:$4 sm:$0xff]  }
 0x2a3   :  { %v2207_v10 = vld [vmem:[#allocation4] ss:$2 sm:$0x3f]  ;;  %v2231_v17 = vld [vmem:[#allocation4 + $0x1] ss:$2 sm:$0x3f] }
 0x2a4   :  { %2222 = vst [vmem:[#allocation5] sm:$0x3f] %v2207_v10  ;;  %v2255_v3 = vld [vmem:[#allocation4 + $0x2] ss:$2 sm:$0x3f]  ;;  %v9227_v33 = vpop.f32.mrb[73].mxu1 }
 0x2a5   :  { %v2279_v15 = vld [vmem:[#allocation4 + $0x3] ss:$2 sm:$0x3f]  ;;  %2246 = vst [vmem:[#allocation5 + $0x8] sm:$0x3f] %v2231_v17  ;;  %v9228_v19 = vadd.f32 %v9227_v33, %v9226_v26  ;;  %v9229_v18 = vpop.f32.mrb[74].mxu1 }
 0x2a6   :  { %2194 = vst [vmem:[#allocation4 + $0x1a] sm:$0x7] %v2178_v61  ;;  %2270 = vst [vmem:[#allocation5 + $0x10] sm:$0x3f] %v2255_v3  ;;  %v9230_v20 = vpop.f32.mrb[75].mxu1 }
 0x2a7   :  { %v2303_v16 = vld [vmem:[#allocation4 + $0x4] ss:$2 sm:$0x3f]  ;;  %2294 = vst [vmem:[#allocation5 + $0x18] sm:$0x3f] %v2279_v15  ;;  %v2129_v24 = vadd.f32 %v9228_v19, %v11208_v31  ;;  %v9231_v40 = vadd.f32 %v9230_v20, %v9229_v18 }
 0x2a8   :  { %2318 = vst [vmem:[#allocation5 + $0x20] sm:$0x3f] %v2303_v16  ;;  %v10193_v3 = vld [vmem:[%s12887_s3 + $0x134] ss:$8 sps:$4 sm:$0xff]  }
 0x2a9   :  { %v2179_v23 = vmax.f32 %v2129_v24, 0.0  ;;  %v2132_v52 = vadd.f32 %v9231_v40, %v11211_v38 }
 0x2aa   :  { %v9232_v25 = vpop.f32.mrb[76].mxu1 }
 0x2ab   :  { %2195 = vst [vmem:[#allocation4 + $0x22] sm:$0xff] %v2179_v23  ;;  %v2180_v36 = vmax.f32 %v2132_v52, 0.0  ;;  %v9233_v41 = vpop.f32.mrb[77].mxu1  ;;  %v2326_v51 = vld [vmem:[#allocation5] sm:$0xff]  ;;  %v10191_v52 = vld [vmem:[%s12887_s3 + $0x130] ss:$8 sps:$4 sm:$0xff]  }
 0x2ac   :  { %v9234_v42 = vadd.f32 %v9233_v41, %v9232_v25  ;;  %v9235_v31 = vpop.f32.mrb[78].mxu1  ;;  %v2327_v21 = vld [vmem:[#allocation5 + $0x8] sm:$0xff] }
 0x2ad   :  { %v2209_v29 = vld [vmem:[#allocation4 + $0x10] ss:$2 sm:$0x3f]  ;;  %v2233_v30 = vld [vmem:[#allocation4 + $0x11] ss:$2 sm:$0x3f] }
 0x2ae   :  { %2223 = vst [vmem:[#allocation5 + $0x28] sm:$0x3f] %v2209_v29  ;;  %v2257_v45 = vld [vmem:[#allocation4 + $0x12] ss:$2 sm:$0x3f]  ;;  %v9236_v9 = vpop.f32.mrb[79].mxu1  ;;  %v2137_v38 = vadd.f32 %v9234_v42, %v11218_v60 }
 0x2af   :  { %v2281_v62 = vld [vmem:[#allocation4 + $0x13] ss:$2 sm:$0x3f]  ;;  %2247 = vst [vmem:[#allocation5 + $0x30] sm:$0x3f] %v2233_v30  ;;  %v9237_v50 = vadd.f32 %v9236_v9, %v9235_v31 }
 0x2b0   :  { %2271 = vst [vmem:[#allocation5 + $0x38] sm:$0x3f] %v2257_v45  ;;  %v2305_v35 = vld [vmem:[#allocation4 + $0x14] ss:$2 sm:$0x3f]  ;;  %v2181_v46 = vmax.f32 %v2137_v38, 0.0 }
 0x2b1   :  { %2295 = vst [vmem:[#allocation5 + $0x40] sm:$0x3f] %v2281_v62  ;;  %2319 = vst [vmem:[#allocation5 + $0x48] sm:$0x3f] %v2305_v35  ;;  %v2140_v47 = vadd.f32 %v9237_v50, %v11221_v0  ;;  %v10187_v0 = vld [vmem:[%s12887_s3 + $0x114] ss:$8 sps:$4 sm:$0xff]  }
 0x2b2   :  { %2196 = vst [vmem:[#allocation4 + $0x2a] sm:$0x7] %v2180_v36  ;;  %v9238_v48 = vpop.f32.mrb[80].mxu1  ;;  %2197 = vst [vmem:[#allocation4 + $0x32] sm:$0xff] %v2181_v46  ;;  %v10196_v25 = vld [vmem:[%s12887_s3 + $0x144] ss:$8 sps:$4 sm:$0xff]  }
 0x2b3   :  { %v9239_v49 = vpop.f32.mrb[81].mxu1  ;;  %v2182_v56 = vmax.f32 %v2140_v47, 0.0  ;;  %v10194_v30 = vld [vmem:[%s12887_s3 + $0x140] ss:$8 sps:$4 sm:$0xff]   ;;  %v10199_v36 = vld [vmem:[%s12887_s3 + $0x154] ss:$8 sps:$4 sm:$0xff]  }
 0x2b4   :  { %v9240_v57 = vadd.f32 %v9239_v49, %v9238_v48  ;;  %v9241_v37 = vpop.f32.mrb[82].mxu1 }
 0x2b5   :  { %v2331_v54 = vld [vmem:[#allocation5 + $0x28] sm:$0xff]  ;;  %v9242_v59 = vpop.f32.mrb[83].mxu1  ;;  %2198 = vst [vmem:[#allocation4 + $0x3a] sm:$0x7] %v2182_v56  ;;  %v10197_v56 = vld [vmem:[%s12887_s3 + $0x150] ss:$8 sps:$4 sm:$0xff]  }
 0x2b6   :  { %v2332_v55 = vld [vmem:[#allocation5 + $0x30] sm:$0xff]  ;;  %v2366_v60 = vpack.c.bf16 %v2331_v54, %v2326_v51  ;;  %v2145_v44 = vadd.f32 %v9240_v57, %v11228_v7  ;;  %v9243_v4 = vadd.f32 %v9242_v59, %v9241_v37  ;;  %v10190_v7 = vld [vmem:[%s12887_s3 + $0x124] ss:$8 sps:$4 sm:$0xff]  }
 0x2b7   :  { %v2367_v6 = vpack.c.bf16 %v2332_v55, %v2327_v21  ;;  %v10202_v57 = vld [vmem:[%s12887_s3 + $0x164] ss:$8 sps:$4 sm:$0xff]  }
 0x2b8   :  { %v2183_v32 = vmax.f32 %v2145_v44, 0.0  ;;  %v2148_v2 = vadd.f32 %v9243_v4, %v11231_v14  ;;  %v10188_v14 = vld [vmem:[%s12887_s3 + $0x120] ss:$8 sps:$4 sm:$0xff]   ;;  %v10205_v44 = vld [vmem:[%s12887_s3 + $0x174] ss:$8 sps:$4 sm:$0xff]  }
 0x2b9   :  { %v2211_v1 = vld [vmem:[#allocation4 + $0x20] ss:$2 sm:$0x3f]  ;;  %v2235_v43 = vld [vmem:[#allocation4 + $0x21] ss:$2 sm:$0x3f]  ;;  %2911 = vmatprep.mubr.bf16.mxu0 %v2367_v6 }
 0x2ba   :  { %v2259_v27 = vld [vmem:[#allocation4 + $0x22] ss:$2 sm:$0x3f]  ;;  %v2283_v13 = vld [vmem:[#allocation4 + $0x23] ss:$2 sm:$0x3f]  ;;  %2912 = vmatmul.mubr.bf16.vlgmr.msra.gmra.mrb[80].mxu0 %v2366_v60 }
 0x2bb   :  { %2224 = vst [vmem:[#allocation5 + $0x50] sm:$0x3f] %v2211_v1  ;;  %2248 = vst [vmem:[#allocation5 + $0x58] sm:$0x3f] %v2235_v43  ;;  %2953 = vmatpush1.bf16.msra.mxu0 %v10182_v58  ;;  %v2184_v8 = vmax.f32 %v2148_v2, 0.0  ;;  %v9244_v61 = vpop.f32.mrb[84].mxu1 }
 0x2bc   :  { %v2307_v12 = vld [vmem:[#allocation4 + $0x24] ss:$2 sm:$0x3f]  ;;  %2272 = vst [vmem:[#allocation5 + $0x60] sm:$0x3f] %v2259_v27  ;;  %2954 = vmatprep.subr.bf16.mxu0 %v10187_v0  ;;  %2199 = vst [vmem:[#allocation4 + $0x42] sm:$0xff] %v2183_v32 }
 0x2bd   :  { %2296 = vst [vmem:[#allocation5 + $0x68] sm:$0x3f] %v2283_v13  ;;  %2320 = vst [vmem:[#allocation5 + $0x70] sm:$0x3f] %v2307_v12  ;;  %v9245_v26 = vpop.f32.mrb[85].mxu1 }
 0x2be   :  { %2200 = vst [vmem:[#allocation4 + $0x4a] sm:$0x7] %v2184_v8  ;;  %v9246_v10 = vadd.f32 %v9245_v26, %v9244_v61  ;;  %v9247_v17 = vpop.f32.mrb[86].mxu1  ;;  %v2213_v15 = vld [vmem:[#allocation4 + $0x30] ss:$2 sm:$0x3f] }
 0x2bf   :  { %2955 = vmatpush1.bf16.msra.mxu0 %v10185_v5  ;;  %v2237_v16 = vld [vmem:[#allocation4 + $0x31] ss:$2 sm:$0x3f]  ;;  %v2261_v33 = vld [vmem:[#allocation4 + $0x32] ss:$2 sm:$0x3f] }
 0x2c0   :  { %2956 = vmatprep.subr.bf16.mxu0 %v10190_v7  ;;  %v2285_v19 = vld [vmem:[#allocation4 + $0x33] ss:$2 sm:$0x3f]  ;;  %2225 = vst [vmem:[#allocation5 + $0x78] sm:$0x3f] %v2213_v15  ;;  %v2153_v18 = vadd.f32 %v9246_v10, %v11238_v28  ;;  %v9248_v24 = vpop.f32.mrb[87].mxu1 }
 0x2c1   :  { %2249 = vst [vmem:[#allocation5 + $0x80] sm:$0x3f] %v2237_v16  ;;  %v2309_v20 = vld [vmem:[#allocation4 + $0x34] ss:$2 sm:$0x3f]  ;;  %v9249_v23 = vadd.f32 %v9248_v24, %v9247_v17 }
 0x2c2   :  { %2273 = vst [vmem:[#allocation5 + $0x88] sm:$0x3f] %v2261_v33  ;;  %2297 = vst [vmem:[#allocation5 + $0x90] sm:$0x3f] %v2285_v19  ;;  %v2185_v40 = vmax.f32 %v2153_v18, 0.0  ;;  %v9250_v29 = vpop.f32.mrb[88].mxu1 }
 0x2c3   :  { %2321 = vst [vmem:[#allocation5 + $0x98] sm:$0x3f] %v2309_v20  ;;  %2957 = vmatpush1.bf16.msra.mxu0 %v10188_v14  ;;  %v2156_v28 = vadd.f32 %v9249_v23, %v11241_v34  ;;  %v2337_v35 = vld [vmem:[#allocation5 + $0x58] sm:$0xff]  ;;  %v9251_v9 = vpop.f32.mrb[89].mxu1  ;;  %v2336_v48 = vld [vmem:[#allocation5 + $0x50] sm:$0xff] }
 0x2c4   :  { %2958 = vmatprep.subr.bf16.mxu0 %v10193_v3  ;;  %2201 = vst [vmem:[#allocation4 + $0x52] sm:$0xff] %v2185_v40  ;;  %v9252_v50 = vadd.f32 %v9251_v9, %v9250_v29  ;;  %v9253_v46 = vpop.f32.mrb[90].mxu1  ;;  %v10200_v1 = vld [vmem:[%s12887_s3 + $0x160] ss:$8 sps:$4 sm:$0xff]   ;;  %v10203_v8 = vld [vmem:[%s12887_s3 + $0x170] ss:$8 sps:$4 sm:$0xff]  }
 0x2c5   :  { %v2215_v45 = vld [vmem:[#allocation4 + $0x40] ss:$2 sm:$0x3f]  ;;  %v2239_v62 = vld [vmem:[#allocation4 + $0x41] ss:$2 sm:$0x3f] }
 0x2c6   :  { %v2263_v41 = vld [vmem:[#allocation4 + $0x42] ss:$2 sm:$0x3f]  ;;  %v2287_v42 = vld [vmem:[#allocation4 + $0x43] ss:$2 sm:$0x3f]  ;;  %v2161_v51 = vadd.f32 %v9252_v50, %v11248_v53 }
 0x2c7   :  { %2226 = vst [vmem:[#allocation5 + $0xa0] sm:$0x3f] %v2215_v45  ;;  %2250 = vst [vmem:[#allocation5 + $0xa8] sm:$0x3f] %v2239_v62  ;;  %2959 = vmatpush1.bf16.msra.mxu0 %v10191_v52  ;;  %v2186_v34 = vmax.f32 %v2156_v28, 0.0  ;;  %v2341_v21 = vld [vmem:[#allocation5 + $0x78] sm:$0xff] }
 0x2c8   :  { %v2311_v31 = vld [vmem:[#allocation4 + $0x44] ss:$2 sm:$0x3f]  ;;  %2274 = vst [vmem:[#allocation5 + $0xb0] sm:$0x3f] %v2263_v41  ;;  %2960 = vmatprep.subr.bf16.mxu0 %v10196_v25  ;;  %v9254_v49 = vpop.f32.mrb[91].mxu1  ;;  %v2371_v55 = vpack.c.bf16 %v2341_v21, %v2336_v48 }
 0x2c9   :  { %2298 = vst [vmem:[#allocation5 + $0xb8] sm:$0x3f] %v2287_v42  ;;  %v2342_v38 = vld [vmem:[#allocation5 + $0x80] sm:$0xff]  ;;  %2322 = vst [vmem:[#allocation5 + $0xc0] sm:$0x3f] %v2311_v31  ;;  %v9255_v54 = vadd.f32 %v9254_v49, %v9253_v46  ;;  %v2187_v37 = vmax.f32 %v2161_v51, 0.0 }
 0x2ca   :  { %v2372_v47 = vpack.c.bf16 %v2342_v38, %v2337_v35  ;;  %2202 = vst [vmem:[#allocation4 + $0x5a] sm:$0x7] %v2186_v34  ;;  %v9256_v58 = vpop.f32.mrb[92].mxu1  ;;  %v10206_v26 = vld [vmem:[%s12887_s3 + $0x180] ss:$8 sps:$4 sm:$0xff]  }
 0x2cb   :  { %2961 = vmatpush1.bf16.msra.mxu0 %v10194_v30  ;;  %v2164_v6 = vadd.f32 %v9255_v54, %v11251_v63  ;;  %v9257_v60 = vpop.f32.mrb[93].mxu1  ;;  %2203 = vst [vmem:[#allocation4 + $0x62] sm:$0xff] %v2187_v37  ;;  %v10209_v40 = vld [vmem:[%s12887_s3 + $0x190] ss:$8 sps:$4 sm:$0xff]   ;;  %v10214_v23 = vld [vmem:[%s12887_s3 + $0x1a4] ss:$8 sps:$4 sm:$0xff]  }
 0x2cc   :  { %2921 = vmatprep.mubr.bf16.mxu0 %v2372_v47  ;;  %2962 = vmatprep.subr.bf16.mxu0 %v10199_v36  ;;  %v9258_v59 = vadd.f32 %v9257_v60, %v9256_v58  ;;  %v9259_v0 = vpop.f32.mrb[94].mxu1  ;;  %v10212_v52 = vld [vmem:[%s12887_s3 + $0x1a0] ss:$8 sps:$4 sm:$0xff]   ;;  %v10217_v62 = vld [vmem:[%s12887_s3 + $0x1b4] ss:$8 sps:$4 sm:$0xff]  }
 0x2cd   :  { %2922 = vmatmul.mubr.bf16.gmra.mrb[84].mxu0 %v2371_v55  ;;  %v2188_v53 = vmax.f32 %v2164_v6, 0.0  ;;  %v9260_v43 = vpop.f32.mrb[95].mxu1  ;;  %v10215_v35 = vld [vmem:[%s12887_s3 + $0x1b0] ss:$8 sps:$4 sm:$0xff]   ;;  %v10220_v36 = vld [vmem:[%s12887_s3 + $0x1c4] ss:$8 sps:$4 sm:$0xff]  }
 0x2ce   :  { %v2169_v63 = vadd.f32 %v9258_v59, %v11258_v11  ;;  %v9261_v13 = vadd.f32 %v9260_v43, %v9259_v0  ;;  %v10208_v11 = vld [vmem:[%s12887_s3 + $0x184] ss:$8 sps:$4 sm:$0xff]   ;;  %v10218_v50 = vld [vmem:[%s12887_s3 + $0x1c0] ss:$8 sps:$4 sm:$0xff]   ;;  %v2329_v47 = vld [vmem:[#allocation5 + $0x18] sm:$0xff] }
 0x2cf   :  { %2963 = vmatpush1.bf16.msra.mxu0 %v10197_v56  ;;  %2204 = vst [vmem:[#allocation4 + $0x6a] sm:$0x7] %v2188_v53  ;;  %v2347_v14 = vld [vmem:[#allocation5 + $0xa8] sm:$0xff]  ;;  %v2346_v3 = vld [vmem:[#allocation5 + $0xa0] sm:$0xff]  ;;  %v10223_v48 = vld [vmem:[%s12887_s3 + $0x1d4] ss:$8 sps:$4 sm:$0xff]  }
 0x2d0   :  { %2964 = vmatprep.subr.bf16.mxu0 %v10202_v57  ;;  %v2189_v5 = vmax.f32 %v2169_v63, 0.0  ;;  %v2172_v7 = vadd.f32 %v9261_v13, %v11261_v22  ;;  %v10211_v22 = vld [vmem:[%s12887_s3 + $0x194] ss:$8 sps:$4 sm:$0xff]   ;;  %v2334_v42 = vld [vmem:[#allocation5 + $0x40] sm:$0xff]  ;;  %v10221_v49 = vld [vmem:[%s12887_s3 + $0x1d0] ss:$8 sps:$4 sm:$0xff]  }
 0x2d1   :  { %v2217_v4 = vld [vmem:[#allocation4 + $0x50] ss:$2 sm:$0x3f]  ;;  %v2241_v27 = vld [vmem:[#allocation4 + $0x51] ss:$2 sm:$0x3f]  ;;  %v2369_v21 = vpack.c.bf16 %v2334_v42, %v2329_v47 }
 0x2d2   :  { %v2265_v12 = vld [vmem:[#allocation4 + $0x52] ss:$2 sm:$0x3f]  ;;  %v2289_v32 = vld [vmem:[#allocation4 + $0x53] ss:$2 sm:$0x3f] }
 0x2d3   :  { %2227 = vst [vmem:[#allocation5 + $0xc8] sm:$0x3f] %v2217_v4  ;;  %2251 = vst [vmem:[#allocation5 + $0xd0] sm:$0x3f] %v2241_v27  ;;  %2965 = vmatpush1.bf16.msra.mxu0 %v10200_v1  ;;  %v2190_v61 = vmax.f32 %v2172_v7, 0.0  ;;  %v2333_v37 = vld [vmem:[#allocation5 + $0x38] sm:$0xff] }
 0x2d4   :  { %v2313_v2 = vld [vmem:[#allocation4 + $0x54] ss:$2 sm:$0x3f]  ;;  %2275 = vst [vmem:[#allocation5 + $0xd8] sm:$0x3f] %v2265_v12  ;;  %2966 = vmatprep.subr.bf16.mxu0 %v10205_v44  ;;  %2205 = vst [vmem:[#allocation4 + $0x72] sm:$0xff] %v2189_v5 }
 0x2d5   :  { %2299 = vst [vmem:[#allocation5 + $0xe0] sm:$0x3f] %v2289_v32  ;;  %2323 = vst [vmem:[#allocation5 + $0xe8] sm:$0x3f] %v2313_v2  ;;  %v10226_v55 = vld [vmem:[%s12887_s3 + $0x1e4] ss:$8 sps:$4 sm:$0xff]  }
 0x2d6   :  { %2206 = vst [vmem:[#allocation4 + $0x7a] sm:$0x7] %v2190_v61  ;;  %v2219_v10 = vld [vmem:[#allocation4 + $0x60] ss:$2 sm:$0x3f]  ;;  %v2344_v6 = vld [vmem:[#allocation5 + $0x90] sm:$0xff] }
 0x2d7   :  { %2967 = vmatpush1.bf16.msra.mxu0 %v10203_v8  ;;  %v2243_v17 = vld [vmem:[#allocation4 + $0x61] ss:$2 sm:$0x3f]  ;;  %v2267_v15 = vld [vmem:[#allocation4 + $0x62] ss:$2 sm:$0x3f] }
 0x2d8   :  { %2968 = vmatprep.subr.bf16.mxu0 %v10208_v11  ;;  %v2291_v16 = vld [vmem:[#allocation4 + $0x63] ss:$2 sm:$0x3f]  ;;  %2228 = vst [vmem:[#allocation5 + $0xf0] sm:$0x3f] %v2219_v10  ;;  %v2328_v58 = vld [vmem:[#allocation5 + $0x10] sm:$0xff] }
 0x2d9   :  { %2252 = vst [vmem:[#allocation5 + $0xf8] sm:$0x3f] %v2243_v17  ;;  %v2315_v33 = vld [vmem:[#allocation4 + $0x64] ss:$2 sm:$0x3f]  ;;  %v2368_v53 = vpack.c.bf16 %v2333_v37, %v2328_v58  ;;  %v2349_v32 = vld [vmem:[#allocation5 + $0xb8] sm:$0xff] }
 0x2da   :  { %2276 = vst [vmem:[#allocation5 + $0x100] sm:$0x3f] %v2267_v15  ;;  %2300 = vst [vmem:[#allocation5 + $0x108] sm:$0x3f] %v2291_v16  ;;  %v2352_v19 = vld [vmem:[#allocation5 + $0xd0] sm:$0xff]  ;;  %v2351_v18 = vld [vmem:[#allocation5 + $0xc8] sm:$0xff] }
 0x2db   :  { %2324 = vst [vmem:[#allocation5 + $0x110] sm:$0x3f] %v2315_v33  ;;  %v2377_v20 = vpack.c.bf16 %v2352_v19, %v2347_v14  ;;  %v2376_v24 = vpack.c.bf16 %v2351_v18, %v2346_v3  ;;  %2969 = vmatpush1.bf16.msra.mxu0 %v10206_v26  ;;  %v10224_v51 = vld [vmem:[%s12887_s3 + $0x1e0] ss:$8 sps:$4 sm:$0xff]   ;;  %v10229_v54 = vld [vmem:[%s12887_s3 + $0x1f4] ss:$8 sps:$4 sm:$0xff]  }
 0x2dc   :  { %2970 = vmatprep.subr.bf16.mxu0 %v10211_v22  ;;  %v10227_v56 = vld [vmem:[%s12887_s3 + $0x1f0] ss:$8 sps:$4 sm:$0xff]   ;;  %v10232_v57 = vld [vmem:[%s12887_s3 + $0x204] ss:$8 sps:$4 sm:$0xff]   ;;  %v10230_v60 = vld [vmem:[%s12887_s3 + $0x200] ss:$8 sps:$4 sm:$0xff]  }
 0x2dd   :  { %2931 = vmatprep.mubr.bf16.mxu0 %v2377_v20  ;;  %v2221_v25 = vld [vmem:[#allocation4 + $0x70] ss:$2 sm:$0x3f]  ;;  %v2245_v28 = vld [vmem:[#allocation4 + $0x71] ss:$2 sm:$0x3f] }
 0x2de   :  { %2932 = vmatmul.mubr.bf16.gmra.mrb[88].mxu0 %v2376_v24  ;;  %v2269_v29 = vld [vmem:[#allocation4 + $0x72] ss:$2 sm:$0x3f]  ;;  %v2293_v30 = vld [vmem:[#allocation4 + $0x73] ss:$2 sm:$0x3f] }
 0x2df   :  { %2229 = vst [vmem:[#allocation5 + $0x118] sm:$0x3f] %v2221_v25  ;;  %2253 = vst [vmem:[#allocation5 + $0x120] sm:$0x3f] %v2245_v28  ;;  %2971 = vmatpush1.bf16.msra.mxu0 %v10209_v40  ;;  %v2356_v34 = vld [vmem:[#allocation5 + $0xf0] sm:$0xff]  ;;  %v2339_v59 = vld [vmem:[#allocation5 + $0x68] sm:$0xff] }
 0x2e0   :  { %v2317_v45 = vld [vmem:[#allocation4 + $0x74] ss:$2 sm:$0x3f]  ;;  %2277 = vst [vmem:[#allocation5 + $0x128] sm:$0x3f] %v2269_v29  ;;  %2972 = vmatprep.subr.bf16.mxu0 %v10214_v23  ;;  %v2374_v1 = vpack.c.bf16 %v2344_v6, %v2339_v59  ;;  %v2343_v4 = vld [vmem:[#allocation5 + $0x88] sm:$0xff] }
 0x2e1   :  { %2301 = vst [vmem:[#allocation5 + $0x130] sm:$0x3f] %v2293_v30  ;;  %2325 = vst [vmem:[#allocation5 + $0x138] sm:$0x3f] %v2317_v45  ;;  %v2357_v41 = vld [vmem:[#allocation5 + $0xf8] sm:$0xff]  ;;  %v2354_v27 = vld [vmem:[#allocation5 + $0xe0] sm:$0xff] }
 0x2e2   :  { %v10235_v0 = vld [vmem:[%s12887_s3 + $0x214] ss:$8 sps:$4 sm:$0xff]   ;;  %v10233_v43 = vld [vmem:[%s12887_s3 + $0x210] ss:$8 sps:$4 sm:$0xff]   ;;  %v10238_v44 = vld [vmem:[%s12887_s3 + $0x224] ss:$8 sps:$4 sm:$0xff]   ;;  %v2379_v5 = vpack.c.bf16 %v2354_v27, %v2349_v32 }
 0x2e3   :  { %2973 = vmatpush1.bf16.msra.mxu0 %v10212_v52  ;;  %v2338_v63 = vld [vmem:[#allocation5 + $0x60] sm:$0xff]  ;;  %v10241_v2 = vld [vmem:[%s12887_s3 + $0x234] ss:$8 sps:$4 sm:$0xff]   ;;  %v10239_v7 = vld [vmem:[%s12887_s3 + $0x230] ss:$8 sps:$4 sm:$0xff]   ;;  %v62_v52 = vlaneseq  ;;  %v10596_v25 = vmov 0  }
 0x2e4   :  { %2974 = vmatprep.subr.bf16.mxu0 %v10217_v62  ;;  %v10236_v13 = vld [vmem:[%s12887_s3 + $0x220] ss:$8 sps:$4 sm:$0xff]   ;;  %v2373_v12 = vpack.c.bf16 %v2343_v4, %v2338_v63  ;;  %v10244_v8 = vld [vmem:[%s12887_s3 + $0x244] ss:$8 sps:$4 sm:$0xff]   ;;  %v2353_v11 = vld [vmem:[#allocation5 + $0xd8] sm:$0xff] }
 0x2e5   :  { %v2348_v26 = vld [vmem:[#allocation5 + $0xb0] sm:$0xff]  ;;  %v10242_v22 = vld [vmem:[%s12887_s3 + $0x240] ss:$8 sps:$4 sm:$0xff]   ;;  %v10250_v16 = vld [vmem:[%s12887_s3 + $0x264] ss:$8 sps:$4 sm:$0xff]   ;;  %vm11431_vm0 = vcmp.lt.s32.totalorder %v62_v52, 256 }
 0x2e6   :  { %v2362_v31 = vld [vmem:[#allocation5 + $0x120] sm:$0xff]  ;;  %v2361_v9 = vld [vmem:[#allocation5 + $0x118] sm:$0xff]  ;;  %v2378_v10 = vpack.c.bf16 %v2353_v11, %v2348_v26  ;;  %v2359_v17 = vld [vmem:[#allocation5 + $0x108] sm:$0xff]  ;;  %66 = vst.msk [vmem:[#allocation6] ss:$8 sm:$0x3] %vm11431_vm0, %v10595_v39 }
 0x2e7   :  { %2975 = vmatpush1.bf16.msra.mxu0 %v10215_v35  ;;  %v2382_v38 = vpack.c.bf16 %v2362_v31, %v2357_v41  ;;  %v2381_v46 = vpack.c.bf16 %v2361_v9, %v2356_v34  ;;  %v10247_v14 = vld [vmem:[%s12887_s3 + $0x254] ss:$8 sps:$4 sm:$0xff]   ;;  %v10245_v15 = vld [vmem:[%s12887_s3 + $0x250] ss:$8 sps:$4 sm:$0xff]   ;;  %v2363_v33 = vld [vmem:[#allocation5 + $0x128] sm:$0xff] }
 0x2e8   :  { %2976 = vmatprep.subr.bf16.mxu0 %v10220_v36  ;;  %v2364_v61 = vld [vmem:[#allocation5 + $0x130] sm:$0xff]  ;;  %v2358_v19 = vld [vmem:[#allocation5 + $0x100] sm:$0xff]  ;;  %v2335_v28 = vld [vmem:[#allocation5 + $0x48] sm:$0xff]  ;;  %90 = vst.msk [vmem:[#allocation6 + $0x7] ss:$8 sm:$0x3] %vm11431_vm0, %v10595_v39 }
 0x2e9   :  { %2941 = vmatprep.mubr.bf16.mxu0 %v2382_v38  ;;  %v2384_v3 = vpack.c.bf16 %v2364_v61, %v2359_v17  ;;  %v10248_v18 = vld [vmem:[%s12887_s3 + $0x260] ss:$8 sps:$4 sm:$0xff]   ;;  %v2383_v20 = vpack.c.bf16 %v2363_v33, %v2358_v19  ;;  %v10253_v24 = vld [vmem:[%s12887_s3 + $0x274] ss:$8 sps:$4 sm:$0xff]   ;;  %v10251_v40 = vld [vmem:[%s12887_s3 + $0x270] ss:$8 sps:$4 sm:$0xff]  }
 0x2ea   :  { %2942 = vmatmul.mubr.bf16.gmra.mrb[92].mxu0 %v2381_v46  ;;  %v10254_v23 = vld [vmem:[%s12883_s1 + $0x40] sm:$0xff]   ;;  %v10288_v62 = vld [vmem:[%s12888_s4 + $0x48] sm:$0xff]   ;;  %69 = vst.msk [vmem:[#allocation6 + $0x10] ss:$8 sm:$0x3] %vm11431_vm0, %v10595_v39  ;;  %v10290_v31 = vld [vmem:[%s12888_s4 + $0x50] sm:$0xff]  }
 0x2eb   :  { %2977 = vmatpush1.bf16.msra.mxu0 %v10218_v50  ;;  %2984 = vmatprep.mubr.bf16.mxu0 %v2369_v21  ;;  %v10286_v29 = vld [vmem:[%s12888_s4 + $0x40] sm:$0xff]   ;;  %72 = vst.msk [vmem:[#allocation6 + $0x20] ss:$8 sm:$0x3] %vm11431_vm0, %v10595_v39  ;;  %v10255_v35 = vld [vmem:[%s12883_s1 + $0x48] sm:$0xff]   ;;  %v10291_v34 = vld [vmem:[%s12888_s4 + $0x10] sm:$0xff]  }
 0x2ec   :  { %2978 = vmatprep.subr.bf16.mxu0 %v10223_v48  ;;  %v10287_v30 = vld [vmem:[%s12888_s4] sm:$0xff]   ;;  %9262 = vmatprep.subr.bf16.mxu1 %v10286_v29  ;;  %75 = vst.msk [vmem:[#allocation6 + $0x30] ss:$8 sm:$0x3] %vm11431_vm0, %v10595_v39  ;;  %v10289_v36 = vld [vmem:[%s12888_s4 + $0x8] sm:$0xff]   ;;  %v2345_v9 = vld [vmem:[#allocation5 + $0x98] sm:$0xff] }
 0x2ed   :  { %78 = vst.msk [vmem:[#allocation6 + $0x40] ss:$8 sm:$0x3] %vm11431_vm0, %v10595_v39  ;;  %81 = vst.msk [vmem:[#allocation6 + $0x50] ss:$8 sm:$0x3] %vm11431_vm0, %v10595_v39  ;;  %9263 = vmatpush3.bf16.msra.mxu1 %v10287_v30 }
 0x2ee   :  { %84 = vst.msk [vmem:[#allocation6 + $0x60] ss:$8 sm:$0x3] %vm11431_vm0, %v10595_v39  ;;  %87 = vst.msk [vmem:[#allocation6 + $0x70] ss:$8 sm:$0x3] %vm11431_vm0, %v10595_v39  ;;  %9264 = vmatprep.subr.bf16.mxu1 %v10288_v62 }
 0x2ef   :  { %2979 = vmatpush1.bf16.msra.mxu0 %v10221_v49  ;;  %93 = vst.msk [vmem:[#allocation6 + $0x17] ss:$8 sm:$0x3] %vm11431_vm0, %v10595_v39  ;;  %96 = vst.msk [vmem:[#allocation6 + $0x27] ss:$8 sm:$0x3] %vm11431_vm0, %v10595_v39 }
 0x2f0   :  { %2980 = vmatprep.subr.bf16.mxu0 %v10226_v55  ;;  %99 = vst.msk [vmem:[#allocation6 + $0x37] ss:$8 sm:$0x3] %vm11431_vm0, %v10595_v39  ;;  %102 = vst.msk [vmem:[#allocation6 + $0x47] ss:$8 sm:$0x3] %vm11431_vm0, %v10595_v39 }
 0x2f1   :  { %105 = vst.msk [vmem:[#allocation6 + $0x57] ss:$8 sm:$0x3] %vm11431_vm0, %v10595_v39  ;;  %108 = vst.msk [vmem:[#allocation6 + $0x67] ss:$8 sm:$0x3] %vm11431_vm0, %v10595_v39  ;;  %9265 = vmatpush3.bf16.msra.mxu1 %v10289_v36 }
 0x2f2   :  { %111 = vst.msk [vmem:[#allocation6 + $0x77] ss:$8 sm:$0x3] %vm11431_vm0, %v10595_v39  ;;  %v2330_v41 = vld [vmem:[#allocation5 + $0x20] sm:$0xff]  ;;  %v10256_v39 = vld [vmem:[%s12883_s1 + $0x50] sm:$0xff]   ;;  %v10292_v38 = vld [vmem:[%s12888_s4 + $0x58] sm:$0xff]   ;;  %9266 = vmatprep.subr.bf16.mxu1 %v10290_v31 }
 0x2f3   :  { %2981 = vmatpush1.bf16.msra.mxu0 %v10224_v51  ;;  %v2370_v42 = vpack.c.bf16 %v2335_v28, %v2330_v41  ;;  %v10293_v50 = vld [vmem:[%s12888_s4 + $0x18] sm:$0xff]   ;;  %v2340_v46 = vld [vmem:[#allocation5 + $0x70] sm:$0xff]  ;;  %v10294_v48 = vld [vmem:[%s12888_s4 + $0x60] sm:$0xff]  }
 0x2f4   :  { %2982 = vmatprep.subr.bf16.mxu0 %v10229_v54  ;;  %v10257_v47 = vld [vmem:[%s12883_s1 + $0x58] sm:$0xff]   ;;  %v2375_v21 = vpack.c.bf16 %v2345_v9, %v2340_v46  ;;  %v10295_v49 = vld [vmem:[%s12888_s4 + $0x20] sm:$0xff]   ;;  %v2355_v51 = vld [vmem:[#allocation5 + $0xe8] sm:$0xff]  ;;  %v11673_v46 = vshrl.u32 %v62_v52, 7 }
 0x2f5   :  { %9267 = vmatpush3.bf16.msra.mxu1 %v10291_v34  ;;  %v10258_v55 = vld [vmem:[%s12883_s1 + $0x60] sm:$0xff]   ;;  %v10260_v37 = vld [vmem:[%s12883_s1 + $0x70] sm:$0xff]   ;;  %v2365_v6 = vld [vmem:[#allocation5 + $0x138] sm:$0xff] }
 0x2f6   :  { %9268 = vmatprep.subr.bf16.mxu1 %v10292_v38  ;;  %v2350_v54 = vld [vmem:[#allocation5 + $0xc0] sm:$0xff]  ;;  %v2360_v58 = vld [vmem:[#allocation5 + $0x110] sm:$0xff]  ;;  %v10267_v4 = vld [vmem:[%s12884_s0 + $0xe8] sm:$0xff]  }
 0x2f7   :  { %2983 = vmatpush1.bf16.msra.mxu0 %v10227_v56  ;;  %v10259_v56 = vld [vmem:[%s12883_s1 + $0x68] sm:$0xff]   ;;  %v2385_v59 = vpack.c.bf16 %v2365_v6, %v2360_v58  ;;  %v10268_v27 = vld [vmem:[%s12884_s0 + $0xf0] sm:$0xff]   ;;  %v10269_v63 = vld [vmem:[%s12884_s0 + $0xf8] sm:$0xff]  }
 0x2f8   :  { %3025 = vmatprep.subr.bf16.mxu0 %v10232_v57  ;;  %v2380_v57 = vpack.c.bf16 %v2355_v51, %v2350_v54  ;;  %v10272_v32 = vld [vmem:[%s12884_s0 + $0x110] sm:$0xff]   ;;  %v10277_v11 = vld [vmem:[%s12884_s0 + $0x138] sm:$0xff]   ;;  %v10278_v61 = vld [vmem:[%s12884_s0 + $0x140] sm:$0xff]  }
 0x2f9   :  { %9269 = vmatpush3.bf16.msra.mxu1 %v10293_v50  ;;  %v10279_v26 = vld [vmem:[%s12884_s0 + $0x148] sm:$0xff]   ;;  %v10282_v17 = vld [vmem:[%s12884_s0 + $0x160] sm:$0xff]   ;;  %v10298_v33 = vld [vmem:[%s12888_s4 + $0x70] sm:$0xff]  }
 0x2fa   :  { %2985 = vmatmul.mubr.bf16.vlgmr.msra.gmra.mrb[80].mxu0 %v2368_v53  ;;  %9270 = vmatprep.subr.bf16.mxu1 %v10294_v48  ;;  %v10261_v53 = vld [vmem:[%s12883_s1 + $0x78] sm:$0xff]   ;;  %v10299_v19 = vld [vmem:[%s12888_s4 + $0x30] sm:$0xff]   ;;  %v10317_v28 = vld [vmem:[%s12885_s2 + $0x300] sm:$0xff]  }
 0x2fb   :  { %2994 = vmatprep.mubr.bf16.mxu0 %v2374_v1  ;;  %3026 = vmatpush1.bf16.msra.mxu0 %v10230_v60  ;;  %v10262_v60 = vld [vmem:[%s12884_s0 + $0xc0] sm:$0xff]   ;;  %v10264_v1 = vld [vmem:[%s12884_s0 + $0xd0] sm:$0xff]   ;;  %v10320_v29 = vld [vmem:[%s12885_s2 + $0x348] sm:$0xff]  }
 0x2fc   :  { %3027 = vmatprep.subr.bf16.mxu0 %v10235_v0  ;;  %v10263_v0 = vld [vmem:[%s12884_s0 + $0xc8] sm:$0xff]   ;;  %v10324_v45 = vld [vmem:[%s12885_s2 + $0x350] sm:$0xff]   ;;  %v10329_v36 = vld [vmem:[%s12885_s2 + $0x318] sm:$0xff]  }
 0x2fd   :  { %9271 = vmatpush3.bf16.msra.mxu1 %v10295_v49  ;;  %v10321_v30 = vld [vmem:[%s12885_s2 + $0x308] sm:$0xff]   ;;  %v10325_v62 = vld [vmem:[%s12885_s2 + $0x310] sm:$0xff]   ;;  %v10332_v41 = vld [vmem:[%s12885_s2 + $0x360] sm:$0xff]  }
 0x2fe   :  { %v10336_v31 = vld [vmem:[%s12885_s2 + $0x368] sm:$0xff]   ;;  %v10340_v34 = vld [vmem:[%s12885_s2 + $0x370] sm:$0xff]   ;;  %v10344_v38 = vld [vmem:[%s12885_s2 + $0x378] sm:$0xff]  }
 0x2ff   :  { %3028 = vmatpush1.bf16.msra.mxu0 %v10233_v43  ;;  %v10265_v43 = vld [vmem:[%s12884_s0 + $0xd8] sm:$0xff]   ;;  %v10341_v9 = vld [vmem:[%s12885_s2 + $0x330] sm:$0xff]   ;;  %v8228_v48 = vld [vmem:[%s12886_s5 + $0x2] ss:$4 sm:$0x3] }
 0x300   :  { %3029 = vmatprep.subr.bf16.mxu0 %v10238_v44  ;;  %v10266_v44 = vld [vmem:[%s12884_s0 + $0xe0] sm:$0xff]   ;;  %v10345_v50 = vld [vmem:[%s12885_s2 + $0x338] sm:$0xff]  }
 0x302   :  { %2995 = vmatmul.mubr.bf16.gmra.mrb[84].mxu0 %v2373_v12  ;;  %v10271_v12 = vld [vmem:[%s12884_s0 + $0x108] sm:$0xff]  }
 0x303   :  { %3004 = vmatprep.mubr.bf16.mxu0 %v2379_v5  ;;  %3030 = vmatpush1.bf16.msra.mxu0 %v10236_v13  ;;  %v10270_v13 = vld [vmem:[%s12884_s0 + $0x100] sm:$0xff]  }
 0x304   :  { %3031 = vmatprep.subr.bf16.mxu0 %v10241_v2  ;;  %v10273_v2 = vld [vmem:[%s12884_s0 + $0x118] sm:$0xff]   ;;  %v10274_v5 = vld [vmem:[%s12884_s0 + $0x120] sm:$0xff]  }
 0x307   :  { %3032 = vmatpush1.bf16.msra.mxu0 %v10239_v7  ;;  %v10275_v7 = vld [vmem:[%s12884_s0 + $0x128] sm:$0xff]  }
 0x308   :  { %3033 = vmatprep.subr.bf16.mxu0 %v10244_v8  ;;  %v10276_v8 = vld [vmem:[%s12884_s0 + $0x130] sm:$0xff]  }
 0x30a   :  { %3005 = vmatmul.mubr.bf16.gmra.mrb[88].mxu0 %v2378_v10  ;;  %v10281_v10 = vld [vmem:[%s12884_s0 + $0x158] sm:$0xff]  }
 0x30b   :  { %3014 = vmatprep.mubr.bf16.mxu0 %v2384_v3  ;;  %3034 = vmatpush1.bf16.msra.mxu0 %v10242_v22  ;;  %v10280_v22 = vld [vmem:[%s12884_s0 + $0x150] sm:$0xff]   ;;  %v10297_v3 = vld [vmem:[%s12888_s4 + $0x28] sm:$0xff]  }
 0x30c   :  { %3035 = vmatprep.subr.bf16.mxu0 %v10247_v14  ;;  %v10296_v14 = vld [vmem:[%s12888_s4 + $0x68] sm:$0xff]  }
 0x30d   :  { %9272 = vmatprep.subr.bf16.mxu1 %v10296_v14 }
 0x30e   :  { %9273 = vmatpush3.bf16.msra.mxu1 %v10297_v3 }
 0x30f   :  { %3036 = vmatpush1.bf16.msra.mxu0 %v10245_v15  ;;  %v10283_v15 = vld [vmem:[%s12884_s0 + $0x168] sm:$0xff]   ;;  %9274 = vmatprep.subr.bf16.mxu1 %v10298_v33 }
 0x310   :  { %3037 = vmatprep.subr.bf16.mxu0 %v10250_v16  ;;  %v10284_v16 = vld [vmem:[%s12884_s0 + $0x170] sm:$0xff]  }
 0x312   :  { %3015 = vmatmul.mubr.bf16.gmra.mrb[92].mxu0 %v2383_v20  ;;  %9275 = vmatpush3.bf16.msra.mxu1 %v10299_v19  ;;  %v10300_v20 = vld [vmem:[%s12888_s4 + $0x78] sm:$0xff]  }
 0x313   :  { %3038 = vmatpush1.bf16.msra.mxu0 %v10248_v18  ;;  %3057 = vmatprep.mubr.bf16.mxu0 %v10596_v25  ;;  %v10285_v18 = vld [vmem:[%s12884_s0 + $0x178] sm:$0xff]  }
 0x314   :  { %3039 = vmatprep.subr.bf16.mxu0 %v10253_v24  ;;  %v10301_v24 = vld [vmem:[%s12888_s4 + $0x38] sm:$0xff]   ;;  %9276 = vmatprep.subr.bf16.mxu1 %v10300_v20 }
 0x316   :  { %9277 = vmatpush3.bf16.msra.mxu1 %v10301_v24 }
 0x317   :  { %3040 = vmatpush1.bf16.msra.mxu0 %v10251_v40  ;;  %v10302_v40 = vld [vmem:[%s12888_s4 + $0xc0] sm:$0xff]  }
 0x318   :  { %9876 = vmatprep.subr.bf16.mxu0 %v10254_v23  ;;  %9302 = vmatprep.subr.bf16.mxu1 %v10302_v40 }
 0x31a   :  { %3058 = vmatmul.mubr.bf16.vlgmr.msra.gmra.mrb[80].mxu0 %v2370_v42  ;;  %v10333_v42 = vld [vmem:[%s12885_s2 + $0x320] sm:$0xff]  }
 0x31b   :  { %3067 = vmatprep.mubr.bf16.mxu0 %v10596_v25  ;;  %9877 = vmatpush3.bf16.msra.mxu0 %v10254_v23  ;;  %v10316_v23 = vld [vmem:[%s12885_s2 + $0x340] sm:$0xff]  }
 0x31c   :  { %9878 = vmatprep.subr.bf16.mxu0 %v10255_v35 }
 0x31f   :  { %9879 = vmatpush3.bf16.msra.mxu0 %v10255_v35  ;;  %v10328_v35 = vld [vmem:[%s12885_s2 + $0x358] sm:$0xff]  }
 0x320   :  { %9880 = vmatprep.subr.bf16.mxu0 %v10256_v39 }
 0x322   :  { %3068 = vmatmul.mubr.bf16.gmra.mrb[84].mxu0 %v2375_v21  ;;  %v2475_v21 = vsub.s32 1, %v11673_v46 }
 0x323   :  { %3077 = vmatprep.mubr.bf16.mxu0 %v10596_v25  ;;  %9881 = vmatpush3.bf16.msra.mxu0 %v10256_v39  ;;  %v10337_v39 = vld [vmem:[%s12885_s2 + $0x328] sm:$0xff]  }
 0x324   :  { %9882 = vmatprep.subr.bf16.mxu0 %v10257_v47 }
 0x327   :  { %9883 = vmatpush3.bf16.msra.mxu0 %v10257_v47  ;;  %v2471_v47 = vsub.s32 0, %v11673_v46 }
 0x328   :  { %9884 = vmatprep.subr.bf16.mxu0 %v10258_v55 }
 0x329   :  { %v11682_v49 = vrot.slane %v8228_v48, %v2471_v47 }
 0x32a   :  { %3078 = vmatmul.mubr.bf16.gmra.mrb[88].mxu0 %v2380_v57 }
 0x32b   :  { %3087 = vmatprep.mubr.bf16.mxu0 %v10596_v25  ;;  %9885 = vmatpush3.bf16.msra.mxu0 %v10258_v55  ;;  %v11686_v55 = vrot.slane %v8228_v48, %v2475_v21 }
 0x32c   :  { %9886 = vmatprep.subr.bf16.mxu0 %v10259_v56 }
 0x32f   :  { %9887 = vmatpush3.bf16.msra.mxu0 %v10259_v56 }
 0x330   :  { %9888 = vmatprep.subr.bf16.mxu0 %v10260_v37 }
 0x332   :  { %3088 = vmatmul.mubr.bf16.gmra.mrb[92].mxu0 %v2385_v59 }
 0x333   :  { %9889 = vmatpush3.bf16.msra.mxu0 %v10260_v37  ;;  %9892 = vmatprep.mubr.bf16.mxu0 %v10262_v60 }
 0x334   :  { %9890 = vmatprep.subr.bf16.mxu0 %v10261_v53 }
 0x337   :  { %9891 = vmatpush3.bf16.msra.mxu0 %v10261_v53 }
 0x338   :  { %9542 = vmatprep.subr.bf16.mxu0 %v10316_v23 }
 0x33a   :  { %9893 = vmatmul.mubr.bf16.vlgmr.msra.gmra.mrb[96].mxu0 %v10263_v0 }
 0x33b   :  { %9896 = vmatprep.mubr.bf16.mxu0 %v10264_v1  ;;  %9543 = vmatpush3.bf16.msra.mxu0 %v10317_v28 }
 0x33c   :  { %9544 = vmatprep.subr.bf16.mxu0 %v10320_v29 }
 0x33f   :  { %9545 = vmatpush3.bf16.msra.mxu0 %v10321_v30 }
 0x340   :  { %9546 = vmatprep.subr.bf16.mxu0 %v10324_v45 }
 0x342   :  { %9897 = vmatmul.mubr.bf16.gmra.mrb[100].mxu0 %v10265_v43 }
 0x343   :  { %9900 = vmatprep.mubr.bf16.mxu0 %v10266_v44  ;;  %9547 = vmatpush3.bf16.msra.mxu0 %v10325_v62 }
 0x344   :  { %9548 = vmatprep.subr.bf16.mxu0 %v10328_v35 }
 0x347   :  { %9549 = vmatpush3.bf16.msra.mxu0 %v10329_v36 }
 0x348   :  { %9550 = vmatprep.subr.bf16.mxu0 %v10332_v41 }
 0x34a   :  { %9901 = vmatmul.mubr.bf16.gmra.mrb[104].mxu0 %v10267_v4 }
 0x34b   :  { %9904 = vmatprep.mubr.bf16.mxu0 %v10268_v27  ;;  %9551 = vmatpush3.bf16.msra.mxu0 %v10333_v42 }
 0x34c   :  { %9552 = vmatprep.subr.bf16.mxu0 %v10336_v31 }
 0x34f   :  { %9553 = vmatpush3.bf16.msra.mxu0 %v10337_v39 }
 0x350   :  { %9554 = vmatprep.subr.bf16.mxu0 %v10340_v34 }
 0x352   :  { %9905 = vmatmul.mubr.bf16.gmra.mrb[108].mxu0 %v10269_v63 }
 0x353   :  { %9908 = vmatprep.mubr.bf16.mxu0 %v10270_v13  ;;  %9555 = vmatpush3.bf16.msra.mxu0 %v10341_v9 }
 0x354   :  { %9556 = vmatprep.subr.bf16.mxu0 %v10344_v38 }
 0x357   :  { %9557 = vmatpush3.bf16.msra.mxu0 %v10345_v50 }
 0x35a   :  { %9909 = vmatmul.mubr.bf16.gmra.mrb[112].mxu0 %v10271_v12 }
 0x35b   :  { %9912 = vmatprep.mubr.bf16.mxu0 %v10272_v32 }
 0x362   :  { %9913 = vmatmul.mubr.bf16.gmra.mrb[116].mxu0 %v10273_v2 }
 0x363   :  { %9916 = vmatprep.mubr.bf16.mxu0 %v10274_v5 }
 0x36a   :  { %9917 = vmatmul.mubr.bf16.gmra.mrb[120].mxu0 %v10275_v7 }
 0x36b   :  { %9920 = vmatprep.mubr.bf16.mxu0 %v10276_v8 }
 0x372   :  { %9921 = vmatmul.mubr.bf16.gmra.mrb[124].mxu0 %v10277_v11 }
 0x373   :  { %9924 = vmatprep.mubr.bf16.mxu0 %v10278_v61 }
 0x37a   :  { %9925 = vmatmul.mubr.bf16.gmra.mrb[128].mxu0 %v10279_v26 }
 0x37b   :  { %9928 = vmatprep.mubr.bf16.mxu0 %v10280_v22 }
 0x382   :  { %9929 = vmatmul.mubr.bf16.gmra.mrb[132].mxu0 %v10281_v10 }
 0x383   :  { %9932 = vmatprep.mubr.bf16.mxu0 %v10282_v17 }
 0x38a   :  { %9933 = vmatmul.mubr.bf16.gmra.mrb[136].mxu0 %v10283_v15 }
 0x38b   :  { %9936 = vmatprep.mubr.bf16.mxu0 %v10284_v16 }
 0x392   :  { %9937 = vmatmul.mubr.bf16.gmra.mrb[140].mxu0 %v10285_v18 }
 0x3ed   :  { %v3059_v51 = vpop.f32.mrb[80].mxu0 }
 0x3ee   :  { %v9940_v52 = vadd.f32 %v3059_v51, %v11682_v49  ;;  %v3061_v54 = vpop.f32.mrb[81].mxu0 }
 0x3ef   :  { %v9941_v56 = vadd.f32 %v3061_v54, %v11686_v55  ;;  %v3063_v57 = vpop.f32.mrb[82].mxu0 }
 0x3f0   :  { %v3098_v37 = vmax.f32 %v9940_v52, 0.0  ;;  %v9942_v6 = vadd.f32 %v3063_v57, %v11682_v49  ;;  %v3065_v58 = vpop.f32.mrb[83].mxu0 }
 0x3f1   :  { %v3099_v60 = vmax.f32 %v9941_v56, 0.0  ;;  %v9943_v53 = vadd.f32 %v3065_v58, %v11686_v55 }
 0x3f2   :  { %v3130_v59 = vrot.slane %v3098_v37, 7  ;;  %v3100_v0 = vmax.f32 %v9942_v6, 0.0 }
 0x3f3   :  { %v3131_v1 = vrot.slane %v3099_v60, 7  ;;  %v3101_v43 = vmax.f32 %v9943_v53, 0.0 }
 0x3f4   :  { %3162 = vst [vmem:[#allocation6] sm:$0x7e] %v3130_v59  ;;  %v3132_v44 = vrot.slane %v3100_v0, 7 }
 0x3f5   :  { %3163 = vst [vmem:[#allocation6 + $0x8] sm:$0x7e] %v3131_v1  ;;  %v3133_v4 = vrot.slane %v3101_v43, 7  ;;  %v3069_v27 = vpop.f32.mrb[84].mxu0 }
 0x3f6   :  { %3164 = vst [vmem:[#allocation6 + $0x10] sm:$0x7e] %v3132_v44  ;;  %v9944_v63 = vadd.f32 %v3069_v27, %v11682_v49  ;;  %v3071_v13 = vpop.f32.mrb[85].mxu0 }
 0x3f7   :  { %3165 = vst [vmem:[#allocation6 + $0x18] sm:$0x7e] %v3133_v4  ;;  %v9945_v12 = vadd.f32 %v3071_v13, %v11686_v55  ;;  %v3073_v32 = vpop.f32.mrb[86].mxu0 }
 0x3f8   :  { %v3102_v2 = vmax.f32 %v9944_v63, 0.0  ;;  %v9946_v5 = vadd.f32 %v3073_v32, %v11682_v49  ;;  %v3075_v7 = vpop.f32.mrb[87].mxu0 }
 0x3f9   :  { %v3103_v8 = vmax.f32 %v9945_v12, 0.0  ;;  %v9947_v16 = vadd.f32 %v3075_v7, %v11686_v55 }
 0x3fa   :  { %v3134_v11 = vrot.slane %v3102_v2, 7  ;;  %v3104_v61 = vmax.f32 %v9946_v5, 0.0 }
 0x3fb   :  { %v3178_v26 = vld [vmem:[#allocation6] sm:$0x3f]  ;;  %v3135_v20 = vrot.slane %v3103_v8, 7  ;;  %v3105_v41 = vmax.f32 %v9947_v16, 0.0 }
 0x3fc   :  { %v3210_v22 = vld [vmem:[#allocation6] sm:$0x7e]  ;;  %3194 = vst [vmem:[#allocation7] sm:$0x3f] %v3178_v26  ;;  %v3179_v3 = vld [vmem:[#allocation6 + $0x8] sm:$0x3f] }
 0x3fd   :  { %v3290_v10 = vld [vmem:[#allocation6] sm:$0xfc]  ;;  %v3242_v17 = vrot.slane %v3210_v22, 1  ;;  %v3211_v15 = vld [vmem:[#allocation6 + $0x8] sm:$0x7e]  ;;  %v3136_v28 = vrot.slane %v3104_v61, 7 }
 0x3fe   :  { %v3322_v14 = vrot.slane %v3290_v10, 2  ;;  %3166 = vst [vmem:[#allocation6 + $0x20] sm:$0x7e] %v3134_v11  ;;  %3195 = vst [vmem:[#allocation7 + $0x8] sm:$0x3f] %v3179_v3  ;;  %v3243_v33 = vrot.slane %v3211_v15, 1 }
 0x3ff   :  { %v3291_v19 = vld [vmem:[#allocation6 + $0x8] sm:$0xfc]  ;;  %v3180_v18 = vld [vmem:[#allocation6 + $0x10] sm:$0x3f]  ;;  %3274 = vst [vmem:[#allocation7 + $0x10] sm:$0x3f] %v3242_v17 }
 0x400   :  { %3354 = vst [vmem:[#allocation7 + $0x20] sm:$0x3f] %v3322_v14  ;;  %v3323_v24 = vrot.slane %v3291_v19, 2  ;;  %3196 = vst [vmem:[#allocation7 + $0x30] sm:$0x3f] %v3180_v18  ;;  %v3079_v42 = vpop.f32.mrb[88].mxu0 }
 0x401   :  { %v3212_v40 = vld [vmem:[#allocation6 + $0x10] sm:$0x7e]  ;;  %3275 = vst [vmem:[#allocation7 + $0x18] sm:$0x3f] %v3243_v33  ;;  %v3181_v45 = vld [vmem:[#allocation6 + $0x18] sm:$0x3f]  ;;  %v9948_v39 = vadd.f32 %v3079_v42, %v11682_v49 }
 0x402   :  { %v3292_v23 = vld [vmem:[#allocation6 + $0x10] sm:$0xfc]  ;;  %v3244_v29 = vrot.slane %v3212_v40, 1  ;;  %v3213_v62 = vld [vmem:[#allocation6 + $0x18] sm:$0x7e]  ;;  %v3081_v34 = vpop.f32.mrb[89].mxu0 }
 0x403   :  { %v3324_v30 = vrot.slane %v3292_v23, 2  ;;  %3167 = vst [vmem:[#allocation6 + $0x28] sm:$0x7e] %v3135_v20  ;;  %3355 = vst [vmem:[#allocation7 + $0x28] sm:$0x3f] %v3323_v24  ;;  %v3245_v35 = vrot.slane %v3213_v62, 1  ;;  %v9949_v38 = vadd.f32 %v3081_v34, %v11686_v55 }
 0x404   :  { %3197 = vst [vmem:[#allocation7 + $0x38] sm:$0x3f] %v3181_v45  ;;  %v3293_v36 = vld [vmem:[#allocation6 + $0x18] sm:$0xfc]  ;;  %3168 = vst [vmem:[#allocation6 + $0x30] sm:$0x7e] %v3136_v28 }
 0x405   :  { %3276 = vst [vmem:[#allocation7 + $0x40] sm:$0x3f] %v3244_v29  ;;  %3356 = vst [vmem:[#allocation7 + $0x50] sm:$0x3f] %v3324_v30  ;;  %v3325_v31 = vrot.slane %v3293_v36, 2  ;;  %v3137_v9 = vrot.slane %v3105_v41, 7 }
 0x406   :  { %3277 = vst [vmem:[#allocation7 + $0x48] sm:$0x3f] %v3245_v35  ;;  %v3083_v50 = vpop.f32.mrb[90].mxu0  ;;  %v3182_v48 = vld [vmem:[#allocation6 + $0x20] sm:$0x3f]  ;;  %v3106_v37 = vmax.f32 %v9948_v39, 0.0 }
 0x407   :  { %3357 = vst [vmem:[#allocation7 + $0x58] sm:$0x3f] %v3325_v31  ;;  %v3214_v51 = vld [vmem:[#allocation6 + $0x20] sm:$0x7e]  ;;  %v9950_v54 = vadd.f32 %v3083_v50, %v11682_v49  ;;  %3198 = vst [vmem:[#allocation7 + $0x60] sm:$0x3f] %v3182_v48 }
 0x408   :  { %v3294_v52 = vld [vmem:[#allocation6 + $0x20] sm:$0xfc]  ;;  %v3246_v56 = vrot.slane %v3214_v51, 1  ;;  %3169 = vst [vmem:[#allocation6 + $0x38] sm:$0x7e] %v3137_v9  ;;  %v3107_v6 = vmax.f32 %v9949_v38, 0.0 }
 0x409   :  { %v3326_v57 = vrot.slane %v3294_v52, 2  ;;  %v3085_v58 = vpop.f32.mrb[91].mxu0  ;;  %v3108_v60 = vmax.f32 %v9950_v54, 0.0  ;;  %v3376_v4 = vld [vmem:[#allocation7 + $0x30] sm:$0xff]  ;;  %v3138_v5 = vrot.slane %v3106_v37, 7  ;;  %v3371_v10 = vld [vmem:[#allocation7 + $0x8] sm:$0xff] }
 0x40a   :  { %v9951_v53 = vadd.f32 %v3085_v58, %v11686_v55  ;;  %v3089_v59 = vpop.f32.mrb[92].mxu0  ;;  %3278 = vst [vmem:[#allocation7 + $0x70] sm:$0x3f] %v3246_v56  ;;  %v3183_v0 = vld [vmem:[#allocation6 + $0x28] sm:$0x3f]  ;;  %v3139_v7 = vrot.slane %v3107_v6, 7 }
 0x40b   :  { %3358 = vst [vmem:[#allocation7 + $0x80] sm:$0x3f] %v3326_v57  ;;  %v3215_v1 = vld [vmem:[#allocation6 + $0x28] sm:$0x7e]  ;;  %v9952_v44 = vadd.f32 %v3089_v59, %v11682_v49  ;;  %3199 = vst [vmem:[#allocation7 + $0x68] sm:$0x3f] %v3183_v0 }
 0x40c   :  { %v3295_v43 = vld [vmem:[#allocation6 + $0x28] sm:$0xfc]  ;;  %v3247_v27 = vrot.slane %v3215_v1, 1  ;;  %v3184_v13 = vld [vmem:[#allocation6 + $0x30] sm:$0x3f]  ;;  %v3140_v8 = vrot.slane %v3108_v60, 7 }
 0x40d   :  { %v3327_v63 = vrot.slane %v3295_v43, 2  ;;  %v3216_v12 = vld [vmem:[#allocation6 + $0x30] sm:$0x7e]  ;;  %3200 = vst [vmem:[#allocation7 + $0x90] sm:$0x3f] %v3184_v13  ;;  %v3109_v61 = vmax.f32 %v9951_v53, 0.0 }
 0x40e   :  { %v3248_v32 = vrot.slane %v3216_v12, 1  ;;  %v3296_v2 = vld [vmem:[#allocation6 + $0x30] sm:$0xfc]  ;;  %3279 = vst [vmem:[#allocation7 + $0x78] sm:$0x3f] %v3247_v27  ;;  %v3110_v26 = vmax.f32 %v9952_v44, 0.0 }
 0x40f   :  { %3359 = vst [vmem:[#allocation7 + $0x88] sm:$0x3f] %v3327_v63  ;;  %v3328_v11 = vrot.slane %v3296_v2, 2  ;;  %v3091_v22 = vpop.f32.mrb[93].mxu0  ;;  %v3377_v17 = vld [vmem:[#allocation7 + $0x38] sm:$0xff]  ;;  %v3370_v16 = vld [vmem:[#allocation7] sm:$0xff] }
 0x410   :  { %3280 = vst [vmem:[#allocation7 + $0xa0] sm:$0x3f] %v3248_v32  ;;  %3170 = vst [vmem:[#allocation6 + $0x40] sm:$0x7e] %v3138_v5  ;;  %v9953_v14 = vadd.f32 %v3091_v22, %v11686_v55  ;;  %v3093_v3 = vpop.f32.mrb[94].mxu0  ;;  %v3419_v15 = vpack.c.bf16 %v3377_v17, %v3371_v10  ;;  %v10303_v33 = vld [vmem:[%s12888_s4 + $0x80] sm:$0xff]   ;;  %v3418_v23 = vpack.c.bf16 %v3376_v4, %v3370_v16 }
 0x411   :  { %3171 = vst [vmem:[#allocation6 + $0x48] sm:$0x7e] %v3139_v7  ;;  %3172 = vst [vmem:[#allocation6 + $0x50] sm:$0x7e] %v3140_v8  ;;  %v10304_v19 = vld [vmem:[%s12888_s4 + $0xc8] sm:$0xff]   ;;  %v9954_v40 = vadd.f32 %v3093_v3, %v11682_v49  ;;  %v3141_v30 = vrot.slane %v3109_v61, 7 }
 0x412   :  { %3360 = vst [vmem:[#allocation7 + $0xb0] sm:$0x3f] %v3328_v11  ;;  %v3185_v18 = vld [vmem:[#allocation6 + $0x38] sm:$0x3f]  ;;  %v3142_v45 = vrot.slane %v3110_v26, 7  ;;  %v3095_v62 = vpop.f32.mrb[95].mxu0  ;;  %3863 = vmatprep.mubr.bf16.mxu1 %v3419_v15 }
 0x413   :  { %v3217_v20 = vld [vmem:[#allocation6 + $0x38] sm:$0x7e]  ;;  %3201 = vst [vmem:[#allocation7 + $0x98] sm:$0x3f] %v3185_v18  ;;  %v3111_v35 = vmax.f32 %v9953_v14, 0.0  ;;  %v3112_v36 = vmax.f32 %v9954_v40, 0.0  ;;  %v9955_v41 = vadd.f32 %v3095_v62, %v11686_v55  ;;  %3864 = vmatmul.mubr.bf16.vlgmr.msra.gmra.mrb[96].mxu1 %v3418_v23 }
 0x414   :  { %v3297_v24 = vld [vmem:[#allocation6 + $0x38] sm:$0xfc]  ;;  %v3249_v28 = vrot.slane %v3217_v20, 1  ;;  %v9894_v42 = vpop.f32.mrb[96].mxu0  ;;  %v11713_v31 = vld [vmem:[%s12886_s5 + $0x8] ss:$0 sm:$0xff]  ;;  %9303 = vmatpush3.bf16.msra.mxu1 %v10303_v33 }
 0x415   :  { %v3329_v29 = vrot.slane %v3297_v24, 2  ;;  %3173 = vst [vmem:[#allocation6 + $0x58] sm:$0x7e] %v3141_v30  ;;  %3174 = vst [vmem:[#allocation6 + $0x60] sm:$0x7e] %v3142_v45  ;;  %v10305_v49 = vld [vmem:[%s12888_s4 + $0x88] sm:$0xff]   ;;  %v4398_v39 = vadd.f32 %v9894_v42, %v11713_v31  ;;  %9304 = vmatprep.subr.bf16.mxu1 %v10304_v19 }
 0x416   :  { %3281 = vst [vmem:[#allocation7 + $0xa8] sm:$0x3f] %v3249_v28  ;;  %v4389_v34 = vpop.f32.mrb[97].mxu0  ;;  %v3143_v55 = vrot.slane %v3111_v35, 7  ;;  %v3144_v9 = vrot.slane %v3112_v36, 7  ;;  %v3113_v38 = vmax.f32 %v9955_v41, 0.0 }
 0x417   :  { %3361 = vst [vmem:[#allocation7 + $0xb8] sm:$0x3f] %v3329_v29  ;;  %v10306_v50 = vld [vmem:[%s12888_s4 + $0xd0] sm:$0xff]   ;;  %v9895_v48 = vpop.f32.mrb[98].mxu0  ;;  %v4582_v52 = vmax.f32 %v4398_v39, 0.0  ;;  %v10308_v58 = vld [vmem:[%s12888_s4 + $0xd8] sm:$0xff]   ;;  %v4390_v43 = vadd.f32 %v11713_v31, %v4389_v34 }
 0x418   :  { %v10307_v51 = vld [vmem:[%s12888_s4 + $0x90] sm:$0xff]   ;;  %v4392_v54 = vpop.f32.mrb[99].mxu0  ;;  %v3186_v56 = vld [vmem:[#allocation6 + $0x40] sm:$0x3f]  ;;  %3175 = vst [vmem:[#allocation6 + $0x68] sm:$0x7e] %v3143_v55  ;;  %9305 = vmatpush3.bf16.msra.mxu1 %v10305_v49  ;;  %v4401_v12 = vadd.f32 %v9895_v48, %v11713_v31 }
 0x419   :  { %v3218_v57 = vld [vmem:[#allocation6 + $0x40] sm:$0x7e]  ;;  %3176 = vst [vmem:[#allocation6 + $0x70] sm:$0x7e] %v3144_v9  ;;  %v3388_v6 = vld [vmem:[#allocation7 + $0x90] sm:$0xff]  ;;  %v3383_v1 = vld [vmem:[#allocation7 + $0x68] sm:$0xff]  ;;  %9306 = vmatprep.subr.bf16.mxu1 %v10306_v50  ;;  %v4393_v40 = vadd.f32 %v11713_v31, %v4392_v54 }
 0x41a   :  { %v3298_v37 = vld [vmem:[#allocation6 + $0x40] sm:$0xfc]  ;;  %3202 = vst [vmem:[#allocation7 + $0xc0] sm:$0x3f] %v3186_v56  ;;  %v3250_v60 = vrot.slane %v3218_v57, 1  ;;  %4630 = vst [vmem:[#allocation2 + $0x14] sm:$0xff] %v4582_v52 }
 0x41b   :  { %v3330_v53 = vrot.slane %v3298_v37, 2  ;;  %v3187_v59 = vld [vmem:[#allocation6 + $0x48] sm:$0x3f]  ;;  %v3188_v27 = vld [vmem:[#allocation6 + $0x50] sm:$0x3f]  ;;  %v3145_v63 = vrot.slane %v3113_v38, 7 }
 0x41c   :  { %v3219_v0 = vld [vmem:[#allocation6 + $0x48] sm:$0x7e]  ;;  %3203 = vst [vmem:[#allocation7 + $0xc8] sm:$0x3f] %v3187_v59  ;;  %v3382_v13 = vld [vmem:[#allocation7 + $0x60] sm:$0xff]  ;;  %v3389_v7 = vld [vmem:[#allocation7 + $0x98] sm:$0xff]  ;;  %9307 = vmatpush3.bf16.msra.mxu1 %v10307_v51 }
 0x41d   :  { %v3251_v44 = vrot.slane %v3219_v0, 1  ;;  %v3299_v4 = vld [vmem:[#allocation6 + $0x48] sm:$0xfc]  ;;  %3282 = vst [vmem:[#allocation7 + $0xd0] sm:$0x3f] %v3250_v60  ;;  %v10309_v8 = vld [vmem:[%s12888_s4 + $0x98] sm:$0xff]   ;;  %v3425_v10 = vpack.c.bf16 %v3389_v7, %v3383_v1  ;;  %v3424_v16 = vpack.c.bf16 %v3388_v6, %v3382_v13  ;;  %9308 = vmatprep.subr.bf16.mxu1 %v10308_v58 }
 0x41e   :  { %3362 = vst [vmem:[#allocation7 + $0xe0] sm:$0x3f] %v3330_v53  ;;  %v3331_v32 = vrot.slane %v3299_v4, 2  ;;  %3204 = vst [vmem:[#allocation7 + $0xf0] sm:$0x3f] %v3188_v27  ;;  %v10310_v17 = vld [vmem:[%s12888_s4 + $0xe0] sm:$0xff]  }
 0x41f   :  { %v3220_v2 = vld [vmem:[#allocation6 + $0x50] sm:$0x7e]  ;;  %3283 = vst [vmem:[#allocation7 + $0xd8] sm:$0x3f] %v3251_v44  ;;  %v3189_v26 = vld [vmem:[#allocation6 + $0x58] sm:$0x3f]  ;;  %3871 = vmatprep.mubr.bf16.mxu1 %v3425_v10 }
 0x420   :  { %v3300_v5 = vld [vmem:[#allocation6 + $0x50] sm:$0xfc]  ;;  %v3252_v11 = vrot.slane %v3220_v2, 1  ;;  %v3221_v22 = vld [vmem:[#allocation6 + $0x58] sm:$0x7e]  ;;  %v4580_v33 = vmax.f32 %v4390_v43, 0.0  ;;  %3872 = vmatmul.mubr.bf16.gmra.mrb[100].mxu1 %v3424_v16 }
 0x421   :  { %v3332_v61 = vrot.slane %v3300_v5, 2  ;;  %3177 = vst [vmem:[#allocation6 + $0x78] sm:$0x7e] %v3145_v63  ;;  %3363 = vst [vmem:[#allocation7 + $0xe8] sm:$0x3f] %v3331_v32  ;;  %v3253_v14 = vrot.slane %v3221_v22, 1  ;;  %9309 = vmatpush3.bf16.msra.mxu1 %v10309_v8 }
 0x422   :  { %3205 = vst [vmem:[#allocation7 + $0xf8] sm:$0x3f] %v3189_v26  ;;  %v3301_v3 = vld [vmem:[#allocation6 + $0x58] sm:$0xfc]  ;;  %v3190_v15 = vld [vmem:[#allocation6 + $0x60] sm:$0x3f]  ;;  %9310 = vmatprep.subr.bf16.mxu1 %v10310_v17 }
 0x423   :  { %3284 = vst [vmem:[#allocation7 + $0x100] sm:$0x3f] %v3252_v11  ;;  %3364 = vst [vmem:[#allocation7 + $0x110] sm:$0x3f] %v3332_v61  ;;  %v3333_v19 = vrot.slane %v3301_v3, 2  ;;  %v4583_v24 = vmax.f32 %v4401_v12, 0.0 }
 0x424   :  { %3206 = vst [vmem:[#allocation7 + $0x120] sm:$0x3f] %v3190_v15  ;;  %v3222_v18 = vld [vmem:[#allocation6 + $0x60] sm:$0x7e]  ;;  %3285 = vst [vmem:[#allocation7 + $0x108] sm:$0x3f] %v3253_v14 }
 0x425   :  { %v3302_v20 = vld [vmem:[#allocation6 + $0x60] sm:$0xfc]  ;;  %v3254_v23 = vrot.slane %v3222_v18, 1  ;;  %v3191_v29 = vld [vmem:[#allocation6 + $0x68] sm:$0x3f]  ;;  %4628 = vst [vmem:[#allocation2 + $0x4] sm:$0xff] %v4580_v33 }
 0x426   :  { %v3334_v28 = vrot.slane %v3302_v20, 2  ;;  %v3223_v30 = vld [vmem:[#allocation6 + $0x68] sm:$0x7e]  ;;  %3365 = vst [vmem:[#allocation7 + $0x118] sm:$0x3f] %v3333_v19  ;;  %4631 = vst [vmem:[#allocation2 + $0x1c] sm:$0xff] %v4583_v24 }
 0x427   :  { %3207 = vst [vmem:[#allocation7 + $0x128] sm:$0x3f] %v3191_v29  ;;  %v3255_v45 = vrot.slane %v3223_v30, 1  ;;  %v3303_v62 = vld [vmem:[#allocation6 + $0x68] sm:$0xfc]  ;;  %v10311_v49 = vld [vmem:[%s12888_s4 + $0xa0] sm:$0xff]  }
 0x428   :  { %v3192_v35 = vld [vmem:[#allocation6 + $0x70] sm:$0x3f]  ;;  %3286 = vst [vmem:[#allocation7 + $0x130] sm:$0x3f] %v3254_v23  ;;  %3366 = vst [vmem:[#allocation7 + $0x140] sm:$0x3f] %v3334_v28  ;;  %9311 = vmatpush3.bf16.msra.mxu1 %v10311_v49 }
 0x429   :  { %v3335_v36 = vrot.slane %v3303_v62, 2  ;;  %3208 = vst [vmem:[#allocation7 + $0x150] sm:$0x3f] %v3192_v35  ;;  %v3224_v41 = vld [vmem:[#allocation6 + $0x70] sm:$0x7e]  ;;  %v10312_v9 = vld [vmem:[%s12888_s4 + $0xe8] sm:$0xff]  }
 0x42a   :  { %v3304_v42 = vld [vmem:[#allocation6 + $0x70] sm:$0xfc]  ;;  %3287 = vst [vmem:[#allocation7 + $0x138] sm:$0x3f] %v3255_v45  ;;  %v3256_v39 = vrot.slane %v3224_v41, 1  ;;  %v4581_v38 = vmax.f32 %v4393_v40, 0.0  ;;  %9312 = vmatprep.subr.bf16.mxu1 %v10312_v9 }
 0x42b   :  { %v3336_v34 = vrot.slane %v3304_v42, 2  ;;  %v3400_v55 = vld [vmem:[#allocation7 + $0xf0] sm:$0xff]  ;;  %v9898_v50 = vpop.f32.mrb[100].mxu0  ;;  %3367 = vst [vmem:[#allocation7 + $0x148] sm:$0x3f] %v3335_v36  ;;  %v3395_v37 = vld [vmem:[#allocation7 + $0xc8] sm:$0xff] }
 0x42c   :  { %v3193_v48 = vld [vmem:[#allocation6 + $0x78] sm:$0x3f]  ;;  %v4414_v54 = vadd.f32 %v9898_v50, %v11713_v31  ;;  %3288 = vst [vmem:[#allocation7 + $0x160] sm:$0x3f] %v3256_v39  ;;  %4629 = vst [vmem:[#allocation2 + $0xc] sm:$0xff] %v4581_v38  ;;  %v4405_v58 = vpop.f32.mrb[101].mxu0 }
 0x42d   :  { %v3225_v51 = vld [vmem:[#allocation6 + $0x78] sm:$0x7e]  ;;  %3368 = vst [vmem:[#allocation7 + $0x170] sm:$0x3f] %v3336_v34  ;;  %3209 = vst [vmem:[#allocation7 + $0x158] sm:$0x3f] %v3193_v48  ;;  %v4406_v1 = vadd.f32 %v11713_v31, %v4405_v58 }
 0x42e   :  { %v3305_v52 = vld [vmem:[#allocation6 + $0x78] sm:$0xfc]  ;;  %v3257_v56 = vrot.slane %v3225_v51, 1  ;;  %v3394_v53 = vld [vmem:[#allocation7 + $0xc0] sm:$0xff]  ;;  %v10313_v59 = vld [vmem:[%s12888_s4 + $0xa8] sm:$0xff]   ;;  %v4586_v0 = vmax.f32 %v4414_v54, 0.0 }
 0x42f   :  { %v3337_v57 = vrot.slane %v3305_v52, 2  ;;  %v3401_v6 = vld [vmem:[#allocation7 + $0xf8] sm:$0xff]  ;;  %v9899_v43 = vpop.f32.mrb[102].mxu0  ;;  %v3430_v44 = vpack.c.bf16 %v3400_v55, %v3394_v53  ;;  %v10314_v4 = vld [vmem:[%s12888_s4 + $0xf0] sm:$0xff]   ;;  %v4584_v13 = vmax.f32 %v4406_v1, 0.0  ;;  %9313 = vmatpush3.bf16.msra.mxu1 %v10313_v59  ;;  %v3407_v22 = vld [vmem:[#allocation7 + $0x128] sm:$0xff] }
 0x430   :  { %v3431_v60 = vpack.c.bf16 %v3401_v6, %v3395_v37  ;;  %3289 = vst [vmem:[#allocation7 + $0x168] sm:$0x3f] %v3257_v56  ;;  %v4417_v27 = vadd.f32 %v9899_v43, %v11713_v31  ;;  %v4408_v63 = vpop.f32.mrb[103].mxu0  ;;  %4634 = vst [vmem:[#allocation2 + $0x34] sm:$0xff] %v4586_v0  ;;  %v10315_v8 = vld [vmem:[%s12888_s4 + $0xb0] sm:$0xff]   ;;  %9314 = vmatprep.subr.bf16.mxu1 %v10314_v4  ;;  %v10318_v10 = vld [vmem:[%s12888_s4 + $0xf8] sm:$0xff]  }
 0x431   :  { %3369 = vst [vmem:[#allocation7 + $0x178] sm:$0x3f] %v3337_v57  ;;  %v4409_v12 = vadd.f32 %v11713_v31, %v4408_v63  ;;  %v9902_v32 = vpop.f32.mrb[104].mxu0  ;;  %4632 = vst [vmem:[#allocation2 + $0x24] sm:$0xff] %v4584_v13  ;;  %v3412_v16 = vld [vmem:[#allocation7 + $0x150] sm:$0xff]  ;;  %v3379_v24 = vld [vmem:[#allocation7 + $0x48] sm:$0xff] }
 0x432   :  { %3879 = vmatprep.mubr.bf16.mxu1 %v3431_v60  ;;  %v4587_v2 = vmax.f32 %v4417_v27, 0.0  ;;  %v4430_v5 = vadd.f32 %v9902_v32, %v11713_v31  ;;  %v4421_v7 = vpop.f32.mrb[105].mxu0  ;;  %v3406_v29 = vld [vmem:[#allocation7 + $0x120] sm:$0xff]  ;;  %v10319_v30 = vld [vmem:[%s12888_s4 + $0xb8] sm:$0xff]   ;;  %v3391_v60 = vld [vmem:[#allocation7 + $0xa8] sm:$0xff] }
 0x433   :  { %3880 = vmatmul.mubr.bf16.gmra.mrb[104].mxu1 %v3430_v44  ;;  %v4585_v11 = vmax.f32 %v4409_v12, 0.0  ;;  %v4422_v61 = vadd.f32 %v11713_v31, %v4421_v7  ;;  %v9903_v26 = vpop.f32.mrb[106].mxu0  ;;  %v11763_v18 = vld [vmem:[#allocation2 + $0x5] ss:$4 sm:$0xff]  ;;  %v11765_v28 = vld [vmem:[#allocation2 + $0x4] ss:$4 sm:$0xff]  ;;  %v3436_v41 = vpack.c.bf16 %v3412_v16, %v3406_v29 }
 0x434   :  { %4635 = vst [vmem:[#allocation2 + $0x3c] sm:$0xff] %v4587_v2  ;;  %v4590_v17 = vmax.f32 %v4430_v5, 0.0  ;;  %v4433_v14 = vadd.f32 %v9903_v26, %v11713_v31  ;;  %v4424_v3 = vpop.f32.mrb[107].mxu0  ;;  %v3413_v15 = vld [vmem:[#allocation7 + $0x158] sm:$0xff]  ;;  %9315 = vmatpush3.bf16.msra.mxu1 %v10315_v8  ;;  %v10322_v49 = vld [vmem:[%s12888_s4 + $0x140] sm:$0xff]   ;;  %v3372_v13 = vld [vmem:[#allocation7 + $0x10] sm:$0xff] }
 0x435   :  { %4633 = vst [vmem:[#allocation2 + $0x2c] sm:$0x7] %v4585_v11  ;;  %v4588_v33 = vmax.f32 %v4422_v61, 0.0  ;;  %v4425_v19 = vadd.f32 %v11713_v31, %v4424_v3  ;;  %v3437_v20 = vpack.c.bf16 %v3413_v15, %v3407_v22  ;;  %v9906_v23 = vpop.f32.mrb[108].mxu0  ;;  %v11771_v36 = vld [vmem:[#allocation2 + $0x1] ss:$4 sm:$0xff]  ;;  %9316 = vmatprep.subr.bf16.mxu1 %v10318_v10 }
 0x436   :  { %4638 = vst [vmem:[#allocation2 + $0x54] sm:$0xff] %v4590_v17  ;;  %v4591_v40 = vmax.f32 %v4433_v14, 0.0  ;;  %v4446_v62 = vadd.f32 %v9906_v23, %v11713_v31  ;;  %v4437_v35 = vpop.f32.mrb[109].mxu0  ;;  %v3373_v42 = vld [vmem:[#allocation7 + $0x18] sm:$0xff]  ;;  %v3378_v57 = vld [vmem:[#allocation7 + $0x40] sm:$0xff]  ;;  %v10326_v12 = vld [vmem:[%s12888_s4 + $0x148] sm:$0xff]  }
 0x437   :  { %4636 = vst [vmem:[#allocation2 + $0x44] sm:$0xff] %v4588_v33  ;;  %v4589_v45 = vmax.f32 %v4425_v19, 0.0  ;;  %3887 = vmatprep.mubr.bf16.mxu1 %v3437_v20  ;;  %v4438_v39 = vadd.f32 %v11713_v31, %v4437_v35  ;;  %v9907_v34 = vpop.f32.mrb[110].mxu0  ;;  %v4676_v55 = vld [vmem:[#allocation2] ss:$4 sm:$0xff]  ;;  %v3421_v9 = vpack.c.bf16 %v3379_v24, %v3373_v42  ;;  %v3420_v7 = vpack.c.bf16 %v3378_v57, %v3372_v13 }
 0x438   :  { %4639 = vst [vmem:[#allocation2 + $0x5c] sm:$0x7] %v4591_v40  ;;  %v4594_v38 = vmax.f32 %v4446_v62, 0.0  ;;  %v4449_v50 = vadd.f32 %v9907_v34, %v11713_v31  ;;  %v4440_v48 = vpop.f32.mrb[111].mxu0  ;;  %4692 = vst [vmem:[#allocation3] sm:$0xff] %v4676_v55  ;;  %9317 = vmatpush3.bf16.msra.mxu1 %v10319_v30  ;;  %v10323_v0 = vld [vmem:[%s12888_s4 + $0x100] sm:$0xff]  }
 0x439   :  { %4637 = vst [vmem:[#allocation2 + $0x4c] sm:$0xff] %v4589_v45  ;;  %v4772_v51 = vld [vmem:[#allocation2 + $0x3] ss:$4 sm:$0xff]  ;;  %v4592_v52 = vmax.f32 %v4438_v39, 0.0  ;;  %v4441_v54 = vadd.f32 %v11713_v31, %v4440_v48  ;;  %v4740_v58 = vld [vmem:[#allocation2 + $0x2] ss:$4 sm:$0xff]  ;;  %9342 = vmatprep.subr.bf16.mxu1 %v10322_v49 }
 0x43a   :  { %v4709_v56 = vld [vmem:[#allocation2 + $0x21] ss:$4 sm:$0x7]  ;;  %4788 = vst [vmem:[#allocation3 + $0x18] sm:$0xff] %v4772_v51  ;;  %4642 = vst [vmem:[#allocation2 + $0x74] sm:$0xff] %v4594_v38  ;;  %v4595_v37 = vmax.f32 %v4449_v50, 0.0 }
 0x43b   :  { %3888 = vmatmul.mubr.bf16.gmra.mrb[108].mxu1 %v3436_v41  ;;  %4725 = vst [vmem:[#allocation3 + $0x48] sm:$0x7] %v4709_v56  ;;  %v4677_v6 = vld [vmem:[#allocation2 + $0x20] ss:$4 sm:$0x7]  ;;  %4640 = vst [vmem:[#allocation2 + $0x64] sm:$0xff] %v4592_v52 }
 0x43c   :  { %3928 = vmatprep.mubr.bf16.mxu1 %v3421_v9  ;;  %v4805_v53 = vld [vmem:[#allocation2 + $0x24] ss:$4 sm:$0x7]  ;;  %v4869_v59 = vld [vmem:[#allocation2 + $0x26] ss:$4 sm:$0x7] }
 0x43d   :  { %4693 = vst [vmem:[#allocation3 + $0x40] sm:$0x7] %v4677_v6  ;;  %4756 = vst [vmem:[#allocation3 + $0x10] sm:$0xff] %v4740_v58  ;;  %v4593_v1 = vmax.f32 %v4441_v54, 0.0  ;;  %v4900_v44 = vld [vmem:[#allocation2 + $0x7] ss:$4 sm:$0xff] }
 0x43e   :  { %4821 = vst [vmem:[#allocation3 + $0x60] sm:$0x7] %v4805_v53  ;;  %4885 = vst [vmem:[#allocation3 + $0x70] sm:$0x7] %v4869_v59  ;;  %v9910_v4 = vpop.f32.mrb[112].mxu0  ;;  %v3385_v8 = vld [vmem:[#allocation7 + $0x78] sm:$0xff] }
 0x43f   :  { %4643 = vst [vmem:[#allocation2 + $0x7c] sm:$0xff] %v4595_v37  ;;  %v4837_v43 = vld [vmem:[#allocation2 + $0x25] ss:$4 sm:$0x7]  ;;  %4916 = vst [vmem:[#allocation3 + $0x38] sm:$0xff] %v4900_v44  ;;  %v4462_v32 = vadd.f32 %v9910_v4, %v11713_v31  ;;  %v4453_v2 = vpop.f32.mrb[113].mxu0  ;;  %v3427_v10 = vpack.c.bf16 %v3391_v60, %v3385_v8 }
 0x440   :  { %4853 = vst [vmem:[#allocation3 + $0x68] sm:$0x7] %v4837_v43  ;;  %v4773_v27 = vld [vmem:[#allocation2 + $0x23] ss:$4 sm:$0x7]  ;;  %4641 = vst [vmem:[#allocation2 + $0x6c] sm:$0xff] %v4593_v1  ;;  %v4454_v11 = vadd.f32 %v11713_v31, %v4453_v2 }
 0x441   :  { %v4868_v63 = vld [vmem:[#allocation2 + $0x6] ss:$4 sm:$0xff]  ;;  %v4839_v5 = vld [vmem:[#allocation2 + $0x55] ss:$4 sm:$0x7]  ;;  %v9911_v61 = vpop.f32.mrb[114].mxu0 }
 0x442   :  { %4789 = vst [vmem:[#allocation3 + $0x58] sm:$0x7] %v4773_v27  ;;  %4884 = vst [vmem:[#allocation3 + $0x30] sm:$0xff] %v4868_v63  ;;  %v11787_v26 = vld [vmem:[#allocation2 + $0x35] ss:$4 sm:$0xff]  ;;  %v4598_v17 = vmax.f32 %v4462_v32, 0.0  ;;  %v4465_v14 = vadd.f32 %v9911_v61, %v11713_v31 }
 0x443   :  { %4855 = vst [vmem:[#allocation3 + $0xe8] sm:$0x7] %v4839_v5  ;;  %v11789_v22 = vld [vmem:[#allocation2 + $0x34] ss:$4 sm:$0xff]  ;;  %v4456_v3 = vpop.f32.mrb[115].mxu0  ;;  %3929 = vmatmul.mubr.bf16.vlgmr.msra.gmra.mrb[112].mxu1 %v3420_v7  ;;  %v4596_v16 = vmax.f32 %v4454_v11, 0.0 }
 0x444   :  { %v4807_v15 = vld [vmem:[#allocation2 + $0x54] ss:$4 sm:$0x7]  ;;  %v4457_v33 = vadd.f32 %v11713_v31, %v4456_v3  ;;  %v11793_v19 = vld [vmem:[#allocation2 + $0x31] ss:$4 sm:$0xff]  ;;  %3936 = vmatprep.mubr.bf16.mxu1 %v3427_v10  ;;  %9343 = vmatpush3.bf16.msra.mxu1 %v10323_v0  ;;  %4646 = vst [vmem:[#allocation2 + $0x94] sm:$0xff] %v4598_v17 }
 0x445   :  { %4823 = vst [vmem:[#allocation3 + $0xe0] sm:$0x7] %v4807_v15  ;;  %v11795_v20 = vld [vmem:[#allocation2 + $0x30] ss:$4 sm:$0xff]  ;;  %v4599_v23 = vmax.f32 %v4465_v14, 0.0  ;;  %9344 = vmatprep.subr.bf16.mxu1 %v10326_v12  ;;  %4644 = vst [vmem:[#allocation2 + $0x84] sm:$0xff] %v4596_v16 }
 0x446   :  { %v10327_v24 = vld [vmem:[%s12888_s4 + $0x108] sm:$0xff]   ;;  %v10330_v40 = vld [vmem:[%s12888_s4 + $0x150] sm:$0xff]   ;;  %v3390_v30 = vld [vmem:[#allocation7 + $0xa0] sm:$0xff]  ;;  %v4597_v45 = vmax.f32 %v4457_v33, 0.0  ;;  %v9914_v51 = vpop.f32.mrb[116].mxu0 }
 0x447   :  { %v4711_v29 = vld [vmem:[#allocation2 + $0x51] ss:$4 sm:$0x7]  ;;  %v4944_v62 = vld [vmem:[#allocation3 + $0x60] sm:$0xff]  ;;  %4647 = vst [vmem:[#allocation2 + $0x9c] sm:$0xff] %v4599_v23  ;;  %v4945_v49 = vld [vmem:[#allocation3 + $0x68] sm:$0xff] }
 0x448   :  { %4727 = vst [vmem:[#allocation3 + $0xc8] sm:$0x7] %v4711_v29  ;;  %v4679_v35 = vld [vmem:[#allocation2 + $0x50] ss:$4 sm:$0x7]  ;;  %v5064_v39 = vpack.c.bf16 %v4944_v62, %v11765_v28  ;;  %v3403_v38 = vld [vmem:[#allocation7 + $0x108] sm:$0xff]  ;;  %v5065_v48 = vpack.c.bf16 %v4945_v49, %v11763_v18  ;;  %9345 = vmatpush3.bf16.msra.mxu1 %v10327_v24  ;;  %v4478_v28 = vadd.f32 %v9914_v51, %v11713_v31 }
 0x449   :  { %v3384_v41 = vld [vmem:[#allocation7 + $0x70] sm:$0xff]  ;;  %4695 = vst [vmem:[#allocation3 + $0xc0] sm:$0x7] %v4679_v35  ;;  %v4741_v34 = vld [vmem:[#allocation2 + $0x22] ss:$4 sm:$0x7]  ;;  %9346 = vmatprep.subr.bf16.mxu1 %v10330_v40 }
 0x44a   :  { %v10331_v42 = vld [vmem:[%s12888_s4 + $0x110] sm:$0xff]   ;;  %v3397_v9 = vld [vmem:[#allocation7 + $0xd8] sm:$0xff]  ;;  %4645 = vst [vmem:[#allocation2 + $0x8c] sm:$0x7] %v4597_v45  ;;  %4757 = vst [vmem:[#allocation3 + $0x50] sm:$0x7] %v4741_v34  ;;  %v3426_v58 = vpack.c.bf16 %v3390_v30, %v3384_v41  ;;  %5868 = vmatprep.mubr.bf16.mxu0 %v5065_v48 }
 0x44b   :  { %v4774_v55 = vld [vmem:[#allocation2 + $0x33] ss:$4 sm:$0xff]  ;;  %v11811_v52 = vld [vmem:[#allocation2 + $0x65] ss:$4 sm:$0xff]  ;;  %v11813_v54 = vld [vmem:[#allocation2 + $0x64] ss:$4 sm:$0xff]  ;;  %v3433_v1 = vpack.c.bf16 %v3403_v38, %v3397_v9  ;;  %5869 = vmatmul.mubr.bf16.vlgmr.msra.gmra.mrb[144].mxu0 %v5064_v39 }
 0x44c   :  { %v10334_v50 = vld [vmem:[%s12888_s4 + $0x158] sm:$0xff]   ;;  %4790 = vst [vmem:[#allocation3 + $0x98] sm:$0xff] %v4774_v55  ;;  %v4469_v56 = vpop.f32.mrb[117].mxu0  ;;  %v4961_v57 = vld [vmem:[#allocation3 + $0xe8] sm:$0xff]  ;;  %v4602_v43 = vmax.f32 %v4478_v28, 0.0  ;;  %3937 = vmatmul.mubr.bf16.gmra.mrb[116].mxu1 %v3426_v58  ;;  %v4960_v12 = vld [vmem:[#allocation3 + $0xe0] sm:$0xff] }
 0x44d   :  { %v11816_v37 = vld [vmem:[#allocation2 + $0x61] ss:$4 sm:$0xff]  ;;  %v11818_v6 = vld [vmem:[#allocation2 + $0x60] ss:$4 sm:$0xff]  ;;  %v4470_v18 = vadd.f32 %v11713_v31, %v4469_v56  ;;  %v9915_v60 = vpop.f32.mrb[118].mxu0  ;;  %v5073_v53 = vpack.c.bf16 %v4961_v57, %v11787_v26  ;;  %3944 = vmatprep.mubr.bf16.mxu1 %v3433_v1  ;;  %9347 = vmatpush3.bf16.msra.mxu1 %v10331_v42  ;;  %v5072_v14 = vpack.c.bf16 %v4960_v12, %v11789_v22 }
 0x44e   :  { %v4775_v59 = vld [vmem:[#allocation2 + $0x53] ss:$4 sm:$0x7]  ;;  %v4742_v0 = vld [vmem:[#allocation2 + $0x32] ss:$4 sm:$0xff]  ;;  %v4481_v44 = vadd.f32 %v9915_v60, %v11713_v31  ;;  %v4472_v4 = vpop.f32.mrb[119].mxu0  ;;  %9348 = vmatprep.subr.bf16.mxu1 %v10334_v50 }
 0x44f   :  { %4791 = vst [vmem:[#allocation3 + $0xd8] sm:$0x7] %v4775_v59  ;;  %v4743_v27 = vld [vmem:[#allocation2 + $0x52] ss:$4 sm:$0x7]  ;;  %4758 = vst [vmem:[#allocation3 + $0x90] sm:$0xff] %v4742_v0  ;;  %5876 = vmatprep.mubr.bf16.mxu0 %v5073_v53  ;;  %v4473_v13 = vadd.f32 %v11713_v31, %v4472_v4 }
 0x450   :  { %v4600_v63 = vmax.f32 %v4470_v18, 0.0  ;;  %4759 = vst [vmem:[#allocation3 + $0xd0] sm:$0x7] %v4743_v27  ;;  %v4776_v32 = vld [vmem:[#allocation2 + $0x63] ss:$4 sm:$0xff]  ;;  %4650 = vst [vmem:[#allocation2 + $0xb4] sm:$0xff] %v4602_v43 }
 0x451   :  { %v4744_v2 = vld [vmem:[#allocation2 + $0x62] ss:$4 sm:$0xff]  ;;  %v4603_v7 = vmax.f32 %v4481_v44, 0.0  ;;  %v4713_v8 = vld [vmem:[#allocation2 + $0x81] ss:$4 sm:$0x7] }
 0x452   :  { %v10335_v5 = vld [vmem:[%s12888_s4 + $0x118] sm:$0xff]   ;;  %4792 = vst [vmem:[#allocation3 + $0x118] sm:$0xff] %v4776_v32  ;;  %4760 = vst [vmem:[#allocation3 + $0x110] sm:$0xff] %v4744_v2  ;;  %v3402_v11 = vld [vmem:[#allocation7 + $0x100] sm:$0xff]  ;;  %v4601_v26 = vmax.f32 %v4473_v13, 0.0  ;;  %v9918_v24 = vpop.f32.mrb[120].mxu0 }
 0x453   :  { %v10338_v61 = vld [vmem:[%s12888_s4 + $0x160] sm:$0xff]   ;;  %4648 = vst [vmem:[#allocation2 + $0xa4] sm:$0xff] %v4600_v63  ;;  %4729 = vst [vmem:[#allocation3 + $0x148] sm:$0x7] %v4713_v8  ;;  %v3396_v16 = vld [vmem:[#allocation7 + $0xd0] sm:$0xff]  ;;  %9349 = vmatpush3.bf16.msra.mxu1 %v10335_v5  ;;  %v4494_v23 = vadd.f32 %v9918_v24, %v11713_v31  ;;  %v4485_v29 = vpop.f32.mrb[121].mxu0  ;;  %5877 = vmatmul.mubr.bf16.gmra.mrb[148].mxu0 %v5072_v14 }
 0x454   :  { %v4681_v10 = vld [vmem:[#allocation2 + $0x80] ss:$4 sm:$0x7]  ;;  %4651 = vst [vmem:[#allocation2 + $0xbc] sm:$0x7] %v4603_v7  ;;  %4649 = vst [vmem:[#allocation2 + $0xac] sm:$0xff] %v4601_v26  ;;  %v3432_v62 = vpack.c.bf16 %v3402_v11, %v3396_v16  ;;  %9350 = vmatprep.subr.bf16.mxu1 %v10338_v61  ;;  %v4486_v41 = vadd.f32 %v11713_v31, %v4485_v29 }
 0x455   :  { %v10339_v17 = vld [vmem:[%s12888_s4 + $0x120] sm:$0xff]   ;;  %4697 = vst [vmem:[#allocation3 + $0x140] sm:$0x7] %v4681_v10  ;;  %v3415_v33 = vld [vmem:[#allocation7 + $0x168] sm:$0xff]  ;;  %v3409_v22 = vld [vmem:[#allocation7 + $0x138] sm:$0xff]  ;;  %v9919_v42 = vpop.f32.mrb[122].mxu0 }
 0x456   :  { %v4841_v3 = vld [vmem:[#allocation2 + $0x85] ss:$4 sm:$0x7]  ;;  %v4809_v15 = vld [vmem:[#allocation2 + $0x84] ss:$4 sm:$0x7]  ;;  %v3439_v39 = vpack.c.bf16 %v3415_v33, %v3409_v22  ;;  %v4497_v55 = vadd.f32 %v9919_v42, %v11713_v31  ;;  %3945 = vmatmul.mubr.bf16.gmra.mrb[120].mxu1 %v3432_v62 }
 0x457   :  { %4857 = vst [vmem:[#allocation3 + $0x168] sm:$0x7] %v4841_v3  ;;  %4825 = vst [vmem:[#allocation3 + $0x160] sm:$0x7] %v4809_v15  ;;  %v4902_v45 = vld [vmem:[#allocation2 + $0x37] ss:$4 sm:$0xff]  ;;  %9351 = vmatpush3.bf16.msra.mxu1 %v10339_v17 }
 0x458   :  { %v4777_v40 = vld [vmem:[#allocation2 + $0x83] ss:$4 sm:$0x7]  ;;  %v4745_v30 = vld [vmem:[#allocation2 + $0x82] ss:$4 sm:$0x7]  ;;  %3952 = vmatprep.mubr.bf16.mxu1 %v3439_v39 }
 0x459   :  { %4793 = vst [vmem:[#allocation3 + $0x158] sm:$0x7] %v4777_v40  ;;  %v10342_v35 = vld [vmem:[%s12888_s4 + $0x168] sm:$0xff]   ;;  %4761 = vst [vmem:[#allocation3 + $0x150] sm:$0x7] %v4745_v30  ;;  %v4606_v34 = vmax.f32 %v4494_v23, 0.0 }
 0x45a   :  { %v4901_v49 = vld [vmem:[#allocation2 + $0x27] ss:$4 sm:$0x7]  ;;  %4918 = vst [vmem:[#allocation3 + $0xb8] sm:$0xff] %v4902_v45  ;;  %v4488_v9 = vpop.f32.mrb[123].mxu0  ;;  %v4604_v50 = vmax.f32 %v4486_v41, 0.0  ;;  %9352 = vmatprep.subr.bf16.mxu1 %v10342_v35 }
 0x45b   :  { %4917 = vst [vmem:[#allocation3 + $0x78] sm:$0x7] %v4901_v49  ;;  %v4903_v38 = vld [vmem:[#allocation2 + $0x57] ss:$4 sm:$0x7]  ;;  %v4489_v48 = vadd.f32 %v11713_v31, %v4488_v9  ;;  %v10343_v56 = vld [vmem:[%s12888_s4 + $0x128] sm:$0xff]  }
 0x45c   :  { %4919 = vst [vmem:[#allocation3 + $0xf8] sm:$0x7] %v4903_v38  ;;  %v4870_v51 = vld [vmem:[#allocation2 + $0x36] ss:$4 sm:$0xff]  ;;  %v4904_v28 = vld [vmem:[#allocation2 + $0x67] ss:$4 sm:$0xff]  ;;  %9353 = vmatpush3.bf16.msra.mxu1 %v10343_v56 }
 0x45d   :  { %v10346_v57 = vld [vmem:[%s12888_s4 + $0x170] sm:$0xff]   ;;  %4654 = vst [vmem:[#allocation2 + $0xd4] sm:$0xff] %v4606_v34  ;;  %v4607_v58 = vmax.f32 %v4497_v55, 0.0  ;;  %4886 = vst [vmem:[#allocation3 + $0xb0] sm:$0xff] %v4870_v51  ;;  %v3414_v60 = vld [vmem:[#allocation7 + $0x160] sm:$0xff]  ;;  %v4605_v59 = vmax.f32 %v4489_v48, 0.0 }
 0x45e   :  { %v4871_v18 = vld [vmem:[#allocation2 + $0x56] ss:$4 sm:$0x7]  ;;  %4920 = vst [vmem:[#allocation3 + $0x138] sm:$0xff] %v4904_v28  ;;  %4652 = vst [vmem:[#allocation2 + $0xc4] sm:$0xff] %v4604_v50  ;;  %v4977_v44 = vld [vmem:[#allocation3 + $0x168] sm:$0xff]  ;;  %9354 = vmatprep.subr.bf16.mxu1 %v10346_v57 }
 0x45f   :  { %v3381_v53 = vld [vmem:[#allocation7 + $0x58] sm:$0xff]  ;;  %4887 = vst [vmem:[#allocation3 + $0xf0] sm:$0x7] %v4871_v18  ;;  %v3408_v1 = vld [vmem:[#allocation7 + $0x130] sm:$0xff]  ;;  %4655 = vst [vmem:[#allocation2 + $0xdc] sm:$0xff] %v4607_v58  ;;  %v9922_v12 = vpop.f32.mrb[124].mxu0  ;;  %v5081_v32 = vpack.c.bf16 %v4977_v44, %v11811_v52 }
 0x460   :  { %v4843_v0 = vld [vmem:[#allocation2 + $0xb5] ss:$4 sm:$0x7]  ;;  %v4976_v4 = vld [vmem:[#allocation3 + $0x160] sm:$0xff]  ;;  %v3375_v63 = vld [vmem:[#allocation7 + $0x28] sm:$0xff]  ;;  %4653 = vst [vmem:[#allocation2 + $0xcc] sm:$0xff] %v4605_v59  ;;  %v4510_v8 = vadd.f32 %v9922_v12, %v11713_v31  ;;  %v3438_v10 = vpack.c.bf16 %v3414_v60, %v3408_v1 }
 0x461   :  { %v10347_v43 = vld [vmem:[%s12888_s4 + $0x130] sm:$0xff]   ;;  %4859 = vst [vmem:[#allocation3 + $0x1e8] sm:$0x7] %v4843_v0  ;;  %v10348_v13 = vld [vmem:[%s12888_s4 + $0x178] sm:$0xff]   ;;  %v5080_v2 = vpack.c.bf16 %v4976_v4, %v11813_v54  ;;  %v4501_v11 = vpop.f32.mrb[125].mxu0  ;;  %5884 = vmatprep.mubr.bf16.mxu0 %v5081_v32  ;;  %v3423_v3 = vpack.c.bf16 %v3381_v53, %v3375_v63  ;;  %v10350_v62 = vld [vmem:[%s12885_s2 + $0x240] sm:$0xff]  }
 0x462   :  { %v11850_v27 = vld [vmem:[#allocation2 + $0x95] ss:$4 sm:$0xff]  ;;  %v11857_v5 = vld [vmem:[#allocation2 + $0x94] ss:$4 sm:$0xff]  ;;  %v4502_v17 = vadd.f32 %v11713_v31, %v4501_v11  ;;  %v9923_v14 = vpop.f32.mrb[126].mxu0  ;;  %v4610_v15 = vmax.f32 %v4510_v8, 0.0  ;;  %3953 = vmatmul.mubr.bf16.gmra.mrb[124].mxu1 %v3438_v10 }
 0x463   :  { %v4811_v7 = vld [vmem:[#allocation2 + $0xb4] ss:$4 sm:$0x7]  ;;  %v11860_v61 = vld [vmem:[#allocation2 + $0x91] ss:$4 sm:$0xff]  ;;  %v4513_v16 = vadd.f32 %v9923_v14, %v11713_v31  ;;  %v4504_v33 = vpop.f32.mrb[127].mxu0  ;;  %5885 = vmatmul.mubr.bf16.gmra.mrb[152].mxu0 %v5080_v2  ;;  %9355 = vmatpush3.bf16.msra.mxu1 %v10347_v43 }
 0x464   :  { %4827 = vst [vmem:[#allocation3 + $0x1e0] sm:$0x7] %v4811_v7  ;;  %v4715_v26 = vld [vmem:[#allocation2 + $0xb1] ss:$4 sm:$0x7]  ;;  %v4608_v40 = vmax.f32 %v4502_v17, 0.0  ;;  %v4505_v23 = vadd.f32 %v11713_v31, %v4504_v33  ;;  %3993 = vmatprep.mubr.bf16.mxu1 %v3423_v3  ;;  %9356 = vmatprep.subr.bf16.mxu1 %v10348_v13 }
 0x465   :  { %4731 = vst [vmem:[#allocation3 + $0x1c8] sm:$0x7] %v4715_v26  ;;  %v11863_v52 = vld [vmem:[#allocation2 + $0x90] ss:$4 sm:$0xff]  ;;  %v11866_v24 = vld [vmem:[#allocation2 + $0x93] ss:$4 sm:$0xff] }
 0x466   :  { %v4683_v54 = vld [vmem:[#allocation2 + $0xb0] ss:$4 sm:$0x7]  ;;  %v4779_v29 = vld [vmem:[#allocation2 + $0xb3] ss:$4 sm:$0x7] }
 0x467   :  { %4699 = vst [vmem:[#allocation3 + $0x1c0] sm:$0x7] %v4683_v54  ;;  %v11869_v30 = vld [vmem:[#allocation2 + $0x92] ss:$4 sm:$0xff]  ;;  %4658 = vst [vmem:[#allocation2 + $0xf4] sm:$0xff] %v4610_v15  ;;  %v4611_v22 = vmax.f32 %v4513_v16, 0.0 }
 0x468   :  { %v10349_v45 = vld [vmem:[%s12888_s4 + $0x138] sm:$0xff]   ;;  %4795 = vst [vmem:[#allocation3 + $0x1d8] sm:$0x7] %v4779_v29  ;;  %v3380_v41 = vld [vmem:[#allocation7 + $0x50] sm:$0xff]  ;;  %4656 = vst [vmem:[#allocation2 + $0xe4] sm:$0xff] %v4608_v40  ;;  %v4609_v49 = vmax.f32 %v4505_v23, 0.0 }
 0x469   :  { %v4747_v35 = vld [vmem:[#allocation2 + $0xb2] ss:$4 sm:$0x7]  ;;  %v4993_v39 = vld [vmem:[#allocation3 + $0x1e8] sm:$0xff]  ;;  %4659 = vst [vmem:[#allocation2 + $0xfc] sm:$0xff] %v4611_v22  ;;  %v9926_v50 = vpop.f32.mrb[128].mxu0  ;;  %9357 = vmatpush3.bf16.msra.mxu1 %v10349_v45 }
 0x46a   :  { %v3393_v42 = vld [vmem:[#allocation7 + $0xb8] sm:$0xff]  ;;  %4763 = vst [vmem:[#allocation3 + $0x1d0] sm:$0x7] %v4747_v35  ;;  %v5089_v34 = vpack.c.bf16 %v4993_v39, %v11850_v27  ;;  %4657 = vst [vmem:[#allocation2 + $0xec] sm:$0x7] %v4609_v49  ;;  %v3374_v56 = vld [vmem:[#allocation7 + $0x20] sm:$0xff]  ;;  %v4526_v58 = vadd.f32 %v9926_v50, %v11713_v31  ;;  %9414 = vmatprep.subr.bf16.mxu1 %v10350_v62 }
 0x46b   :  { %v11878_v55 = vld [vmem:[#allocation2 + $0xc5] ss:$4 sm:$0xff]  ;;  %v11880_v9 = vld [vmem:[#allocation2 + $0xc4] ss:$4 sm:$0xff]  ;;  %v11886_v28 = vld [vmem:[#allocation2 + $0xc3] ss:$4 sm:$0xff]  ;;  %v3422_v59 = vpack.c.bf16 %v3380_v41, %v3374_v56 }
 0x46c   :  { %v11882_v38 = vld [vmem:[#allocation2 + $0xc1] ss:$4 sm:$0xff]  ;;  %v11884_v51 = vld [vmem:[#allocation2 + $0xc0] ss:$4 sm:$0xff]  ;;  %v4517_v18 = vpop.f32.mrb[129].mxu0  ;;  %5892 = vmatprep.mubr.bf16.mxu0 %v5089_v34  ;;  %v4614_v63 = vmax.f32 %v4526_v58, 0.0 }
 0x46d   :  { %v4992_v48 = vld [vmem:[#allocation3 + $0x1e0] sm:$0xff]  ;;  %v3387_v0 = vld [vmem:[#allocation7 + $0x88] sm:$0xff]  ;;  %v4518_v43 = vadd.f32 %v11713_v31, %v4517_v18  ;;  %v9927_v44 = vpop.f32.mrb[130].mxu0  ;;  %3994 = vmatmul.mubr.bf16.vlgmr.msra.gmra.mrb[128].mxu1 %v3422_v59  ;;  %v3392_v26 = vld [vmem:[#allocation7 + $0xb0] sm:$0xff] }
 0x46e   :  { %v10351_v57 = vld [vmem:[%s12885_s2 + $0x200] sm:$0xff]   ;;  %v5088_v60 = vpack.c.bf16 %v4992_v48, %v11857_v5  ;;  %v10352_v1 = vld [vmem:[%s12885_s2 + $0x248] sm:$0xff]   ;;  %v3429_v27 = vpack.c.bf16 %v3393_v42, %v3387_v0  ;;  %v4529_v13 = vadd.f32 %v9927_v44, %v11713_v31  ;;  %v4520_v12 = vpop.f32.mrb[131].mxu0  ;;  %v10354_v10 = vld [vmem:[%s12885_s2 + $0x250] sm:$0xff]   ;;  %4662 = vst [vmem:[#allocation2 + $0x114] sm:$0xff] %v4614_v63 }
 0x46f   :  { %v11893_v53 = vld [vmem:[#allocation2 + $0xc2] ss:$4 sm:$0xff]  ;;  %v4905_v4 = vld [vmem:[#allocation2 + $0x87] ss:$4 sm:$0x7]  ;;  %v4612_v7 = vmax.f32 %v4518_v43, 0.0  ;;  %v4521_v8 = vadd.f32 %v11713_v31, %v4520_v12  ;;  %9415 = vmatpush3.bf16.msra.mxu1 %v10351_v57 }
 0x470   :  { %5893 = vmatmul.mubr.bf16.gmra.mrb[156].mxu0 %v5088_v60  ;;  %4921 = vst [vmem:[#allocation3 + $0x178] sm:$0x7] %v4905_v4  ;;  %v11900_v32 = vld [vmem:[#allocation2 + $0x66] ss:$4 sm:$0xff]  ;;  %v11902_v2 = vld [vmem:[#allocation2 + $0x97] ss:$4 sm:$0xff]  ;;  %4001 = vmatprep.mubr.bf16.mxu1 %v3429_v27 }
 0x471   :  { %v10353_v5 = vld [vmem:[%s12885_s2 + $0x208] sm:$0xff]   ;;  %4888 = vst [vmem:[#allocation3 + $0x130] sm:$0xff] %v11900_v32  ;;  %4922 = vst [vmem:[#allocation3 + $0x1b8] sm:$0xff] %v11902_v2  ;;  %v4615_v17 = vmax.f32 %v4529_v13, 0.0  ;;  %9416 = vmatprep.subr.bf16.mxu1 %v10352_v1  ;;  %v3405_v54 = vld [vmem:[#allocation7 + $0x118] sm:$0xff]  ;;  %v4613_v31 = vmax.f32 %v4521_v8, 0.0 }
 0x472   :  { %v4873_v11 = vld [vmem:[#allocation2 + $0x86] ss:$4 sm:$0x7]  ;;  %v4717_v14 = vld [vmem:[#allocation2 + $0xe1] ss:$4 sm:$0x7] }
 0x473   :  { %4889 = vst [vmem:[#allocation3 + $0x170] sm:$0x7] %v4873_v11  ;;  %4660 = vst [vmem:[#allocation2 + $0x104] sm:$0xff] %v4612_v7  ;;  %v4685_v3 = vld [vmem:[#allocation2 + $0xe0] ss:$4 sm:$0x7]  ;;  %9417 = vmatpush3.bf16.msra.mxu1 %v10353_v5 }
 0x474   :  { %4733 = vst [vmem:[#allocation3 + $0x248] sm:$0x7] %v4717_v14  ;;  %v11913_v15 = vld [vmem:[#allocation2 + $0x96] ss:$4 sm:$0xff]  ;;  %4663 = vst [vmem:[#allocation2 + $0x11c] sm:$0x7] %v4615_v17  ;;  %9418 = vmatprep.subr.bf16.mxu1 %v10354_v10 }
 0x475   :  { %v3386_v16 = vld [vmem:[#allocation7 + $0x80] sm:$0xff]  ;;  %v10355_v33 = vld [vmem:[%s12885_s2 + $0x210] sm:$0xff]   ;;  %4701 = vst [vmem:[#allocation3 + $0x240] sm:$0x7] %v4685_v3  ;;  %4890 = vst [vmem:[#allocation3 + $0x1b0] sm:$0xff] %v11913_v15  ;;  %v9930_v29 = vpop.f32.mrb[132].mxu0 }
 0x476   :  { %v4845_v40 = vld [vmem:[#allocation2 + $0xe5] ss:$4 sm:$0x7]  ;;  %v4813_v23 = vld [vmem:[#allocation2 + $0xe4] ss:$4 sm:$0x7]  ;;  %v3428_v39 = vpack.c.bf16 %v3392_v26, %v3386_v16 }
 0x477   :  { %4661 = vst [vmem:[#allocation2 + $0x10c] sm:$0xff] %v4613_v31  ;;  %4861 = vst [vmem:[#allocation3 + $0x268] sm:$0x7] %v4845_v40  ;;  %v4781_v45 = vld [vmem:[#allocation2 + $0xe3] ss:$4 sm:$0x7]  ;;  %9419 = vmatpush3.bf16.msra.mxu1 %v10355_v33 }
 0x478   :  { %4829 = vst [vmem:[#allocation3 + $0x260] sm:$0x7] %v4813_v23  ;;  %v11919_v62 = vld [vmem:[#allocation2 + $0xc7] ss:$4 sm:$0xff]  ;;  %v11924_v22 = vld [vmem:[%s12886_s5 + $0x8] ss:$0 sm:$0xff]  ;;  %4002 = vmatmul.mubr.bf16.gmra.mrb[132].mxu1 %v3428_v39 }
 0x479   :  { %v4542_v35 = vadd.f32 %v11924_v22, %v9930_v29  ;;  %v4533_v41 = vpop.f32.mrb[133].mxu0  ;;  %4797 = vst [vmem:[#allocation3 + $0x258] sm:$0x7] %v4781_v45  ;;  %v4749_v42 = vld [vmem:[#allocation2 + $0xe2] ss:$4 sm:$0x7] }
 0x47a   :  { %4924 = vst [vmem:[#allocation3 + $0x238] sm:$0xff] %v11919_v62  ;;  %v11928_v49 = vld [vmem:[#allocation2 + $0xc6] ss:$4 sm:$0xff]  ;;  %v4534_v48 = vadd.f32 %v11924_v22, %v4533_v41  ;;  %v9931_v56 = vpop.f32.mrb[134].mxu0  ;;  %4765 = vst [vmem:[#allocation3 + $0x250] sm:$0x7] %v4749_v42 }
 0x47b   :  { %v3399_v34 = vld [vmem:[#allocation7 + $0xe8] sm:$0xff]  ;;  %v10356_v50 = vld [vmem:[%s12885_s2 + $0x258] sm:$0xff]   ;;  %4892 = vst [vmem:[#allocation3 + $0x230] sm:$0xff] %v11928_v49  ;;  %v4618_v18 = vmax.f32 %v4542_v35, 0.0  ;;  %v4545_v60 = vadd.f32 %v11924_v22, %v9931_v56  ;;  %v4536_v59 = vpop.f32.mrb[135].mxu0  ;;  %v10358_v27 = vld [vmem:[%s12885_s2 + $0x260] sm:$0xff]  }
 0x47c   :  { %v4907_v57 = vld [vmem:[#allocation2 + $0xb7] ss:$4 sm:$0x7]  ;;  %v3435_v58 = vpack.c.bf16 %v3405_v54, %v3399_v34  ;;  %v4875_v0 = vld [vmem:[#allocation2 + $0xb6] ss:$4 sm:$0x7]  ;;  %v4537_v43 = vadd.f32 %v11924_v22, %v4536_v59  ;;  %9420 = vmatprep.subr.bf16.mxu1 %v10356_v50 }
 0x47d   :  { %4923 = vst [vmem:[#allocation3 + $0x1f8] sm:$0x7] %v4907_v57  ;;  %v4616_v1 = vmax.f32 %v4534_v48, 0.0  ;;  %4891 = vst [vmem:[#allocation3 + $0x1f0] sm:$0x7] %v4875_v0  ;;  %v10357_v4 = vld [vmem:[%s12885_s2 + $0x218] sm:$0xff]  }
 0x47e   :  { %v4909_v44 = vld [vmem:[#allocation2 + $0xe7] ss:$4 sm:$0x7]  ;;  %4009 = vmatprep.mubr.bf16.mxu1 %v3435_v58  ;;  %4666 = vst [vmem:[#allocation2 + $0x134] sm:$0xff] %v4618_v18  ;;  %v4619_v63 = vmax.f32 %v4545_v60, 0.0  ;;  %v3404_v12 = vld [vmem:[#allocation7 + $0x110] sm:$0xff]  ;;  %9421 = vmatpush3.bf16.msra.mxu1 %v10357_v4 }
 0x47f   :  { %4925 = vst [vmem:[#allocation3 + $0x278] sm:$0x7] %v4909_v44  ;;  %v4877_v13 = vld [vmem:[#allocation2 + $0xe6] ss:$4 sm:$0x7]  ;;  %v3417_v5 = vld [vmem:[#allocation7 + $0x178] sm:$0xff]  ;;  %9422 = vmatprep.subr.bf16.mxu1 %v10358_v27 }
 0x480   :  { %4664 = vst [vmem:[#allocation2 + $0x124] sm:$0xff] %v4616_v1  ;;  %v4617_v7 = vmax.f32 %v4537_v43, 0.0  ;;  %v4847_v8 = vld [vmem:[#allocation2 + $0x115] ss:$4 sm:$0x7]  ;;  %v3398_v11 = vld [vmem:[#allocation7 + $0xe0] sm:$0xff] }
 0x481   :  { %4893 = vst [vmem:[#allocation3 + $0x270] sm:$0x7] %v4877_v13  ;;  %v10359_v26 = vld [vmem:[%s12885_s2 + $0x220] sm:$0xff]   ;;  %4667 = vst [vmem:[#allocation2 + $0x13c] sm:$0xff] %v4619_v63  ;;  %v5009_v10 = vld [vmem:[#allocation3 + $0x268] sm:$0xff]  ;;  %v9934_v3 = vpop.f32.mrb[136].mxu0  ;;  %v3434_v42 = vpack.c.bf16 %v3404_v12, %v3398_v11 }
 0x482   :  { %v5008_v17 = vld [vmem:[#allocation3 + $0x260] sm:$0xff]  ;;  %4863 = vst [vmem:[#allocation3 + $0x2e8] sm:$0x7] %v4847_v8  ;;  %v3411_v54 = vld [vmem:[#allocation7 + $0x148] sm:$0xff]  ;;  %4665 = vst [vmem:[#allocation2 + $0x12c] sm:$0xff] %v4617_v7  ;;  %v5097_v16 = vpack.c.bf16 %v5009_v10, %v11878_v55  ;;  %v4558_v29 = vadd.f32 %v11924_v22, %v9934_v3  ;;  %v4549_v45 = vpop.f32.mrb[137].mxu0  ;;  %9423 = vmatpush3.bf16.msra.mxu1 %v10359_v26 }
 0x483   :  { %v11946_v14 = vld [vmem:[#allocation2 + $0xf5] ss:$4 sm:$0xff]  ;;  %v5096_v33 = vpack.c.bf16 %v5008_v17, %v11880_v9  ;;  %v11953_v40 = vld [vmem:[#allocation2 + $0xf4] ss:$4 sm:$0xff]  ;;  %v4550_v39 = vadd.f32 %v11924_v22, %v4549_v45  ;;  %v9935_v34 = vpop.f32.mrb[138].mxu0  ;;  %v3441_v50 = vpack.c.bf16 %v3417_v5, %v3411_v54  ;;  %4010 = vmatmul.mubr.bf16.gmra.mrb[136].mxu1 %v3434_v42 }
 0x484   :  { %v10360_v31 = vld [vmem:[%s12885_s2 + $0x268] sm:$0xff]   ;;  %v4815_v23 = vld [vmem:[#allocation2 + $0x114] ss:$4 sm:$0x7]  ;;  %5900 = vmatprep.mubr.bf16.mxu0 %v5097_v16  ;;  %v4622_v48 = vmax.f32 %v4558_v29, 0.0  ;;  %v4561_v56 = vadd.f32 %v11924_v22, %v9935_v34  ;;  %v4552_v57 = vpop.f32.mrb[139].mxu0 }
 0x485   :  { %4831 = vst [vmem:[#allocation3 + $0x2e0] sm:$0x7] %v4815_v23  ;;  %v11956_v35 = vld [vmem:[#allocation2 + $0xf1] ss:$4 sm:$0xff]  ;;  %v11959_v55 = vld [vmem:[#allocation2 + $0xf0] ss:$4 sm:$0xff]  ;;  %5901 = vmatmul.mubr.bf16.gmra.mrb[160].mxu0 %v5096_v33  ;;  %v4553_v60 = vadd.f32 %v11924_v22, %v4552_v57  ;;  %4017 = vmatprep.mubr.bf16.mxu1 %v3441_v50 }
 0x486   :  { %v4719_v41 = vld [vmem:[#allocation2 + $0x111] ss:$4 sm:$0x7]  ;;  %v4687_v9 = vld [vmem:[#allocation2 + $0x110] ss:$4 sm:$0x7]  ;;  %9424 = vmatprep.subr.bf16.mxu1 %v10360_v31 }
 0x487   :  { %4735 = vst [vmem:[#allocation3 + $0x2c8] sm:$0x7] %v4719_v41  ;;  %4703 = vst [vmem:[#allocation3 + $0x2c0] sm:$0x7] %v4687_v9  ;;  %v11962_v58 = vld [vmem:[#allocation2 + $0xf3] ss:$4 sm:$0xff] }
 0x488   :  { %v4620_v18 = vmax.f32 %v4550_v39, 0.0  ;;  %v4783_v59 = vld [vmem:[#allocation2 + $0x113] ss:$4 sm:$0x7]  ;;  %v11965_v0 = vld [vmem:[#allocation2 + $0xf2] ss:$4 sm:$0xff] }
 0x489   :  { %v10361_v1 = vld [vmem:[%s12885_s2 + $0x228] sm:$0xff]   ;;  %v10362_v43 = vld [vmem:[%s12885_s2 + $0x270] sm:$0xff]   ;;  %4670 = vst [vmem:[#allocation2 + $0x154] sm:$0xff] %v4622_v48  ;;  %v4623_v44 = vmax.f32 %v4561_v56, 0.0  ;;  %4799 = vst [vmem:[#allocation3 + $0x2d8] sm:$0x7] %v4783_v59 }
 0x48a   :  { %v4751_v4 = vld [vmem:[#allocation2 + $0x112] ss:$4 sm:$0x7]  ;;  %v4941_v63 = vld [vmem:[#allocation3 + $0x48] sm:$0xff]  ;;  %4668 = vst [vmem:[#allocation2 + $0x144] sm:$0xff] %v4620_v18  ;;  %v4621_v13 = vmax.f32 %v4553_v60, 0.0  ;;  %9425 = vmatpush3.bf16.msra.mxu1 %v10361_v1 }
 0x48b   :  { %v3416_v27 = vld [vmem:[#allocation7 + $0x170] sm:$0xff]  ;;  %v5025_v12 = vld [vmem:[#allocation3 + $0x2e8] sm:$0xff]  ;;  %4767 = vst [vmem:[#allocation3 + $0x2d0] sm:$0x7] %v4751_v4  ;;  %4671 = vst [vmem:[#allocation2 + $0x15c] sm:$0xff] %v4623_v44  ;;  %v9938_v26 = vpop.f32.mrb[140].mxu0  ;;  %9426 = vmatprep.subr.bf16.mxu1 %v10362_v43  ;;  %v5061_v39 = vpack.c.bf16 %v4941_v63, %v11771_v36 }
 0x48c   :  { %v5105_v5 = vpack.c.bf16 %v5025_v12, %v11946_v14  ;;  %v11974_v7 = vld [vmem:[#allocation2 + $0x125] ss:$4 sm:$0xff]  ;;  %v11976_v8 = vld [vmem:[#allocation2 + $0x124] ss:$4 sm:$0xff]  ;;  %4669 = vst [vmem:[#allocation2 + $0x14c] sm:$0x7] %v4621_v13  ;;  %v4574_v14 = vadd.f32 %v11924_v22, %v9938_v26 }
 0x48d   :  { %v11978_v11 = vld [vmem:[#allocation2 + $0x121] ss:$4 sm:$0xff]  ;;  %v11980_v17 = vld [vmem:[#allocation2 + $0x120] ss:$4 sm:$0xff]  ;;  %v11982_v54 = vld [vmem:[#allocation2 + $0x123] ss:$4 sm:$0xff] }
 0x48e   :  { %v5024_v10 = vld [vmem:[#allocation3 + $0x2e0] sm:$0xff]  ;;  %v10363_v3 = vld [vmem:[%s12885_s2 + $0x230] sm:$0xff]   ;;  %v4565_v16 = vpop.f32.mrb[141].mxu0  ;;  %5908 = vmatprep.mubr.bf16.mxu0 %v5105_v5  ;;  %v10364_v45 = vld [vmem:[%s12885_s2 + $0x278] sm:$0xff]   ;;  %v4626_v34 = vmax.f32 %v4574_v14, 0.0 }
 0x48f   :  { %v3410_v31 = vld [vmem:[#allocation7 + $0x140] sm:$0xff]  ;;  %v5104_v33 = vpack.c.bf16 %v5024_v10, %v11953_v40  ;;  %v4566_v41 = vadd.f32 %v11924_v22, %v4565_v16  ;;  %v9939_v42 = vpop.f32.mrb[142].mxu0  ;;  %v10365_v56 = vld [vmem:[%s12885_s2 + $0x238] sm:$0xff]   ;;  %9427 = vmatpush3.bf16.msra.mxu1 %v10363_v3  ;;  %v4957_v43 = vld [vmem:[#allocation3 + $0xc8] sm:$0xff] }
 0x490   :  { %v11989_v23 = vld [vmem:[#allocation2 + $0x122] ss:$4 sm:$0xff]  ;;  %v3440_v29 = vpack.c.bf16 %v3416_v27, %v3410_v31  ;;  %v4577_v9 = vadd.f32 %v11924_v22, %v9939_v42  ;;  %v4568_v50 = vpop.f32.mrb[143].mxu0  ;;  %v11997_v48 = vld [vmem:[#allocation2 + $0xf7] ss:$4 sm:$0xff]  ;;  %4674 = vst [vmem:[#allocation2 + $0x174] sm:$0xff] %v4626_v34  ;;  %9428 = vmatprep.subr.bf16.mxu1 %v10364_v45 }
 0x491   :  { %5909 = vmatmul.mubr.bf16.gmra.mrb[164].mxu0 %v5104_v33  ;;  %v11999_v40 = vld [vmem:[#allocation2 + $0xf6] ss:$4 sm:$0xff]  ;;  %v4624_v57 = vmax.f32 %v4566_v41, 0.0  ;;  %v4569_v18 = vadd.f32 %v11924_v22, %v4568_v50  ;;  %v4721_v1 = vld [vmem:[#allocation2 + $0x141] ss:$4 sm:$0x7] }
 0x492   :  { %4018 = vmatmul.mubr.bf16.gmra.mrb[140].mxu1 %v3440_v29  ;;  %v4940_v36 = vld [vmem:[#allocation3 + $0x40] sm:$0xff]  ;;  %v4627_v59 = vmax.f32 %v4577_v9, 0.0  ;;  %4737 = vst [vmem:[#allocation3 + $0x348] sm:$0x7] %v4721_v1  ;;  %v10368_v14 = vld [vmem:[%s12885_s2 + $0x2c8] sm:$0xff]   ;;  %v5069_v29 = vpack.c.bf16 %v4957_v43, %v11793_v19  ;;  %v10370_v34 = vld [vmem:[%s12885_s2 + $0x2d0] sm:$0xff]  }
 0x493   :  { %5674 = vmatprep.mubr.bf16.mxu1 %v5061_v39  ;;  %v10366_v60 = vld [vmem:[%s12885_s2 + $0x2c0] sm:$0xff]   ;;  %4672 = vst [vmem:[#allocation2 + $0x164] sm:$0xff] %v4624_v57  ;;  %v4625_v44 = vmax.f32 %v4569_v18, 0.0  ;;  %9429 = vmatpush3.bf16.msra.mxu1 %v10365_v56  ;;  %v4911_v26 = vld [vmem:[#allocation2 + $0x117] ss:$4 sm:$0x7] }
 0x494   :  { %v4689_v4 = vld [vmem:[#allocation2 + $0x140] ss:$4 sm:$0x7]  ;;  %v12008_v27 = vld [vmem:[#allocation2 + $0x127] ss:$4 sm:$0xff]  ;;  %9478 = vmatprep.subr.bf16.mxu1 %v10366_v60 }
 0x495   :  { %v10367_v22 = vld [vmem:[%s12885_s2 + $0x280] sm:$0xff]   ;;  %4675 = vst [vmem:[#allocation2 + $0x17c] sm:$0x7] %v4627_v59  ;;  %4705 = vst [vmem:[#allocation3 + $0x340] sm:$0x7] %v4689_v4  ;;  %v10369_v39 = vld [vmem:[%s12885_s2 + $0x288] sm:$0xff]  }
 0x496   :  { %v4849_v63 = vld [vmem:[#allocation2 + $0x145] ss:$4 sm:$0x7]  ;;  %v4817_v13 = vld [vmem:[#allocation2 + $0x144] ss:$4 sm:$0x7] }
 0x497   :  { %4673 = vst [vmem:[#allocation2 + $0x16c] sm:$0xff] %v4625_v44  ;;  %4865 = vst [vmem:[#allocation3 + $0x368] sm:$0x7] %v4849_v63  ;;  %v4785_v12 = vld [vmem:[#allocation2 + $0x143] ss:$4 sm:$0x7] }
 0x498   :  { %4833 = vst [vmem:[#allocation3 + $0x360] sm:$0x7] %v4817_v13  ;;  %v4753_v5 = vld [vmem:[#allocation2 + $0x142] ss:$4 sm:$0x7]  ;;  %v10371_v43 = vld [vmem:[%s12885_s2 + $0x290] sm:$0xff]  }
 0x499   :  { %4801 = vst [vmem:[#allocation3 + $0x358] sm:$0x7] %v4785_v12  ;;  %4769 = vst [vmem:[#allocation3 + $0x350] sm:$0x7] %v4753_v5  ;;  %v10583_v31 = vld [vmem:[#allocation3] sm:$0xff]  ;;  %v4973_v18 = vld [vmem:[#allocation3 + $0x148] sm:$0xff] }
 0x49a   :  { %v4879_v10 = vld [vmem:[#allocation2 + $0x116] ss:$4 sm:$0x7]  ;;  %v5060_v3 = vpack.c.bf16 %v4940_v36, %v10583_v31  ;;  %4927 = vst [vmem:[#allocation3 + $0x2f8] sm:$0x7] %v4911_v26  ;;  %v4956_v42 = vld [vmem:[#allocation3 + $0xc0] sm:$0xff]  ;;  %v5077_v13 = vpack.c.bf16 %v4973_v18, %v11816_v37 }
 0x49b   :  { %4895 = vst [vmem:[#allocation3 + $0x2f0] sm:$0x7] %v4879_v10  ;;  %v4913_v16 = vld [vmem:[#allocation2 + $0x147] ss:$4 sm:$0x7]  ;;  %v10373_v26 = vld [vmem:[%s12885_s2 + $0x298] sm:$0xff]  }
 0x49c   :  { %v12016_v33 = vld [vmem:[#allocation2 + $0x126] ss:$4 sm:$0xff]  ;;  %4929 = vst [vmem:[#allocation3 + $0x378] sm:$0x7] %v4913_v16  ;;  %5675 = vmatmul.mubr.bf16.vlgmr.msra.gmra.mrb[144].mxu1 %v5060_v3 }
 0x49d   :  { %v4881_v45 = vld [vmem:[#allocation2 + $0x146] ss:$4 sm:$0x7]  ;;  %v4915_v41 = vld [vmem:[#allocation2 + $0x177] ss:$4 sm:$0x7]  ;;  %5682 = vmatprep.mubr.bf16.mxu1 %v5069_v29  ;;  %9479 = vmatpush3.bf16.msra.mxu1 %v10367_v22  ;;  %v5068_v22 = vpack.c.bf16 %v4956_v42, %v11795_v20 }
 0x49e   :  { %4897 = vst [vmem:[#allocation3 + $0x370] sm:$0x7] %v4881_v45  ;;  %4931 = vst [vmem:[#allocation3 + $0x3f8] sm:$0x7] %v4915_v41  ;;  %9480 = vmatprep.subr.bf16.mxu1 %v10368_v14  ;;  %v5041_v50 = vld [vmem:[#allocation3 + $0x368] sm:$0xff]  ;;  %v10374_v10 = vld [vmem:[%s12885_s2 + $0x2e0] sm:$0xff]  }
 0x49f   :  { %v4851_v9 = vld [vmem:[#allocation2 + $0x175] ss:$4 sm:$0x7]  ;;  %v4819_v19 = vld [vmem:[#allocation2 + $0x174] ss:$4 sm:$0x7]  ;;  %v5113_v36 = vpack.c.bf16 %v5041_v50, %v11974_v7 }
 0x4a0   :  { %v5040_v56 = vld [vmem:[#allocation3 + $0x360] sm:$0xff]  ;;  %4867 = vst [vmem:[#allocation3 + $0x3e8] sm:$0x7] %v4851_v9  ;;  %4835 = vst [vmem:[#allocation3 + $0x3e0] sm:$0x7] %v4819_v19  ;;  %v10372_v7 = vld [vmem:[%s12885_s2 + $0x2d8] sm:$0xff]  }
 0x4a1   :  { %v4850_v57 = vld [vmem:[#allocation2 + $0x155] ss:$4 sm:$0xff]  ;;  %v5112_v60 = vpack.c.bf16 %v5040_v56, %v11976_v8  ;;  %v4818_v59 = vld [vmem:[#allocation2 + $0x154] ss:$4 sm:$0xff]  ;;  %9481 = vmatpush3.bf16.msra.mxu1 %v10369_v39  ;;  %5916 = vmatprep.mubr.bf16.mxu0 %v5113_v36  ;;  %v12038_v63 = vld [vmem:[#allocation2 + $0x153] ss:$4 sm:$0xff] }
 0x4a2   :  { %v12027_v1 = vld [vmem:[#allocation2 + $0x151] ss:$4 sm:$0xff]  ;;  %v12032_v4 = vld [vmem:[#allocation2 + $0x150] ss:$4 sm:$0xff]  ;;  %9482 = vmatprep.subr.bf16.mxu1 %v10370_v34  ;;  %v12041_v5 = vld [vmem:[#allocation2 + $0x152] ss:$4 sm:$0xff] }
 0x4a3   :  { %v4723_v44 = vld [vmem:[#allocation2 + $0x171] ss:$4 sm:$0x7]  ;;  %v4691_v8 = vld [vmem:[#allocation2 + $0x170] ss:$4 sm:$0x7]  ;;  %5917 = vmatmul.mubr.bf16.gmra.mrb[168].mxu0 %v5112_v60 }
 0x4a4   :  { %4739 = vst [vmem:[#allocation3 + $0x3c8] sm:$0x7] %v4723_v44  ;;  %4707 = vst [vmem:[#allocation3 + $0x3c0] sm:$0x7] %v4691_v8  ;;  %5683 = vmatmul.mubr.bf16.gmra.mrb[148].mxu1 %v5068_v22  ;;  %v12049_v37 = vld [vmem:[#allocation2 + $0x157] ss:$4 sm:$0xff] }
 0x4a5   :  { %v4787_v12 = vld [vmem:[#allocation2 + $0x173] ss:$4 sm:$0x7]  ;;  %v4755_v20 = vld [vmem:[#allocation2 + $0x172] ss:$4 sm:$0x7]  ;;  %5690 = vmatprep.mubr.bf16.mxu1 %v5077_v13  ;;  %9483 = vmatpush3.bf16.msra.mxu1 %v10371_v43 }
 0x4a6   :  { %4803 = vst [vmem:[#allocation3 + $0x3d8] sm:$0x7] %v4787_v12  ;;  %4771 = vst [vmem:[#allocation3 + $0x3d0] sm:$0x7] %v4755_v20  ;;  %9484 = vmatprep.subr.bf16.mxu1 %v10372_v7  ;;  %v12051_v14 = vld [vmem:[#allocation2 + $0x156] ss:$4 sm:$0xff] }
 0x4a7   :  { %v5057_v31 = vld [vmem:[#allocation3 + $0x3e8] sm:$0xff]  ;;  %v5056_v3 = vld [vmem:[#allocation3 + $0x3e0] sm:$0xff]  ;;  %v4883_v41 = vld [vmem:[#allocation2 + $0x176] ss:$4 sm:$0x7] }
 0x4a8   :  { %v4972_v16 = vld [vmem:[#allocation3 + $0x140] sm:$0xff]  ;;  %v5121_v29 = vpack.c.bf16 %v5057_v31, %v4850_v57  ;;  %v5120_v45 = vpack.c.bf16 %v5056_v3, %v4818_v59  ;;  %v4989_v42 = vld [vmem:[#allocation3 + $0x1c8] sm:$0xff]  ;;  %4899 = vst [vmem:[#allocation3 + $0x3f0] sm:$0x7] %v4883_v41  ;;  %v10380_v36 = vld [vmem:[%s12885_s2 + $0x2f8] sm:$0xff]  }
 0x4a9   :  { %9485 = vmatpush3.bf16.msra.mxu1 %v10373_v26  ;;  %v10375_v39 = vld [vmem:[%s12885_s2 + $0x2a0] sm:$0xff]   ;;  %v5076_v34 = vpack.c.bf16 %v4972_v16, %v11818_v6  ;;  %v10376_v9 = vld [vmem:[%s12885_s2 + $0x2e8] sm:$0xff]   ;;  %v5085_v19 = vpack.c.bf16 %v4989_v42, %v11860_v61  ;;  %v10378_v6 = vld [vmem:[%s12885_s2 + $0x2f0] sm:$0xff]  }
 0x4aa   :  { %5924 = vmatprep.mubr.bf16.mxu0 %v5121_v29  ;;  %9486 = vmatprep.subr.bf16.mxu1 %v10374_v10  ;;  %v10377_v50 = vld [vmem:[%s12885_s2 + $0x2a8] sm:$0xff]   ;;  %v4988_v56 = vld [vmem:[#allocation3 + $0x1c0] sm:$0xff]  ;;  %v10379_v61 = vld [vmem:[%s12885_s2 + $0x2b0] sm:$0xff]  }
 0x4ab   :  { %5925 = vmatmul.mubr.bf16.gmra.mrb[172].mxu0 %v5120_v45  ;;  %v5005_v57 = vld [vmem:[#allocation3 + $0x248] sm:$0xff]  ;;  %v5084_v18 = vpack.c.bf16 %v4988_v56, %v11863_v52  ;;  %v10381_v59 = vld [vmem:[%s12885_s2 + $0x2b8] sm:$0xff]   ;;  %v10382_v43 = vld [vmem:[%s12885_s2 + $0x3c0] sm:$0xff]  }
 0x4ac   :  { %5691 = vmatmul.mubr.bf16.gmra.mrb[152].mxu1 %v5076_v34  ;;  %v5093_v60 = vpack.c.bf16 %v5005_v57, %v11882_v38  ;;  %v5004_v52 = vld [vmem:[#allocation3 + $0x240] sm:$0xff]  ;;  %v5021_v44 = vld [vmem:[#allocation3 + $0x2c8] sm:$0xff]  ;;  %v10584_v16 = vld [vmem:[#allocation3 + $0x18] sm:$0xff] }
 0x4ad   :  { %5698 = vmatprep.mubr.bf16.mxu1 %v5085_v19  ;;  %9487 = vmatpush3.bf16.msra.mxu1 %v10375_v39  ;;  %v5092_v22 = vpack.c.bf16 %v5004_v52, %v11884_v51  ;;  %v5101_v38 = vpack.c.bf16 %v5021_v44, %v11956_v35  ;;  %v5020_v7 = vld [vmem:[#allocation3 + $0x2c0] sm:$0xff]  ;;  %v5037_v8 = vld [vmem:[#allocation3 + $0x348] sm:$0xff]  ;;  %v4943_v35 = vld [vmem:[#allocation3 + $0x58] sm:$0xff] }
 0x4ae   :  { %9488 = vmatprep.subr.bf16.mxu1 %v10376_v9  ;;  %v5100_v13 = vpack.c.bf16 %v5020_v7, %v11959_v55  ;;  %v5109_v12 = vpack.c.bf16 %v5037_v8, %v11978_v11  ;;  %v5036_v20 = vld [vmem:[#allocation3 + $0x340] sm:$0xff]  ;;  %v5053_v26 = vld [vmem:[#allocation3 + $0x3c8] sm:$0xff]  ;;  %v5063_v29 = vpack.c.bf16 %v4943_v35, %v10584_v16  ;;  %v4942_v55 = vld [vmem:[#allocation3 + $0x50] sm:$0xff] }
 0x4af   :  { %v5108_v10 = vpack.c.bf16 %v5036_v20, %v11980_v17  ;;  %v5117_v31 = vpack.c.bf16 %v5053_v26, %v12027_v1  ;;  %v5052_v51 = vld [vmem:[#allocation3 + $0x3c0] sm:$0xff]  ;;  %v4959_v11 = vld [vmem:[#allocation3 + $0xd8] sm:$0xff]  ;;  %v10585_v41 = vld [vmem:[#allocation3 + $0x10] sm:$0xff] }
 0x4b0   :  { %v5116_v3 = vpack.c.bf16 %v5052_v51, %v12032_v4  ;;  %v10383_v45 = vld [vmem:[%s12885_s2 + $0x380] sm:$0xff]   ;;  %v5062_v17 = vpack.c.bf16 %v4942_v55, %v10585_v41  ;;  %v10384_v1 = vld [vmem:[%s12885_s2 + $0x3c8] sm:$0xff]   ;;  %v10586_v42 = vld [vmem:[#allocation3 + $0x98] sm:$0xff] }
 0x4b1   :  { %9489 = vmatpush3.bf16.msra.mxu1 %v10377_v50  ;;  %v5071_v39 = vpack.c.bf16 %v4959_v11, %v10586_v42  ;;  %v10385_v4 = vld [vmem:[%s12885_s2 + $0x388] sm:$0xff]   ;;  %v10386_v34 = vld [vmem:[%s12885_s2 + $0x3d0] sm:$0xff]   ;;  %v4975_v19 = vld [vmem:[#allocation3 + $0x158] sm:$0xff] }
 0x4b2   :  { %9490 = vmatprep.subr.bf16.mxu1 %v10378_v6  ;;  %v4958_v9 = vld [vmem:[#allocation3 + $0xd0] sm:$0xff]  ;;  %v10388_v57 = vld [vmem:[%s12885_s2 + $0x3d8] sm:$0xff]   ;;  %v10391_v52 = vld [vmem:[%s12885_s2 + $0x3a0] sm:$0xff]  }
 0x4b3   :  { %v10387_v50 = vld [vmem:[%s12885_s2 + $0x390] sm:$0xff]   ;;  %v10393_v8 = vld [vmem:[%s12885_s2 + $0x3a8] sm:$0xff]   ;;  %v5007_v20 = vld [vmem:[#allocation3 + $0x258] sm:$0xff] }
 0x4b4   :  { %5699 = vmatmul.mubr.bf16.gmra.mrb[156].mxu1 %v5084_v18  ;;  %v10587_v6 = vld [vmem:[#allocation3 + $0x90] sm:$0xff]  ;;  %v10397_v51 = vld [vmem:[%s12885_s2 + $0x3b8] sm:$0xff]  }
 0x4b5   :  { %5706 = vmatprep.mubr.bf16.mxu1 %v5093_v60  ;;  %9491 = vmatpush3.bf16.msra.mxu1 %v10379_v61  ;;  %v5070_v56 = vpack.c.bf16 %v4958_v9, %v10587_v6  ;;  %v10588_v61 = vld [vmem:[#allocation3 + $0x118] sm:$0xff]  ;;  %v10390_v60 = vld [vmem:[%s12885_s2 + $0x3e0] sm:$0xff]   ;;  %v10589_v44 = vld [vmem:[#allocation3 + $0x110] sm:$0xff] }
 0x4b6   :  { %9492 = vmatprep.subr.bf16.mxu1 %v10380_v36  ;;  %v5079_v18 = vpack.c.bf16 %v4975_v19, %v10588_v61  ;;  %v10389_v36 = vld [vmem:[%s12885_s2 + $0x398] sm:$0xff]   ;;  %v10395_v26 = vld [vmem:[%s12885_s2 + $0x3b0] sm:$0xff]  }
 0x4b7   :  { %v5006_v35 = vld [vmem:[#allocation3 + $0x250] sm:$0xff]  ;;  %v5039_v55 = vld [vmem:[#allocation3 + $0x358] sm:$0xff] }
 0x4b8   :  { %v5111_v11 = vpack.c.bf16 %v5039_v55, %v11982_v54  ;;  %v5055_v41 = vld [vmem:[#allocation3 + $0x3d8] sm:$0xff]  ;;  %v5054_v9 = vld [vmem:[#allocation3 + $0x3d0] sm:$0xff] }
 0x4b9   :  { %9493 = vmatpush3.bf16.msra.mxu1 %v10381_v59  ;;  %v4974_v59 = vld [vmem:[#allocation3 + $0x150] sm:$0xff]  ;;  %v5118_v54 = vpack.c.bf16 %v5054_v9, %v12041_v5  ;;  %v10590_v19 = vld [vmem:[#allocation3 + $0x38] sm:$0xff] }
 0x4ba   :  { %9606 = vmatprep.subr.bf16.mxu1 %v10382_v43  ;;  %v4991_v43 = vld [vmem:[#allocation3 + $0x1d8] sm:$0xff] }
 0x4bb   :  { %v5087_v7 = vpack.c.bf16 %v4991_v43, %v11866_v24  ;;  %v4963_v61 = vld [vmem:[#allocation3 + $0xf8] sm:$0xff] }
 0x4bc   :  { %5707 = vmatmul.mubr.bf16.gmra.mrb[160].mxu1 %v5092_v22  ;;  %v5078_v22 = vpack.c.bf16 %v4974_v59, %v10589_v44  ;;  %v10592_v43 = vld [vmem:[#allocation3 + $0xb8] sm:$0xff]  ;;  %v4962_v44 = vld [vmem:[#allocation3 + $0xf0] sm:$0xff] }
 0x4bd   :  { %5714 = vmatprep.mubr.bf16.mxu1 %v5101_v38  ;;  %v10392_v38 = vld [vmem:[%s12885_s2 + $0x3e8] sm:$0xff]  }
 0x4c4   :  { %5715 = vmatmul.mubr.bf16.gmra.mrb[164].mxu1 %v5100_v13  ;;  %v10394_v13 = vld [vmem:[%s12885_s2 + $0x3f0] sm:$0xff]  }
 0x4c5   :  { %5722 = vmatprep.mubr.bf16.mxu1 %v5109_v12  ;;  %v4990_v12 = vld [vmem:[#allocation3 + $0x1d0] sm:$0xff] }
 0x4c6   :  { %v5086_v24 = vpack.c.bf16 %v4990_v12, %v11869_v30  ;;  %v5094_v30 = vpack.c.bf16 %v5006_v35, %v11893_v53  ;;  %v10593_v12 = vld [vmem:[#allocation3 + $0xb0] sm:$0xff] }
 0x4cc   :  { %5723 = vmatmul.mubr.bf16.gmra.mrb[168].mxu1 %v5108_v10  ;;  %v10396_v10 = vld [vmem:[%s12885_s2 + $0x3f8] sm:$0xff]  }
 0x4cd   :  { %5730 = vmatprep.mubr.bf16.mxu1 %v5117_v31  ;;  %v5095_v31 = vpack.c.bf16 %v5007_v20, %v11886_v28  ;;  %v5074_v20 = vpack.c.bf16 %v4962_v44, %v10593_v12 }
 0x4d4   :  { %5731 = vmatmul.mubr.bf16.gmra.mrb[172].mxu1 %v5116_v3  ;;  %v5023_v3 = vld [vmem:[#allocation3 + $0x2d8] sm:$0xff] }
 0x4d5   :  { %5771 = vmatprep.mubr.bf16.mxu1 %v5063_v29  ;;  %v5103_v16 = vpack.c.bf16 %v5023_v3, %v11962_v58  ;;  %v5022_v29 = vld [vmem:[#allocation3 + $0x2d0] sm:$0xff]  ;;  %v4995_v3 = vld [vmem:[#allocation3 + $0x1f8] sm:$0xff] }
 0x4d6   :  { %v5102_v28 = vpack.c.bf16 %v5022_v29, %v11965_v0  ;;  %v4947_v0 = vld [vmem:[#allocation3 + $0x78] sm:$0xff] }
 0x4dc   :  { %5772 = vmatmul.mubr.bf16.vlgmr.msra.gmra.mrb[176].mxu1 %v5062_v17 }
 0x4dd   :  { %5779 = vmatprep.mubr.bf16.mxu1 %v5071_v39  ;;  %9607 = vmatpush3.bf16.msra.mxu1 %v10383_v45  ;;  %v5038_v45 = vld [vmem:[#allocation3 + $0x350] sm:$0xff] }
 0x4de   :  { %9608 = vmatprep.subr.bf16.mxu1 %v10384_v1  ;;  %v5110_v17 = vpack.c.bf16 %v5038_v45, %v11989_v23  ;;  %v5119_v1 = vpack.c.bf16 %v5055_v41, %v12038_v63  ;;  %v12158_v45 = vld [vmem:[%s12886_s5 + $0x3] ss:$0 sm:$0xff] }
 0x4e1   :  { %9609 = vmatpush3.bf16.msra.mxu1 %v10385_v4 }
 0x4e2   :  { %9610 = vmatprep.subr.bf16.mxu1 %v10386_v34 }
 0x4e4   :  { %5780 = vmatmul.mubr.bf16.gmra.mrb[180].mxu1 %v5070_v56  ;;  %v4946_v56 = vld [vmem:[#allocation3 + $0x70] sm:$0xff] }
 0x4e5   :  { %5787 = vmatprep.mubr.bf16.mxu1 %v5079_v18  ;;  %9611 = vmatpush3.bf16.msra.mxu1 %v10387_v50  ;;  %v5067_v50 = vpack.c.bf16 %v4947_v0, %v10590_v19 }
 0x4e6   :  { %9612 = vmatprep.subr.bf16.mxu1 %v10388_v57  ;;  %v9278_v42 = vpop.f32.mrb[96].mxu1 }
 0x4e7   :  { %v9279_v53 = vpop.f32.mrb[97].mxu1 }
 0x4e8   :  { %v9280_v58 = vadd.f32 %v9279_v53, %v9278_v42  ;;  %v9281_v39 = vpop.f32.mrb[98].mxu1  ;;  %v5011_v42 = vld [vmem:[#allocation3 + $0x278] sm:$0xff] }
 0x4e9   :  { %9613 = vmatpush3.bf16.msra.mxu1 %v10389_v36  ;;  %v9282_v4 = vpop.f32.mrb[99].mxu1  ;;  %v5099_v19 = vpack.c.bf16 %v5011_v42, %v11919_v62 }
 0x4ea   :  { %9614 = vmatprep.subr.bf16.mxu1 %v10390_v60  ;;  %v9283_v34 = vadd.f32 %v9282_v4, %v9281_v39  ;;  %v10591_v60 = vld [vmem:[#allocation3 + $0x30] sm:$0xff]  ;;  %v3866_v53 = vadd.f32 %v9280_v58, %v12158_v45 }
 0x4eb   :  { %v5066_v59 = vpack.c.bf16 %v4946_v56, %v10591_v60  ;;  %v5010_v56 = vld [vmem:[#allocation3 + $0x270] sm:$0xff] }
 0x4ec   :  { %5788 = vmatmul.mubr.bf16.gmra.mrb[184].mxu1 %v5078_v22  ;;  %v5098_v62 = vpack.c.bf16 %v5010_v56, %v11928_v49  ;;  %v5043_v49 = vld [vmem:[#allocation3 + $0x378] sm:$0xff] }
 0x4ed   :  { %5795 = vmatprep.mubr.bf16.mxu1 %v5087_v7  ;;  %9615 = vmatpush3.bf16.msra.mxu1 %v10391_v52  ;;  %v5075_v52 = vpack.c.bf16 %v4963_v61, %v10592_v43  ;;  %v5027_v61 = vld [vmem:[#allocation3 + $0x2f8] sm:$0xff] }
 0x4ee   :  { %9616 = vmatprep.subr.bf16.mxu1 %v10392_v38  ;;  %v4979_v38 = vld [vmem:[#allocation3 + $0x178] sm:$0xff] }
 0x4f1   :  { %9617 = vmatpush3.bf16.msra.mxu1 %v10393_v8 }
 0x4f2   :  { %9618 = vmatprep.subr.bf16.mxu1 %v10394_v13 }
 0x4f3   :  { %v9284_v6 = vpop.f32.mrb[100].mxu1 }
 0x4f4   :  { %5796 = vmatmul.mubr.bf16.gmra.mrb[188].mxu1 %v5086_v24  ;;  %v9285_v23 = vpop.f32.mrb[101].mxu1  ;;  %v10594_v24 = vld [vmem:[#allocation3 + $0x138] sm:$0xff] }
 0x4f5   :  { %5803 = vmatprep.mubr.bf16.mxu1 %v5095_v31  ;;  %9619 = vmatpush3.bf16.msra.mxu1 %v10395_v26  ;;  %v9286_v63 = vadd.f32 %v9285_v23, %v9284_v6  ;;  %v9287_v57 = vpop.f32.mrb[102].mxu1 }
 0x4f6   :  { %9620 = vmatprep.subr.bf16.mxu1 %v10396_v10  ;;  %v9288_v18 = vpop.f32.mrb[103].mxu1  ;;  %v5083_v10 = vpack.c.bf16 %v4979_v38, %v10594_v24 }
 0x4f7   :  { %v12143_v36 = vadd.f32 %v9288_v18, %v9287_v57 }
 0x4f9   :  { %9621 = vmatpush3.bf16.msra.mxu1 %v10397_v51  ;;  %v4978_v51 = vld [vmem:[#allocation3 + $0x170] sm:$0xff]  ;;  %v3877_v44 = vadd.f32 %v12143_v36, %v12158_v45 }
 0x4fa   :  { %v5082_v55 = vpack.c.bf16 %v4978_v51, %v11900_v32 }
 0x4fc   :  { %5804 = vmatmul.mubr.bf16.gmra.mrb[192].mxu1 %v5094_v30 }
 0x4fd   :  { %5811 = vmatprep.mubr.bf16.mxu1 %v5103_v16 }
 0x504   :  { %5812 = vmatmul.mubr.bf16.gmra.mrb[196].mxu1 %v5102_v28 }
 0x505   :  { %5819 = vmatprep.mubr.bf16.mxu1 %v5111_v11  ;;  %v5091_v11 = vpack.c.bf16 %v4995_v3, %v11902_v2  ;;  %v3869_v2 = vadd.f32 %v9283_v34, %v12158_v45  ;;  %v3874_v34 = vadd.f32 %v9286_v63, %v12158_v45 }
 0x506   :  { %v9290_v5 = vpop.f32.mrb[104].mxu1 }
 0x507   :  { %v9291_v22 = vpop.f32.mrb[105].mxu1 }
 0x508   :  { %v12145_v7 = vadd.f32 %v9291_v22, %v9290_v5  ;;  %v9293_v8 = vpop.f32.mrb[106].mxu1 }
 0x509   :  { %v9294_v13 = vpop.f32.mrb[107].mxu1 }
 0x50a   :  { %v12147_v26 = vadd.f32 %v9294_v13, %v9293_v8  ;;  %v5107_v8 = vpack.c.bf16 %v5027_v61, %v11997_v48  ;;  %v3882_v36 = vadd.f32 %v12145_v7, %v12158_v45 }
 0x50c   :  { %5820 = vmatmul.mubr.bf16.gmra.mrb[200].mxu1 %v5110_v17  ;;  %v4994_v17 = vld [vmem:[#allocation3 + $0x1f0] sm:$0xff] }
 0x50d   :  { %5827 = vmatprep.mubr.bf16.mxu1 %v5119_v1  ;;  %v5090_v9 = vpack.c.bf16 %v4994_v17, %v11913_v15 }
 0x50e   :  { %v9296_v31 = vpop.f32.mrb[108].mxu1 }
 0x50f   :  { %v9297_v35 = vpop.f32.mrb[109].mxu1 }
 0x510   :  { %v12149_v30 = vadd.f32 %v9297_v35, %v9296_v31  ;;  %v9299_v16 = vpop.f32.mrb[110].mxu1 }
 0x511   :  { %v9300_v29 = vpop.f32.mrb[111].mxu1 }
 0x512   :  { %v12152_v28 = vadd.f32 %v9300_v29, %v9299_v16 }
 0x514   :  { %5828 = vmatmul.mubr.bf16.gmra.mrb[204].mxu1 %v5118_v54 }
 0x515   :  { %5965 = vmatprep.mubr.bf16.mxu1 %v5067_v50 }
 0x516   :  { %v9318_v41 = vpop.f32.mrb[112].mxu1 }
 0x517   :  { %v9319_v1 = vpop.f32.mrb[113].mxu1 }
 0x518   :  { %v9320_v39 = vadd.f32 %v9319_v1, %v9318_v41  ;;  %v9321_v4 = vpop.f32.mrb[114].mxu1  ;;  %v5115_v1 = vpack.c.bf16 %v5043_v49, %v12008_v27  ;;  %v10400_v49 = vld [vmem:[%s12887_s3 + $0x284] ss:$8 sps:$4 sm:$0xff]  }
 0x519   :  { %v9322_v32 = vpop.f32.mrb[115].mxu1  ;;  %6696 = vmatprep.subr.bf16.mxu0 %v10400_v49 }
 0x51a   :  { %v12163_v0 = vadd.f32 %v9320_v39, %v3866_v53  ;;  %v9323_v54 = vadd.f32 %v9322_v32, %v9321_v4  ;;  %v5042_v39 = vld [vmem:[#allocation3 + $0x370] sm:$0xff] }
 0x51c   :  { %5966 = vmatmul.mubr.bf16.vlgmr.msra.gmra.mrb[208].mxu1 %v5066_v59  ;;  %v12166_v50 = vadd.f32 %v9323_v54, %v3869_v2 }
 0x51d   :  { %5973 = vmatprep.mubr.bf16.mxu1 %v5075_v52 }
 0x51e   :  { %v9558_v6 = vpop.f32.mrb[144].mxu0 }
 0x51f   :  { %v9324_v23 = vpop.f32.mrb[116].mxu1  ;;  %v9559_v58 = vpop.f32.mrb[145].mxu0 }
 0x520   :  { %v9325_v57 = vpop.f32.mrb[117].mxu1  ;;  %v12168_v18 = vadd.f32 %v9559_v58, %v9558_v6  ;;  %v9561_v15 = vpop.f32.mrb[146].mxu0  ;;  %v3893_v58 = vadd.f32 %v12152_v28, %v12158_v45 }
 0x521   :  { %v9326_v60 = vadd.f32 %v9325_v57, %v9324_v23  ;;  %v9327_v59 = vpop.f32.mrb[118].mxu1  ;;  %v9562_v43 = vpop.f32.mrb[147].mxu0  ;;  %v5114_v23 = vpack.c.bf16 %v5042_v39, %v12016_v33 }
 0x522   :  { %v9328_v52 = vpop.f32.mrb[119].mxu1  ;;  %v12172_v5 = vadd.f32 %v9562_v43, %v9561_v15 }
 0x523   :  { %v12176_v22 = vadd.f32 %v9326_v60, %v3874_v34  ;;  %v9329_v38 = vadd.f32 %v9328_v52, %v9327_v59  ;;  %v5058_v59 = vld [vmem:[#allocation3 + $0x3f0] sm:$0xff] }
 0x524   :  { %5974 = vmatmul.mubr.bf16.gmra.mrb[212].mxu1 %v5074_v20  ;;  %v5026_v20 = vld [vmem:[#allocation3 + $0x2f0] sm:$0xff] }
 0x525   :  { %5981 = vmatprep.mubr.bf16.mxu1 %v5083_v10  ;;  %v12179_v13 = vadd.f32 %v9329_v38, %v3877_v44  ;;  %v5106_v29 = vpack.c.bf16 %v5026_v20, %v11999_v40  ;;  %v5059_v40 = vld [vmem:[#allocation3 + $0x3f8] sm:$0xff] }
 0x526   :  { %v9564_v63 = vpop.f32.mrb[148].mxu0  ;;  %v5123_v15 = vpack.c.bf16 %v5059_v40, %v12049_v37 }
 0x527   :  { %v9565_v24 = vpop.f32.mrb[149].mxu0 }
 0x528   :  { %v12181_v31 = vadd.f32 %v9565_v24, %v9564_v63  ;;  %v9567_v51 = vpop.f32.mrb[150].mxu0 }
 0x529   :  { %v9330_v12 = vpop.f32.mrb[120].mxu1  ;;  %v9568_v16 = vpop.f32.mrb[151].mxu0 }
 0x52a   :  { %v9331_v10 = vpop.f32.mrb[121].mxu1 }
 0x52b   :  { %v9332_v35 = vadd.f32 %v9331_v10, %v9330_v12  ;;  %v9333_v3 = vpop.f32.mrb[122].mxu1  ;;  %v10398_v10 = vld [vmem:[%s12887_s3 + $0x280] ss:$8 sps:$4 sm:$0xff]  }
 0x52c   :  { %5982 = vmatmul.mubr.bf16.gmra.mrb[216].mxu1 %v5082_v55  ;;  %v9334_v48 = vpop.f32.mrb[123].mxu1  ;;  %v12186_v55 = vadd.f32 %v9568_v16, %v9567_v51  ;;  %6697 = vmatpush1.bf16.msra.mxu0 %v10398_v10 }
 0x52d   :  { %5989 = vmatprep.mubr.bf16.mxu1 %v5091_v11  ;;  %v3885_v11 = vadd.f32 %v12147_v26, %v12158_v45  ;;  %v12190_v41 = vadd.f32 %v9332_v35, %v3882_v36  ;;  %v9335_v17 = vadd.f32 %v9334_v48, %v9333_v3  ;;  %v3890_v26 = vadd.f32 %v12149_v30, %v12158_v45  ;;  %v10403_v3 = vld [vmem:[%s12887_s3 + $0x294] ss:$8 sps:$4 sm:$0xff]  }
 0x52e   :  { %6698 = vmatprep.subr.bf16.mxu0 %v10403_v3  ;;  %v10412_v3 = vld [vmem:[%s12887_s3 + $0x2c4] ss:$8 sps:$4 sm:$0xff]  }
 0x52f   :  { %v12193_v42 = vadd.f32 %v9335_v17, %v3885_v11 }
 0x534   :  { %5990 = vmatmul.mubr.bf16.gmra.mrb[220].mxu1 %v5090_v9 }
 0x535   :  { %5997 = vmatprep.mubr.bf16.mxu1 %v5099_v19  ;;  %v9336_v53 = vpop.f32.mrb[124].mxu1 }
 0x536   :  { %v9570_v7 = vpop.f32.mrb[152].mxu0  ;;  %v9337_v32 = vpop.f32.mrb[125].mxu1 }
 0x537   :  { %v9571_v4 = vpop.f32.mrb[153].mxu0  ;;  %v9338_v54 = vadd.f32 %v9337_v32, %v9336_v53  ;;  %v9339_v19 = vpop.f32.mrb[126].mxu1 }
 0x538   :  { %v12195_v9 = vadd.f32 %v9571_v4, %v9570_v7  ;;  %v9573_v2 = vpop.f32.mrb[154].mxu0  ;;  %v9340_v27 = vpop.f32.mrb[127].mxu1 }
 0x539   :  { %v9574_v6 = vpop.f32.mrb[155].mxu0  ;;  %v12204_v57 = vadd.f32 %v9338_v54, %v3890_v26  ;;  %v9341_v61 = vadd.f32 %v9340_v27, %v9339_v19  ;;  %v10406_v26 = vld [vmem:[%s12887_s3 + $0x2a4] ss:$8 sps:$4 sm:$0xff]  }
 0x53a   :  { %v12200_v56 = vadd.f32 %v9574_v6, %v9573_v2  ;;  %v10404_v2 = vld [vmem:[%s12887_s3 + $0x2a0] ss:$8 sps:$4 sm:$0xff]  }
 0x53b   :  { %v12207_v34 = vadd.f32 %v9341_v61, %v3893_v58 }
 0x53c   :  { %5998 = vmatmul.mubr.bf16.gmra.mrb[224].mxu1 %v5098_v62 }
 0x53d   :  { %6005 = vmatprep.mubr.bf16.mxu1 %v5107_v8  ;;  %v5122_v8 = vpack.c.bf16 %v5058_v59, %v12051_v14 }
 0x540   :  { %v9358_v60 = vpop.f32.mrb[128].mxu1 }
 0x541   :  { %v9359_v52 = vpop.f32.mrb[129].mxu1 }
 0x542   :  { %v9360_v44 = vadd.f32 %v9359_v52, %v9358_v60  ;;  %v9361_v38 = vpop.f32.mrb[130].mxu1  ;;  %v10409_v52 = vld [vmem:[%s12887_s3 + $0x2b4] ss:$8 sps:$4 sm:$0xff]  }
 0x543   :  { %v9576_v30 = vpop.f32.mrb[156].mxu0  ;;  %v9362_v45 = vpop.f32.mrb[131].mxu1 }
 0x544   :  { %6006 = vmatmul.mubr.bf16.gmra.mrb[228].mxu1 %v5106_v29  ;;  %v9577_v43 = vpop.f32.mrb[157].mxu0  ;;  %v3996_v37 = vadd.f32 %v9360_v44, %v12163_v0  ;;  %v9363_v12 = vadd.f32 %v9362_v45, %v9361_v38 }
 0x545   :  { %6013 = vmatprep.mubr.bf16.mxu1 %v5115_v1  ;;  %v12209_v33 = vadd.f32 %v9577_v43, %v9576_v30  ;;  %v9579_v62 = vpop.f32.mrb[158].mxu0 }
 0x546   :  { %v9580_v28 = vpop.f32.mrb[159].mxu0  ;;  %v4026_v20 = vmax.f32 %v3996_v37, 0.0  ;;  %v3999_v24 = vadd.f32 %v9363_v12, %v12166_v50  ;;  %v10401_v50 = vld [vmem:[%s12887_s3 + $0x290] ss:$8 sps:$4 sm:$0xff]  }
 0x547   :  { %v12212_v63 = vadd.f32 %v9580_v28, %v9579_v62  ;;  %6699 = vmatpush1.bf16.msra.mxu0 %v10401_v50  ;;  %v10410_v50 = vld [vmem:[%s12887_s3 + $0x2c0] ss:$8 sps:$4 sm:$0xff]  }
 0x548   :  { %v4035_v14 = vsel %vm4034_vm1, %v4026_v20, -inf  ;;  %v4027_v51 = vmax.f32 %v3999_v24, 0.0  ;;  %6700 = vmatprep.subr.bf16.mxu0 %v10406_v26  ;;  %v10415_v26 = vld [vmem:[%s12887_s3 + $0x2d4] ss:$8 sps:$4 sm:$0xff]  }
 0x549   :  { %v4036_v0 = vrot.slane %v4035_v14, 4 }
 0x54a   :  { %v4042_v16 = vsel %vm4034_vm1, %v4027_v51, -inf }
 0x54b   :  { %v9364_v36 = vpop.f32.mrb[132].mxu1  ;;  %v4037_v11 = vmax.f32 %v4035_v14, %v4036_v0  ;;  %v4043_v17 = vrot.slane %v4042_v16, 4  ;;  %6701 = vmatpush1.bf16.msra.mxu0 %v10404_v2 }
 0x54c   :  { %6014 = vmatmul.mubr.bf16.gmra.mrb[232].mxu1 %v5114_v23  ;;  %v9365_v35 = vpop.f32.mrb[133].mxu1  ;;  %6702 = vmatprep.subr.bf16.mxu0 %v10409_v52 }
 0x54d   :  { %6021 = vmatprep.mubr.bf16.mxu1 %v5123_v15  ;;  %v9366_v48 = vadd.f32 %v9365_v35, %v9364_v36  ;;  %v9367_v29 = vpop.f32.mrb[134].mxu1  ;;  %v4038_v39 = vrot.slane %v4037_v11, 2  ;;  %v4044_v4 = vmax.f32 %v4042_v16, %v4043_v17 }
 0x54e   :  { %v9368_v1 = vpop.f32.mrb[135].mxu1 }
 0x54f   :  { %v4004_v7 = vadd.f32 %v9366_v48, %v12176_v22  ;;  %v9369_v53 = vadd.f32 %v9368_v1, %v9367_v29  ;;  %v4039_v54 = vmax.f32 %v4037_v11, %v4038_v39  ;;  %v4045_v19 = vrot.slane %v4044_v4, 2 }
 0x551   :  { %v4028_v32 = vmax.f32 %v4004_v7, 0.0  ;;  %v4007_v40 = vadd.f32 %v9369_v53, %v12179_v13  ;;  %v10407_v13 = vld [vmem:[%s12887_s3 + $0x2b0] ss:$8 sps:$4 sm:$0xff]   ;;  %v4040_v61 = vrot.slane %v4039_v54, 1  ;;  %v4046_v15 = vmax.f32 %v4044_v4, %v4045_v19 }
 0x552   :  { %6703 = vmatpush1.bf16.msra.mxu0 %v10407_v13 }
 0x553   :  { %v4049_v22 = vsel %vm4034_vm1, %v4028_v32, -inf  ;;  %v4029_v27 = vmax.f32 %v4007_v40, 0.0  ;;  %v4047_v45 = vrot.slane %v4046_v15, 1  ;;  %v4041_v49 = vmax.f32 %v4039_v54, %v4040_v61  ;;  %6704 = vmatprep.subr.bf16.mxu0 %v10412_v3 }
 0x554   :  { %6022 = vmatmul.mubr.bf16.gmra.mrb[236].mxu1 %v5122_v8  ;;  %v4050_v30 = vrot.slane %v4049_v22, 4 }
 0x555   :  { %v4056_v62 = vsel %vm4034_vm1, %v4029_v27, -inf  ;;  %v4048_v14 = vmax.f32 %v4046_v15, %v4047_v45  ;;  %v10416_v45 = vld [vmem:[%s12887_s3 + $0x2e0] ss:$8 sps:$4 sm:$0xff]  }
 0x556   :  { %v9370_v23 = vpop.f32.mrb[136].mxu1  ;;  %v4051_v8 = vmax.f32 %v4049_v22, %v4050_v30  ;;  %v4057_v37 = vrot.slane %v4056_v62, 4  ;;  %6705 = vmatpush1.bf16.msra.mxu0 %v10410_v50 }
 0x557   :  { %v9371_v60 = vpop.f32.mrb[137].mxu1  ;;  %6706 = vmatprep.subr.bf16.mxu0 %v10415_v26 }
 0x558   :  { %v9582_v6 = vpop.f32.mrb[160].mxu0  ;;  %v9372_v44 = vadd.f32 %v9371_v60, %v9370_v23  ;;  %v9373_v38 = vpop.f32.mrb[138].mxu1  ;;  %v4052_v51 = vrot.slane %v4051_v8, 2  ;;  %v4058_v36 = vmax.f32 %v4056_v62, %v4057_v37 }
 0x559   :  { %v9583_v58 = vpop.f32.mrb[161].mxu0  ;;  %v9374_v12 = vpop.f32.mrb[139].mxu1 }
 0x55a   :  { %v12242_v59 = vadd.f32 %v9583_v58, %v9582_v6  ;;  %v9585_v43 = vpop.f32.mrb[162].mxu0  ;;  %v4012_v20 = vadd.f32 %v9372_v44, %v12190_v41  ;;  %v9375_v24 = vadd.f32 %v9374_v12, %v9373_v38  ;;  %v7917_v41 = vsel %vm7916_vm2, %v4048_v14, %v4041_v49 }
 0x55b   :  { %v9586_v28 = vpop.f32.mrb[163].mxu0  ;;  %v4053_v16 = vmax.f32 %v4051_v8, %v4052_v51  ;;  %v4059_v48 = vrot.slane %v4058_v36, 2 }
 0x55c   :  { %v12249_v10 = vadd.f32 %v9586_v28, %v9585_v43  ;;  %v4030_v0 = vmax.f32 %v4012_v20, 0.0  ;;  %v4015_v35 = vadd.f32 %v9375_v24, %v12193_v42  ;;  %v10413_v42 = vld [vmem:[%s12887_s3 + $0x2d0] ss:$8 sps:$4 sm:$0xff]  }
 0x55d   :  { %v4054_v53 = vrot.slane %v4053_v16, 1  ;;  %v4060_v39 = vmax.f32 %v4058_v36, %v4059_v48  ;;  %6707 = vmatpush1.bf16.msra.mxu0 %v10413_v42 }
 0x55e   :  { %v4063_v11 = vsel %vm4034_vm1, %v4030_v0, -inf  ;;  %v4031_v17 = vmax.f32 %v4015_v35, 0.0  ;;  %v10421_v35 = vld [vmem:[%s12887_s3 + $0x2f4] ss:$8 sps:$4 sm:$0xff]  }
 0x55f   :  { %v4064_v4 = vrot.slane %v4063_v11, 4  ;;  %v4055_v27 = vmax.f32 %v4053_v16, %v4054_v53  ;;  %v4061_v23 = vrot.slane %v4060_v39, 1 }
 0x560   :  { %v4070_v54 = vsel %vm4034_vm1, %v4031_v17, -inf }
 0x561   :  { %v4065_v58 = vmax.f32 %v4063_v11, %v4064_v4  ;;  %v4071_v13 = vrot.slane %v4070_v54, 4  ;;  %v7919_v43 = vsel %vm7918_vm3, %v4055_v27, %v7917_v41  ;;  %v4062_v52 = vmax.f32 %v4060_v39, %v4061_v23 }
 0x563   :  { %v4066_v62 = vrot.slane %v4065_v58, 2  ;;  %v4072_v44 = vmax.f32 %v4070_v54, %v4071_v13  ;;  %v7921_v8 = vsel %vm7920_vm4, %v4062_v52, %v7919_v43  ;;  %v10424_v43 = vld [vmem:[%s12887_s3 + $0x304] ss:$8 sps:$4 sm:$0xff]  }
 0x564   :  { %v9588_v29 = vpop.f32.mrb[164].mxu0 }
 0x565   :  { %v9376_v1 = vpop.f32.mrb[140].mxu1  ;;  %v9589_v7 = vpop.f32.mrb[165].mxu0  ;;  %v4067_v37 = vmax.f32 %v4065_v58, %v4066_v62  ;;  %v4073_v12 = vrot.slane %v4072_v44, 2 }
 0x566   :  { %v9377_v32 = vpop.f32.mrb[141].mxu1  ;;  %v12263_v40 = vadd.f32 %v9589_v7, %v9588_v29  ;;  %v9591_v2 = vpop.f32.mrb[166].mxu0 }
 0x567   :  { %v9378_v19 = vadd.f32 %v9377_v32, %v9376_v1  ;;  %v9379_v6 = vpop.f32.mrb[142].mxu1  ;;  %v9592_v22 = vpop.f32.mrb[167].mxu0  ;;  %v4068_v14 = vrot.slane %v4067_v37, 1  ;;  %v4074_v51 = vmax.f32 %v4072_v44, %v4073_v12 }
 0x568   :  { %v9380_v61 = vpop.f32.mrb[143].mxu1  ;;  %v12270_v60 = vadd.f32 %v9592_v22, %v9591_v2 }
 0x569   :  { %v4020_v15 = vadd.f32 %v9378_v19, %v12204_v57  ;;  %v9381_v30 = vadd.f32 %v9380_v61, %v9379_v6  ;;  %v10418_v57 = vld [vmem:[%s12887_s3 + $0x2e4] ss:$8 sps:$4 sm:$0xff]   ;;  %v4069_v16 = vmax.f32 %v4067_v37, %v4068_v14  ;;  %v4075_v48 = vrot.slane %v4074_v51, 1 }
 0x56a   :  { %6708 = vmatprep.subr.bf16.mxu0 %v10418_v57 }
 0x56b   :  { %v4032_v38 = vmax.f32 %v4020_v15, 0.0  ;;  %v4023_v28 = vadd.f32 %v9381_v30, %v12207_v34  ;;  %v10419_v34 = vld [vmem:[%s12887_s3 + $0x2f0] ss:$8 sps:$4 sm:$0xff]   ;;  %6709 = vmatpush1.bf16.msra.mxu0 %v10416_v45  ;;  %v4076_v7 = vmax.f32 %v4074_v51, %v4075_v48  ;;  %v7923_v39 = vsel %vm7922_vm5, %v4069_v16, %v7921_v8  ;;  %v10422_v30 = vld [vmem:[%s12887_s3 + $0x300] ss:$8 sps:$4 sm:$0xff]  }
 0x56c   :  { %6710 = vmatprep.subr.bf16.mxu0 %v10421_v35  ;;  %v10425_v8 = vld [vmem:[%s12887_s3 + $0x310] ss:$8 sps:$4 sm:$0xff]  }
 0x56d   :  { %v4077_v20 = vsel %vm4034_vm1, %v4032_v38, -inf  ;;  %v4033_v24 = vmax.f32 %v4023_v28, 0.0  ;;  %v7925_v26 = vsel %vm7924_vm6, %v4076_v7, %v7923_v39  ;;  %v10427_v28 = vld [vmem:[%s12887_s3 + $0x314] ss:$8 sps:$4 sm:$0xff]  }
 0x56e   :  { %v4078_v36 = vrot.slane %v4077_v20, 4 }
 0x56f   :  { %v9430_v49 = vpop.f32.mrb[144].mxu1  ;;  %v4084_v50 = vsel %vm4034_vm1, %v4033_v24, -inf  ;;  %6711 = vmatpush1.bf16.msra.mxu0 %v10419_v34 }
 0x570   :  { %v9431_v0 = vpop.f32.mrb[145].mxu1  ;;  %v4079_v29 = vmax.f32 %v4077_v20, %v4078_v36  ;;  %v4085_v11 = vrot.slane %v4084_v50, 4  ;;  %6712 = vmatprep.subr.bf16.mxu0 %v10424_v43  ;;  %v10445_v43 = vld [vmem:[%s12887_s3 + $0x374] ss:$8 sps:$4 sm:$0xff]  }
 0x571   :  { %v12289_v3 = vadd.f32 %v9431_v0, %v9430_v49  ;;  %v9433_v41 = vpop.f32.mrb[146].mxu1 }
 0x572   :  { %v9434_v17 = vpop.f32.mrb[147].mxu1  ;;  %v4080_v42 = vrot.slane %v4079_v29, 2  ;;  %v4086_v53 = vmax.f32 %v4084_v50, %v4085_v11  ;;  %v10428_v50 = vld [vmem:[%s12887_s3 + $0x320] ss:$8 sps:$4 sm:$0xff]  }
 0x573   :  { %v12291_v1 = vadd.f32 %v9434_v17, %v9433_v41  ;;  %6713 = vmatpush1.bf16.msra.mxu0 %v10422_v30  ;;  %v10430_v41 = vld [vmem:[%s12887_s3 + $0x324] ss:$8 sps:$4 sm:$0xff]   ;;  %v10431_v17 = vld [vmem:[%s12887_s3 + $0x330] ss:$8 sps:$4 sm:$0xff]  }
 0x574   :  { %v4081_v4 = vmax.f32 %v4079_v29, %v4080_v42  ;;  %v4087_v32 = vrot.slane %v4086_v53, 2  ;;  %6714 = vmatprep.subr.bf16.mxu0 %v10427_v28  ;;  %v10433_v29 = vld [vmem:[%s12887_s3 + $0x334] ss:$8 sps:$4 sm:$0xff]  }
 0x576   :  { %v9594_v2 = vpop.f32.mrb[168].mxu0  ;;  %v4082_v6 = vrot.slane %v4081_v4, 1  ;;  %v4088_v22 = vmax.f32 %v4086_v53, %v4087_v32  ;;  %v10436_v32 = vld [vmem:[%s12887_s3 + $0x344] ss:$8 sps:$4 sm:$0xff]  }
 0x577   :  { %v9436_v54 = vpop.f32.mrb[148].mxu1  ;;  %v9595_v19 = vpop.f32.mrb[169].mxu0  ;;  %6715 = vmatpush1.bf16.msra.mxu0 %v10425_v8 }
 0x578   :  { %v9437_v27 = vpop.f32.mrb[149].mxu1  ;;  %v12295_v23 = vadd.f32 %v9595_v19, %v9594_v2  ;;  %v9597_v58 = vpop.f32.mrb[170].mxu0  ;;  %v4083_v52 = vmax.f32 %v4081_v4, %v4082_v6  ;;  %v4089_v62 = vrot.slane %v4088_v22, 1  ;;  %6716 = vmatprep.subr.bf16.mxu0 %v10430_v41  ;;  %v10434_v4 = vld [vmem:[%s12887_s3 + $0x340] ss:$8 sps:$4 sm:$0xff]  }
 0x579   :  { %v12297_v13 = vadd.f32 %v9437_v27, %v9436_v54  ;;  %v9439_v61 = vpop.f32.mrb[150].mxu1  ;;  %v9598_v15 = vpop.f32.mrb[171].mxu0  ;;  %v10437_v19 = vld [vmem:[%s12887_s3 + $0x350] ss:$8 sps:$4 sm:$0xff]  }
 0x57a   :  { %v9440_v44 = vpop.f32.mrb[151].mxu1  ;;  %v12305_v38 = vadd.f32 %v9598_v15, %v9597_v58  ;;  %v4090_v57 = vmax.f32 %v4088_v22, %v4089_v62  ;;  %v7927_v37 = vsel %vm7926_vm7, %v4083_v52, %v7925_v26  ;;  %v10439_v26 = vld [vmem:[%s12887_s3 + $0x354] ss:$8 sps:$4 sm:$0xff]   ;;  %v10442_v15 = vld [vmem:[%s12887_s3 + $0x364] ss:$8 sps:$4 sm:$0xff]  }
 0x57b   :  { %v12310_v45 = vadd.f32 %v9440_v44, %v9439_v61  ;;  %6717 = vmatpush1.bf16.msra.mxu0 %v10428_v50  ;;  %v10440_v61 = vld [vmem:[%s12887_s3 + $0x360] ss:$8 sps:$4 sm:$0xff]   ;;  %v10443_v62 = vld [vmem:[%s12887_s3 + $0x370] ss:$8 sps:$4 sm:$0xff]  }
 0x57c   :  { %v12317_v20 = vsel %vm7928_vm8, %v4090_v57, %v7927_v37  ;;  %6718 = vmatprep.subr.bf16.mxu0 %v10433_v29  ;;  %v10448_v37 = vld [vmem:[%s12887_s3 + $0x384] ss:$8 sps:$4 sm:$0xff]  }
 0x57e   :  { %v9600_v12 = vpop.f32.mrb[172].mxu0 }
 0x57f   :  { %v9442_v24 = vpop.f32.mrb[152].mxu1  ;;  %v9601_v49 = vpop.f32.mrb[173].mxu0  ;;  %6719 = vmatpush1.bf16.msra.mxu0 %v10431_v17 }
 0x580   :  { %v9443_v34 = vpop.f32.mrb[153].mxu1  ;;  %v12319_v14 = vadd.f32 %v9601_v49, %v9600_v12  ;;  %v9603_v51 = vpop.f32.mrb[174].mxu0  ;;  %6720 = vmatprep.subr.bf16.mxu0 %v10436_v32 }
 0x581   :  { %v12321_v36 = vadd.f32 %v9443_v34, %v9442_v24  ;;  %v9445_v0 = vpop.f32.mrb[154].mxu1  ;;  %v9604_v35 = vpop.f32.mrb[175].mxu0 }
 0x582   :  { %v9446_v16 = vpop.f32.mrb[155].mxu1  ;;  %v12329_v48 = vadd.f32 %v9604_v35, %v9603_v51 }
 0x583   :  { %v12334_v11 = vadd.f32 %v9446_v16, %v9445_v0  ;;  %6721 = vmatpush1.bf16.msra.mxu0 %v10434_v4 }
 0x584   :  { %6722 = vmatprep.subr.bf16.mxu0 %v10439_v26 }
 0x587   :  { %v9448_v7 = vpop.f32.mrb[156].mxu1  ;;  %6723 = vmatpush1.bf16.msra.mxu0 %v10437_v19 }
 0x588   :  { %v9449_v42 = vpop.f32.mrb[157].mxu1  ;;  %6724 = vmatprep.subr.bf16.mxu0 %v10442_v15 }
 0x589   :  { %v12339_v53 = vadd.f32 %v9449_v42, %v9448_v7  ;;  %v9451_v39 = vpop.f32.mrb[158].mxu1 }
 0x58a   :  { %v9452_v2 = vpop.f32.mrb[159].mxu1 }
 0x58b   :  { %v12350_v54 = vadd.f32 %v9452_v2, %v9451_v39  ;;  %6725 = vmatpush1.bf16.msra.mxu0 %v10440_v61  ;;  %v12389_v39 = vld [vmem:[%s12886_s5 + $0x9] ss:$0 sm:$0xff] }
 0x58c   :  { %6726 = vmatprep.subr.bf16.mxu0 %v10445_v43  ;;  %v5677_v2 = vadd.f32 %v12289_v3, %v12389_v39  ;;  %v5685_v3 = vadd.f32 %v12297_v13, %v12389_v39  ;;  %v5693_v13 = vadd.f32 %v12321_v36, %v12389_v39  ;;  %v5701_v36 = vadd.f32 %v12339_v53, %v12389_v39 }
 0x58f   :  { %v9454_v6 = vpop.f32.mrb[160].mxu1  ;;  %6727 = vmatpush1.bf16.msra.mxu0 %v10443_v62 }
 0x590   :  { %v9455_v22 = vpop.f32.mrb[161].mxu1  ;;  %6769 = vmatprep.subr.bf16.mxu0 %v10448_v37 }
 0x591   :  { %v12355_v27 = vadd.f32 %v9455_v22, %v9454_v6  ;;  %v9457_v58 = vpop.f32.mrb[162].mxu1  ;;  %v5680_v22 = vadd.f32 %v12291_v1, %v12389_v39  ;;  %v5688_v1 = vadd.f32 %v12310_v45, %v12389_v39  ;;  %v5696_v45 = vadd.f32 %v12334_v11, %v12389_v39 }
 0x592   :  { %v9458_v30 = vpop.f32.mrb[163].mxu1  ;;  %v5704_v11 = vadd.f32 %v12350_v54, %v12389_v39 }
 0x593   :  { %v12366_v52 = vadd.f32 %v9458_v30, %v9457_v58  ;;  %v5709_v53 = vadd.f32 %v12355_v27, %v12389_v39 }
 0x595   :  { %v5712_v54 = vadd.f32 %v12366_v52, %v12389_v39 }
 0x597   :  { %v9460_v44 = vpop.f32.mrb[164].mxu1 }
 0x598   :  { %v9461_v28 = vpop.f32.mrb[165].mxu1 }
 0x599   :  { %v12371_v57 = vadd.f32 %v9461_v28, %v9460_v44  ;;  %v9463_v8 = vpop.f32.mrb[166].mxu1 }
 0x59a   :  { %v9464_v12 = vpop.f32.mrb[167].mxu1 }
 0x59b   :  { %v12376_v24 = vadd.f32 %v9464_v12, %v9463_v8  ;;  %v5717_v27 = vadd.f32 %v12371_v57, %v12389_v39 }
 0x59d   :  { %v5720_v52 = vadd.f32 %v12376_v24, %v12389_v39 }
 0x59f   :  { %v9466_v49 = vpop.f32.mrb[168].mxu1 }
 0x5a0   :  { %v9467_v34 = vpop.f32.mrb[169].mxu1 }
 0x5a1   :  { %v12378_v51 = vadd.f32 %v9467_v34, %v9466_v49  ;;  %v9469_v0 = vpop.f32.mrb[170].mxu1 }
 0x5a2   :  { %v9470_v35 = vpop.f32.mrb[171].mxu1 }
 0x5a3   :  { %v12380_v50 = vadd.f32 %v9470_v35, %v9469_v0  ;;  %v5725_v57 = vadd.f32 %v12378_v51, %v12389_v39 }
 0x5a5   :  { %v5728_v24 = vadd.f32 %v12380_v50, %v12389_v39 }
 0x5a7   :  { %v9472_v41 = vpop.f32.mrb[172].mxu1 }
 0x5a8   :  { %v9473_v16 = vpop.f32.mrb[173].mxu1 }
 0x5a9   :  { %v12382_v29 = vadd.f32 %v9473_v16, %v9472_v41  ;;  %v9475_v17 = vpop.f32.mrb[174].mxu1 }
 0x5aa   :  { %v9476_v7 = vpop.f32.mrb[175].mxu1 }
 0x5ab   :  { %v12384_v42 = vadd.f32 %v9476_v7, %v9475_v17  ;;  %v5733_v51 = vadd.f32 %v12382_v29, %v12389_v39 }
 0x5ad   :  { %v5736_v50 = vadd.f32 %v12384_v42, %v12389_v39 }
 0x5af   :  { %v9494_v4 = vpop.f32.mrb[176].mxu1 }
 0x5b0   :  { %v9495_v32 = vpop.f32.mrb[177].mxu1 }
 0x5b1   :  { %v9496_v26 = vadd.f32 %v9495_v32, %v9494_v4  ;;  %v9497_v19 = vpop.f32.mrb[178].mxu1 }
 0x5b2   :  { %v9498_v6 = vpop.f32.mrb[179].mxu1 }
 0x5b3   :  { %v5774_v58 = vadd.f32 %v9496_v26, %v5677_v2  ;;  %v9499_v61 = vadd.f32 %v9498_v6, %v9497_v19 }
 0x5b5   :  { %v5777_v15 = vadd.f32 %v9499_v61, %v5680_v22  ;;  %v12396_v30 = vadd.f32 %v12168_v18, %v5774_v58 }
 0x5b7   :  { %v9500_v43 = vpop.f32.mrb[180].mxu1  ;;  %v12399_v62 = vadd.f32 %v12172_v5, %v5777_v15 }
 0x5b8   :  { %v9501_v44 = vpop.f32.mrb[181].mxu1 }
 0x5b9   :  { %v9502_v28 = vadd.f32 %v9501_v44, %v9500_v43  ;;  %v9503_v8 = vpop.f32.mrb[182].mxu1 }
 0x5ba   :  { %v9504_v37 = vpop.f32.mrb[183].mxu1 }
 0x5bb   :  { %v5782_v12 = vadd.f32 %v9502_v28, %v5685_v3  ;;  %v9505_v49 = vadd.f32 %v9504_v37, %v9503_v8 }
 0x5bd   :  { %v5785_v34 = vadd.f32 %v9505_v49, %v5688_v1  ;;  %v12406_v18 = vadd.f32 %v12181_v31, %v5782_v12 }
 0x5bf   :  { %v9506_v0 = vpop.f32.mrb[184].mxu1  ;;  %v12409_v5 = vadd.f32 %v12186_v55, %v5785_v34 }
 0x5c0   :  { %v9507_v35 = vpop.f32.mrb[185].mxu1 }
 0x5c1   :  { %v9508_v41 = vadd.f32 %v9507_v35, %v9506_v0  ;;  %v9509_v16 = vpop.f32.mrb[186].mxu1 }
 0x5c2   :  { %v9510_v17 = vpop.f32.mrb[187].mxu1 }
 0x5c3   :  { %v5790_v7 = vadd.f32 %v9508_v41, %v5693_v13  ;;  %v9511_v4 = vadd.f32 %v9510_v17, %v9509_v16 }
 0x5c5   :  { %v5793_v32 = vadd.f32 %v9511_v4, %v5696_v45  ;;  %v12416_v31 = vadd.f32 %v12195_v9, %v5790_v7 }
 0x5c7   :  { %v9512_v2 = vpop.f32.mrb[188].mxu1  ;;  %v12419_v55 = vadd.f32 %v12200_v56, %v5793_v32 }
 0x5c8   :  { %v9513_v26 = vpop.f32.mrb[189].mxu1 }
 0x5c9   :  { %v9514_v19 = vadd.f32 %v9513_v26, %v9512_v2  ;;  %v9515_v6 = vpop.f32.mrb[190].mxu1 }
 0x5ca   :  { %v9516_v22 = vpop.f32.mrb[191].mxu1 }
 0x5cb   :  { %v5798_v58 = vadd.f32 %v9514_v19, %v5701_v36  ;;  %v9517_v61 = vadd.f32 %v9516_v22, %v9515_v6 }
 0x5cd   :  { %v5801_v15 = vadd.f32 %v9517_v61, %v5704_v11  ;;  %v12426_v9 = vadd.f32 %v12209_v33, %v5798_v58 }
 0x5cf   :  { %v9518_v43 = vpop.f32.mrb[192].mxu1  ;;  %v12429_v56 = vadd.f32 %v12212_v63, %v5801_v15 }
 0x5d0   :  { %v9519_v44 = vpop.f32.mrb[193].mxu1 }
 0x5d1   :  { %v9520_v3 = vadd.f32 %v9519_v44, %v9518_v43  ;;  %v9521_v28 = vpop.f32.mrb[194].mxu1 }
 0x5d2   :  { %v9522_v8 = vpop.f32.mrb[195].mxu1 }
 0x5d3   :  { %v5806_v37 = vadd.f32 %v9520_v3, %v5709_v53  ;;  %v9523_v1 = vadd.f32 %v9522_v8, %v9521_v28 }
 0x5d5   :  { %v5809_v12 = vadd.f32 %v9523_v1, %v5712_v54  ;;  %v12436_v33 = vadd.f32 %v12242_v59, %v5806_v37 }
 0x5d7   :  { %v9524_v49 = vpop.f32.mrb[196].mxu1  ;;  %v12439_v63 = vadd.f32 %v12249_v10, %v5809_v12 }
 0x5d8   :  { %v9525_v34 = vpop.f32.mrb[197].mxu1 }
 0x5d9   :  { %v9526_v0 = vadd.f32 %v9525_v34, %v9524_v49  ;;  %v9527_v35 = vpop.f32.mrb[198].mxu1 }
 0x5da   :  { %v9528_v13 = vpop.f32.mrb[199].mxu1 }
 0x5db   :  { %v5814_v41 = vadd.f32 %v9526_v0, %v5717_v27  ;;  %v9529_v16 = vadd.f32 %v9528_v13, %v9527_v35 }
 0x5dd   :  { %v5817_v17 = vadd.f32 %v9529_v16, %v5720_v52  ;;  %v12446_v59 = vadd.f32 %v12263_v40, %v5814_v41 }
 0x5df   :  { %v9530_v45 = vpop.f32.mrb[200].mxu1  ;;  %v12449_v10 = vadd.f32 %v12270_v60, %v5817_v17 }
 0x5e0   :  { %v9531_v7 = vpop.f32.mrb[201].mxu1 }
 0x5e1   :  { %v9532_v4 = vadd.f32 %v9531_v7, %v9530_v45  ;;  %v9533_v32 = vpop.f32.mrb[202].mxu1 }
 0x5e2   :  { %v9534_v2 = vpop.f32.mrb[203].mxu1 }
 0x5e3   :  { %v5822_v26 = vadd.f32 %v9532_v4, %v5725_v57  ;;  %v9535_v36 = vadd.f32 %v9534_v2, %v9533_v32 }
 0x5e5   :  { %v5825_v19 = vadd.f32 %v9535_v36, %v5728_v24  ;;  %v12456_v40 = vadd.f32 %v12295_v23, %v5822_v26 }
 0x5e7   :  { %v9536_v6 = vpop.f32.mrb[204].mxu1  ;;  %v12459_v60 = vadd.f32 %v12305_v38, %v5825_v19 }
 0x5e8   :  { %v9537_v22 = vpop.f32.mrb[205].mxu1 }
 0x5e9   :  { %v9538_v11 = vadd.f32 %v9537_v22, %v9536_v6  ;;  %v9539_v58 = vpop.f32.mrb[206].mxu1 }
 0x5ea   :  { %v9540_v61 = vpop.f32.mrb[207].mxu1 }
 0x5eb   :  { %v5830_v15 = vadd.f32 %v9538_v11, %v5733_v51  ;;  %v9541_v43 = vadd.f32 %v9540_v61, %v9539_v58 }
 0x5ed   :  { %v5833_v44 = vadd.f32 %v9541_v43, %v5736_v50  ;;  %v12466_v23 = vadd.f32 %v12319_v14, %v5830_v15  ;;  %v10518_v43 = vld [vmem:[%s12888_s4 + $0x1c0] sm:$0xff]  }
 0x5ee   :  { %9670 = vmatprep.subr.bf16.mxu1 %v10518_v43 }
 0x5ef   :  { %v9622_v53 = vpop.f32.mrb[208].mxu1  ;;  %v12469_v38 = vadd.f32 %v12329_v48, %v5833_v44  ;;  %v10519_v44 = vld [vmem:[%s12888_s4 + $0x180] sm:$0xff]  }
 0x5f0   :  { %v9623_v3 = vpop.f32.mrb[209].mxu1  ;;  %9671 = vmatpush3.bf16.msra.mxu1 %v10519_v44  ;;  %v10455_v44 = vld [vmem:[%s12887_s3 + $0x3b0] ss:$8 sps:$4 sm:$0xff]  }
 0x5f1   :  { %v9624_v28 = vadd.f32 %v9623_v3, %v9622_v53  ;;  %v9625_v8 = vpop.f32.mrb[210].mxu1 }
 0x5f2   :  { %v9626_v29 = vpop.f32.mrb[211].mxu1 }
 0x5f3   :  { %v5968_v54 = vadd.f32 %v9624_v28, %v12396_v30  ;;  %v9627_v37 = vadd.f32 %v9626_v29, %v9625_v8 }
 0x5f5   :  { %v6030_v1 = vmax.f32 %v5968_v54, 0.0  ;;  %v5971_v42 = vadd.f32 %v9627_v37, %v12399_v62  ;;  %v10446_v54 = vld [vmem:[%s12887_s3 + $0x380] ss:$8 sps:$4 sm:$0xff]  }
 0x5f6   :  { %v10521_v37 = vld [vmem:[%s12888_s4 + $0x188] sm:$0xff]  }
 0x5f7   :  { %6046 = vst [vmem:[#allocation4 + $0x2] sm:$0xff] %v6030_v1  ;;  %v6031_v39 = vmax.f32 %v5971_v42, 0.0  ;;  %v9628_v12 = vpop.f32.mrb[212].mxu1 }
 0x5f8   :  { %v9629_v49 = vpop.f32.mrb[213].mxu1 }
 0x5f9   :  { %6047 = vst [vmem:[#allocation4 + $0xa] sm:$0x7] %v6031_v39  ;;  %v9630_v14 = vadd.f32 %v9629_v49, %v9628_v12  ;;  %v9631_v34 = vpop.f32.mrb[214].mxu1  ;;  %v10522_v39 = vld [vmem:[%s12888_s4 + $0x1d0] sm:$0xff]  }
 0x5fa   :  { %v9632_v27 = vpop.f32.mrb[215].mxu1 }
 0x5fb   :  { %v5976_v48 = vadd.f32 %v9630_v14, %v12406_v18  ;;  %v9633_v0 = vadd.f32 %v9632_v27, %v9631_v34 }
 0x5fd   :  { %v6032_v35 = vmax.f32 %v5976_v48, 0.0  ;;  %v5979_v13 = vadd.f32 %v9633_v0, %v12409_v5 }
 0x5ff   :  { %6048 = vst [vmem:[#allocation4 + $0x12] sm:$0xff] %v6032_v35  ;;  %v6033_v30 = vmax.f32 %v5979_v13, 0.0  ;;  %v9634_v52 = vpop.f32.mrb[216].mxu1  ;;  %v10451_v13 = vld [vmem:[%s12887_s3 + $0x394] ss:$8 sps:$4 sm:$0xff]  }
 0x600   :  { %v9635_v41 = vpop.f32.mrb[217].mxu1  ;;  %v6078_v16 = vld [vmem:[#allocation4 + $0x1] ss:$2 sm:$0x3f] }
 0x601   :  { %6049 = vst [vmem:[#allocation4 + $0x1a] sm:$0x7] %v6033_v30  ;;  %v9636_v62 = vadd.f32 %v9635_v41, %v9634_v52  ;;  %v9637_v17 = vpop.f32.mrb[218].mxu1  ;;  %6086 = vst [vmem:[#allocation5 + $0x8] sm:$0x3f] %v6078_v16 }
 0x602   :  { %v6062_v45 = vld [vmem:[#allocation4] ss:$2 sm:$0x3f]  ;;  %v9638_v7 = vpop.f32.mrb[219].mxu1 }
 0x603   :  { %6070 = vst [vmem:[#allocation5] sm:$0x3f] %v6062_v45  ;;  %v6110_v57 = vld [vmem:[#allocation4 + $0x3] ss:$2 sm:$0x3f]  ;;  %v5984_v4 = vadd.f32 %v9636_v62, %v12416_v31  ;;  %v9639_v18 = vadd.f32 %v9638_v7, %v9637_v17  ;;  %v10523_v62 = vld [vmem:[%s12888_s4 + $0x190] sm:$0xff]  }
 0x604   :  { %6118 = vst [vmem:[#allocation5 + $0x18] sm:$0x3f] %v6110_v57  ;;  %v6094_v32 = vld [vmem:[#allocation4 + $0x2] ss:$2 sm:$0x3f]  ;;  %v10524_v45 = vld [vmem:[%s12888_s4 + $0x1d8] sm:$0xff]  }
 0x605   :  { %v6126_v2 = vld [vmem:[#allocation4 + $0x4] ss:$2 sm:$0x3f]  ;;  %6102 = vst [vmem:[#allocation5 + $0x10] sm:$0x3f] %v6094_v32  ;;  %v6034_v5 = vmax.f32 %v5984_v4, 0.0  ;;  %v5987_v24 = vadd.f32 %v9639_v18, %v12419_v55 }
 0x606   :  { %6134 = vst [vmem:[#allocation5 + $0x20] sm:$0x3f] %v6126_v2  ;;  %v10449_v57 = vld [vmem:[%s12887_s3 + $0x390] ss:$8 sps:$4 sm:$0xff]   ;;  %v10454_v4 = vld [vmem:[%s12887_s3 + $0x3a4] ss:$8 sps:$4 sm:$0xff]  }
 0x607   :  { %6050 = vst [vmem:[#allocation4 + $0x22] sm:$0xff] %v6034_v5  ;;  %v6035_v26 = vmax.f32 %v5987_v24, 0.0  ;;  %v9640_v36 = vpop.f32.mrb[220].mxu1  ;;  %v10525_v2 = vld [vmem:[%s12888_s4 + $0x198] sm:$0xff]   ;;  %v10526_v24 = vld [vmem:[%s12888_s4 + $0x1e0] sm:$0xff]  }
 0x608   :  { %v9641_v19 = vpop.f32.mrb[221].mxu1  ;;  %v6079_v6 = vld [vmem:[#allocation4 + $0x11] ss:$2 sm:$0x3f]  ;;  %v6143_v29 = vld [vmem:[#allocation5 + $0x8] sm:$0xff] }
 0x609   :  { %6051 = vst [vmem:[#allocation4 + $0x2a] sm:$0x7] %v6035_v26  ;;  %v9642_v22 = vadd.f32 %v9641_v19, %v9640_v36  ;;  %v9643_v51 = vpop.f32.mrb[222].mxu1  ;;  %6087 = vst [vmem:[#allocation5 + $0x30] sm:$0x3f] %v6079_v6 }
 0x60a   :  { %v6063_v11 = vld [vmem:[#allocation4 + $0x10] ss:$2 sm:$0x3f]  ;;  %v9644_v31 = vpop.f32.mrb[223].mxu1  ;;  %v6142_v34 = vld [vmem:[#allocation5] sm:$0xff] }
 0x60b   :  { %6071 = vst [vmem:[#allocation5 + $0x28] sm:$0x3f] %v6063_v11  ;;  %v6111_v58 = vld [vmem:[#allocation4 + $0x13] ss:$2 sm:$0x3f]  ;;  %v5992_v61 = vadd.f32 %v9642_v22, %v12426_v9  ;;  %v9645_v50 = vadd.f32 %v9644_v31, %v9643_v51  ;;  %v10520_v9 = vld [vmem:[%s12888_s4 + $0x1c8] sm:$0xff]  }
 0x60c   :  { %6119 = vst [vmem:[#allocation5 + $0x40] sm:$0x3f] %v6111_v58  ;;  %v6095_v15 = vld [vmem:[#allocation4 + $0x12] ss:$2 sm:$0x3f]  ;;  %9672 = vmatprep.subr.bf16.mxu1 %v10520_v9 }
 0x60d   :  { %6103 = vst [vmem:[#allocation5 + $0x38] sm:$0x3f] %v6095_v15  ;;  %v6127_v55 = vld [vmem:[#allocation4 + $0x14] ss:$2 sm:$0x3f]  ;;  %v6036_v53 = vmax.f32 %v5992_v61, 0.0  ;;  %v5995_v3 = vadd.f32 %v9645_v50, %v12429_v56  ;;  %9673 = vmatpush3.bf16.msra.mxu1 %v10521_v37 }
 0x60e   :  { %6135 = vst [vmem:[#allocation5 + $0x48] sm:$0x3f] %v6127_v55  ;;  %9674 = vmatprep.subr.bf16.mxu1 %v10522_v39  ;;  %v10452_v19 = vld [vmem:[%s12887_s3 + $0x3a0] ss:$8 sps:$4 sm:$0xff]   ;;  %v10457_v51 = vld [vmem:[%s12887_s3 + $0x3b4] ss:$8 sps:$4 sm:$0xff]  }
 0x60f   :  { %6052 = vst [vmem:[#allocation4 + $0x32] sm:$0xff] %v6036_v53  ;;  %v6037_v28 = vmax.f32 %v5995_v3, 0.0  ;;  %v9646_v8 = vpop.f32.mrb[224].mxu1  ;;  %v10527_v50 = vld [vmem:[%s12888_s4 + $0x1a0] sm:$0xff]  }
 0x610   :  { %v9647_v56 = vpop.f32.mrb[225].mxu1  ;;  %v6148_v1 = vld [vmem:[#allocation5 + $0x30] sm:$0xff]  ;;  %v6080_v42 = vld [vmem:[#allocation4 + $0x21] ss:$2 sm:$0x3f] }
 0x611   :  { %6053 = vst [vmem:[#allocation4 + $0x3a] sm:$0x7] %v6037_v28  ;;  %v9648_v12 = vadd.f32 %v9647_v56, %v9646_v8  ;;  %v9649_v49 = vpop.f32.mrb[226].mxu1  ;;  %v6183_v14 = vpack.c.bf16 %v6148_v1, %v6143_v29  ;;  %6088 = vst [vmem:[#allocation5 + $0x58] sm:$0x3f] %v6080_v42  ;;  %9675 = vmatpush3.bf16.msra.mxu1 %v10523_v62 }
 0x612   :  { %v6147_v27 = vld [vmem:[#allocation5 + $0x28] sm:$0xff]  ;;  %v9650_v0 = vpop.f32.mrb[227].mxu1  ;;  %9676 = vmatprep.subr.bf16.mxu1 %v10524_v45 }
 0x613   :  { %v6064_v48 = vld [vmem:[#allocation4 + $0x20] ss:$2 sm:$0x3f]  ;;  %v6182_v35 = vpack.c.bf16 %v6147_v27, %v6142_v34  ;;  %v6112_v30 = vld [vmem:[#allocation4 + $0x23] ss:$2 sm:$0x3f]  ;;  %v6000_v52 = vadd.f32 %v9648_v12, %v12436_v33  ;;  %v9651_v41 = vadd.f32 %v9650_v0, %v9649_v49  ;;  %6728 = vmatprep.mubr.bf16.mxu0 %v6183_v14 }
 0x614   :  { %6072 = vst [vmem:[#allocation5 + $0x50] sm:$0x3f] %v6064_v48  ;;  %6120 = vst [vmem:[#allocation5 + $0x68] sm:$0x3f] %v6112_v30  ;;  %v10458_v9 = vld [vmem:[%s12887_s3 + $0x3c0] ss:$8 sps:$4 sm:$0xff]  }
 0x615   :  { %v6096_v16 = vld [vmem:[#allocation4 + $0x22] ss:$2 sm:$0x3f]  ;;  %6729 = vmatmul.mubr.bf16.vlgmr.msra.gmra.mrb[176].mxu0 %v6182_v35  ;;  %v6038_v7 = vmax.f32 %v6000_v52, 0.0  ;;  %v6003_v33 = vadd.f32 %v9651_v41, %v12439_v63  ;;  %9677 = vmatpush3.bf16.msra.mxu1 %v10525_v2  ;;  %v10463_v14 = vld [vmem:[%s12887_s3 + $0x3d4] ss:$8 sps:$4 sm:$0xff]  }
 0x616   :  { %6104 = vst [vmem:[#allocation5 + $0x60] sm:$0x3f] %v6096_v16  ;;  %v6128_v17 = vld [vmem:[#allocation4 + $0x24] ss:$2 sm:$0x3f]  ;;  %6770 = vmatpush1.bf16.msra.mxu0 %v10446_v54  ;;  %9678 = vmatprep.subr.bf16.mxu1 %v10526_v24 }
 0x617   :  { %6136 = vst [vmem:[#allocation5 + $0x70] sm:$0x3f] %v6128_v17  ;;  %6771 = vmatprep.subr.bf16.mxu0 %v10451_v13  ;;  %6054 = vst [vmem:[#allocation4 + $0x42] sm:$0xff] %v6038_v7  ;;  %v6039_v18 = vmax.f32 %v6003_v33, 0.0  ;;  %v9652_v32 = vpop.f32.mrb[228].mxu1 }
 0x618   :  { %v9653_v63 = vpop.f32.mrb[229].mxu1  ;;  %v6081_v5 = vld [vmem:[#allocation4 + $0x31] ss:$2 sm:$0x3f]  ;;  %v10464_v7 = vld [vmem:[%s12887_s3 + $0x3e0] ss:$8 sps:$4 sm:$0xff]  }
 0x619   :  { %6055 = vst [vmem:[#allocation4 + $0x4a] sm:$0x7] %v6039_v18  ;;  %v9654_v26 = vadd.f32 %v9653_v63, %v9652_v32  ;;  %v9655_v36 = vpop.f32.mrb[230].mxu1  ;;  %6089 = vst [vmem:[#allocation5 + $0x80] sm:$0x3f] %v6081_v5  ;;  %9679 = vmatpush3.bf16.msra.mxu1 %v10527_v50  ;;  %v6153_v28 = vld [vmem:[#allocation5 + $0x58] sm:$0xff] }
 0x61a   :  { %6772 = vmatpush1.bf16.msra.mxu0 %v10449_v57  ;;  %v6065_v6 = vld [vmem:[#allocation4 + $0x30] ss:$2 sm:$0x3f]  ;;  %v9656_v22 = vpop.f32.mrb[231].mxu1 }
 0x61b   :  { %6773 = vmatprep.subr.bf16.mxu0 %v10454_v4  ;;  %6073 = vst [vmem:[#allocation5 + $0x78] sm:$0x3f] %v6065_v6  ;;  %v6113_v11 = vld [vmem:[#allocation4 + $0x33] ss:$2 sm:$0x3f]  ;;  %v6008_v31 = vadd.f32 %v9654_v26, %v12446_v59  ;;  %v9657_v58 = vadd.f32 %v9656_v22, %v9655_v36 }
 0x61c   :  { %6121 = vst [vmem:[#allocation5 + $0x90] sm:$0x3f] %v6113_v11  ;;  %v6097_v61 = vld [vmem:[#allocation4 + $0x32] ss:$2 sm:$0x3f] }
 0x61d   :  { %6105 = vst [vmem:[#allocation5 + $0x88] sm:$0x3f] %v6097_v61  ;;  %v6129_v15 = vld [vmem:[#allocation4 + $0x34] ss:$2 sm:$0x3f]  ;;  %v6040_v55 = vmax.f32 %v6008_v31, 0.0  ;;  %v6011_v43 = vadd.f32 %v9657_v58, %v12449_v10 }
 0x61e   :  { %6774 = vmatpush1.bf16.msra.mxu0 %v10452_v19  ;;  %6137 = vst [vmem:[#allocation5 + $0x98] sm:$0x3f] %v6129_v15  ;;  %v10460_v59 = vld [vmem:[%s12887_s3 + $0x3c4] ss:$8 sps:$4 sm:$0xff]   ;;  %v6152_v1 = vld [vmem:[#allocation5 + $0x50] sm:$0xff] }
 0x61f   :  { %6775 = vmatprep.subr.bf16.mxu0 %v10457_v51  ;;  %6056 = vst [vmem:[#allocation4 + $0x52] sm:$0xff] %v6040_v55  ;;  %v6041_v53 = vmax.f32 %v6011_v43, 0.0  ;;  %v9658_v3 = vpop.f32.mrb[232].mxu1  ;;  %v10461_v52 = vld [vmem:[%s12887_s3 + $0x3d0] ss:$8 sps:$4 sm:$0xff]  }
 0x620   :  { %v9659_v10 = vpop.f32.mrb[233].mxu1  ;;  %v6158_v8 = vld [vmem:[#allocation5 + $0x80] sm:$0xff]  ;;  %v10469_v4 = vld [vmem:[%s12887_s3 + $0x3f4] ss:$8 sps:$4 sm:$0xff]   ;;  %v10467_v36 = vld [vmem:[%s12887_s3 + $0x3f0] ss:$8 sps:$4 sm:$0xff]  }
 0x621   :  { %v6082_v29 = vld [vmem:[#allocation4 + $0x41] ss:$2 sm:$0x3f]  ;;  %6057 = vst [vmem:[#allocation4 + $0x5a] sm:$0x7] %v6041_v53  ;;  %v9660_v54 = vadd.f32 %v9659_v10, %v9658_v3  ;;  %v9661_v37 = vpop.f32.mrb[234].mxu1  ;;  %v6188_v56 = vpack.c.bf16 %v6158_v8, %v6153_v28 }
 0x622   :  { %6776 = vmatpush1.bf16.msra.mxu0 %v10455_v44  ;;  %v6157_v42 = vld [vmem:[#allocation5 + $0x78] sm:$0xff]  ;;  %6090 = vst [vmem:[#allocation5 + $0xa8] sm:$0x3f] %v6082_v29  ;;  %v6066_v39 = vld [vmem:[#allocation4 + $0x40] ss:$2 sm:$0x3f] }
 0x623   :  { %v9662_v12 = vpop.f32.mrb[235].mxu1  ;;  %6777 = vmatprep.subr.bf16.mxu0 %v10460_v59  ;;  %v6187_v49 = vpack.c.bf16 %v6157_v42, %v6152_v1  ;;  %6074 = vst [vmem:[#allocation5 + $0xa0] sm:$0x3f] %v6066_v39  ;;  %v6114_v34 = vld [vmem:[#allocation4 + $0x43] ss:$2 sm:$0x3f]  ;;  %v6016_v27 = vadd.f32 %v9660_v54, %v12456_v40  ;;  %6738 = vmatprep.mubr.bf16.mxu0 %v6188_v56 }
 0x624   :  { %v9663_v48 = vadd.f32 %v9662_v12, %v9661_v37  ;;  %6122 = vst [vmem:[#allocation5 + $0xb8] sm:$0x3f] %v6114_v34  ;;  %v6098_v0 = vld [vmem:[#allocation4 + $0x42] ss:$2 sm:$0x3f] }
 0x625   :  { %6739 = vmatmul.mubr.bf16.gmra.mrb[180].mxu0 %v6187_v49  ;;  %6106 = vst [vmem:[#allocation5 + $0xb0] sm:$0x3f] %v6098_v0  ;;  %v6130_v35 = vld [vmem:[#allocation4 + $0x44] ss:$2 sm:$0x3f]  ;;  %v6042_v13 = vmax.f32 %v6016_v27, 0.0 }
 0x626   :  { %v6019_v30 = vadd.f32 %v9663_v48, %v12459_v60  ;;  %6778 = vmatpush1.bf16.msra.mxu0 %v10458_v9  ;;  %6138 = vst [vmem:[#allocation5 + $0xc0] sm:$0x3f] %v6130_v35  ;;  %v10466_v40 = vld [vmem:[%s12887_s3 + $0x3e4] ss:$8 sps:$4 sm:$0xff]   ;;  %v10470_v6 = vld [vmem:[%s12887_s3 + $0x400] ss:$8 sps:$4 sm:$0xff]  }
 0x627   :  { %6779 = vmatprep.subr.bf16.mxu0 %v10463_v14  ;;  %6058 = vst [vmem:[#allocation4 + $0x62] sm:$0xff] %v6042_v13  ;;  %v9664_v16 = vpop.f32.mrb[236].mxu1  ;;  %v10472_v19 = vld [vmem:[%s12887_s3 + $0x404] ss:$8 sps:$4 sm:$0xff]   ;;  %v10475_v15 = vld [vmem:[%s12887_s3 + $0x414] ss:$8 sps:$4 sm:$0xff]  }
 0x628   :  { %v6043_v41 = vmax.f32 %v6019_v30, 0.0  ;;  %v9665_v62 = vpop.f32.mrb[237].mxu1  ;;  %v6083_v17 = vld [vmem:[#allocation4 + $0x51] ss:$2 sm:$0x3f]  ;;  %v6150_v39 = vld [vmem:[#allocation5 + $0x40] sm:$0xff] }
 0x629   :  { %v9666_v45 = vadd.f32 %v9665_v62, %v9664_v16  ;;  %v9667_v60 = vpop.f32.mrb[238].mxu1  ;;  %6091 = vst [vmem:[#allocation5 + $0xd0] sm:$0x3f] %v6083_v17  ;;  %v6067_v33 = vld [vmem:[#allocation4 + $0x50] ss:$2 sm:$0x3f] }
 0x62a   :  { %6059 = vst [vmem:[#allocation4 + $0x6a] sm:$0x7] %v6043_v41  ;;  %6780 = vmatpush1.bf16.msra.mxu0 %v10461_v52  ;;  %v9668_v57 = vpop.f32.mrb[239].mxu1  ;;  %6075 = vst [vmem:[#allocation5 + $0xc8] sm:$0x3f] %v6067_v33  ;;  %v6163_v22 = vld [vmem:[#allocation5 + $0xa8] sm:$0xff] }
 0x62b   :  { %6781 = vmatprep.subr.bf16.mxu0 %v10466_v40  ;;  %v6115_v18 = vld [vmem:[#allocation4 + $0x53] ss:$2 sm:$0x3f]  ;;  %v6024_v32 = vadd.f32 %v9666_v45, %v12466_v23  ;;  %v9669_v2 = vadd.f32 %v9668_v57, %v9667_v60  ;;  %v6099_v63 = vld [vmem:[#allocation4 + $0x52] ss:$2 sm:$0x3f] }
 0x62c   :  { %6123 = vst [vmem:[#allocation5 + $0xe0] sm:$0x3f] %v6115_v18  ;;  %6107 = vst [vmem:[#allocation5 + $0xd8] sm:$0x3f] %v6099_v63  ;;  %v6162_v31 = vld [vmem:[#allocation5 + $0xa0] sm:$0xff]  ;;  %v6145_v48 = vld [vmem:[#allocation5 + $0x18] sm:$0xff] }
 0x62d   :  { %v6131_v5 = vld [vmem:[#allocation4 + $0x54] ss:$2 sm:$0x3f]  ;;  %v6044_v24 = vmax.f32 %v6024_v32, 0.0  ;;  %v6027_v26 = vadd.f32 %v9669_v2, %v12469_v38  ;;  %v10478_v53 = vld [vmem:[%s12887_s3 + $0x424] ss:$8 sps:$4 sm:$0xff]   ;;  %v6185_v35 = vpack.c.bf16 %v6150_v39, %v6145_v48 }
 0x62e   :  { %6782 = vmatpush1.bf16.msra.mxu0 %v10464_v7  ;;  %6139 = vst [vmem:[#allocation5 + $0xe8] sm:$0x3f] %v6131_v5  ;;  %v10473_v59 = vld [vmem:[%s12887_s3 + $0x410] ss:$8 sps:$4 sm:$0xff]   ;;  %v10476_v9 = vld [vmem:[%s12887_s3 + $0x420] ss:$8 sps:$4 sm:$0xff]  }
 0x62f   :  { %6783 = vmatprep.subr.bf16.mxu0 %v10469_v4  ;;  %6060 = vst [vmem:[#allocation4 + $0x72] sm:$0xff] %v6044_v24  ;;  %v6045_v23 = vmax.f32 %v6027_v26, 0.0  ;;  %v10481_v28 = vld [vmem:[%s12887_s3 + $0x434] ss:$8 sps:$4 sm:$0xff]   ;;  %v10479_v37 = vld [vmem:[%s12887_s3 + $0x430] ss:$8 sps:$4 sm:$0xff]  }
 0x630   :  { %v6168_v51 = vld [vmem:[#allocation5 + $0xd0] sm:$0xff]  ;;  %v10484_v56 = vld [vmem:[%s12887_s3 + $0x444] ss:$8 sps:$4 sm:$0xff]   ;;  %v10482_v49 = vld [vmem:[%s12887_s3 + $0x440] ss:$8 sps:$4 sm:$0xff]  }
 0x631   :  { %v6084_v38 = vld [vmem:[#allocation4 + $0x61] ss:$2 sm:$0x3f]  ;;  %6061 = vst [vmem:[#allocation4 + $0x7a] sm:$0x7] %v6045_v23  ;;  %v6193_v11 = vpack.c.bf16 %v6168_v51, %v6163_v22  ;;  %v6149_v62 = vld [vmem:[#allocation5 + $0x38] sm:$0xff] }
 0x632   :  { %6784 = vmatpush1.bf16.msra.mxu0 %v10467_v36  ;;  %v6167_v58 = vld [vmem:[#allocation5 + $0xc8] sm:$0xff]  ;;  %6092 = vst [vmem:[#allocation5 + $0xf8] sm:$0x3f] %v6084_v38  ;;  %v10487_v0 = vld [vmem:[%s12887_s3 + $0x454] ss:$8 sps:$4 sm:$0xff]   ;;  %v6154_v5 = vld [vmem:[#allocation5 + $0x60] sm:$0xff] }
 0x633   :  { %v6068_v61 = vld [vmem:[#allocation4 + $0x60] ss:$2 sm:$0x3f]  ;;  %6785 = vmatprep.subr.bf16.mxu0 %v10472_v19  ;;  %v6192_v50 = vpack.c.bf16 %v6167_v58, %v6162_v31  ;;  %v6116_v55 = vld [vmem:[#allocation4 + $0x63] ss:$2 sm:$0x3f]  ;;  %6748 = vmatprep.mubr.bf16.mxu0 %v6193_v11 }
 0x634   :  { %6076 = vst [vmem:[#allocation5 + $0xf0] sm:$0x3f] %v6068_v61  ;;  %6124 = vst [vmem:[#allocation5 + $0x108] sm:$0x3f] %v6116_v55  ;;  %v10485_v13 = vld [vmem:[%s12887_s3 + $0x450] ss:$8 sps:$4 sm:$0xff]  }
 0x635   :  { %v6100_v43 = vld [vmem:[#allocation4 + $0x62] ss:$2 sm:$0x3f]  ;;  %6749 = vmatmul.mubr.bf16.gmra.mrb[184].mxu0 %v6192_v50  ;;  %v10493_v40 = vld [vmem:[%s12887_s3 + $0x474] ss:$8 sps:$4 sm:$0xff]  }
 0x636   :  { %6108 = vst [vmem:[#allocation5 + $0x100] sm:$0x3f] %v6100_v43  ;;  %v6132_v44 = vld [vmem:[#allocation4 + $0x64] ss:$2 sm:$0x3f]  ;;  %6786 = vmatpush1.bf16.msra.mxu0 %v10470_v6  ;;  %v6160_v17 = vld [vmem:[#allocation5 + $0x90] sm:$0xff] }
 0x637   :  { %6140 = vst [vmem:[#allocation5 + $0x110] sm:$0x3f] %v6132_v44  ;;  %6787 = vmatprep.subr.bf16.mxu0 %v10475_v15  ;;  %v10490_v30 = vld [vmem:[%s12887_s3 + $0x464] ss:$8 sps:$4 sm:$0xff]   ;;  %v10488_v52 = vld [vmem:[%s12887_s3 + $0x460] ss:$8 sps:$4 sm:$0xff]  }
 0x638   :  { %v6085_v3 = vld [vmem:[#allocation4 + $0x71] ss:$2 sm:$0x3f]  ;;  %v6069_v10 = vld [vmem:[#allocation4 + $0x70] ss:$2 sm:$0x3f] }
 0x639   :  { %6093 = vst [vmem:[#allocation5 + $0x120] sm:$0x3f] %v6085_v3  ;;  %6077 = vst [vmem:[#allocation5 + $0x118] sm:$0x3f] %v6069_v10  ;;  %v6173_v1 = vld [vmem:[#allocation5 + $0xf8] sm:$0xff]  ;;  %v6144_v45 = vld [vmem:[#allocation5 + $0x10] sm:$0xff] }
 0x63a   :  { %6788 = vmatpush1.bf16.msra.mxu0 %v10473_v59  ;;  %v6117_v8 = vld [vmem:[#allocation4 + $0x73] ss:$2 sm:$0x3f]  ;;  %v6101_v29 = vld [vmem:[#allocation4 + $0x72] ss:$2 sm:$0x3f]  ;;  %v6184_v7 = vpack.c.bf16 %v6149_v62, %v6144_v45 }
 0x63b   :  { %6789 = vmatprep.subr.bf16.mxu0 %v10478_v53  ;;  %6125 = vst [vmem:[#allocation5 + $0x130] sm:$0x3f] %v6117_v8  ;;  %6109 = vst [vmem:[#allocation5 + $0x128] sm:$0x3f] %v6101_v29  ;;  %v6172_v14 = vld [vmem:[#allocation5 + $0xf0] sm:$0xff]  ;;  %v6155_v33 = vld [vmem:[#allocation5 + $0x68] sm:$0xff] }
 0x63c   :  { %v6133_v54 = vld [vmem:[#allocation4 + $0x74] ss:$2 sm:$0x3f]  ;;  %v10496_v16 = vld [vmem:[%s12887_s3 + $0x484] ss:$8 sps:$4 sm:$0xff]   ;;  %v6190_v4 = vpack.c.bf16 %v6160_v17, %v6155_v33 }
 0x63d   :  { %6141 = vst [vmem:[#allocation5 + $0x138] sm:$0x3f] %v6133_v54  ;;  %v10491_v41 = vld [vmem:[%s12887_s3 + $0x470] ss:$8 sps:$4 sm:$0xff]   ;;  %v10494_v60 = vld [vmem:[%s12887_s3 + $0x480] ss:$8 sps:$4 sm:$0xff]  }
 0x63e   :  { %6790 = vmatpush1.bf16.msra.mxu0 %v10476_v9  ;;  %v10499_v57 = vld [vmem:[%s12887_s3 + $0x494] ss:$8 sps:$4 sm:$0xff]   ;;  %v10497_v18 = vld [vmem:[%s12887_s3 + $0x490] ss:$8 sps:$4 sm:$0xff]   ;;  %v10502_v32 = vld [vmem:[%s12887_s3 + $0x4a4] ss:$8 sps:$4 sm:$0xff]  }
 0x63f   :  { %6791 = vmatprep.subr.bf16.mxu0 %v10481_v28  ;;  %v6159_v2 = vld [vmem:[#allocation5 + $0x88] sm:$0xff]  ;;  %v6170_v63 = vld [vmem:[#allocation5 + $0xe0] sm:$0xff]  ;;  %v6165_v36 = vld [vmem:[#allocation5 + $0xb8] sm:$0xff] }
 0x640   :  { %v6178_v42 = vld [vmem:[#allocation5 + $0x120] sm:$0xff]  ;;  %v6177_v34 = vld [vmem:[#allocation5 + $0x118] sm:$0xff]  ;;  %v6189_v26 = vpack.c.bf16 %v6159_v2, %v6154_v5  ;;  %v6195_v23 = vpack.c.bf16 %v6170_v63, %v6165_v36  ;;  %v6164_v11 = vld [vmem:[#allocation5 + $0xb0] sm:$0xff] }
 0x641   :  { %v6198_v12 = vpack.c.bf16 %v6178_v42, %v6173_v1  ;;  %v6197_v27 = vpack.c.bf16 %v6177_v34, %v6172_v14  ;;  %v10500_v24 = vld [vmem:[%s12887_s3 + $0x4a0] ss:$8 sps:$4 sm:$0xff]   ;;  %v10505_v19 = vld [vmem:[%s12887_s3 + $0x4b4] ss:$8 sps:$4 sm:$0xff]   ;;  %v10503_v6 = vld [vmem:[%s12887_s3 + $0x4b0] ss:$8 sps:$4 sm:$0xff]  }
 0x642   :  { %6792 = vmatpush1.bf16.msra.mxu0 %v10479_v37  ;;  %v10508_v22 = vld [vmem:[%s12887_s3 + $0x4c4] ss:$8 sps:$4 sm:$0xff]   ;;  %v6169_v51 = vld [vmem:[#allocation5 + $0xd8] sm:$0xff]  ;;  %v6180_v38 = vld [vmem:[#allocation5 + $0x130] sm:$0xff] }
 0x643   :  { %6793 = vmatprep.subr.bf16.mxu0 %v10484_v56  ;;  %6758 = vmatprep.mubr.bf16.mxu0 %v6198_v12  ;;  %v10506_v31 = vld [vmem:[%s12887_s3 + $0x4c0] ss:$8 sps:$4 sm:$0xff]   ;;  %v6194_v58 = vpack.c.bf16 %v6169_v51, %v6164_v11  ;;  %v10511_v50 = vld [vmem:[%s12887_s3 + $0x4d4] ss:$8 sps:$4 sm:$0xff]   ;;  %v10509_v55 = vld [vmem:[%s12887_s3 + $0x4d0] ss:$8 sps:$4 sm:$0xff]  }
 0x644   :  { %6759 = vmatmul.mubr.bf16.gmra.mrb[188].mxu0 %v6197_v27  ;;  %v6175_v61 = vld [vmem:[#allocation5 + $0x108] sm:$0xff]  ;;  %v6174_v59 = vld [vmem:[#allocation5 + $0x100] sm:$0xff]  ;;  %v10517_v9 = vld [vmem:[%s12887_s3 + $0x4f4] ss:$8 sps:$4 sm:$0xff]  }
 0x645   :  { %6801 = vmatprep.mubr.bf16.mxu0 %v6185_v35  ;;  %v6200_v15 = vpack.c.bf16 %v6180_v38, %v6175_v61  ;;  %v10514_v43 = vld [vmem:[%s12887_s3 + $0x4e4] ss:$8 sps:$4 sm:$0xff]   ;;  %v10512_v53 = vld [vmem:[%s12887_s3 + $0x4e0] ss:$8 sps:$4 sm:$0xff]   ;;  %v10515_v10 = vld [vmem:[%s12887_s3 + $0x4f0] ss:$8 sps:$4 sm:$0xff]  }
 0x646   :  { %6794 = vmatpush1.bf16.msra.mxu0 %v10482_v49  ;;  %v6179_v44 = vld [vmem:[#allocation5 + $0x128] sm:$0xff]  ;;  %v6146_v8 = vld [vmem:[#allocation5 + $0x20] sm:$0xff]  ;;  %v6161_v54 = vld [vmem:[#allocation5 + $0x98] sm:$0xff] }
 0x647   :  { %6795 = vmatprep.subr.bf16.mxu0 %v10487_v0  ;;  %v6199_v3 = vpack.c.bf16 %v6179_v44, %v6174_v59  ;;  %v6151_v28 = vld [vmem:[#allocation5 + $0x48] sm:$0xff]  ;;  %v6156_v37 = vld [vmem:[#allocation5 + $0x70] sm:$0xff]  ;;  %v6166_v42 = vld [vmem:[#allocation5 + $0xc0] sm:$0xff] }
 0x648   :  { %v6186_v29 = vpack.c.bf16 %v6151_v28, %v6146_v8  ;;  %v6191_v56 = vpack.c.bf16 %v6161_v54, %v6156_v37  ;;  %v6171_v1 = vld [vmem:[#allocation5 + $0xe8] sm:$0xff]  ;;  %v6181_v12 = vld [vmem:[#allocation5 + $0x138] sm:$0xff]  ;;  %v6176_v49 = vld [vmem:[#allocation5 + $0x110] sm:$0xff] }
 0x649   :  { %v6196_v39 = vpack.c.bf16 %v6171_v1, %v6166_v42  ;;  %v6201_v14 = vpack.c.bf16 %v6181_v12, %v6176_v49  ;;  %v10528_v34 = vld [vmem:[%s12888_s4 + $0x1e8] sm:$0xff]   ;;  %v10530_v48 = vld [vmem:[%s12888_s4 + $0x1f0] sm:$0xff]   ;;  %v10532_v0 = vld [vmem:[%s12888_s4 + $0x1f8] sm:$0xff]  }
 0x64a   :  { %6796 = vmatpush1.bf16.msra.mxu0 %v10485_v13  ;;  %v10529_v27 = vld [vmem:[%s12888_s4 + $0x1a8] sm:$0xff]   ;;  %9680 = vmatprep.subr.bf16.mxu1 %v10528_v34  ;;  %v10533_v35 = vld [vmem:[%s12888_s4 + $0x1b8] sm:$0xff]   ;;  %v10534_v13 = vld [vmem:[%s12888_s4 + $0x240] sm:$0xff]  }
 0x64b   :  { %6797 = vmatprep.subr.bf16.mxu0 %v10490_v30  ;;  %9681 = vmatpush3.bf16.msra.mxu1 %v10529_v27  ;;  %v8730_v30 = vld [vmem:[%s12886_s5 + $0xa] ss:$4 sm:$0x3] }
 0x64c   :  { %9682 = vmatprep.subr.bf16.mxu1 %v10530_v48 }
 0x64e   :  { %6798 = vmatpush1.bf16.msra.mxu0 %v10488_v52  ;;  %v12688_v52 = vrot.slane %v8730_v30, %v2471_v47 }
 0x64f   :  { %6799 = vmatprep.subr.bf16.mxu0 %v10493_v40  ;;  %v12692_v40 = vrot.slane %v8730_v30, %v2475_v21 }
 0x652   :  { %6800 = vmatpush1.bf16.msra.mxu0 %v10491_v41 }
 0x653   :  { %6842 = vmatprep.subr.bf16.mxu0 %v10496_v16 }
 0x655   :  { %6802 = vmatmul.mubr.bf16.vlgmr.msra.gmra.mrb[176].mxu0 %v6184_v7 }
 0x656   :  { %6811 = vmatprep.mubr.bf16.mxu0 %v6190_v4  ;;  %6843 = vmatpush1.bf16.msra.mxu0 %v10494_v60 }
 0x657   :  { %6844 = vmatprep.subr.bf16.mxu0 %v10499_v57 }
 0x65a   :  { %6845 = vmatpush1.bf16.msra.mxu0 %v10497_v18 }
 0x65b   :  { %6846 = vmatprep.subr.bf16.mxu0 %v10502_v32 }
 0x65d   :  { %6812 = vmatmul.mubr.bf16.gmra.mrb[180].mxu0 %v6189_v26 }
 0x65e   :  { %6821 = vmatprep.mubr.bf16.mxu0 %v6195_v23  ;;  %6847 = vmatpush1.bf16.msra.mxu0 %v10500_v24 }
 0x65f   :  { %6848 = vmatprep.subr.bf16.mxu0 %v10505_v19 }
 0x662   :  { %6849 = vmatpush1.bf16.msra.mxu0 %v10503_v6 }
 0x663   :  { %6850 = vmatprep.subr.bf16.mxu0 %v10508_v22 }
 0x665   :  { %6822 = vmatmul.mubr.bf16.gmra.mrb[184].mxu0 %v6194_v58 }
 0x666   :  { %6831 = vmatprep.mubr.bf16.mxu0 %v6200_v15  ;;  %6851 = vmatpush1.bf16.msra.mxu0 %v10506_v31 }
 0x667   :  { %6852 = vmatprep.subr.bf16.mxu0 %v10511_v50 }
 0x66a   :  { %6853 = vmatpush1.bf16.msra.mxu0 %v10509_v55 }
 0x66b   :  { %6854 = vmatprep.subr.bf16.mxu0 %v10514_v43 }
 0x66d   :  { %6832 = vmatmul.mubr.bf16.gmra.mrb[188].mxu0 %v6199_v3 }
 0x66e   :  { %6855 = vmatpush1.bf16.msra.mxu0 %v10512_v53  ;;  %6874 = vmatprep.mubr.bf16.mxu0 %v10596_v25 }
 0x66f   :  { %6856 = vmatprep.subr.bf16.mxu0 %v10517_v9 }
 0x672   :  { %6857 = vmatpush1.bf16.msra.mxu0 %v10515_v10 }
 0x675   :  { %6875 = vmatmul.mubr.bf16.vlgmr.msra.gmra.mrb[176].mxu0 %v6186_v29 }
 0x676   :  { %6884 = vmatprep.mubr.bf16.mxu0 %v10596_v25 }
 0x67d   :  { %6885 = vmatmul.mubr.bf16.gmra.mrb[180].mxu0 %v6191_v56 }
 0x67e   :  { %6894 = vmatprep.mubr.bf16.mxu0 %v10596_v25 }
 0x685   :  { %6895 = vmatmul.mubr.bf16.gmra.mrb[184].mxu0 %v6196_v39 }
 0x686   :  { %6904 = vmatprep.mubr.bf16.mxu0 %v10596_v25  ;;  %v10531_v25 = vld [vmem:[%s12888_s4 + $0x1b0] sm:$0xff]  }
 0x687   :  { %9683 = vmatpush3.bf16.msra.mxu1 %v10531_v25 }
 0x688   :  { %9684 = vmatprep.subr.bf16.mxu1 %v10532_v0 }
 0x68b   :  { %9685 = vmatpush3.bf16.msra.mxu1 %v10533_v35 }
 0x68c   :  { %9710 = vmatprep.subr.bf16.mxu1 %v10534_v13 }
 0x68d   :  { %6905 = vmatmul.mubr.bf16.gmra.mrb[188].mxu0 %v6201_v14 }
 0x748   :  { %v6876_v41 = vpop.f32.mrb[176].mxu0 }
 0x749   :  { %v9956_v16 = vadd.f32 %v6876_v41, %v12688_v52  ;;  %v6878_v62 = vpop.f32.mrb[177].mxu0 }
 0x74a   :  { %v9957_v17 = vadd.f32 %v6878_v62, %v12692_v40  ;;  %v6880_v45 = vpop.f32.mrb[178].mxu0 }
 0x74b   :  { %v6915_v60 = vmax.f32 %v9956_v16, 0.0  ;;  %v9958_v7 = vadd.f32 %v6880_v45, %v12688_v52  ;;  %v6882_v33 = vpop.f32.mrb[179].mxu0 }
 0x74c   :  { %v6916_v57 = vmax.f32 %v9957_v17, 0.0  ;;  %v9959_v4 = vadd.f32 %v6882_v33, %v12692_v40 }
 0x74d   :  { %v6947_v47 = vrot.slane %v6915_v60, 7  ;;  %v6917_v18 = vmax.f32 %v9958_v7, 0.0 }
 0x74e   :  { %v6948_v32 = vrot.slane %v6916_v57, 7  ;;  %v6918_v46 = vmax.f32 %v9959_v4, 0.0 }
 0x74f   :  { %6979 = vst [vmem:[#allocation6] sm:$0x7e] %v6947_v47  ;;  %v6949_v21 = vrot.slane %v6917_v18, 7 }
 0x750   :  { %6980 = vst [vmem:[#allocation6 + $0x8] sm:$0x7e] %v6948_v32  ;;  %v6950_v2 = vrot.slane %v6918_v46, 7  ;;  %v6886_v63 = vpop.f32.mrb[180].mxu0 }
 0x751   :  { %6981 = vst [vmem:[#allocation6 + $0x10] sm:$0x7e] %v6949_v21  ;;  %v9960_v5 = vadd.f32 %v6886_v63, %v12688_v52  ;;  %v6888_v24 = vpop.f32.mrb[181].mxu0  ;;  %v10535_v21 = vld [vmem:[%s12888_s4 + $0x200] sm:$0xff]  }
 0x752   :  { %6982 = vst [vmem:[#allocation6 + $0x18] sm:$0x7e] %v6950_v2  ;;  %v9961_v26 = vadd.f32 %v6888_v24, %v12692_v40  ;;  %v6890_v36 = vpop.f32.mrb[182].mxu0 }
 0x753   :  { %v6919_v19 = vmax.f32 %v9960_v5, 0.0  ;;  %v9962_v23 = vadd.f32 %v6890_v36, %v12688_v52  ;;  %v6892_v6 = vpop.f32.mrb[183].mxu0 }
 0x754   :  { %v6920_v22 = vmax.f32 %v9961_v26, 0.0  ;;  %v9963_v11 = vadd.f32 %v6892_v6, %v12692_v40 }
 0x755   :  { %v6951_v51 = vrot.slane %v6919_v19, 7  ;;  %v6921_v38 = vmax.f32 %v9962_v23, 0.0 }
 0x756   :  { %v6995_v31 = vld [vmem:[#allocation6] sm:$0x3f]  ;;  %v6952_v55 = vrot.slane %v6920_v22, 7  ;;  %v6922_v28 = vmax.f32 %v9963_v11, 0.0 }
 0x757   :  { %v7027_v58 = vld [vmem:[#allocation6] sm:$0x7e]  ;;  %7011 = vst [vmem:[#allocation7] sm:$0x3f] %v6995_v31  ;;  %6983 = vst [vmem:[#allocation6 + $0x20] sm:$0x7e] %v6951_v51 }
 0x758   :  { %v7107_v61 = vld [vmem:[#allocation6] sm:$0xfc]  ;;  %v7059_v50 = vrot.slane %v7027_v58, 1  ;;  %v6953_v43 = vrot.slane %v6921_v38, 7  ;;  %v6996_v44 = vld [vmem:[#allocation6 + $0x8] sm:$0x3f] }
 0x759   :  { %v7139_v15 = vrot.slane %v7107_v61, 2  ;;  %v6997_v59 = vld [vmem:[#allocation6 + $0x10] sm:$0x3f]  ;;  %7012 = vst [vmem:[#allocation7 + $0x8] sm:$0x3f] %v6996_v44  ;;  %v6896_v8 = vpop.f32.mrb[184].mxu0 }
 0x75a   :  { %v7029_v53 = vld [vmem:[#allocation6 + $0x10] sm:$0x7e]  ;;  %7091 = vst [vmem:[#allocation7 + $0x10] sm:$0x3f] %v7059_v50  ;;  %7013 = vst [vmem:[#allocation7 + $0x30] sm:$0x3f] %v6997_v59  ;;  %v9964_v54 = vadd.f32 %v6896_v8, %v12688_v52 }
 0x75b   :  { %v7109_v3 = vld [vmem:[#allocation6 + $0x10] sm:$0xfc]  ;;  %7171 = vst [vmem:[#allocation7 + $0x20] sm:$0x3f] %v7139_v15  ;;  %v7061_v9 = vrot.slane %v7029_v53, 1  ;;  %v6898_v37 = vpop.f32.mrb[185].mxu0 }
 0x75c   :  { %v7141_v10 = vrot.slane %v7109_v3, 2  ;;  %6984 = vst [vmem:[#allocation6 + $0x28] sm:$0x7e] %v6952_v55  ;;  %6985 = vst [vmem:[#allocation6 + $0x30] sm:$0x7e] %v6953_v43  ;;  %v6954_v42 = vrot.slane %v6922_v28, 7  ;;  %v9965_v39 = vadd.f32 %v6898_v37, %v12692_v40 }
 0x75d   :  { %v6998_v29 = vld [vmem:[#allocation6 + $0x18] sm:$0x3f]  ;;  %v7028_v56 = vld [vmem:[#allocation6 + $0x8] sm:$0x7e]  ;;  %7093 = vst [vmem:[#allocation7 + $0x40] sm:$0x3f] %v7061_v9 }
 0x75e   :  { %7014 = vst [vmem:[#allocation7 + $0x38] sm:$0x3f] %v6998_v29  ;;  %v7030_v1 = vld [vmem:[#allocation6 + $0x18] sm:$0x7e]  ;;  %7173 = vst [vmem:[#allocation7 + $0x50] sm:$0x3f] %v7141_v10 }
 0x75f   :  { %v6900_v12 = vpop.f32.mrb[186].mxu0  ;;  %v7060_v49 = vrot.slane %v7028_v56, 1  ;;  %v7062_v14 = vrot.slane %v7030_v1, 1  ;;  %v7108_v34 = vld [vmem:[#allocation6 + $0x8] sm:$0xfc]  ;;  %v6923_v27 = vmax.f32 %v9964_v54, 0.0 }
 0x760   :  { %v9966_v48 = vadd.f32 %v6900_v12, %v12688_v52  ;;  %v6902_v25 = vpop.f32.mrb[187].mxu0  ;;  %v7110_v0 = vld [vmem:[#allocation6 + $0x18] sm:$0xfc]  ;;  %v7140_v35 = vrot.slane %v7108_v34, 2  ;;  %6986 = vst [vmem:[#allocation6 + $0x38] sm:$0x7e] %v6954_v42 }
 0x761   :  { %v6924_v13 = vmax.f32 %v9965_v39, 0.0  ;;  %v9967_v30 = vadd.f32 %v6902_v25, %v12692_v40  ;;  %7092 = vst [vmem:[#allocation7 + $0x18] sm:$0x3f] %v7060_v49  ;;  %7094 = vst [vmem:[#allocation7 + $0x48] sm:$0x3f] %v7062_v14  ;;  %v7142_v41 = vrot.slane %v7110_v0, 2 }
 0x762   :  { %v7031_v16 = vld [vmem:[#allocation6 + $0x20] sm:$0x7e]  ;;  %v6955_v17 = vrot.slane %v6923_v27, 7  ;;  %v6925_v45 = vmax.f32 %v9966_v48, 0.0  ;;  %7172 = vst [vmem:[#allocation7 + $0x28] sm:$0x3f] %v7140_v35 }
 0x763   :  { %v7111_v62 = vld [vmem:[#allocation6 + $0x20] sm:$0xfc]  ;;  %v7063_v60 = vrot.slane %v7031_v16, 1  ;;  %v6956_v33 = vrot.slane %v6924_v13, 7  ;;  %v6926_v57 = vmax.f32 %v9967_v30, 0.0  ;;  %v7188_v4 = vld [vmem:[#allocation7 + $0x8] sm:$0xff] }
 0x764   :  { %v7143_v7 = vrot.slane %v7111_v62, 2  ;;  %7174 = vst [vmem:[#allocation7 + $0x58] sm:$0x3f] %v7142_v41  ;;  %v7033_v47 = vld [vmem:[#allocation6 + $0x30] sm:$0x7e]  ;;  %v6957_v32 = vrot.slane %v6925_v45, 7 }
 0x765   :  { %v7113_v18 = vld [vmem:[#allocation6 + $0x30] sm:$0xfc]  ;;  %6987 = vst [vmem:[#allocation6 + $0x40] sm:$0x7e] %v6955_v17  ;;  %v6906_v46 = vpop.f32.mrb[188].mxu0  ;;  %v7065_v2 = vrot.slane %v7033_v47, 1 }
 0x766   :  { %7095 = vst [vmem:[#allocation7 + $0x70] sm:$0x3f] %v7063_v60  ;;  %7175 = vst [vmem:[#allocation7 + $0x80] sm:$0x3f] %v7143_v7  ;;  %v7145_v63 = vrot.slane %v7113_v18, 2  ;;  %v6958_v5 = vrot.slane %v6926_v57, 7  ;;  %v9968_v24 = vadd.f32 %v6906_v46, %v12688_v52 }
 0x767   :  { %6988 = vst [vmem:[#allocation6 + $0x48] sm:$0x7e] %v6956_v33  ;;  %v6908_v26 = vpop.f32.mrb[189].mxu0  ;;  %v7194_v36 = vld [vmem:[#allocation7 + $0x38] sm:$0xff]  ;;  %v7193_v19 = vld [vmem:[#allocation7 + $0x30] sm:$0xff]  ;;  %v7187_v51 = vld [vmem:[#allocation7] sm:$0xff] }
 0x768   :  { %6989 = vst [vmem:[#allocation6 + $0x50] sm:$0x7e] %v6957_v32  ;;  %v9969_v23 = vadd.f32 %v6908_v26, %v12692_v40  ;;  %v6910_v6 = vpop.f32.mrb[190].mxu0  ;;  %v7236_v22 = vpack.c.bf16 %v7194_v36, %v7188_v4  ;;  %v7000_v38 = vld [vmem:[#allocation6 + $0x28] sm:$0x3f]  ;;  %v6927_v31 = vmax.f32 %v9968_v24, 0.0  ;;  %v7235_v50 = vpack.c.bf16 %v7193_v19, %v7187_v51 }
 0x769   :  { %v6999_v11 = vld [vmem:[#allocation6 + $0x20] sm:$0x3f]  ;;  %7097 = vst [vmem:[#allocation7 + $0xa0] sm:$0x3f] %v7065_v2  ;;  %7177 = vst [vmem:[#allocation7 + $0xb0] sm:$0x3f] %v7145_v63  ;;  %v9970_v58 = vadd.f32 %v6910_v6, %v12688_v52 }
 0x76a   :  { %6990 = vst [vmem:[#allocation6 + $0x58] sm:$0x7e] %v6958_v5  ;;  %v6912_v61 = vpop.f32.mrb[191].mxu0  ;;  %v10536_v15 = vld [vmem:[%s12888_s4 + $0x248] sm:$0xff]   ;;  %7016 = vst [vmem:[#allocation7 + $0x68] sm:$0x3f] %v7000_v38  ;;  %7681 = vmatprep.mubr.bf16.mxu1 %v7236_v22 }
 0x76b   :  { %v7001_v55 = vld [vmem:[#allocation6 + $0x30] sm:$0x3f]  ;;  %7015 = vst [vmem:[#allocation7 + $0x60] sm:$0x3f] %v6999_v11  ;;  %v6928_v43 = vmax.f32 %v9969_v23, 0.0  ;;  %v9971_v44 = vadd.f32 %v6912_v61, %v12692_v40  ;;  %v6959_v53 = vrot.slane %v6927_v31, 7  ;;  %7682 = vmatmul.mubr.bf16.vlgmr.msra.gmra.mrb[240].mxu1 %v7235_v50 }
 0x76c   :  { %v7002_v59 = vld [vmem:[#allocation6 + $0x38] sm:$0x3f]  ;;  %7017 = vst [vmem:[#allocation7 + $0x90] sm:$0x3f] %v7001_v55  ;;  %v6929_v3 = vmax.f32 %v9970_v58, 0.0  ;;  %9711 = vmatpush3.bf16.msra.mxu1 %v10535_v21  ;;  %v10537_v8 = vld [vmem:[%s12888_s4 + $0x208] sm:$0xff]  }
 0x76d   :  { %7018 = vst [vmem:[#allocation7 + $0x98] sm:$0x3f] %v7002_v59  ;;  %v7032_v52 = vld [vmem:[#allocation6 + $0x28] sm:$0x7e]  ;;  %v7034_v9 = vld [vmem:[#allocation6 + $0x38] sm:$0x7e]  ;;  %9712 = vmatprep.subr.bf16.mxu1 %v10536_v15 }
 0x76e   :  { %v6960_v10 = vrot.slane %v6928_v43, 7  ;;  %v6930_v28 = vmax.f32 %v9971_v44, 0.0  ;;  %v7064_v29 = vrot.slane %v7032_v52, 1  ;;  %v7066_v54 = vrot.slane %v7034_v9, 1  ;;  %v7035_v37 = vld [vmem:[#allocation6 + $0x40] sm:$0x7e] }
 0x76f   :  { %v7115_v40 = vld [vmem:[#allocation6 + $0x40] sm:$0xfc]  ;;  %6991 = vst [vmem:[#allocation6 + $0x60] sm:$0x7e] %v6959_v53  ;;  %v6961_v56 = vrot.slane %v6929_v3, 7  ;;  %v10538_v1 = vld [vmem:[%s12888_s4 + $0x250] sm:$0xff]  }
 0x770   :  { %v7067_v42 = vrot.slane %v7035_v37, 1  ;;  %v7147_v39 = vrot.slane %v7115_v40, 2  ;;  %6992 = vst [vmem:[#allocation6 + $0x68] sm:$0x7e] %v6960_v10  ;;  %v6962_v12 = vrot.slane %v6930_v28, 7  ;;  %9713 = vmatpush3.bf16.msra.mxu1 %v10537_v8  ;;  %v10539_v0 = vld [vmem:[%s12888_s4 + $0x210] sm:$0xff]  }
 0x771   :  { %v7004_v49 = vld [vmem:[#allocation6 + $0x48] sm:$0x3f]  ;;  %7096 = vst [vmem:[#allocation7 + $0x78] sm:$0x3f] %v7064_v29  ;;  %7098 = vst [vmem:[#allocation7 + $0xa8] sm:$0x3f] %v7066_v54  ;;  %9714 = vmatprep.subr.bf16.mxu1 %v10538_v1 }
 0x772   :  { %v7037_v14 = vld [vmem:[#allocation6 + $0x50] sm:$0x7e]  ;;  %6993 = vst [vmem:[#allocation6 + $0x70] sm:$0x7e] %v6961_v56  ;;  %7020 = vst [vmem:[#allocation7 + $0xc8] sm:$0x3f] %v7004_v49 }
 0x773   :  { %v7117_v34 = vld [vmem:[#allocation6 + $0x50] sm:$0xfc]  ;;  %v7003_v27 = vld [vmem:[#allocation6 + $0x40] sm:$0x3f]  ;;  %7099 = vst [vmem:[#allocation7 + $0xd0] sm:$0x3f] %v7067_v42 }
 0x774   :  { %7179 = vst [vmem:[#allocation7 + $0xe0] sm:$0x3f] %v7147_v39  ;;  %v7069_v48 = vrot.slane %v7037_v14, 1  ;;  %v7149_v25 = vrot.slane %v7117_v34, 2  ;;  %6994 = vst [vmem:[#allocation6 + $0x78] sm:$0x7e] %v6962_v12  ;;  %9715 = vmatpush3.bf16.msra.mxu1 %v10539_v0 }
 0x775   :  { %v10540_v35 = vld [vmem:[%s12888_s4 + $0x258] sm:$0xff]   ;;  %7019 = vst [vmem:[#allocation7 + $0xc0] sm:$0x3f] %v7003_v27  ;;  %v7200_v30 = vld [vmem:[#allocation7 + $0x68] sm:$0xff]  ;;  %v7205_v41 = vld [vmem:[#allocation7 + $0x90] sm:$0xff] }
 0x776   :  { %v7006_v13 = vld [vmem:[#allocation6 + $0x58] sm:$0x3f]  ;;  %v7005_v16 = vld [vmem:[#allocation6 + $0x50] sm:$0x3f]  ;;  %7101 = vst [vmem:[#allocation7 + $0x100] sm:$0x3f] %v7069_v48  ;;  %9716 = vmatprep.subr.bf16.mxu1 %v10540_v35 }
 0x777   :  { %7022 = vst [vmem:[#allocation7 + $0xf8] sm:$0x3f] %v7006_v13  ;;  %7181 = vst [vmem:[#allocation7 + $0x110] sm:$0x3f] %v7149_v25  ;;  %v7206_v62 = vld [vmem:[#allocation7 + $0x98] sm:$0xff]  ;;  %v7199_v33 = vld [vmem:[#allocation7 + $0x60] sm:$0xff] }
 0x778   :  { %v10541_v17 = vld [vmem:[%s12888_s4 + $0x218] sm:$0xff]   ;;  %7021 = vst [vmem:[#allocation7 + $0xf0] sm:$0x3f] %v7005_v16  ;;  %v7036_v45 = vld [vmem:[#allocation6 + $0x48] sm:$0x7e]  ;;  %v7242_v7 = vpack.c.bf16 %v7206_v62, %v7200_v30  ;;  %v10542_v57 = vld [vmem:[%s12888_s4 + $0x260] sm:$0xff]   ;;  %v7241_v21 = vpack.c.bf16 %v7205_v41, %v7199_v33 }
 0x779   :  { %v7038_v60 = vld [vmem:[#allocation6 + $0x58] sm:$0x7e]  ;;  %v7068_v4 = vrot.slane %v7036_v45, 1  ;;  %v7112_v18 = vld [vmem:[#allocation6 + $0x28] sm:$0xfc]  ;;  %v10543_v38 = vld [vmem:[%s12888_s4 + $0x220] sm:$0xff]   ;;  %9717 = vmatpush3.bf16.msra.mxu1 %v10541_v17 }
 0x77a   :  { %v7070_v47 = vrot.slane %v7038_v60, 1  ;;  %v7039_v32 = vld [vmem:[#allocation6 + $0x60] sm:$0x7e]  ;;  %7689 = vmatprep.mubr.bf16.mxu1 %v7242_v7  ;;  %v7008_v24 = vld [vmem:[#allocation6 + $0x68] sm:$0x3f]  ;;  %v7144_v23 = vrot.slane %v7112_v18, 2  ;;  %9718 = vmatprep.subr.bf16.mxu1 %v10542_v57 }
 0x77b   :  { %v7119_v46 = vld [vmem:[#allocation6 + $0x60] sm:$0xfc]  ;;  %v7071_v63 = vrot.slane %v7039_v32, 1  ;;  %7100 = vst [vmem:[#allocation7 + $0xd8] sm:$0x3f] %v7068_v4  ;;  %7690 = vmatmul.mubr.bf16.gmra.mrb[244].mxu1 %v7241_v21  ;;  %v7212_v51 = vld [vmem:[#allocation7 + $0xc8] sm:$0xff] }
 0x77c   :  { %v7007_v2 = vld [vmem:[#allocation6 + $0x60] sm:$0x3f]  ;;  %v7151_v5 = vrot.slane %v7119_v46, 2  ;;  %7102 = vst [vmem:[#allocation7 + $0x108] sm:$0x3f] %v7070_v47  ;;  %v10544_v43 = vld [vmem:[%s12888_s4 + $0x268] sm:$0xff]  }
 0x77d   :  { %7023 = vst [vmem:[#allocation7 + $0x120] sm:$0x3f] %v7007_v2  ;;  %v7114_v26 = vld [vmem:[#allocation6 + $0x38] sm:$0xfc]  ;;  %v7041_v36 = vld [vmem:[#allocation6 + $0x70] sm:$0x7e]  ;;  %9719 = vmatpush3.bf16.msra.mxu1 %v10543_v38 }
 0x77e   :  { %v7121_v19 = vld [vmem:[#allocation6 + $0x70] sm:$0xfc]  ;;  %7024 = vst [vmem:[#allocation7 + $0x128] sm:$0x3f] %v7008_v24  ;;  %7103 = vst [vmem:[#allocation7 + $0x130] sm:$0x3f] %v7071_v63  ;;  %9720 = vmatprep.subr.bf16.mxu1 %v10544_v43 }
 0x77f   :  { %7183 = vst [vmem:[#allocation7 + $0x140] sm:$0x3f] %v7151_v5  ;;  %v7073_v6 = vrot.slane %v7041_v36, 1  ;;  %v7153_v22 = vrot.slane %v7121_v19, 2  ;;  %v7010_v11 = vld [vmem:[#allocation6 + $0x78] sm:$0x3f] }
 0x780   :  { %v7218_v31 = vld [vmem:[#allocation7 + $0xf8] sm:$0xff]  ;;  %7026 = vst [vmem:[#allocation7 + $0x158] sm:$0x3f] %v7010_v11  ;;  %v7009_v58 = vld [vmem:[#allocation6 + $0x70] sm:$0x3f]  ;;  %v7146_v50 = vrot.slane %v7114_v26, 2 }
 0x781   :  { %v7040_v61 = vld [vmem:[#allocation6 + $0x68] sm:$0x7e]  ;;  %7176 = vst [vmem:[#allocation7 + $0x88] sm:$0x3f] %v7144_v23  ;;  %7105 = vst [vmem:[#allocation7 + $0x160] sm:$0x3f] %v7073_v6  ;;  %v7248_v15 = vpack.c.bf16 %v7218_v31, %v7212_v51 }
 0x782   :  { %7185 = vst [vmem:[#allocation7 + $0x170] sm:$0x3f] %v7153_v22  ;;  %v7217_v55 = vld [vmem:[#allocation7 + $0xf0] sm:$0xff]  ;;  %7025 = vst [vmem:[#allocation7 + $0x150] sm:$0x3f] %v7009_v58  ;;  %v7072_v59 = vrot.slane %v7040_v61, 1 }
 0x783   :  { %v7042_v44 = vld [vmem:[#allocation6 + $0x78] sm:$0x7e]  ;;  %7178 = vst [vmem:[#allocation7 + $0xb8] sm:$0x3f] %v7146_v50  ;;  %v7116_v3 = vld [vmem:[#allocation6 + $0x48] sm:$0xfc]  ;;  %7697 = vmatprep.mubr.bf16.mxu1 %v7248_v15 }
 0x784   :  { %v7074_v53 = vrot.slane %v7042_v44, 1  ;;  %v7211_v52 = vld [vmem:[#allocation7 + $0xc0] sm:$0xff]  ;;  %7104 = vst [vmem:[#allocation7 + $0x138] sm:$0x3f] %v7072_v59  ;;  %v7118_v9 = vld [vmem:[#allocation6 + $0x58] sm:$0xfc] }
 0x785   :  { %v7148_v10 = vrot.slane %v7116_v3, 2  ;;  %v7247_v28 = vpack.c.bf16 %v7217_v55, %v7211_v52  ;;  %v10545_v8 = vld [vmem:[%s12888_s4 + $0x228] sm:$0xff]   ;;  %v7150_v29 = vrot.slane %v7118_v9, 2  ;;  %v10546_v54 = vld [vmem:[%s12888_s4 + $0x270] sm:$0xff]   ;;  %v7122_v40 = vld [vmem:[#allocation6 + $0x78] sm:$0xfc] }
 0x786   :  { %7106 = vst [vmem:[#allocation7 + $0x168] sm:$0x3f] %v7074_v53  ;;  %v7120_v37 = vld [vmem:[#allocation6 + $0x68] sm:$0xfc]  ;;  %v7154_v1 = vrot.slane %v7122_v40, 2  ;;  %9721 = vmatpush3.bf16.msra.mxu1 %v10545_v8  ;;  %v10547_v49 = vld [vmem:[%s12888_s4 + $0x230] sm:$0xff]  }
 0x787   :  { %7180 = vst [vmem:[#allocation7 + $0xe8] sm:$0x3f] %v7148_v10  ;;  %7698 = vmatmul.mubr.bf16.gmra.mrb[248].mxu1 %v7247_v28  ;;  %7182 = vst [vmem:[#allocation7 + $0x118] sm:$0x3f] %v7150_v29  ;;  %v7152_v56 = vrot.slane %v7120_v37, 2  ;;  %v7224_v42 = vld [vmem:[#allocation7 + $0x128] sm:$0xff]  ;;  %9722 = vmatprep.subr.bf16.mxu1 %v10546_v54 }
 0x788   :  { %v7230_v39 = vld [vmem:[#allocation7 + $0x158] sm:$0xff]  ;;  %7186 = vst [vmem:[#allocation7 + $0x178] sm:$0x3f] %v7154_v1  ;;  %v7196_v27 = vld [vmem:[#allocation7 + $0x48] sm:$0xff]  ;;  %v7223_v48 = vld [vmem:[#allocation7 + $0x120] sm:$0xff] }
 0x789   :  { %v7254_v12 = vpack.c.bf16 %v7230_v39, %v7224_v42  ;;  %7184 = vst [vmem:[#allocation7 + $0x148] sm:$0x3f] %v7152_v56  ;;  %v7229_v14 = vld [vmem:[#allocation7 + $0x150] sm:$0xff]  ;;  %v10548_v34 = vld [vmem:[%s12888_s4 + $0x278] sm:$0xff]   ;;  %v10550_v30 = vld [vmem:[%s12888_s4 + $0x2c0] sm:$0xff]  }
 0x78a   :  { %v7253_v25 = vpack.c.bf16 %v7229_v14, %v7223_v48  ;;  %9723 = vmatpush3.bf16.msra.mxu1 %v10547_v49  ;;  %v7190_v0 = vld [vmem:[#allocation7 + $0x18] sm:$0xff]  ;;  %v7195_v41 = vld [vmem:[#allocation7 + $0x40] sm:$0xff]  ;;  %v7208_v16 = vld [vmem:[#allocation7 + $0xa8] sm:$0xff] }
 0x78b   :  { %7705 = vmatprep.mubr.bf16.mxu1 %v7254_v12  ;;  %v10549_v35 = vld [vmem:[%s12888_s4 + $0x238] sm:$0xff]   ;;  %v7238_v13 = vpack.c.bf16 %v7196_v27, %v7190_v0  ;;  %9724 = vmatprep.subr.bf16.mxu1 %v10548_v34  ;;  %v7189_v62 = vld [vmem:[#allocation7 + $0x10] sm:$0xff]  ;;  %v10551_v17 = vld [vmem:[%s12888_s4 + $0x280] sm:$0xff]  }
 0x78c   :  { %v7237_v45 = vpack.c.bf16 %v7195_v41, %v7189_v62  ;;  %v7202_v60 = vld [vmem:[#allocation7 + $0x78] sm:$0xff]  ;;  %v10552_v7 = vld [vmem:[%s12888_s4 + $0x2c8] sm:$0xff]   ;;  %v10554_v4 = vld [vmem:[%s12888_s4 + $0x2d0] sm:$0xff]  }
 0x78d   :  { %v7244_v33 = vpack.c.bf16 %v7208_v16, %v7202_v60  ;;  %v10553_v57 = vld [vmem:[%s12888_s4 + $0x288] sm:$0xff]   ;;  %v7207_v47 = vld [vmem:[#allocation7 + $0xa0] sm:$0xff]  ;;  %v7201_v32 = vld [vmem:[#allocation7 + $0x70] sm:$0xff] }
 0x78e   :  { %9725 = vmatpush3.bf16.msra.mxu1 %v10549_v35  ;;  %v7220_v18 = vld [vmem:[#allocation7 + $0x108] sm:$0xff]  ;;  %v10555_v46 = vld [vmem:[%s12888_s4 + $0x290] sm:$0xff]   ;;  %v7243_v21 = vpack.c.bf16 %v7207_v47, %v7201_v32  ;;  %v7214_v2 = vld [vmem:[#allocation7 + $0xd8] sm:$0xff] }
 0x78f   :  { %7706 = vmatmul.mubr.bf16.gmra.mrb[252].mxu1 %v7253_v25  ;;  %9750 = vmatprep.subr.bf16.mxu1 %v10550_v30  ;;  %v10556_v63 = vld [vmem:[%s12888_s4 + $0x2d8] sm:$0xff]   ;;  %v7250_v5 = vpack.c.bf16 %v7220_v18, %v7214_v2  ;;  %v10558_v26 = vld [vmem:[%s12888_s4 + $0x2e0] sm:$0xff]   ;;  %v7232_v19 = vld [vmem:[#allocation7 + $0x168] sm:$0xff] }
 0x790   :  { %7746 = vmatprep.mubr.bf16.mxu1 %v7238_v13  ;;  %v10557_v24 = vld [vmem:[%s12888_s4 + $0x298] sm:$0xff]   ;;  %v7219_v36 = vld [vmem:[#allocation7 + $0x100] sm:$0xff]  ;;  %v7213_v23 = vld [vmem:[#allocation7 + $0xd0] sm:$0xff] }
 0x791   :  { %v10559_v6 = vld [vmem:[%s12888_s4 + $0x2a0] sm:$0xff]   ;;  %v7249_v22 = vpack.c.bf16 %v7219_v36, %v7213_v23  ;;  %v7226_v51 = vld [vmem:[#allocation7 + $0x138] sm:$0xff]  ;;  %v10560_v38 = vld [vmem:[%s12888_s4 + $0x2e8] sm:$0xff]  }
 0x792   :  { %v7256_v11 = vpack.c.bf16 %v7232_v19, %v7226_v51  ;;  %v10561_v31 = vld [vmem:[%s12888_s4 + $0x2a8] sm:$0xff]   ;;  %v10562_v58 = vld [vmem:[%s12888_s4 + $0x2f0] sm:$0xff]   ;;  %v7231_v61 = vld [vmem:[#allocation7 + $0x160] sm:$0xff] }
 0x793   :  { %v7198_v50 = vld [vmem:[#allocation7 + $0x58] sm:$0xff]  ;;  %v7225_v15 = vld [vmem:[#allocation7 + $0x130] sm:$0xff]  ;;  %v7192_v44 = vld [vmem:[#allocation7 + $0x28] sm:$0xff] }
 0x794   :  { %v10563_v55 = vld [vmem:[%s12888_s4 + $0x2b0] sm:$0xff]   ;;  %v7255_v43 = vpack.c.bf16 %v7231_v61, %v7225_v15  ;;  %v10564_v59 = vld [vmem:[%s12888_s4 + $0x2f8] sm:$0xff]   ;;  %v7240_v53 = vpack.c.bf16 %v7198_v50, %v7192_v44  ;;  %v7191_v10 = vld [vmem:[#allocation7 + $0x20] sm:$0xff] }
 0x795   :  { %v10565_v3 = vld [vmem:[%s12888_s4 + $0x2b8] sm:$0xff]   ;;  %v7197_v52 = vld [vmem:[#allocation7 + $0x50] sm:$0xff]  ;;  %v7204_v8 = vld [vmem:[#allocation7 + $0x88] sm:$0xff] }
 0x796   :  { %v7210_v9 = vld [vmem:[#allocation7 + $0xb8] sm:$0xff]  ;;  %v7239_v28 = vpack.c.bf16 %v7197_v52, %v7191_v10  ;;  %v7209_v54 = vld [vmem:[#allocation7 + $0xb0] sm:$0xff]  ;;  %v7203_v40 = vld [vmem:[#allocation7 + $0x80] sm:$0xff] }
 0x797   :  { %7747 = vmatmul.mubr.bf16.vlgmr.msra.gmra.mrb[0].mxu1 %v7237_v45  ;;  %v7246_v29 = vpack.c.bf16 %v7210_v9, %v7204_v8  ;;  %v7222_v37 = vld [vmem:[#allocation7 + $0x118] sm:$0xff]  ;;  %v7245_v56 = vpack.c.bf16 %v7209_v54, %v7203_v40  ;;  %v7216_v1 = vld [vmem:[#allocation7 + $0xe8] sm:$0xff]  ;;  %v7221_v39 = vld [vmem:[#allocation7 + $0x110] sm:$0xff] }
 0x798   :  { %7754 = vmatprep.mubr.bf16.mxu1 %v7244_v33  ;;  %9751 = vmatpush3.bf16.msra.mxu1 %v10551_v17  ;;  %v7252_v42 = vpack.c.bf16 %v7222_v37, %v7216_v1  ;;  %v7234_v12 = vld [vmem:[#allocation7 + $0x178] sm:$0xff]  ;;  %v7215_v49 = vld [vmem:[#allocation7 + $0xe0] sm:$0xff]  ;;  %v7228_v34 = vld [vmem:[#allocation7 + $0x148] sm:$0xff] }
 0x799   :  { %9752 = vmatprep.subr.bf16.mxu1 %v10552_v7  ;;  %v7251_v14 = vpack.c.bf16 %v7221_v39, %v7215_v49  ;;  %v7258_v27 = vpack.c.bf16 %v7234_v12, %v7228_v34  ;;  %v7233_v48 = vld [vmem:[#allocation7 + $0x170] sm:$0xff]  ;;  %v7227_v25 = vld [vmem:[#allocation7 + $0x140] sm:$0xff]  ;;  %v10568_v30 = vld [vmem:[%s12889_s6 + $0x48] sm:$0xff]  }
 0x79a   :  { %v7257_v0 = vpack.c.bf16 %v7233_v48, %v7227_v25  ;;  %v10566_v35 = vld [vmem:[%s12889_s6 + $0x40] sm:$0xff]   ;;  %v10569_v41 = vld [vmem:[%s12889_s6 + $0x8] sm:$0xff]   ;;  %v10570_v16 = vld [vmem:[%s12889_s6 + $0x50] sm:$0xff]  }
 0x79b   :  { %v10567_v13 = vld [vmem:[%s12889_s6] sm:$0xff]   ;;  %9790 = vmatprep.subr.bf16.mxu0 %v10566_v35  ;;  %v10571_v62 = vld [vmem:[%s12889_s6 + $0x10] sm:$0xff]   ;;  %v10572_v17 = vld [vmem:[%s12889_s6 + $0x58] sm:$0xff]  }
 0x79c   :  { %9753 = vmatpush3.bf16.msra.mxu1 %v10553_v57  ;;  %9791 = vmatpush3.bf16.msra.mxu0 %v10567_v13  ;;  %v10573_v45 = vld [vmem:[%s12889_s6 + $0x18] sm:$0xff]   ;;  %v10574_v60 = vld [vmem:[%s12889_s6 + $0x60] sm:$0xff]   ;;  %v10576_v33 = vld [vmem:[%s12889_s6 + $0x68] sm:$0xff]  }
 0x79d   :  { %9754 = vmatprep.subr.bf16.mxu1 %v10554_v4  ;;  %9792 = vmatprep.subr.bf16.mxu0 %v10568_v30  ;;  %v10575_v7 = vld [vmem:[%s12889_s6 + $0x20] sm:$0xff]   ;;  %v10577_v57 = vld [vmem:[%s12889_s6 + $0x28] sm:$0xff]   ;;  %v10578_v4 = vld [vmem:[%s12889_s6 + $0x70] sm:$0xff]  }
 0x79e   :  { %v10579_v47 = vld [vmem:[%s12889_s6 + $0x30] sm:$0xff]   ;;  %v10580_v18 = vld [vmem:[%s12889_s6 + $0x78] sm:$0xff]  }
 0x79f   :  { %7755 = vmatmul.mubr.bf16.gmra.mrb[4].mxu1 %v7243_v21  ;;  %v10581_v32 = vld [vmem:[%s12889_s6 + $0x38] sm:$0xff]  }
 0x7a0   :  { %7762 = vmatprep.mubr.bf16.mxu1 %v7250_v5  ;;  %9755 = vmatpush3.bf16.msra.mxu1 %v10555_v46 }
 0x7a1   :  { %9756 = vmatprep.subr.bf16.mxu1 %v10556_v63  ;;  %9793 = vmatpush3.bf16.msra.mxu0 %v10569_v41 }
 0x7a2   :  { %9794 = vmatprep.subr.bf16.mxu0 %v10570_v16 }
 0x7a4   :  { %9757 = vmatpush3.bf16.msra.mxu1 %v10557_v24 }
 0x7a5   :  { %9758 = vmatprep.subr.bf16.mxu1 %v10558_v26  ;;  %9795 = vmatpush3.bf16.msra.mxu0 %v10571_v62 }
 0x7a6   :  { %9796 = vmatprep.subr.bf16.mxu0 %v10572_v17 }
 0x7a7   :  { %7763 = vmatmul.mubr.bf16.gmra.mrb[8].mxu1 %v7249_v22 }
 0x7a8   :  { %7770 = vmatprep.mubr.bf16.mxu1 %v7256_v11  ;;  %9759 = vmatpush3.bf16.msra.mxu1 %v10559_v6 }
 0x7a9   :  { %9760 = vmatprep.subr.bf16.mxu1 %v10560_v38  ;;  %9797 = vmatpush3.bf16.msra.mxu0 %v10573_v45 }
 0x7aa   :  { %9798 = vmatprep.subr.bf16.mxu0 %v10574_v60 }
 0x7ac   :  { %9761 = vmatpush3.bf16.msra.mxu1 %v10561_v31 }
 0x7ad   :  { %9762 = vmatprep.subr.bf16.mxu1 %v10562_v58  ;;  %9799 = vmatpush3.bf16.msra.mxu0 %v10575_v7 }
 0x7ae   :  { %9800 = vmatprep.subr.bf16.mxu0 %v10576_v33 }
 0x7af   :  { %7771 = vmatmul.mubr.bf16.gmra.mrb[12].mxu1 %v7255_v43 }
 0x7b0   :  { %9763 = vmatpush3.bf16.msra.mxu1 %v10563_v55  ;;  %7811 = vmatprep.mubr.bf16.mxu1 %v7240_v53  ;;  %v8908_v53 = vld [vmem:[%s12886_s5 + $0xb] ss:$0 sm:$0xff] }
 0x7b1   :  { %9764 = vmatprep.subr.bf16.mxu1 %v10564_v59  ;;  %9801 = vmatpush3.bf16.msra.mxu0 %v10577_v57 }
 0x7b2   :  { %9802 = vmatprep.subr.bf16.mxu0 %v10578_v4 }
 0x7b4   :  { %9765 = vmatpush3.bf16.msra.mxu1 %v10565_v3 }
 0x7b5   :  { %9803 = vmatpush3.bf16.msra.mxu0 %v10579_v47 }
 0x7b6   :  { %9804 = vmatprep.subr.bf16.mxu0 %v10580_v18 }
 0x7b7   :  { %7812 = vmatmul.mubr.bf16.vlgmr.msra.gmra.mrb[16].mxu1 %v7239_v28 }
 0x7b8   :  { %7819 = vmatprep.mubr.bf16.mxu1 %v7246_v29 }
 0x7b9   :  { %9805 = vmatpush3.bf16.msra.mxu0 %v10581_v32 }
 0x7bf   :  { %7820 = vmatmul.mubr.bf16.gmra.mrb[20].mxu1 %v7245_v56 }
 0x7c0   :  { %7827 = vmatprep.mubr.bf16.mxu1 %v7252_v42 }
 0x7c7   :  { %7828 = vmatmul.mubr.bf16.gmra.mrb[24].mxu1 %v7251_v14 }
 0x7c8   :  { %7835 = vmatprep.mubr.bf16.mxu1 %v7258_v27 }
 0x7cf   :  { %7836 = vmatmul.mubr.bf16.gmra.mrb[28].mxu1 %v7257_v0 }
 0x83e   :  { %v9686_v46 = vpop.f32.mrb[240].mxu1 }
 0x83f   :  { %v9687_v21 = vpop.f32.mrb[241].mxu1 }
 0x840   :  { %v9688_v2 = vadd.f32 %v9687_v21, %v9686_v46  ;;  %v9689_v63 = vpop.f32.mrb[242].mxu1 }
 0x841   :  { %v9690_v5 = vpop.f32.mrb[243].mxu1 }
 0x842   :  { %v9691_v24 = vadd.f32 %v9690_v5, %v9689_v63  ;;  %v7684_v9 = vadd.f32 %v9688_v2, %v8908_v53 }
 0x844   :  { %v7687_v29 = vadd.f32 %v9691_v24, %v8908_v53 }
 0x84e   :  { %v9692_v26 = vpop.f32.mrb[244].mxu1 }
 0x84f   :  { %v9693_v36 = vpop.f32.mrb[245].mxu1 }
 0x850   :  { %v9694_v19 = vadd.f32 %v9693_v36, %v9692_v26  ;;  %v9695_v23 = vpop.f32.mrb[246].mxu1 }
 0x851   :  { %v9696_v6 = vpop.f32.mrb[247].mxu1 }
 0x852   :  { %v9697_v22 = vadd.f32 %v9696_v6, %v9695_v23  ;;  %v7692_v42 = vadd.f32 %v9694_v19, %v8908_v53 }
 0x854   :  { %v7695_v14 = vadd.f32 %v9697_v22, %v8908_v53 }
 0x85a   :  { %v9698_v51 = vpop.f32.mrb[248].mxu1 }
 0x85b   :  { %v9699_v38 = vpop.f32.mrb[249].mxu1 }
 0x85c   :  { %v9700_v11 = vadd.f32 %v9699_v38, %v9698_v51  ;;  %v9701_v31 = vpop.f32.mrb[250].mxu1 }
 0x85d   :  { %v9702_v58 = vpop.f32.mrb[251].mxu1 }
 0x85e   :  { %v9703_v61 = vadd.f32 %v9702_v58, %v9701_v31  ;;  %v7700_v35 = vadd.f32 %v9700_v11, %v8908_v53 }
 0x860   :  { %v7703_v16 = vadd.f32 %v9703_v61, %v8908_v53 }
 0x862   :  { %v9704_v50 = vpop.f32.mrb[252].mxu1 }
 0x863   :  { %v9705_v15 = vpop.f32.mrb[253].mxu1 }
 0x864   :  { %v9706_v55 = vadd.f32 %v9705_v15, %v9704_v50  ;;  %v9707_v43 = vpop.f32.mrb[254].mxu1 }
 0x865   :  { %v9708_v44 = vpop.f32.mrb[255].mxu1 }
 0x866   :  { %v9709_v59 = vadd.f32 %v9708_v44, %v9707_v43  ;;  %v7708_v33 = vadd.f32 %v9706_v55, %v8908_v53 }
 0x868   :  { %v7711_v18 = vadd.f32 %v9709_v59, %v8908_v53 }
 0x86a   :  { %v9726_v3 = vpop.f32.mrb[0].mxu1 }
 0x86b   :  { %v9727_v52 = vpop.f32.mrb[1].mxu1 }
 0x86c   :  { %v9728_v10 = vadd.f32 %v9727_v52, %v9726_v3  ;;  %v9729_v28 = vpop.f32.mrb[2].mxu1 }
 0x86d   :  { %v9730_v8 = vpop.f32.mrb[3].mxu1 }
 0x86e   :  { %v7749_v54 = vadd.f32 %v9728_v10, %v7684_v9  ;;  %v9731_v37 = vadd.f32 %v9730_v8, %v9729_v28 }
 0x870   :  { %v7752_v40 = vadd.f32 %v9731_v37, %v7687_v29 }
 0x872   :  { %v9732_v56 = vpop.f32.mrb[4].mxu1 }
 0x873   :  { %v9733_v1 = vpop.f32.mrb[5].mxu1 }
 0x874   :  { %v9734_v39 = vadd.f32 %v9733_v1, %v9732_v56  ;;  %v9735_v12 = vpop.f32.mrb[6].mxu1 }
 0x875   :  { %v9736_v49 = vpop.f32.mrb[7].mxu1 }
 0x876   :  { %v7757_v34 = vadd.f32 %v9734_v39, %v7692_v42  ;;  %v9737_v27 = vadd.f32 %v9736_v49, %v9735_v12 }
 0x878   :  { %v7760_v48 = vadd.f32 %v9737_v27, %v7695_v14 }
 0x87a   :  { %v9738_v25 = vpop.f32.mrb[8].mxu1 }
 0x87b   :  { %v9739_v0 = vpop.f32.mrb[9].mxu1 }
 0x87c   :  { %v9740_v13 = vadd.f32 %v9739_v0, %v9738_v25  ;;  %v9741_v30 = vpop.f32.mrb[10].mxu1 }
 0x87d   :  { %v9742_v41 = vpop.f32.mrb[11].mxu1 }
 0x87e   :  { %v7765_v62 = vadd.f32 %v9740_v13, %v7700_v35  ;;  %v9743_v17 = vadd.f32 %v9742_v41, %v9741_v30 }
 0x880   :  { %v7768_v45 = vadd.f32 %v9743_v17, %v7703_v16 }
 0x882   :  { %v9744_v60 = vpop.f32.mrb[12].mxu1 }
 0x883   :  { %v9745_v7 = vpop.f32.mrb[13].mxu1 }
 0x884   :  { %v9746_v57 = vadd.f32 %v9745_v7, %v9744_v60  ;;  %v9747_v4 = vpop.f32.mrb[14].mxu1 }
 0x885   :  { %v9748_v47 = vpop.f32.mrb[15].mxu1 }
 0x886   :  { %v12854_v32 = vadd.f32 %v9746_v57, %v7708_v33  ;;  %v9749_v46 = vadd.f32 %v9748_v47, %v9747_v4 }
 0x888   :  { %v12856_v21 = vadd.f32 %v9749_v46, %v7711_v18 }
 0x88a   :  { %v9766_v2 = vpop.f32.mrb[16].mxu1 }
 0x88b   :  { %v9767_v63 = vpop.f32.mrb[17].mxu1 }
 0x88c   :  { %v9768_v5 = vadd.f32 %v9767_v63, %v9766_v2  ;;  %v9769_v24 = vpop.f32.mrb[18].mxu1 }
 0x88d   :  { %v9770_v26 = vpop.f32.mrb[19].mxu1 }
 0x88e   :  { %v7814_v36 = vadd.f32 %v9768_v5, %v7749_v54  ;;  %v9771_v19 = vadd.f32 %v9770_v26, %v9769_v24 }
 0x890   :  { %v7844_v23 = vmax.f32 %v7814_v36, 0.0  ;;  %v7817_v6 = vadd.f32 %v9771_v19, %v7752_v40 }
 0x892   :  { %v7852_v22 = vsel %vm4034_vm1, %v7844_v23, -inf  ;;  %v7845_v51 = vmax.f32 %v7817_v6, 0.0  ;;  %v9772_v38 = vpop.f32.mrb[20].mxu1 }
 0x893   :  { %v7853_v11 = vrot.slane %v7852_v22, 4  ;;  %v9773_v31 = vpop.f32.mrb[21].mxu1 }
 0x894   :  { %v7859_v58 = vsel %vm4034_vm1, %v7845_v51, -inf  ;;  %v9774_v61 = vadd.f32 %v9773_v31, %v9772_v38  ;;  %v9775_v50 = vpop.f32.mrb[22].mxu1 }
 0x895   :  { %v7854_v15 = vmax.f32 %v7852_v22, %v7853_v11  ;;  %v7860_v55 = vrot.slane %v7859_v58, 4  ;;  %v9776_v43 = vpop.f32.mrb[23].mxu1 }
 0x896   :  { %v7822_v44 = vadd.f32 %v9774_v61, %v7757_v34  ;;  %v9777_v59 = vadd.f32 %v9776_v43, %v9775_v50 }
 0x897   :  { %v7855_v53 = vrot.slane %v7854_v15, 2  ;;  %v7861_v3 = vmax.f32 %v7859_v58, %v7860_v55 }
 0x898   :  { %v7846_v52 = vmax.f32 %v7822_v44, 0.0  ;;  %v7825_v9 = vadd.f32 %v9777_v59, %v7760_v48 }
 0x899   :  { %v7856_v10 = vmax.f32 %v7854_v15, %v7855_v53  ;;  %v7862_v28 = vrot.slane %v7861_v3, 2 }
 0x89a   :  { %v7866_v8 = vsel %vm4034_vm1, %v7846_v52, -inf  ;;  %v7847_v29 = vmax.f32 %v7825_v9, 0.0  ;;  %v9778_v54 = vpop.f32.mrb[24].mxu1 }
 0x89b   :  { %v7857_v37 = vrot.slane %v7856_v10, 1  ;;  %v7863_v40 = vmax.f32 %v7861_v3, %v7862_v28  ;;  %v7867_v56 = vrot.slane %v7866_v8, 4  ;;  %v9779_v1 = vpop.f32.mrb[25].mxu1 }
 0x89c   :  { %v7873_v42 = vsel %vm4034_vm1, %v7847_v29, -inf  ;;  %v9780_v39 = vadd.f32 %v9779_v1, %v9778_v54  ;;  %v9781_v12 = vpop.f32.mrb[26].mxu1 }
 0x89d   :  { %v7864_v49 = vrot.slane %v7863_v40, 1  ;;  %v7868_v14 = vmax.f32 %v7866_v8, %v7867_v56  ;;  %v7874_v34 = vrot.slane %v7873_v42, 4  ;;  %v9782_v27 = vpop.f32.mrb[27].mxu1  ;;  %v7858_v0 = vmax.f32 %v7856_v10, %v7857_v37 }
 0x89e   :  { %v7830_v25 = vadd.f32 %v9780_v39, %v7765_v62  ;;  %v9783_v48 = vadd.f32 %v9782_v27, %v9781_v12  ;;  %v7947_v27 = vpack.c.bf16 %v12317_v20, %v12317_v20 }
 0x89f   :  { %v7865_v35 = vmax.f32 %v7863_v40, %v7864_v49  ;;  %v7869_v13 = vrot.slane %v7868_v14, 2  ;;  %v7875_v30 = vmax.f32 %v7873_v42, %v7874_v34 }
 0x8a0   :  { %v7848_v41 = vmax.f32 %v7830_v25, 0.0  ;;  %v7833_v16 = vadd.f32 %v9783_v48, %v7768_v45  ;;  %v8957_v48 = vld [vmem:[%s12890_s7] ss:$0 sm:$0xff] }
 0x8a1   :  { %v7939_v17 = vsel %vm7916_vm2, %v7865_v35, %v7858_v0  ;;  %v7870_v60 = vmax.f32 %v7868_v14, %v7869_v13  ;;  %v7876_v7 = vrot.slane %v7875_v30, 2 }
 0x8a2   :  { %v7880_v33 = vsel %vm4034_vm1, %v7848_v41, -inf  ;;  %v7849_v57 = vmax.f32 %v7833_v16, 0.0  ;;  %v9784_v4 = vpop.f32.mrb[28].mxu1 }
 0x8a3   :  { %v7871_v47 = vrot.slane %v7870_v60, 1  ;;  %v7877_v18 = vmax.f32 %v7875_v30, %v7876_v7  ;;  %v7881_v46 = vrot.slane %v7880_v33, 4  ;;  %v9785_v2 = vpop.f32.mrb[29].mxu1 }
 0x8a4   :  { %v7887_v62 = vsel %vm4034_vm1, %v7849_v57, -inf  ;;  %v9786_v63 = vadd.f32 %v9785_v2, %v9784_v4  ;;  %v9787_v5 = vpop.f32.mrb[30].mxu1 }
 0x8a5   :  { %v7872_v24 = vmax.f32 %v7870_v60, %v7871_v47  ;;  %v7878_v26 = vrot.slane %v7877_v18, 1  ;;  %v7882_v36 = vmax.f32 %v7880_v33, %v7881_v46  ;;  %v7888_v45 = vrot.slane %v7887_v62, 4  ;;  %v9788_v19 = vpop.f32.mrb[31].mxu1 }
 0x8a6   :  { %v7838_v23 = vadd.f32 %v9786_v63, %v12854_v32  ;;  %v9789_v6 = vadd.f32 %v9788_v19, %v9787_v5 }
 0x8a7   :  { %v7940_v22 = vsel %vm7918_vm3, %v7872_v24, %v7939_v17  ;;  %v7879_v51 = vmax.f32 %v7877_v18, %v7878_v26  ;;  %v7883_v38 = vrot.slane %v7882_v36, 2  ;;  %v7889_v11 = vmax.f32 %v7887_v62, %v7888_v45 }
 0x8a8   :  { %v7850_v31 = vmax.f32 %v7838_v23, 0.0  ;;  %v7841_v58 = vadd.f32 %v9789_v6, %v12856_v21 }
 0x8a9   :  { %v7884_v61 = vmax.f32 %v7882_v36, %v7883_v38  ;;  %v7890_v50 = vrot.slane %v7889_v11, 2  ;;  %v7941_v15 = vsel %vm7920_vm4, %v7879_v51, %v7940_v22 }
 0x8aa   :  { %v7894_v55 = vsel %vm4034_vm1, %v7850_v31, -inf  ;;  %v7851_v43 = vmax.f32 %v7841_v58, 0.0 }
 0x8ab   :  { %v7885_v44 = vrot.slane %v7884_v61, 1  ;;  %v7891_v59 = vmax.f32 %v7889_v11, %v7890_v50  ;;  %v7895_v53 = vrot.slane %v7894_v55, 4 }
 0x8ac   :  { %v7901_v32 = vsel %vm4034_vm1, %v7851_v43, -inf }
 0x8ad   :  { %v7886_v3 = vmax.f32 %v7884_v61, %v7885_v44  ;;  %v7892_v52 = vrot.slane %v7891_v59, 1  ;;  %v7896_v9 = vmax.f32 %v7894_v55, %v7895_v53  ;;  %v7902_v10 = vrot.slane %v7901_v32, 4 }
 0x8af   :  { %v7893_v28 = vmax.f32 %v7891_v59, %v7892_v52  ;;  %v7897_v8 = vrot.slane %v7896_v9, 2  ;;  %v7903_v29 = vmax.f32 %v7901_v32, %v7902_v10  ;;  %v7942_v21 = vsel %vm7922_vm5, %v7886_v3, %v7941_v15 }
 0x8b1   :  { %v7898_v54 = vmax.f32 %v7896_v9, %v7897_v8  ;;  %v7904_v37 = vrot.slane %v7903_v29, 2  ;;  %v7943_v40 = vsel %vm7924_vm6, %v7893_v28, %v7942_v21 }
 0x8b3   :  { %v7899_v56 = vrot.slane %v7898_v54, 1  ;;  %v7905_v1 = vmax.f32 %v7903_v29, %v7904_v37 }
 0x8b5   :  { %v7900_v42 = vmax.f32 %v7898_v54, %v7899_v56  ;;  %v7906_v39 = vrot.slane %v7905_v1, 1 }
 0x8b7   :  { %v7907_v12 = vmax.f32 %v7905_v1, %v7906_v39  ;;  %v7944_v49 = vsel %vm7926_vm7, %v7900_v42, %v7943_v40 }
 0x8b9   :  { %v7945_v14 = vsel %vm7928_vm8, %v7907_v12, %v7944_v49 }
 0x8ba   :  { %v7948_v34 = vpack.c.bf16 %v7945_v14, %v7945_v14 }
 0x8bc   :  { %8116 = vmatprep.mubr.bf16.mxu0 %v7948_v34 }
 0x8bd   :  { %8117 = vmatmul.mubr.bf16.vlgmr.msra.gmra.mrb[192].mxu0 %v7947_v27 }
 0x990   :  { %v9806_v25 = vpop.f32.mrb[192].mxu0 }
 0x991   :  { %v9807_v0 = vpop.f32.mrb[193].mxu0 }
 0x992   :  { %v9808_v35 = vadd.f32 %v9807_v0, %v9806_v25  ;;  %v9809_v13 = vpop.f32.mrb[194].mxu0 }
 0x993   :  { %v9810_v30 = vpop.f32.mrb[195].mxu0 }
 0x994   :  { %v8119_v41 = vadd.f32 %v9808_v35, %v8957_v48 }
 0x996   :  { %8124 = vst [vmem:[%s12891_s8] sm:$0xff] %v8119_v41 }

</bundles_post_ra>
